<compile_context>
chip_gen: v7x
topology: tpu7x:2x2x1
jax: 0.10.0
libtpu: 0.0.40
codegen_flags: <defaults>
</compile_context>

<pallas_src>
import functools

import jax
import jax.numpy as jnp
import numpy as np
from jax.experimental import pallas as pl
from jax.experimental.pallas import tpu as pltpu


def _round_up(x, m):
    return ((x + m - 1) // m) * m


# ---------------------------------------------------------------------------
# Fused Pallas kernel: 2-layer biLSTM + mean over time + linear head
# ---------------------------------------------------------------------------
def _fused_bilstm_kernel(
    x_ref,                                   # [T*Bp, E]
    wih0_ref, b0_ref,                        # [E, 8Hp], [1, 8Hp]   (fwd gates | bwd gates)
    whh0f_ref, whh0b_ref,                    # [Hp, 4Hp] each
    wih1_ref, b1_ref,                        # [2Hp, 8Hp], [1, 8Hp]
    whh1f_ref, whh1b_ref,                    # [Hp, 4Hp] each
    linwf_ref, linwb_ref, linb_ref,          # [Hp, Hop] x2, [1, Hop]
    out_ref,                                 # [Bp, Hop]
    gx_scr,                                  # [T*Bp, 8Hp] hoisted input-gate buffer (both dirs)
    h0_scr,                                  # [T*Bp, 2Hp] layer-0 h sequences (fwd | bwd)
    *, T, Bp, Hp, unroll):
    f32 = jnp.float32
    G = 4 * Hp                               # per-direction gate width

    def cell_update(gates, c):
        # Lane-aligned static views (each gate occupies a 128-multiple slot).
        i = jax.nn.sigmoid(gates[:, 0 * Hp:1 * Hp])
        f = jax.nn.sigmoid(gates[:, 1 * Hp:2 * Hp])
        g = jnp.tanh(gates[:, 2 * Hp:3 * Hp])
        o = jax.nn.sigmoid(gates[:, 3 * Hp:4 * Hp])
        c = f * c + i * g
        h = o * jnp.tanh(c)
        return h, c

    def run_layer(whhf_ref, whhb_ref, *, store_seq, accumulate):
        """Interleaved fwd+bwd recurrence over the precomputed gates in gx_scr."""
        zeros = jnp.zeros((Bp, Hp), f32)

        def step(s, carry):
            if accumulate:
                h_f, c_f, s_f, h_b, c_b, s_b = carry
            else:
                h_f, c_f, h_b, c_b = carry
            t_f = s                                    # forward time index
            t_b = T - 1 - s                            # backward time index
            r_f = pl.multiple_of(t_f * Bp, Bp)         # Bp is a multiple of 8 (sublane)
            r_b = pl.multiple_of(t_b * Bp, Bp)
            # Two independent chains per step -> MXU of one direction overlaps
            # with EUP/VPU of the other.  RHS is read from VMEM each step
            # (no register-resident 256 KiB weight under unrolling).
            gates_f = gx_scr[pl.ds(r_f, Bp), 0:G] + jnp.dot(
                h_f, whhf_ref[...], preferred_element_type=f32)
            gates_b = gx_scr[pl.ds(r_b, Bp), G:2 * G] + jnp.dot(
                h_b, whhb_ref[...], preferred_element_type=f32)
            h_f, c_f = cell_update(gates_f, c_f)
            h_b, c_b = cell_update(gates_b, c_b)
            if store_seq:
                h0_scr[pl.ds(r_f, Bp), 0:Hp] = h_f     # lane-dense VMEM stores
                h0_scr[pl.ds(r_b, Bp), Hp:2 * Hp] = h_b
            if accumulate:
                return h_f, c_f, s_f + h_f, h_b, c_b, s_b + h_b
            return h_f, c_f, h_b, c_b

        init = (zeros,) * (6 if accumulate else 4)
        out = jax.lax.fori_loop(0, T, step, init, unroll=unroll)
        if accumulate:
            return out[2], out[5]                      # sum over time, per direction
        return None

    x = x_ref[...]                                     # [T*Bp, E]

    # ----- layer 0: one fused input projection for BOTH directions -----
    gx_scr[...] = (jnp.dot(x, wih0_ref[...], preferred_element_type=f32)
                   + b0_ref[...])
    run_layer(whh0f_ref, whh0b_ref, store_seq=True, accumulate=False)

    # ----- layer 1: input = [h_fwd | h_bwd] of layer 0, one fused projection -----
    gx_scr[...] = (jnp.dot(h0_scr[...], wih1_ref[...], preferred_element_type=f32)
                   + b1_ref[...])
    sum_f, sum_b = run_layer(whh1f_ref, whh1b_ref, store_seq=False, accumulate=True)

    # ----- head: mean over time + linear (fused, nothing intermediate to HBM) -----
    inv_t = 1.0 / T
    out_ref[...] = (jnp.dot(sum_f * inv_t, linwf_ref[...], preferred_element_type=f32)
                    + jnp.dot(sum_b * inv_t, linwb_ref[...], preferred_element_type=f32)
                    + linb_ref[...])


def _fused_bilstm_head(x_flat, kp, *, T, Bp):
    """x_flat: [T*Bp, E] time-major flattened embeddings. Returns [Bp, Hop]."""
    Hp = kp["whh0f"].shape[0]
    Hop = kp["linb"].shape[1]
    args = (x_flat,
            kp["wih0"], kp["b0"], kp["whh0f"], kp["whh0b"],
            kp["wih1"], kp["b1"], kp["whh1f"], kp["whh1b"],
            kp["linwf"], kp["linwb"], kp["linb"])
    in_specs = [pl.BlockSpec(a.shape, lambda i, n=a.ndim: (0,) * n) for a in args]
    unroll = True if T <= 16 else 8            # bounded unroll once T grows
    kernel = functools.partial(_fused_bilstm_kernel, T=T, Bp=Bp, Hp=Hp, unroll=unroll)
    return pl.pallas_call(
        kernel,
        out_shape=jax.ShapeDtypeStruct((Bp, Hop), jnp.float32),
        grid_spec=pltpu.PrefetchScalarGridSpec(
            num_scalar_prefetch=0,
            grid=(1,),                                   # whole recurrence lives in-kernel
            in_specs=in_specs,
            out_specs=pl.BlockSpec((Bp, Hop), lambda i: (0, 0)),
            scratch_shapes=[
                pltpu.VMEM((T * Bp, 8 * Hp), jnp.float32),  # fused fwd|bwd input gates
                pltpu.VMEM((T * Bp, 2 * Hp), jnp.float32),  # layer-0 fwd|bwd h sequences
            ],
        ),
        compiler_params=pltpu.CompilerParams(
            dimension_semantics=("arbitrary",)),
    )(*args)


# ---------------------------------------------------------------------------
# Parameters (PyTorch-like uniform(-1/sqrt(H), 1/sqrt(H)) init), reference format
# ---------------------------------------------------------------------------
def init_params(key, vocab_size, embed_dim, hidden_dim):
    num_layers, num_directs = 2, 2
    keys = jax.random.split(key, 1 + num_layers * num_directs * 4 + 2)
    ki = iter(keys)
    k = 1.0 / np.sqrt(hidden_dim)

    params = {"embed": jax.random.normal(next(ki), (vocab_size, embed_dim), jnp.float32)}
    lstm = {}
    for layer in range(num_layers):
        in_dim = embed_dim if layer == 0 else num_directs * hidden_dim
        for d in range(num_directs):
            w_ih = jax.random.uniform(next(ki), (4 * hidden_dim, in_dim), jnp.float32, -k, k)
            w_hh = jax.random.uniform(next(ki), (4 * hidden_dim, hidden_dim), jnp.float32, -k, k)
            b_ih = jax.random.uniform(next(ki), (4 * hidden_dim,), jnp.float32, -k, k)
            b_hh = jax.random.uniform(next(ki), (4 * hidden_dim,), jnp.float32, -k, k)
            lstm[(layer, d)] = {
                "w_ih": jnp.transpose(w_ih),            # [in, 4H]
                "w_hh": jnp.transpose(w_hh),            # [H, 4H]
                "b": (b_ih + b_hh)[None, :],            # [1, 4H]
            }
    params["lstm"] = lstm

    klin = 1.0 / np.sqrt(num_directs * hidden_dim)
    params["lin_w"] = jax.random.uniform(
        next(ki), (num_directs * hidden_dim, hidden_dim), jnp.float32, -klin, klin)
    params["lin_b"] = jax.random.uniform(
        next(ki), (1, hidden_dim), jnp.float32, -klin, klin)
    return params


# ---------------------------------------------------------------------------
# Kernel-format weights: lane-aligned (128-padded) gates, fused fwd|bwd blocks
# ---------------------------------------------------------------------------
def _pad_gate_cols(w, hidden, hidden_pad):
    """[..., 4*H] -> [..., 4*Hp], gate g placed at columns [g*Hp, g*Hp+H)."""
    pad = [(0, 0)] * (w.ndim - 1) + [(0, hidden_pad - hidden)]
    parts = [jnp.pad(w[..., g * hidden:(g + 1) * hidden], pad) for g in range(4)]
    return jnp.concatenate(parts, axis=-1)


def _pad_rows(w, rows):
    return jnp.pad(w, ((0, rows - w.shape[0]), (0, 0)))


def prepare_kernel_params(params, hidden_dim):
    H = hidden_dim
    Hp = _round_up(H, 128)                              # lane-aligned hidden width
    kp = {"embed": params["embed"]}
    # TODO(synk): bf16 weight/scratch storage (f32 accumulation) for 2x MXU and
    # half the VMEM when scaling past toy shapes; kept f32 for the 1e-3 check.

    # layer 0: fused [fwd gates | bwd gates] input projection
    wih0, b0 = [], []
    for d in (0, 1):
        p = params["lstm"][(0, d)]
        wih0.append(_pad_gate_cols(p["w_ih"], H, Hp))                       # [E, 4Hp]
        b0.append(_pad_gate_cols(p["b"], H, Hp))                            # [1, 4Hp]
    kp["wih0"] = jnp.concatenate(wih0, axis=1)                              # [E, 8Hp]
    kp["b0"] = jnp.concatenate(b0, axis=1)                                  # [1, 8Hp]
    kp["whh0f"] = _pad_rows(_pad_gate_cols(params["lstm"][(0, 0)]["w_hh"], H, Hp), Hp)
    kp["whh0b"] = _pad_rows(_pad_gate_cols(params["lstm"][(0, 1)]["w_hh"], H, Hp), Hp)

    # layer 1: input is the [h_fwd | h_bwd] slab of layer 0 -> rows [0:Hp)=fwd, [Hp:2Hp)=bwd
    wih1, b1 = [], []
    for d in (0, 1):
        p = params["lstm"][(1, d)]
        wih = _pad_gate_cols(p["w_ih"], H, Hp)                              # [2H, 4Hp]
        wih_rows = jnp.concatenate(
            [_pad_rows(wih[:H], Hp), _pad_rows(wih[H:2 * H], Hp)], axis=0)  # [2Hp, 4Hp]
        wih1.append(wih_rows)
        b1.append(_pad_gate_cols(p["b"], H, Hp))
    kp["wih1"] = jnp.concatenate(wih1, axis=1)                              # [2Hp, 8Hp]
    kp["b1"] = jnp.concatenate(b1, axis=1)                                  # [1, 8Hp]
    kp["whh1f"] = _pad_rows(_pad_gate_cols(params["lstm"][(1, 0)]["w_hh"], H, Hp), Hp)
    kp["whh1b"] = _pad_rows(_pad_gate_cols(params["lstm"][(1, 1)]["w_hh"], H, Hp), Hp)

    # head (mean over time -> linear), split by direction, lane-dense output
    lw, lb = params["lin_w"], params["lin_b"]
    Ho = lb.shape[1]
    Hop = _round_up(Ho, 128)
    kp["linwf"] = jnp.pad(lw[:H], ((0, Hp - H), (0, Hop - Ho)))             # [Hp, Hop]
    kp["linwb"] = jnp.pad(lw[H:2 * H], ((0, Hp - H), (0, Hop - Ho)))        # [Hp, Hop]
    kp["linb"] = jnp.pad(lb, ((0, 0), (0, Hop - Ho)))                       # [1, Hop]
    return kp


# ---------------------------------------------------------------------------
# Model forward (embedding gather in XLA glue, everything else in one kernel)
# ---------------------------------------------------------------------------
def lstm_model(tokens, kparams, *, hidden_dim):
    # Embedding lookup: data-dependent gather, kept in XLA glue.
    x = kparams["embed"][tokens]                        # [B, T, E]
    B, T, _E = x.shape
    Bp = _round_up(B, 8)                                # sublane-align the batch
    x = jnp.pad(x, ((0, Bp - B), (0, 0), (0, 0)))
    x = jnp.transpose(x, (1, 0, 2)).reshape(T * Bp, -1)  # time-major, flattened [T*Bp, E]

    # TODO(synk): nn.LSTM inter-layer dropout (p=0.2) is training-only; inference
    # semantics (no dropout) are implemented here.
    out = _fused_bilstm_head(x, kparams, T=T, Bp=Bp)    # [Bp, Hop]
    return out[:B, :hidden_dim]                         # strip batch / lane padding


# ---------------------------------------------------------------------------
# Pure-JAX reference (for correctness check)
# ---------------------------------------------------------------------------
def _ref_layer_dir(x_tbf, p, hidden):
    def step(carry, x_t):
        hprev, cprev = carry
        gates = x_t @ p["w_ih"] + hprev @ p["w_hh"] + p["b"]
        i = jax.nn.sigmoid(gates[:, 0 * hidden:1 * hidden])
        f = jax.nn.sigmoid(gates[:, 1 * hidden:2 * hidden])
        g = jnp.tanh(gates[:, 2 * hidden:3 * hidden])
        o = jax.nn.sigmoid(gates[:, 3 * hidden:4 * hidden])
        c = f * cprev + i * g
        hnew = o * jnp.tanh(c)
        return (hnew, c), hnew

    B = x_tbf.shape[1]
    init = (jnp.zeros((B, hidden), jnp.float32), jnp.zeros((B, hidden), jnp.float32))
    _, hs = jax.lax.scan(step, init, x_tbf)
    return hs


def ref_model(tokens, params, *, hidden_dim):
    x = jnp.transpose(params["embed"][tokens], (1, 0, 2))
    h = x
    for layer in range(2):
        outs = []
        for d in range(2):
            p = params["lstm"][(layer, d)]
            inp = h[::-1] if d == 1 else h
            out = _ref_layer_dir(inp, p, hidden_dim)
            if d == 1:
                out = out[::-1]
            outs.append(out)
        h = jnp.concatenate(outs, axis=-1)
    return jnp.mean(h, axis=0) @ params["lin_w"] + params["lin_b"]


# ---------------------------------------------------------------------------
if __name__ == "__main__":
    VOCAB = 50
    EMBED = 32
    HIDDEN = 16
    B, T = 2, 8

    key = jax.random.PRNGKey(0)
    kparam_key, ktok_key = jax.random.split(key)
    params = init_params(kparam_key, VOCAB, EMBED, HIDDEN)
    kparams = prepare_kernel_params(params, HIDDEN)
    tokens = jax.random.randint(ktok_key, (B, T), 0, VOCAB, dtype=jnp.int32)

    fwd = jax.jit(functools.partial(lstm_model, hidden_dim=HIDDEN))
    out = jax.block_until_ready(fwd(tokens, kparams))

    ref = jax.block_until_ready(ref_model(tokens, params, hidden_dim=HIDDEN))

    assert out.shape == (B, HIDDEN), out.shape
    np.testing.assert_allclose(np.asarray(out), np.asarray(ref), rtol=1e-3, atol=1e-3)
    print("KERNEL_OK")
</pallas_src>

<mosaic_0001>
module attributes {stable_mosaic.version = 11 : i64} {
  func.func @_fused_bilstm_kernel(%arg0: i32, %arg1: memref<64x32xf32, #tpu.memory_space<vmem>>, %arg2: memref<32x1024xf32, #tpu.memory_space<vmem>>, %arg3: memref<1x1024xf32, #tpu.memory_space<vmem>>, %arg4: memref<128x512xf32, #tpu.memory_space<vmem>>, %arg5: memref<128x512xf32, #tpu.memory_space<vmem>>, %arg6: memref<256x1024xf32, #tpu.memory_space<vmem>>, %arg7: memref<1x1024xf32, #tpu.memory_space<vmem>>, %arg8: memref<128x512xf32, #tpu.memory_space<vmem>>, %arg9: memref<128x512xf32, #tpu.memory_space<vmem>>, %arg10: memref<128x128xf32, #tpu.memory_space<vmem>>, %arg11: memref<128x128xf32, #tpu.memory_space<vmem>>, %arg12: memref<1x128xf32, #tpu.memory_space<vmem>>, %arg13: memref<8x128xf32, #tpu.memory_space<vmem>>, %arg14: memref<64x1024xf32, #tpu.memory_space<vmem>>, %arg15: memref<64x256xf32, #tpu.memory_space<vmem>>) attributes {dimension_semantics = [#tpu.dimension_semantics<arbitrary>], iteration_bounds = array<i64: 1>, scalar_prefetch = 0 : i64, scratch_operands = 2 : i64, tpu.core_type = #tpu.core_type<tc>, window_params = [{pipeline_mode = #tpu.pipeline_mode<synchronous>, transform_indices = @transform_0, window_bounds = array<i64: 64, 32>}, {pipeline_mode = #tpu.pipeline_mode<synchronous>, transform_indices = @transform_1, window_bounds = array<i64: 32, 1024>}, {pipeline_mode = #tpu.pipeline_mode<synchronous>, transform_indices = @transform_2, window_bounds = array<i64: 1, 1024>}, {pipeline_mode = #tpu.pipeline_mode<synchronous>, transform_indices = @transform_3, window_bounds = array<i64: 128, 512>}, {pipeline_mode = #tpu.pipeline_mode<synchronous>, transform_indices = @transform_4, window_bounds = array<i64: 128, 512>}, {pipeline_mode = #tpu.pipeline_mode<synchronous>, transform_indices = @transform_5, window_bounds = array<i64: 256, 1024>}, {pipeline_mode = #tpu.pipeline_mode<synchronous>, transform_indices = @transform_6, window_bounds = array<i64: 1, 1024>}, {pipeline_mode = #tpu.pipeline_mode<synchronous>, transform_indices = @transform_7, window_bounds = array<i64: 128, 512>}, {pipeline_mode = #tpu.pipeline_mode<synchronous>, transform_indices = @transform_8, window_bounds = array<i64: 128, 512>}, {pipeline_mode = #tpu.pipeline_mode<synchronous>, transform_indices = @transform_9, window_bounds = array<i64: 128, 128>}, {pipeline_mode = #tpu.pipeline_mode<synchronous>, transform_indices = @transform_10, window_bounds = array<i64: 128, 128>}, {pipeline_mode = #tpu.pipeline_mode<synchronous>, transform_indices = @transform_11, window_bounds = array<i64: 1, 128>}, {pipeline_mode = #tpu.pipeline_mode<synchronous>, transform_indices = @transform_12, window_bounds = array<i64: 8, 128>}]} {
    %c0 = arith.constant 0 : index
    %c0_0 = arith.constant 0 : index
    %0 = vector.load %arg1[%c0, %c0_0] : memref<64x32xf32, #tpu.memory_space<vmem>>, vector<64x32xf32>
    %c0_1 = arith.constant 0 : index
    %c0_2 = arith.constant 0 : index
    %1 = vector.load %arg2[%c0_1, %c0_2] : memref<32x1024xf32, #tpu.memory_space<vmem>>, vector<32x1024xf32>
    %cst = arith.constant dense<0.000000e+00> : vector<64x1024xf32>
    %2 = tpu.matmul %0, %1, %cst {dimension_numbers = #tpu.dot_dimension_numbers<[1], [0], [0], [1], [0, 0, 1, 1], [], []>} : vector<64x32xf32>, vector<32x1024xf32>, vector<64x1024xf32> -> vector<64x1024xf32>
    %c0_3 = arith.constant 0 : index
    %c0_4 = arith.constant 0 : index
    %3 = vector.load %arg3[%c0_3, %c0_4] : memref<1x1024xf32, #tpu.memory_space<vmem>>, vector<1x1024xf32>
    %4 = vector.broadcast %3 : vector<1x1024xf32> to vector<64x1024xf32>
    %5 = arith.addf %2, %4 : vector<64x1024xf32>
    %c0_5 = arith.constant 0 : index
    %c0_6 = arith.constant 0 : index
    %6 = vector.load %arg14[%c0_5, %c0_6] : memref<64x1024xf32, #tpu.memory_space<vmem>>, vector<64x1024xf32>
    tpu.vector_store %arg14[%c0_5, %c0_6], %5 {strides = array<i32>} : memref<64x1024xf32, #tpu.memory_space<vmem>>, vector<64x1024xf32>,
    %cst_7 = arith.constant 0.000000e+00 : f32
    %7 = vector.broadcast %cst_7 : f32 to vector<8x128xf32>
    %c0_i32 = arith.constant 0 : i32
    %c7_i32 = arith.constant 7 : i32
    %8 = arith.subi %c7_i32, %c0_i32 : i32
    %c8_i32 = arith.constant 8 : i32
    %9 = arith.muli %c0_i32, %c8_i32 : i32
    %10 = tpu.assume_multiple %9, 8 : i32
    %c8_i32_8 = arith.constant 8 : i32
    %11 = arith.muli %8, %c8_i32_8 : i32
    %12 = tpu.assume_multiple %11, 8 : i32
    %13 = arith.index_cast %10 : i32 to index
    %c0_9 = arith.constant 0 : index
    %14 = vector.load %arg14[%13, %c0_9] : memref<64x1024xf32, #tpu.memory_space<vmem>>, vector<8x512xf32>
    %c0_10 = arith.constant 0 : index
    %c0_11 = arith.constant 0 : index
    %15 = vector.load %arg4[%c0_10, %c0_11] : memref<128x512xf32, #tpu.memory_space<vmem>>, vector<128x512xf32>
    %cst_12 = arith.constant dense<0.000000e+00> : vector<8x512xf32>
    %16 = tpu.matmul %7, %15, %cst_12 {dimension_numbers = #tpu.dot_dimension_numbers<[1], [0], [0], [1], [0, 0, 1, 1], [], []>} : vector<8x128xf32>, vector<128x512xf32>, vector<8x512xf32> -> vector<8x512xf32>
    %17 = arith.addf %14, %16 : vector<8x512xf32>
    %18 = arith.index_cast %12 : i32 to index
    %c512 = arith.constant 512 : index
    %19 = vector.load %arg14[%18, %c512] : memref<64x1024xf32, #tpu.memory_space<vmem>>, vector<8x512xf32>
    %c0_13 = arith.constant 0 : index
    %c0_14 = arith.constant 0 : index
    %20 = vector.load %arg5[%c0_13, %c0_14] : memref<128x512xf32, #tpu.memory_space<vmem>>, vector<128x512xf32>
    %cst_15 = arith.constant dense<0.000000e+00> : vector<8x512xf32>
    %21 = tpu.matmul %7, %20, %cst_15 {dimension_numbers = #tpu.dot_dimension_numbers<[1], [0], [0], [1], [0, 0, 1, 1], [], []>} : vector<8x128xf32>, vector<128x512xf32>, vector<8x512xf32> -> vector<8x512xf32>
    %22 = arith.addf %19, %21 : vector<8x512xf32>
    %23 = vector.extract_strided_slice %17 {offsets = [0, 0], sizes = [8, 128], strides = [1, 1]} : vector<8x512xf32> to vector<8x128xf32>
    %24 = arith.negf %23 : vector<8x128xf32>
    %25 = math.exp %24 : vector<8x128xf32>
    %cst_16 = arith.constant 1.000000e+00 : f32
    %26 = vector.broadcast %cst_16 : f32 to vector<8x128xf32>
    %27 = arith.addf %26, %25 : vector<8x128xf32>
    %28 = arith.divf %26, %27 : vector<8x128xf32>
    %29 = vector.extract_strided_slice %17 {offsets = [0, 128], sizes = [8, 128], strides = [1, 1]} : vector<8x512xf32> to vector<8x128xf32>
    %30 = arith.negf %29 : vector<8x128xf32>
    %31 = math.exp %30 : vector<8x128xf32>
    %cst_17 = arith.constant 1.000000e+00 : f32
    %32 = vector.broadcast %cst_17 : f32 to vector<8x128xf32>
    %33 = arith.addf %32, %31 : vector<8x128xf32>
    %34 = arith.divf %32, %33 : vector<8x128xf32>
    %35 = vector.extract_strided_slice %17 {offsets = [0, 256], sizes = [8, 128], strides = [1, 1]} : vector<8x512xf32> to vector<8x128xf32>
    %36 = math.tanh %35 : vector<8x128xf32>
    %37 = vector.extract_strided_slice %17 {offsets = [0, 384], sizes = [8, 128], strides = [1, 1]} : vector<8x512xf32> to vector<8x128xf32>
    %38 = arith.negf %37 : vector<8x128xf32>
    %39 = math.exp %38 : vector<8x128xf32>
    %cst_18 = arith.constant 1.000000e+00 : f32
    %40 = vector.broadcast %cst_18 : f32 to vector<8x128xf32>
    %41 = arith.addf %40, %39 : vector<8x128xf32>
    %42 = arith.divf %40, %41 : vector<8x128xf32>
    %43 = arith.mulf %34, %7 : vector<8x128xf32>
    %44 = arith.mulf %28, %36 : vector<8x128xf32>
    %45 = arith.addf %43, %44 : vector<8x128xf32>
    %46 = math.tanh %45 : vector<8x128xf32>
    %47 = arith.mulf %42, %46 : vector<8x128xf32>
    %48 = vector.extract_strided_slice %22 {offsets = [0, 0], sizes = [8, 128], strides = [1, 1]} : vector<8x512xf32> to vector<8x128xf32>
    %49 = arith.negf %48 : vector<8x128xf32>
    %50 = math.exp %49 : vector<8x128xf32>
    %cst_19 = arith.constant 1.000000e+00 : f32
    %51 = vector.broadcast %cst_19 : f32 to vector<8x128xf32>
    %52 = arith.addf %51, %50 : vector<8x128xf32>
    %53 = arith.divf %51, %52 : vector<8x128xf32>
    %54 = vector.extract_strided_slice %22 {offsets = [0, 128], sizes = [8, 128], strides = [1, 1]} : vector<8x512xf32> to vector<8x128xf32>
    %55 = arith.negf %54 : vector<8x128xf32>
    %56 = math.exp %55 : vector<8x128xf32>
    %cst_20 = arith.constant 1.000000e+00 : f32
    %57 = vector.broadcast %cst_20 : f32 to vector<8x128xf32>
    %58 = arith.addf %57, %56 : vector<8x128xf32>
    %59 = arith.divf %57, %58 : vector<8x128xf32>
    %60 = vector.extract_strided_slice %22 {offsets = [0, 256], sizes = [8, 128], strides = [1, 1]} : vector<8x512xf32> to vector<8x128xf32>
    %61 = math.tanh %60 : vector<8x128xf32>
    %62 = vector.extract_strided_slice %22 {offsets = [0, 384], sizes = [8, 128], strides = [1, 1]} : vector<8x512xf32> to vector<8x128xf32>
    %63 = arith.negf %62 : vector<8x128xf32>
    %64 = math.exp %63 : vector<8x128xf32>
    %cst_21 = arith.constant 1.000000e+00 : f32
    %65 = vector.broadcast %cst_21 : f32 to vector<8x128xf32>
    %66 = arith.addf %65, %64 : vector<8x128xf32>
    %67 = arith.divf %65, %66 : vector<8x128xf32>
    %68 = arith.mulf %59, %7 : vector<8x128xf32>
    %69 = arith.mulf %53, %61 : vector<8x128xf32>
    %70 = arith.addf %68, %69 : vector<8x128xf32>
    %71 = math.tanh %70 : vector<8x128xf32>
    %72 = arith.mulf %67, %71 : vector<8x128xf32>
    %73 = arith.index_cast %10 : i32 to index
    %c0_22 = arith.constant 0 : index
    %74 = vector.load %arg15[%73, %c0_22] : memref<64x256xf32, #tpu.memory_space<vmem>>, vector<8x128xf32>
    tpu.vector_store %arg15[%73, %c0_22], %47 {strides = array<i32>} : memref<64x256xf32, #tpu.memory_space<vmem>>, vector<8x128xf32>,
    %75 = arith.index_cast %12 : i32 to index
    %c128 = arith.constant 128 : index
    %76 = vector.load %arg15[%75, %c128] : memref<64x256xf32, #tpu.memory_space<vmem>>, vector<8x128xf32>
    tpu.vector_store %arg15[%75, %c128], %72 {strides = array<i32>} : memref<64x256xf32, #tpu.memory_space<vmem>>, vector<8x128xf32>,
    %c1_i32 = arith.constant 1 : i32
    %c7_i32_23 = arith.constant 7 : i32
    %77 = arith.subi %c7_i32_23, %c1_i32 : i32
    %c8_i32_24 = arith.constant 8 : i32
    %78 = arith.muli %c1_i32, %c8_i32_24 : i32
    %79 = tpu.assume_multiple %78, 8 : i32
    %c8_i32_25 = arith.constant 8 : i32
    %80 = arith.muli %77, %c8_i32_25 : i32
    %81 = tpu.assume_multiple %80, 8 : i32
    %82 = arith.index_cast %79 : i32 to index
    %c0_26 = arith.constant 0 : index
    %83 = vector.load %arg14[%82, %c0_26] : memref<64x1024xf32, #tpu.memory_space<vmem>>, vector<8x512xf32>
    %c0_27 = arith.constant 0 : index
    %c0_28 = arith.constant 0 : index
    %84 = vector.load %arg4[%c0_27, %c0_28] : memref<128x512xf32, #tpu.memory_space<vmem>>, vector<128x512xf32>
    %cst_29 = arith.constant dense<0.000000e+00> : vector<8x512xf32>
    %85 = tpu.matmul %47, %84, %cst_29 {dimension_numbers = #tpu.dot_dimension_numbers<[1], [0], [0], [1], [0, 0, 1, 1], [], []>} : vector<8x128xf32>, vector<128x512xf32>, vector<8x512xf32> -> vector<8x512xf32>
    %86 = arith.addf %83, %85 : vector<8x512xf32>
    %87 = arith.index_cast %81 : i32 to index
    %c512_30 = arith.constant 512 : index
    %88 = vector.load %arg14[%87, %c512_30] : memref<64x1024xf32, #tpu.memory_space<vmem>>, vector<8x512xf32>
    %c0_31 = arith.constant 0 : index
    %c0_32 = arith.constant 0 : index
    %89 = vector.load %arg5[%c0_31, %c0_32] : memref<128x512xf32, #tpu.memory_space<vmem>>, vector<128x512xf32>
    %cst_33 = arith.constant dense<0.000000e+00> : vector<8x512xf32>
    %90 = tpu.matmul %72, %89, %cst_33 {dimension_numbers = #tpu.dot_dimension_numbers<[1], [0], [0], [1], [0, 0, 1, 1], [], []>} : vector<8x128xf32>, vector<128x512xf32>, vector<8x512xf32> -> vector<8x512xf32>
    %91 = arith.addf %88, %90 : vector<8x512xf32>
    %92 = vector.extract_strided_slice %86 {offsets = [0, 0], sizes = [8, 128], strides = [1, 1]} : vector<8x512xf32> to vector<8x128xf32>
    %93 = arith.negf %92 : vector<8x128xf32>
    %94 = math.exp %93 : vector<8x128xf32>
    %cst_34 = arith.constant 1.000000e+00 : f32
    %95 = vector.broadcast %cst_34 : f32 to vector<8x128xf32>
    %96 = arith.addf %95, %94 : vector<8x128xf32>
    %97 = arith.divf %95, %96 : vector<8x128xf32>
    %98 = vector.extract_strided_slice %86 {offsets = [0, 128], sizes = [8, 128], strides = [1, 1]} : vector<8x512xf32> to vector<8x128xf32>
    %99 = arith.negf %98 : vector<8x128xf32>
    %100 = math.exp %99 : vector<8x128xf32>
    %cst_35 = arith.constant 1.000000e+00 : f32
    %101 = vector.broadcast %cst_35 : f32 to vector<8x128xf32>
    %102 = arith.addf %101, %100 : vector<8x128xf32>
    %103 = arith.divf %101, %102 : vector<8x128xf32>
    %104 = vector.extract_strided_slice %86 {offsets = [0, 256], sizes = [8, 128], strides = [1, 1]} : vector<8x512xf32> to vector<8x128xf32>
    %105 = math.tanh %104 : vector<8x128xf32>
    %106 = vector.extract_strided_slice %86 {offsets = [0, 384], sizes = [8, 128], strides = [1, 1]} : vector<8x512xf32> to vector<8x128xf32>
    %107 = arith.negf %106 : vector<8x128xf32>
    %108 = math.exp %107 : vector<8x128xf32>
    %cst_36 = arith.constant 1.000000e+00 : f32
    %109 = vector.broadcast %cst_36 : f32 to vector<8x128xf32>
    %110 = arith.addf %109, %108 : vector<8x128xf32>
    %111 = arith.divf %109, %110 : vector<8x128xf32>
    %112 = arith.mulf %103, %45 : vector<8x128xf32>
    %113 = arith.mulf %97, %105 : vector<8x128xf32>
    %114 = arith.addf %112, %113 : vector<8x128xf32>
    %115 = math.tanh %114 : vector<8x128xf32>
    %116 = arith.mulf %111, %115 : vector<8x128xf32>
    %117 = vector.extract_strided_slice %91 {offsets = [0, 0], sizes = [8, 128], strides = [1, 1]} : vector<8x512xf32> to vector<8x128xf32>
    %118 = arith.negf %117 : vector<8x128xf32>
    %119 = math.exp %118 : vector<8x128xf32>
    %cst_37 = arith.constant 1.000000e+00 : f32
    %120 = vector.broadcast %cst_37 : f32 to vector<8x128xf32>
    %121 = arith.addf %120, %119 : vector<8x128xf32>
    %122 = arith.divf %120, %121 : vector<8x128xf32>
    %123 = vector.extract_strided_slice %91 {offsets = [0, 128], sizes = [8, 128], strides = [1, 1]} : vector<8x512xf32> to vector<8x128xf32>
    %124 = arith.negf %123 : vector<8x128xf32>
    %125 = math.exp %124 : vector<8x128xf32>
    %cst_38 = arith.constant 1.000000e+00 : f32
    %126 = vector.broadcast %cst_38 : f32 to vector<8x128xf32>
    %127 = arith.addf %126, %125 : vector<8x128xf32>
    %128 = arith.divf %126, %127 : vector<8x128xf32>
    %129 = vector.extract_strided_slice %91 {offsets = [0, 256], sizes = [8, 128], strides = [1, 1]} : vector<8x512xf32> to vector<8x128xf32>
    %130 = math.tanh %129 : vector<8x128xf32>
    %131 = vector.extract_strided_slice %91 {offsets = [0, 384], sizes = [8, 128], strides = [1, 1]} : vector<8x512xf32> to vector<8x128xf32>
    %132 = arith.negf %131 : vector<8x128xf32>
    %133 = math.exp %132 : vector<8x128xf32>
    %cst_39 = arith.constant 1.000000e+00 : f32
    %134 = vector.broadcast %cst_39 : f32 to vector<8x128xf32>
    %135 = arith.addf %134, %133 : vector<8x128xf32>
    %136 = arith.divf %134, %135 : vector<8x128xf32>
    %137 = arith.mulf %128, %70 : vector<8x128xf32>
    %138 = arith.mulf %122, %130 : vector<8x128xf32>
    %139 = arith.addf %137, %138 : vector<8x128xf32>
    %140 = math.tanh %139 : vector<8x128xf32>
    %141 = arith.mulf %136, %140 : vector<8x128xf32>
    %142 = arith.index_cast %79 : i32 to index
    %c0_40 = arith.constant 0 : index
    %143 = vector.load %arg15[%142, %c0_40] : memref<64x256xf32, #tpu.memory_space<vmem>>, vector<8x128xf32>
    tpu.vector_store %arg15[%142, %c0_40], %116 {strides = array<i32>} : memref<64x256xf32, #tpu.memory_space<vmem>>, vector<8x128xf32>,
    %144 = arith.index_cast %81 : i32 to index
    %c128_41 = arith.constant 128 : index
    %145 = vector.load %arg15[%144, %c128_41] : memref<64x256xf32, #tpu.memory_space<vmem>>, vector<8x128xf32>
    tpu.vector_store %arg15[%144, %c128_41], %141 {strides = array<i32>} : memref<64x256xf32, #tpu.memory_space<vmem>>, vector<8x128xf32>,
    %c2_i32 = arith.constant 2 : i32
    %c7_i32_42 = arith.constant 7 : i32
    %146 = arith.subi %c7_i32_42, %c2_i32 : i32
    %c8_i32_43 = arith.constant 8 : i32
    %147 = arith.muli %c2_i32, %c8_i32_43 : i32
    %148 = tpu.assume_multiple %147, 8 : i32
    %c8_i32_44 = arith.constant 8 : i32
    %149 = arith.muli %146, %c8_i32_44 : i32
    %150 = tpu.assume_multiple %149, 8 : i32
    %151 = arith.index_cast %148 : i32 to index
    %c0_45 = arith.constant 0 : index
    %152 = vector.load %arg14[%151, %c0_45] : memref<64x1024xf32, #tpu.memory_space<vmem>>, vector<8x512xf32>
    %c0_46 = arith.constant 0 : index
    %c0_47 = arith.constant 0 : index
    %153 = vector.load %arg4[%c0_46, %c0_47] : memref<128x512xf32, #tpu.memory_space<vmem>>, vector<128x512xf32>
    %cst_48 = arith.constant dense<0.000000e+00> : vector<8x512xf32>
    %154 = tpu.matmul %116, %153, %cst_48 {dimension_numbers = #tpu.dot_dimension_numbers<[1], [0], [0], [1], [0, 0, 1, 1], [], []>} : vector<8x128xf32>, vector<128x512xf32>, vector<8x512xf32> -> vector<8x512xf32>
    %155 = arith.addf %152, %154 : vector<8x512xf32>
    %156 = arith.index_cast %150 : i32 to index
    %c512_49 = arith.constant 512 : index
    %157 = vector.load %arg14[%156, %c512_49] : memref<64x1024xf32, #tpu.memory_space<vmem>>, vector<8x512xf32>
    %c0_50 = arith.constant 0 : index
    %c0_51 = arith.constant 0 : index
    %158 = vector.load %arg5[%c0_50, %c0_51] : memref<128x512xf32, #tpu.memory_space<vmem>>, vector<128x512xf32>
    %cst_52 = arith.constant dense<0.000000e+00> : vector<8x512xf32>
    %159 = tpu.matmul %141, %158, %cst_52 {dimension_numbers = #tpu.dot_dimension_numbers<[1], [0], [0], [1], [0, 0, 1, 1], [], []>} : vector<8x128xf32>, vector<128x512xf32>, vector<8x512xf32> -> vector<8x512xf32>
    %160 = arith.addf %157, %159 : vector<8x512xf32>
    %161 = vector.extract_strided_slice %155 {offsets = [0, 0], sizes = [8, 128], strides = [1, 1]} : vector<8x512xf32> to vector<8x128xf32>
    %162 = arith.negf %161 : vector<8x128xf32>
    %163 = math.exp %162 : vector<8x128xf32>
    %cst_53 = arith.constant 1.000000e+00 : f32
    %164 = vector.broadcast %cst_53 : f32 to vector<8x128xf32>
    %165 = arith.addf %164, %163 : vector<8x128xf32>
    %166 = arith.divf %164, %165 : vector<8x128xf32>
    %167 = vector.extract_strided_slice %155 {offsets = [0, 128], sizes = [8, 128], strides = [1, 1]} : vector<8x512xf32> to vector<8x128xf32>
    %168 = arith.negf %167 : vector<8x128xf32>
    %169 = math.exp %168 : vector<8x128xf32>
    %cst_54 = arith.constant 1.000000e+00 : f32
    %170 = vector.broadcast %cst_54 : f32 to vector<8x128xf32>
    %171 = arith.addf %170, %169 : vector<8x128xf32>
    %172 = arith.divf %170, %171 : vector<8x128xf32>
    %173 = vector.extract_strided_slice %155 {offsets = [0, 256], sizes = [8, 128], strides = [1, 1]} : vector<8x512xf32> to vector<8x128xf32>
    %174 = math.tanh %173 : vector<8x128xf32>
    %175 = vector.extract_strided_slice %155 {offsets = [0, 384], sizes = [8, 128], strides = [1, 1]} : vector<8x512xf32> to vector<8x128xf32>
    %176 = arith.negf %175 : vector<8x128xf32>
    %177 = math.exp %176 : vector<8x128xf32>
    %cst_55 = arith.constant 1.000000e+00 : f32
    %178 = vector.broadcast %cst_55 : f32 to vector<8x128xf32>
    %179 = arith.addf %178, %177 : vector<8x128xf32>
    %180 = arith.divf %178, %179 : vector<8x128xf32>
    %181 = arith.mulf %172, %114 : vector<8x128xf32>
    %182 = arith.mulf %166, %174 : vector<8x128xf32>
    %183 = arith.addf %181, %182 : vector<8x128xf32>
    %184 = math.tanh %183 : vector<8x128xf32>
    %185 = arith.mulf %180, %184 : vector<8x128xf32>
    %186 = vector.extract_strided_slice %160 {offsets = [0, 0], sizes = [8, 128], strides = [1, 1]} : vector<8x512xf32> to vector<8x128xf32>
    %187 = arith.negf %186 : vector<8x128xf32>
    %188 = math.exp %187 : vector<8x128xf32>
    %cst_56 = arith.constant 1.000000e+00 : f32
    %189 = vector.broadcast %cst_56 : f32 to vector<8x128xf32>
    %190 = arith.addf %189, %188 : vector<8x128xf32>
    %191 = arith.divf %189, %190 : vector<8x128xf32>
    %192 = vector.extract_strided_slice %160 {offsets = [0, 128], sizes = [8, 128], strides = [1, 1]} : vector<8x512xf32> to vector<8x128xf32>
    %193 = arith.negf %192 : vector<8x128xf32>
    %194 = math.exp %193 : vector<8x128xf32>
    %cst_57 = arith.constant 1.000000e+00 : f32
    %195 = vector.broadcast %cst_57 : f32 to vector<8x128xf32>
    %196 = arith.addf %195, %194 : vector<8x128xf32>
    %197 = arith.divf %195, %196 : vector<8x128xf32>
    %198 = vector.extract_strided_slice %160 {offsets = [0, 256], sizes = [8, 128], strides = [1, 1]} : vector<8x512xf32> to vector<8x128xf32>
    %199 = math.tanh %198 : vector<8x128xf32>
    %200 = vector.extract_strided_slice %160 {offsets = [0, 384], sizes = [8, 128], strides = [1, 1]} : vector<8x512xf32> to vector<8x128xf32>
    %201 = arith.negf %200 : vector<8x128xf32>
    %202 = math.exp %201 : vector<8x128xf32>
    %cst_58 = arith.constant 1.000000e+00 : f32
    %203 = vector.broadcast %cst_58 : f32 to vector<8x128xf32>
    %204 = arith.addf %203, %202 : vector<8x128xf32>
    %205 = arith.divf %203, %204 : vector<8x128xf32>
    %206 = arith.mulf %197, %139 : vector<8x128xf32>
    %207 = arith.mulf %191, %199 : vector<8x128xf32>
    %208 = arith.addf %206, %207 : vector<8x128xf32>
    %209 = math.tanh %208 : vector<8x128xf32>
    %210 = arith.mulf %205, %209 : vector<8x128xf32>
    %211 = arith.index_cast %148 : i32 to index
    %c0_59 = arith.constant 0 : index
    %212 = vector.load %arg15[%211, %c0_59] : memref<64x256xf32, #tpu.memory_space<vmem>>, vector<8x128xf32>
    tpu.vector_store %arg15[%211, %c0_59], %185 {strides = array<i32>} : memref<64x256xf32, #tpu.memory_space<vmem>>, vector<8x128xf32>,
    %213 = arith.index_cast %150 : i32 to index
    %c128_60 = arith.constant 128 : index
    %214 = vector.load %arg15[%213, %c128_60] : memref<64x256xf32, #tpu.memory_space<vmem>>, vector<8x128xf32>
    tpu.vector_store %arg15[%213, %c128_60], %210 {strides = array<i32>} : memref<64x256xf32, #tpu.memory_space<vmem>>, vector<8x128xf32>,
    %c3_i32 = arith.constant 3 : i32
    %c7_i32_61 = arith.constant 7 : i32
    %215 = arith.subi %c7_i32_61, %c3_i32 : i32
    %c8_i32_62 = arith.constant 8 : i32
    %216 = arith.muli %c3_i32, %c8_i32_62 : i32
    %217 = tpu.assume_multiple %216, 8 : i32
    %c8_i32_63 = arith.constant 8 : i32
    %218 = arith.muli %215, %c8_i32_63 : i32
    %219 = tpu.assume_multiple %218, 8 : i32
    %220 = arith.index_cast %217 : i32 to index
    %c0_64 = arith.constant 0 : index
    %221 = vector.load %arg14[%220, %c0_64] : memref<64x1024xf32, #tpu.memory_space<vmem>>, vector<8x512xf32>
    %c0_65 = arith.constant 0 : index
    %c0_66 = arith.constant 0 : index
    %222 = vector.load %arg4[%c0_65, %c0_66] : memref<128x512xf32, #tpu.memory_space<vmem>>, vector<128x512xf32>
    %cst_67 = arith.constant dense<0.000000e+00> : vector<8x512xf32>
    %223 = tpu.matmul %185, %222, %cst_67 {dimension_numbers = #tpu.dot_dimension_numbers<[1], [0], [0], [1], [0, 0, 1, 1], [], []>} : vector<8x128xf32>, vector<128x512xf32>, vector<8x512xf32> -> vector<8x512xf32>
    %224 = arith.addf %221, %223 : vector<8x512xf32>
    %225 = arith.index_cast %219 : i32 to index
    %c512_68 = arith.constant 512 : index
    %226 = vector.load %arg14[%225, %c512_68] : memref<64x1024xf32, #tpu.memory_space<vmem>>, vector<8x512xf32>
    %c0_69 = arith.constant 0 : index
    %c0_70 = arith.constant 0 : index
    %227 = vector.load %arg5[%c0_69, %c0_70] : memref<128x512xf32, #tpu.memory_space<vmem>>, vector<128x512xf32>
    %cst_71 = arith.constant dense<0.000000e+00> : vector<8x512xf32>
    %228 = tpu.matmul %210, %227, %cst_71 {dimension_numbers = #tpu.dot_dimension_numbers<[1], [0], [0], [1], [0, 0, 1, 1], [], []>} : vector<8x128xf32>, vector<128x512xf32>, vector<8x512xf32> -> vector<8x512xf32>
    %229 = arith.addf %226, %228 : vector<8x512xf32>
    %230 = vector.extract_strided_slice %224 {offsets = [0, 0], sizes = [8, 128], strides = [1, 1]} : vector<8x512xf32> to vector<8x128xf32>
    %231 = arith.negf %230 : vector<8x128xf32>
    %232 = math.exp %231 : vector<8x128xf32>
    %cst_72 = arith.constant 1.000000e+00 : f32
    %233 = vector.broadcast %cst_72 : f32 to vector<8x128xf32>
    %234 = arith.addf %233, %232 : vector<8x128xf32>
    %235 = arith.divf %233, %234 : vector<8x128xf32>
    %236 = vector.extract_strided_slice %224 {offsets = [0, 128], sizes = [8, 128], strides = [1, 1]} : vector<8x512xf32> to vector<8x128xf32>
    %237 = arith.negf %236 : vector<8x128xf32>
    %238 = math.exp %237 : vector<8x128xf32>
    %cst_73 = arith.constant 1.000000e+00 : f32
    %239 = vector.broadcast %cst_73 : f32 to vector<8x128xf32>
    %240 = arith.addf %239, %238 : vector<8x128xf32>
    %241 = arith.divf %239, %240 : vector<8x128xf32>
    %242 = vector.extract_strided_slice %224 {offsets = [0, 256], sizes = [8, 128], strides = [1, 1]} : vector<8x512xf32> to vector<8x128xf32>
    %243 = math.tanh %242 : vector<8x128xf32>
    %244 = vector.extract_strided_slice %224 {offsets = [0, 384], sizes = [8, 128], strides = [1, 1]} : vector<8x512xf32> to vector<8x128xf32>
    %245 = arith.negf %244 : vector<8x128xf32>
    %246 = math.exp %245 : vector<8x128xf32>
    %cst_74 = arith.constant 1.000000e+00 : f32
    %247 = vector.broadcast %cst_74 : f32 to vector<8x128xf32>
    %248 = arith.addf %247, %246 : vector<8x128xf32>
    %249 = arith.divf %247, %248 : vector<8x128xf32>
    %250 = arith.mulf %241, %183 : vector<8x128xf32>
    %251 = arith.mulf %235, %243 : vector<8x128xf32>
    %252 = arith.addf %250, %251 : vector<8x128xf32>
    %253 = math.tanh %252 : vector<8x128xf32>
    %254 = arith.mulf %249, %253 : vector<8x128xf32>
    %255 = vector.extract_strided_slice %229 {offsets = [0, 0], sizes = [8, 128], strides = [1, 1]} : vector<8x512xf32> to vector<8x128xf32>
    %256 = arith.negf %255 : vector<8x128xf32>
    %257 = math.exp %256 : vector<8x128xf32>
    %cst_75 = arith.constant 1.000000e+00 : f32
    %258 = vector.broadcast %cst_75 : f32 to vector<8x128xf32>
    %259 = arith.addf %258, %257 : vector<8x128xf32>
    %260 = arith.divf %258, %259 : vector<8x128xf32>
    %261 = vector.extract_strided_slice %229 {offsets = [0, 128], sizes = [8, 128], strides = [1, 1]} : vector<8x512xf32> to vector<8x128xf32>
    %262 = arith.negf %261 : vector<8x128xf32>
    %263 = math.exp %262 : vector<8x128xf32>
    %cst_76 = arith.constant 1.000000e+00 : f32
    %264 = vector.broadcast %cst_76 : f32 to vector<8x128xf32>
    %265 = arith.addf %264, %263 : vector<8x128xf32>
    %266 = arith.divf %264, %265 : vector<8x128xf32>
    %267 = vector.extract_strided_slice %229 {offsets = [0, 256], sizes = [8, 128], strides = [1, 1]} : vector<8x512xf32> to vector<8x128xf32>
    %268 = math.tanh %267 : vector<8x128xf32>
    %269 = vector.extract_strided_slice %229 {offsets = [0, 384], sizes = [8, 128], strides = [1, 1]} : vector<8x512xf32> to vector<8x128xf32>
    %270 = arith.negf %269 : vector<8x128xf32>
    %271 = math.exp %270 : vector<8x128xf32>
    %cst_77 = arith.constant 1.000000e+00 : f32
    %272 = vector.broadcast %cst_77 : f32 to vector<8x128xf32>
    %273 = arith.addf %272, %271 : vector<8x128xf32>
    %274 = arith.divf %272, %273 : vector<8x128xf32>
    %275 = arith.mulf %266, %208 : vector<8x128xf32>
    %276 = arith.mulf %260, %268 : vector<8x128xf32>
    %277 = arith.addf %275, %276 : vector<8x128xf32>
    %278 = math.tanh %277 : vector<8x128xf32>
    %279 = arith.mulf %274, %278 : vector<8x128xf32>
    %280 = arith.index_cast %217 : i32 to index
    %c0_78 = arith.constant 0 : index
    %281 = vector.load %arg15[%280, %c0_78] : memref<64x256xf32, #tpu.memory_space<vmem>>, vector<8x128xf32>
    tpu.vector_store %arg15[%280, %c0_78], %254 {strides = array<i32>} : memref<64x256xf32, #tpu.memory_space<vmem>>, vector<8x128xf32>,
    %282 = arith.index_cast %219 : i32 to index
    %c128_79 = arith.constant 128 : index
    %283 = vector.load %arg15[%282, %c128_79] : memref<64x256xf32, #tpu.memory_space<vmem>>, vector<8x128xf32>
    tpu.vector_store %arg15[%282, %c128_79], %279 {strides = array<i32>} : memref<64x256xf32, #tpu.memory_space<vmem>>, vector<8x128xf32>,
    %c4_i32 = arith.constant 4 : i32
    %c7_i32_80 = arith.constant 7 : i32
    %284 = arith.subi %c7_i32_80, %c4_i32 : i32
    %c8_i32_81 = arith.constant 8 : i32
    %285 = arith.muli %c4_i32, %c8_i32_81 : i32
    %286 = tpu.assume_multiple %285, 8 : i32
    %c8_i32_82 = arith.constant 8 : i32
    %287 = arith.muli %284, %c8_i32_82 : i32
    %288 = tpu.assume_multiple %287, 8 : i32
    %289 = arith.index_cast %286 : i32 to index
    %c0_83 = arith.constant 0 : index
    %290 = vector.load %arg14[%289, %c0_83] : memref<64x1024xf32, #tpu.memory_space<vmem>>, vector<8x512xf32>
    %c0_84 = arith.constant 0 : index
    %c0_85 = arith.constant 0 : index
    %291 = vector.load %arg4[%c0_84, %c0_85] : memref<128x512xf32, #tpu.memory_space<vmem>>, vector<128x512xf32>
    %cst_86 = arith.constant dense<0.000000e+00> : vector<8x512xf32>
    %292 = tpu.matmul %254, %291, %cst_86 {dimension_numbers = #tpu.dot_dimension_numbers<[1], [0], [0], [1], [0, 0, 1, 1], [], []>} : vector<8x128xf32>, vector<128x512xf32>, vector<8x512xf32> -> vector<8x512xf32>
    %293 = arith.addf %290, %292 : vector<8x512xf32>
    %294 = arith.index_cast %288 : i32 to index
    %c512_87 = arith.constant 512 : index
    %295 = vector.load %arg14[%294, %c512_87] : memref<64x1024xf32, #tpu.memory_space<vmem>>, vector<8x512xf32>
    %c0_88 = arith.constant 0 : index
    %c0_89 = arith.constant 0 : index
    %296 = vector.load %arg5[%c0_88, %c0_89] : memref<128x512xf32, #tpu.memory_space<vmem>>, vector<128x512xf32>
    %cst_90 = arith.constant dense<0.000000e+00> : vector<8x512xf32>
    %297 = tpu.matmul %279, %296, %cst_90 {dimension_numbers = #tpu.dot_dimension_numbers<[1], [0], [0], [1], [0, 0, 1, 1], [], []>} : vector<8x128xf32>, vector<128x512xf32>, vector<8x512xf32> -> vector<8x512xf32>
    %298 = arith.addf %295, %297 : vector<8x512xf32>
    %299 = vector.extract_strided_slice %293 {offsets = [0, 0], sizes = [8, 128], strides = [1, 1]} : vector<8x512xf32> to vector<8x128xf32>
    %300 = arith.negf %299 : vector<8x128xf32>
    %301 = math.exp %300 : vector<8x128xf32>
    %cst_91 = arith.constant 1.000000e+00 : f32
    %302 = vector.broadcast %cst_91 : f32 to vector<8x128xf32>
    %303 = arith.addf %302, %301 : vector<8x128xf32>
    %304 = arith.divf %302, %303 : vector<8x128xf32>
    %305 = vector.extract_strided_slice %293 {offsets = [0, 128], sizes = [8, 128], strides = [1, 1]} : vector<8x512xf32> to vector<8x128xf32>
    %306 = arith.negf %305 : vector<8x128xf32>
    %307 = math.exp %306 : vector<8x128xf32>
    %cst_92 = arith.constant 1.000000e+00 : f32
    %308 = vector.broadcast %cst_92 : f32 to vector<8x128xf32>
    %309 = arith.addf %308, %307 : vector<8x128xf32>
    %310 = arith.divf %308, %309 : vector<8x128xf32>
    %311 = vector.extract_strided_slice %293 {offsets = [0, 256], sizes = [8, 128], strides = [1, 1]} : vector<8x512xf32> to vector<8x128xf32>
    %312 = math.tanh %311 : vector<8x128xf32>
    %313 = vector.extract_strided_slice %293 {offsets = [0, 384], sizes = [8, 128], strides = [1, 1]} : vector<8x512xf32> to vector<8x128xf32>
    %314 = arith.negf %313 : vector<8x128xf32>
    %315 = math.exp %314 : vector<8x128xf32>
    %cst_93 = arith.constant 1.000000e+00 : f32
    %316 = vector.broadcast %cst_93 : f32 to vector<8x128xf32>
    %317 = arith.addf %316, %315 : vector<8x128xf32>
    %318 = arith.divf %316, %317 : vector<8x128xf32>
    %319 = arith.mulf %310, %252 : vector<8x128xf32>
    %320 = arith.mulf %304, %312 : vector<8x128xf32>
    %321 = arith.addf %319, %320 : vector<8x128xf32>
    %322 = math.tanh %321 : vector<8x128xf32>
    %323 = arith.mulf %318, %322 : vector<8x128xf32>
    %324 = vector.extract_strided_slice %298 {offsets = [0, 0], sizes = [8, 128], strides = [1, 1]} : vector<8x512xf32> to vector<8x128xf32>
    %325 = arith.negf %324 : vector<8x128xf32>
    %326 = math.exp %325 : vector<8x128xf32>
    %cst_94 = arith.constant 1.000000e+00 : f32
    %327 = vector.broadcast %cst_94 : f32 to vector<8x128xf32>
    %328 = arith.addf %327, %326 : vector<8x128xf32>
    %329 = arith.divf %327, %328 : vector<8x128xf32>
    %330 = vector.extract_strided_slice %298 {offsets = [0, 128], sizes = [8, 128], strides = [1, 1]} : vector<8x512xf32> to vector<8x128xf32>
    %331 = arith.negf %330 : vector<8x128xf32>
    %332 = math.exp %331 : vector<8x128xf32>
    %cst_95 = arith.constant 1.000000e+00 : f32
    %333 = vector.broadcast %cst_95 : f32 to vector<8x128xf32>
    %334 = arith.addf %333, %332 : vector<8x128xf32>
    %335 = arith.divf %333, %334 : vector<8x128xf32>
    %336 = vector.extract_strided_slice %298 {offsets = [0, 256], sizes = [8, 128], strides = [1, 1]} : vector<8x512xf32> to vector<8x128xf32>
    %337 = math.tanh %336 : vector<8x128xf32>
    %338 = vector.extract_strided_slice %298 {offsets = [0, 384], sizes = [8, 128], strides = [1, 1]} : vector<8x512xf32> to vector<8x128xf32>
    %339 = arith.negf %338 : vector<8x128xf32>
    %340 = math.exp %339 : vector<8x128xf32>
    %cst_96 = arith.constant 1.000000e+00 : f32
    %341 = vector.broadcast %cst_96 : f32 to vector<8x128xf32>
    %342 = arith.addf %341, %340 : vector<8x128xf32>
    %343 = arith.divf %341, %342 : vector<8x128xf32>
    %344 = arith.mulf %335, %277 : vector<8x128xf32>
    %345 = arith.mulf %329, %337 : vector<8x128xf32>
    %346 = arith.addf %344, %345 : vector<8x128xf32>
    %347 = math.tanh %346 : vector<8x128xf32>
    %348 = arith.mulf %343, %347 : vector<8x128xf32>
    %349 = arith.index_cast %286 : i32 to index
    %c0_97 = arith.constant 0 : index
    %350 = vector.load %arg15[%349, %c0_97] : memref<64x256xf32, #tpu.memory_space<vmem>>, vector<8x128xf32>
    tpu.vector_store %arg15[%349, %c0_97], %323 {strides = array<i32>} : memref<64x256xf32, #tpu.memory_space<vmem>>, vector<8x128xf32>,
    %351 = arith.index_cast %288 : i32 to index
    %c128_98 = arith.constant 128 : index
    %352 = vector.load %arg15[%351, %c128_98] : memref<64x256xf32, #tpu.memory_space<vmem>>, vector<8x128xf32>
    tpu.vector_store %arg15[%351, %c128_98], %348 {strides = array<i32>} : memref<64x256xf32, #tpu.memory_space<vmem>>, vector<8x128xf32>,
    %c5_i32 = arith.constant 5 : i32
    %c7_i32_99 = arith.constant 7 : i32
    %353 = arith.subi %c7_i32_99, %c5_i32 : i32
    %c8_i32_100 = arith.constant 8 : i32
    %354 = arith.muli %c5_i32, %c8_i32_100 : i32
    %355 = tpu.assume_multiple %354, 8 : i32
    %c8_i32_101 = arith.constant 8 : i32
    %356 = arith.muli %353, %c8_i32_101 : i32
    %357 = tpu.assume_multiple %356, 8 : i32
    %358 = arith.index_cast %355 : i32 to index
    %c0_102 = arith.constant 0 : index
    %359 = vector.load %arg14[%358, %c0_102] : memref<64x1024xf32, #tpu.memory_space<vmem>>, vector<8x512xf32>
    %c0_103 = arith.constant 0 : index
    %c0_104 = arith.constant 0 : index
    %360 = vector.load %arg4[%c0_103, %c0_104] : memref<128x512xf32, #tpu.memory_space<vmem>>, vector<128x512xf32>
    %cst_105 = arith.constant dense<0.000000e+00> : vector<8x512xf32>
    %361 = tpu.matmul %323, %360, %cst_105 {dimension_numbers = #tpu.dot_dimension_numbers<[1], [0], [0], [1], [0, 0, 1, 1], [], []>} : vector<8x128xf32>, vector<128x512xf32>, vector<8x512xf32> -> vector<8x512xf32>
    %362 = arith.addf %359, %361 : vector<8x512xf32>
    %363 = arith.index_cast %357 : i32 to index
    %c512_106 = arith.constant 512 : index
    %364 = vector.load %arg14[%363, %c512_106] : memref<64x1024xf32, #tpu.memory_space<vmem>>, vector<8x512xf32>
    %c0_107 = arith.constant 0 : index
    %c0_108 = arith.constant 0 : index
    %365 = vector.load %arg5[%c0_107, %c0_108] : memref<128x512xf32, #tpu.memory_space<vmem>>, vector<128x512xf32>
    %cst_109 = arith.constant dense<0.000000e+00> : vector<8x512xf32>
    %366 = tpu.matmul %348, %365, %cst_109 {dimension_numbers = #tpu.dot_dimension_numbers<[1], [0], [0], [1], [0, 0, 1, 1], [], []>} : vector<8x128xf32>, vector<128x512xf32>, vector<8x512xf32> -> vector<8x512xf32>
    %367 = arith.addf %364, %366 : vector<8x512xf32>
    %368 = vector.extract_strided_slice %362 {offsets = [0, 0], sizes = [8, 128], strides = [1, 1]} : vector<8x512xf32> to vector<8x128xf32>
    %369 = arith.negf %368 : vector<8x128xf32>
    %370 = math.exp %369 : vector<8x128xf32>
    %cst_110 = arith.constant 1.000000e+00 : f32
    %371 = vector.broadcast %cst_110 : f32 to vector<8x128xf32>
    %372 = arith.addf %371, %370 : vector<8x128xf32>
    %373 = arith.divf %371, %372 : vector<8x128xf32>
    %374 = vector.extract_strided_slice %362 {offsets = [0, 128], sizes = [8, 128], strides = [1, 1]} : vector<8x512xf32> to vector<8x128xf32>
    %375 = arith.negf %374 : vector<8x128xf32>
    %376 = math.exp %375 : vector<8x128xf32>
    %cst_111 = arith.constant 1.000000e+00 : f32
    %377 = vector.broadcast %cst_111 : f32 to vector<8x128xf32>
    %378 = arith.addf %377, %376 : vector<8x128xf32>
    %379 = arith.divf %377, %378 : vector<8x128xf32>
    %380 = vector.extract_strided_slice %362 {offsets = [0, 256], sizes = [8, 128], strides = [1, 1]} : vector<8x512xf32> to vector<8x128xf32>
    %381 = math.tanh %380 : vector<8x128xf32>
    %382 = vector.extract_strided_slice %362 {offsets = [0, 384], sizes = [8, 128], strides = [1, 1]} : vector<8x512xf32> to vector<8x128xf32>
    %383 = arith.negf %382 : vector<8x128xf32>
    %384 = math.exp %383 : vector<8x128xf32>
    %cst_112 = arith.constant 1.000000e+00 : f32
    %385 = vector.broadcast %cst_112 : f32 to vector<8x128xf32>
    %386 = arith.addf %385, %384 : vector<8x128xf32>
    %387 = arith.divf %385, %386 : vector<8x128xf32>
    %388 = arith.mulf %379, %321 : vector<8x128xf32>
    %389 = arith.mulf %373, %381 : vector<8x128xf32>
    %390 = arith.addf %388, %389 : vector<8x128xf32>
    %391 = math.tanh %390 : vector<8x128xf32>
    %392 = arith.mulf %387, %391 : vector<8x128xf32>
    %393 = vector.extract_strided_slice %367 {offsets = [0, 0], sizes = [8, 128], strides = [1, 1]} : vector<8x512xf32> to vector<8x128xf32>
    %394 = arith.negf %393 : vector<8x128xf32>
    %395 = math.exp %394 : vector<8x128xf32>
    %cst_113 = arith.constant 1.000000e+00 : f32
    %396 = vector.broadcast %cst_113 : f32 to vector<8x128xf32>
    %397 = arith.addf %396, %395 : vector<8x128xf32>
    %398 = arith.divf %396, %397 : vector<8x128xf32>
    %399 = vector.extract_strided_slice %367 {offsets = [0, 128], sizes = [8, 128], strides = [1, 1]} : vector<8x512xf32> to vector<8x128xf32>
    %400 = arith.negf %399 : vector<8x128xf32>
    %401 = math.exp %400 : vector<8x128xf32>
    %cst_114 = arith.constant 1.000000e+00 : f32
    %402 = vector.broadcast %cst_114 : f32 to vector<8x128xf32>
    %403 = arith.addf %402, %401 : vector<8x128xf32>
    %404 = arith.divf %402, %403 : vector<8x128xf32>
    %405 = vector.extract_strided_slice %367 {offsets = [0, 256], sizes = [8, 128], strides = [1, 1]} : vector<8x512xf32> to vector<8x128xf32>
    %406 = math.tanh %405 : vector<8x128xf32>
    %407 = vector.extract_strided_slice %367 {offsets = [0, 384], sizes = [8, 128], strides = [1, 1]} : vector<8x512xf32> to vector<8x128xf32>
    %408 = arith.negf %407 : vector<8x128xf32>
    %409 = math.exp %408 : vector<8x128xf32>
    %cst_115 = arith.constant 1.000000e+00 : f32
    %410 = vector.broadcast %cst_115 : f32 to vector<8x128xf32>
    %411 = arith.addf %410, %409 : vector<8x128xf32>
    %412 = arith.divf %410, %411 : vector<8x128xf32>
    %413 = arith.mulf %404, %346 : vector<8x128xf32>
    %414 = arith.mulf %398, %406 : vector<8x128xf32>
    %415 = arith.addf %413, %414 : vector<8x128xf32>
    %416 = math.tanh %415 : vector<8x128xf32>
    %417 = arith.mulf %412, %416 : vector<8x128xf32>
    %418 = arith.index_cast %355 : i32 to index
    %c0_116 = arith.constant 0 : index
    %419 = vector.load %arg15[%418, %c0_116] : memref<64x256xf32, #tpu.memory_space<vmem>>, vector<8x128xf32>
    tpu.vector_store %arg15[%418, %c0_116], %392 {strides = array<i32>} : memref<64x256xf32, #tpu.memory_space<vmem>>, vector<8x128xf32>,
    %420 = arith.index_cast %357 : i32 to index
    %c128_117 = arith.constant 128 : index
    %421 = vector.load %arg15[%420, %c128_117] : memref<64x256xf32, #tpu.memory_space<vmem>>, vector<8x128xf32>
    tpu.vector_store %arg15[%420, %c128_117], %417 {strides = array<i32>} : memref<64x256xf32, #tpu.memory_space<vmem>>, vector<8x128xf32>,
    %c6_i32 = arith.constant 6 : i32
    %c7_i32_118 = arith.constant 7 : i32
    %422 = arith.subi %c7_i32_118, %c6_i32 : i32
    %c8_i32_119 = arith.constant 8 : i32
    %423 = arith.muli %c6_i32, %c8_i32_119 : i32
    %424 = tpu.assume_multiple %423, 8 : i32
    %c8_i32_120 = arith.constant 8 : i32
    %425 = arith.muli %422, %c8_i32_120 : i32
    %426 = tpu.assume_multiple %425, 8 : i32
    %427 = arith.index_cast %424 : i32 to index
    %c0_121 = arith.constant 0 : index
    %428 = vector.load %arg14[%427, %c0_121] : memref<64x1024xf32, #tpu.memory_space<vmem>>, vector<8x512xf32>
    %c0_122 = arith.constant 0 : index
    %c0_123 = arith.constant 0 : index
    %429 = vector.load %arg4[%c0_122, %c0_123] : memref<128x512xf32, #tpu.memory_space<vmem>>, vector<128x512xf32>
    %cst_124 = arith.constant dense<0.000000e+00> : vector<8x512xf32>
    %430 = tpu.matmul %392, %429, %cst_124 {dimension_numbers = #tpu.dot_dimension_numbers<[1], [0], [0], [1], [0, 0, 1, 1], [], []>} : vector<8x128xf32>, vector<128x512xf32>, vector<8x512xf32> -> vector<8x512xf32>
    %431 = arith.addf %428, %430 : vector<8x512xf32>
    %432 = arith.index_cast %426 : i32 to index
    %c512_125 = arith.constant 512 : index
    %433 = vector.load %arg14[%432, %c512_125] : memref<64x1024xf32, #tpu.memory_space<vmem>>, vector<8x512xf32>
    %c0_126 = arith.constant 0 : index
    %c0_127 = arith.constant 0 : index
    %434 = vector.load %arg5[%c0_126, %c0_127] : memref<128x512xf32, #tpu.memory_space<vmem>>, vector<128x512xf32>
    %cst_128 = arith.constant dense<0.000000e+00> : vector<8x512xf32>
    %435 = tpu.matmul %417, %434, %cst_128 {dimension_numbers = #tpu.dot_dimension_numbers<[1], [0], [0], [1], [0, 0, 1, 1], [], []>} : vector<8x128xf32>, vector<128x512xf32>, vector<8x512xf32> -> vector<8x512xf32>
    %436 = arith.addf %433, %435 : vector<8x512xf32>
    %437 = vector.extract_strided_slice %431 {offsets = [0, 0], sizes = [8, 128], strides = [1, 1]} : vector<8x512xf32> to vector<8x128xf32>
    %438 = arith.negf %437 : vector<8x128xf32>
    %439 = math.exp %438 : vector<8x128xf32>
    %cst_129 = arith.constant 1.000000e+00 : f32
    %440 = vector.broadcast %cst_129 : f32 to vector<8x128xf32>
    %441 = arith.addf %440, %439 : vector<8x128xf32>
    %442 = arith.divf %440, %441 : vector<8x128xf32>
    %443 = vector.extract_strided_slice %431 {offsets = [0, 128], sizes = [8, 128], strides = [1, 1]} : vector<8x512xf32> to vector<8x128xf32>
    %444 = arith.negf %443 : vector<8x128xf32>
    %445 = math.exp %444 : vector<8x128xf32>
    %cst_130 = arith.constant 1.000000e+00 : f32
    %446 = vector.broadcast %cst_130 : f32 to vector<8x128xf32>
    %447 = arith.addf %446, %445 : vector<8x128xf32>
    %448 = arith.divf %446, %447 : vector<8x128xf32>
    %449 = vector.extract_strided_slice %431 {offsets = [0, 256], sizes = [8, 128], strides = [1, 1]} : vector<8x512xf32> to vector<8x128xf32>
    %450 = math.tanh %449 : vector<8x128xf32>
    %451 = vector.extract_strided_slice %431 {offsets = [0, 384], sizes = [8, 128], strides = [1, 1]} : vector<8x512xf32> to vector<8x128xf32>
    %452 = arith.negf %451 : vector<8x128xf32>
    %453 = math.exp %452 : vector<8x128xf32>
    %cst_131 = arith.constant 1.000000e+00 : f32
    %454 = vector.broadcast %cst_131 : f32 to vector<8x128xf32>
    %455 = arith.addf %454, %453 : vector<8x128xf32>
    %456 = arith.divf %454, %455 : vector<8x128xf32>
    %457 = arith.mulf %448, %390 : vector<8x128xf32>
    %458 = arith.mulf %442, %450 : vector<8x128xf32>
    %459 = arith.addf %457, %458 : vector<8x128xf32>
    %460 = math.tanh %459 : vector<8x128xf32>
    %461 = arith.mulf %456, %460 : vector<8x128xf32>
    %462 = vector.extract_strided_slice %436 {offsets = [0, 0], sizes = [8, 128], strides = [1, 1]} : vector<8x512xf32> to vector<8x128xf32>
    %463 = arith.negf %462 : vector<8x128xf32>
    %464 = math.exp %463 : vector<8x128xf32>
    %cst_132 = arith.constant 1.000000e+00 : f32
    %465 = vector.broadcast %cst_132 : f32 to vector<8x128xf32>
    %466 = arith.addf %465, %464 : vector<8x128xf32>
    %467 = arith.divf %465, %466 : vector<8x128xf32>
    %468 = vector.extract_strided_slice %436 {offsets = [0, 128], sizes = [8, 128], strides = [1, 1]} : vector<8x512xf32> to vector<8x128xf32>
    %469 = arith.negf %468 : vector<8x128xf32>
    %470 = math.exp %469 : vector<8x128xf32>
    %cst_133 = arith.constant 1.000000e+00 : f32
    %471 = vector.broadcast %cst_133 : f32 to vector<8x128xf32>
    %472 = arith.addf %471, %470 : vector<8x128xf32>
    %473 = arith.divf %471, %472 : vector<8x128xf32>
    %474 = vector.extract_strided_slice %436 {offsets = [0, 256], sizes = [8, 128], strides = [1, 1]} : vector<8x512xf32> to vector<8x128xf32>
    %475 = math.tanh %474 : vector<8x128xf32>
    %476 = vector.extract_strided_slice %436 {offsets = [0, 384], sizes = [8, 128], strides = [1, 1]} : vector<8x512xf32> to vector<8x128xf32>
    %477 = arith.negf %476 : vector<8x128xf32>
    %478 = math.exp %477 : vector<8x128xf32>
    %cst_134 = arith.constant 1.000000e+00 : f32
    %479 = vector.broadcast %cst_134 : f32 to vector<8x128xf32>
    %480 = arith.addf %479, %478 : vector<8x128xf32>
    %481 = arith.divf %479, %480 : vector<8x128xf32>
    %482 = arith.mulf %473, %415 : vector<8x128xf32>
    %483 = arith.mulf %467, %475 : vector<8x128xf32>
    %484 = arith.addf %482, %483 : vector<8x128xf32>
    %485 = math.tanh %484 : vector<8x128xf32>
    %486 = arith.mulf %481, %485 : vector<8x128xf32>
    %487 = arith.index_cast %424 : i32 to index
    %c0_135 = arith.constant 0 : index
    %488 = vector.load %arg15[%487, %c0_135] : memref<64x256xf32, #tpu.memory_space<vmem>>, vector<8x128xf32>
    tpu.vector_store %arg15[%487, %c0_135], %461 {strides = array<i32>} : memref<64x256xf32, #tpu.memory_space<vmem>>, vector<8x128xf32>,
    %489 = arith.index_cast %426 : i32 to index
    %c128_136 = arith.constant 128 : index
    %490 = vector.load %arg15[%489, %c128_136] : memref<64x256xf32, #tpu.memory_space<vmem>>, vector<8x128xf32>
    tpu.vector_store %arg15[%489, %c128_136], %486 {strides = array<i32>} : memref<64x256xf32, #tpu.memory_space<vmem>>, vector<8x128xf32>,
    %c7_i32_137 = arith.constant 7 : i32
    %c7_i32_138 = arith.constant 7 : i32
    %491 = arith.subi %c7_i32_138, %c7_i32_137 : i32
    %c8_i32_139 = arith.constant 8 : i32
    %492 = arith.muli %c7_i32_137, %c8_i32_139 : i32
    %493 = tpu.assume_multiple %492, 8 : i32
    %c8_i32_140 = arith.constant 8 : i32
    %494 = arith.muli %491, %c8_i32_140 : i32
    %495 = tpu.assume_multiple %494, 8 : i32
    %496 = arith.index_cast %493 : i32 to index
    %c0_141 = arith.constant 0 : index
    %497 = vector.load %arg14[%496, %c0_141] : memref<64x1024xf32, #tpu.memory_space<vmem>>, vector<8x512xf32>
    %c0_142 = arith.constant 0 : index
    %c0_143 = arith.constant 0 : index
    %498 = vector.load %arg4[%c0_142, %c0_143] : memref<128x512xf32, #tpu.memory_space<vmem>>, vector<128x512xf32>
    %cst_144 = arith.constant dense<0.000000e+00> : vector<8x512xf32>
    %499 = tpu.matmul %461, %498, %cst_144 {dimension_numbers = #tpu.dot_dimension_numbers<[1], [0], [0], [1], [0, 0, 1, 1], [], []>} : vector<8x128xf32>, vector<128x512xf32>, vector<8x512xf32> -> vector<8x512xf32>
    %500 = arith.addf %497, %499 : vector<8x512xf32>
    %501 = arith.index_cast %495 : i32 to index
    %c512_145 = arith.constant 512 : index
    %502 = vector.load %arg14[%501, %c512_145] : memref<64x1024xf32, #tpu.memory_space<vmem>>, vector<8x512xf32>
    %c0_146 = arith.constant 0 : index
    %c0_147 = arith.constant 0 : index
    %503 = vector.load %arg5[%c0_146, %c0_147] : memref<128x512xf32, #tpu.memory_space<vmem>>, vector<128x512xf32>
    %cst_148 = arith.constant dense<0.000000e+00> : vector<8x512xf32>
    %504 = tpu.matmul %486, %503, %cst_148 {dimension_numbers = #tpu.dot_dimension_numbers<[1], [0], [0], [1], [0, 0, 1, 1], [], []>} : vector<8x128xf32>, vector<128x512xf32>, vector<8x512xf32> -> vector<8x512xf32>
    %505 = arith.addf %502, %504 : vector<8x512xf32>
    %506 = vector.extract_strided_slice %500 {offsets = [0, 0], sizes = [8, 128], strides = [1, 1]} : vector<8x512xf32> to vector<8x128xf32>
    %507 = arith.negf %506 : vector<8x128xf32>
    %508 = math.exp %507 : vector<8x128xf32>
    %cst_149 = arith.constant 1.000000e+00 : f32
    %509 = vector.broadcast %cst_149 : f32 to vector<8x128xf32>
    %510 = arith.addf %509, %508 : vector<8x128xf32>
    %511 = arith.divf %509, %510 : vector<8x128xf32>
    %512 = vector.extract_strided_slice %500 {offsets = [0, 128], sizes = [8, 128], strides = [1, 1]} : vector<8x512xf32> to vector<8x128xf32>
    %513 = arith.negf %512 : vector<8x128xf32>
    %514 = math.exp %513 : vector<8x128xf32>
    %cst_150 = arith.constant 1.000000e+00 : f32
    %515 = vector.broadcast %cst_150 : f32 to vector<8x128xf32>
    %516 = arith.addf %515, %514 : vector<8x128xf32>
    %517 = arith.divf %515, %516 : vector<8x128xf32>
    %518 = vector.extract_strided_slice %500 {offsets = [0, 256], sizes = [8, 128], strides = [1, 1]} : vector<8x512xf32> to vector<8x128xf32>
    %519 = math.tanh %518 : vector<8x128xf32>
    %520 = vector.extract_strided_slice %500 {offsets = [0, 384], sizes = [8, 128], strides = [1, 1]} : vector<8x512xf32> to vector<8x128xf32>
    %521 = arith.negf %520 : vector<8x128xf32>
    %522 = math.exp %521 : vector<8x128xf32>
    %cst_151 = arith.constant 1.000000e+00 : f32
    %523 = vector.broadcast %cst_151 : f32 to vector<8x128xf32>
    %524 = arith.addf %523, %522 : vector<8x128xf32>
    %525 = arith.divf %523, %524 : vector<8x128xf32>
    %526 = arith.mulf %517, %459 : vector<8x128xf32>
    %527 = arith.mulf %511, %519 : vector<8x128xf32>
    %528 = arith.addf %526, %527 : vector<8x128xf32>
    %529 = math.tanh %528 : vector<8x128xf32>
    %530 = arith.mulf %525, %529 : vector<8x128xf32>
    %531 = vector.extract_strided_slice %505 {offsets = [0, 0], sizes = [8, 128], strides = [1, 1]} : vector<8x512xf32> to vector<8x128xf32>
    %532 = arith.negf %531 : vector<8x128xf32>
    %533 = math.exp %532 : vector<8x128xf32>
    %cst_152 = arith.constant 1.000000e+00 : f32
    %534 = vector.broadcast %cst_152 : f32 to vector<8x128xf32>
    %535 = arith.addf %534, %533 : vector<8x128xf32>
    %536 = arith.divf %534, %535 : vector<8x128xf32>
    %537 = vector.extract_strided_slice %505 {offsets = [0, 128], sizes = [8, 128], strides = [1, 1]} : vector<8x512xf32> to vector<8x128xf32>
    %538 = arith.negf %537 : vector<8x128xf32>
    %539 = math.exp %538 : vector<8x128xf32>
    %cst_153 = arith.constant 1.000000e+00 : f32
    %540 = vector.broadcast %cst_153 : f32 to vector<8x128xf32>
    %541 = arith.addf %540, %539 : vector<8x128xf32>
    %542 = arith.divf %540, %541 : vector<8x128xf32>
    %543 = vector.extract_strided_slice %505 {offsets = [0, 256], sizes = [8, 128], strides = [1, 1]} : vector<8x512xf32> to vector<8x128xf32>
    %544 = math.tanh %543 : vector<8x128xf32>
    %545 = vector.extract_strided_slice %505 {offsets = [0, 384], sizes = [8, 128], strides = [1, 1]} : vector<8x512xf32> to vector<8x128xf32>
    %546 = arith.negf %545 : vector<8x128xf32>
    %547 = math.exp %546 : vector<8x128xf32>
    %cst_154 = arith.constant 1.000000e+00 : f32
    %548 = vector.broadcast %cst_154 : f32 to vector<8x128xf32>
    %549 = arith.addf %548, %547 : vector<8x128xf32>
    %550 = arith.divf %548, %549 : vector<8x128xf32>
    %551 = arith.mulf %542, %484 : vector<8x128xf32>
    %552 = arith.mulf %536, %544 : vector<8x128xf32>
    %553 = arith.addf %551, %552 : vector<8x128xf32>
    %554 = math.tanh %553 : vector<8x128xf32>
    %555 = arith.mulf %550, %554 : vector<8x128xf32>
    %556 = arith.index_cast %493 : i32 to index
    %c0_155 = arith.constant 0 : index
    %557 = vector.load %arg15[%556, %c0_155] : memref<64x256xf32, #tpu.memory_space<vmem>>, vector<8x128xf32>
    tpu.vector_store %arg15[%556, %c0_155], %530 {strides = array<i32>} : memref<64x256xf32, #tpu.memory_space<vmem>>, vector<8x128xf32>,
    %558 = arith.index_cast %495 : i32 to index
    %c128_156 = arith.constant 128 : index
    %559 = vector.load %arg15[%558, %c128_156] : memref<64x256xf32, #tpu.memory_space<vmem>>, vector<8x128xf32>
    tpu.vector_store %arg15[%558, %c128_156], %555 {strides = array<i32>} : memref<64x256xf32, #tpu.memory_space<vmem>>, vector<8x128xf32>,
    %c8_i32_157 = arith.constant 8 : i32
    %c0_158 = arith.constant 0 : index
    %c0_159 = arith.constant 0 : index
    %560 = vector.load %arg15[%c0_158, %c0_159] : memref<64x256xf32, #tpu.memory_space<vmem>>, vector<64x256xf32>
    %c0_160 = arith.constant 0 : index
    %c0_161 = arith.constant 0 : index
    %561 = vector.load %arg6[%c0_160, %c0_161] : memref<256x1024xf32, #tpu.memory_space<vmem>>, vector<256x1024xf32>
    %cst_162 = arith.constant dense<0.000000e+00> : vector<64x1024xf32>
    %562 = tpu.matmul %560, %561, %cst_162 {dimension_numbers = #tpu.dot_dimension_numbers<[1], [0], [0], [1], [0, 0, 1, 1], [], []>} : vector<64x256xf32>, vector<256x1024xf32>, vector<64x1024xf32> -> vector<64x1024xf32>
    %c0_163 = arith.constant 0 : index
    %c0_164 = arith.constant 0 : index
    %563 = vector.load %arg7[%c0_163, %c0_164] : memref<1x1024xf32, #tpu.memory_space<vmem>>, vector<1x1024xf32>
    %564 = vector.broadcast %563 : vector<1x1024xf32> to vector<64x1024xf32>
    %565 = arith.addf %562, %564 : vector<64x1024xf32>
    %c0_165 = arith.constant 0 : index
    %c0_166 = arith.constant 0 : index
    %566 = vector.load %arg14[%c0_165, %c0_166] : memref<64x1024xf32, #tpu.memory_space<vmem>>, vector<64x1024xf32>
    tpu.vector_store %arg14[%c0_165, %c0_166], %565 {strides = array<i32>} : memref<64x1024xf32, #tpu.memory_space<vmem>>, vector<64x1024xf32>,
    %cst_167 = arith.constant 0.000000e+00 : f32
    %567 = vector.broadcast %cst_167 : f32 to vector<8x128xf32>
    %c0_i32_168 = arith.constant 0 : i32
    %c7_i32_169 = arith.constant 7 : i32
    %568 = arith.subi %c7_i32_169, %c0_i32_168 : i32
    %c8_i32_170 = arith.constant 8 : i32
    %569 = arith.muli %c0_i32_168, %c8_i32_170 : i32
    %570 = tpu.assume_multiple %569, 8 : i32
    %c8_i32_171 = arith.constant 8 : i32
    %571 = arith.muli %568, %c8_i32_171 : i32
    %572 = tpu.assume_multiple %571, 8 : i32
    %573 = arith.index_cast %570 : i32 to index
    %c0_172 = arith.constant 0 : index
    %574 = vector.load %arg14[%573, %c0_172] : memref<64x1024xf32, #tpu.memory_space<vmem>>, vector<8x512xf32>
    %c0_173 = arith.constant 0 : index
    %c0_174 = arith.constant 0 : index
    %575 = vector.load %arg8[%c0_173, %c0_174] : memref<128x512xf32, #tpu.memory_space<vmem>>, vector<128x512xf32>
    %cst_175 = arith.constant dense<0.000000e+00> : vector<8x512xf32>
    %576 = tpu.matmul %567, %575, %cst_175 {dimension_numbers = #tpu.dot_dimension_numbers<[1], [0], [0], [1], [0, 0, 1, 1], [], []>} : vector<8x128xf32>, vector<128x512xf32>, vector<8x512xf32> -> vector<8x512xf32>
    %577 = arith.addf %574, %576 : vector<8x512xf32>
    %578 = arith.index_cast %572 : i32 to index
    %c512_176 = arith.constant 512 : index
    %579 = vector.load %arg14[%578, %c512_176] : memref<64x1024xf32, #tpu.memory_space<vmem>>, vector<8x512xf32>
    %c0_177 = arith.constant 0 : index
    %c0_178 = arith.constant 0 : index
    %580 = vector.load %arg9[%c0_177, %c0_178] : memref<128x512xf32, #tpu.memory_space<vmem>>, vector<128x512xf32>
    %cst_179 = arith.constant dense<0.000000e+00> : vector<8x512xf32>
    %581 = tpu.matmul %567, %580, %cst_179 {dimension_numbers = #tpu.dot_dimension_numbers<[1], [0], [0], [1], [0, 0, 1, 1], [], []>} : vector<8x128xf32>, vector<128x512xf32>, vector<8x512xf32> -> vector<8x512xf32>
    %582 = arith.addf %579, %581 : vector<8x512xf32>
    %583 = vector.extract_strided_slice %577 {offsets = [0, 0], sizes = [8, 128], strides = [1, 1]} : vector<8x512xf32> to vector<8x128xf32>
    %584 = arith.negf %583 : vector<8x128xf32>
    %585 = math.exp %584 : vector<8x128xf32>
    %cst_180 = arith.constant 1.000000e+00 : f32
    %586 = vector.broadcast %cst_180 : f32 to vector<8x128xf32>
    %587 = arith.addf %586, %585 : vector<8x128xf32>
    %588 = arith.divf %586, %587 : vector<8x128xf32>
    %589 = vector.extract_strided_slice %577 {offsets = [0, 128], sizes = [8, 128], strides = [1, 1]} : vector<8x512xf32> to vector<8x128xf32>
    %590 = arith.negf %589 : vector<8x128xf32>
    %591 = math.exp %590 : vector<8x128xf32>
    %cst_181 = arith.constant 1.000000e+00 : f32
    %592 = vector.broadcast %cst_181 : f32 to vector<8x128xf32>
    %593 = arith.addf %592, %591 : vector<8x128xf32>
    %594 = arith.divf %592, %593 : vector<8x128xf32>
    %595 = vector.extract_strided_slice %577 {offsets = [0, 256], sizes = [8, 128], strides = [1, 1]} : vector<8x512xf32> to vector<8x128xf32>
    %596 = math.tanh %595 : vector<8x128xf32>
    %597 = vector.extract_strided_slice %577 {offsets = [0, 384], sizes = [8, 128], strides = [1, 1]} : vector<8x512xf32> to vector<8x128xf32>
    %598 = arith.negf %597 : vector<8x128xf32>
    %599 = math.exp %598 : vector<8x128xf32>
    %cst_182 = arith.constant 1.000000e+00 : f32
    %600 = vector.broadcast %cst_182 : f32 to vector<8x128xf32>
    %601 = arith.addf %600, %599 : vector<8x128xf32>
    %602 = arith.divf %600, %601 : vector<8x128xf32>
    %603 = arith.mulf %594, %567 : vector<8x128xf32>
    %604 = arith.mulf %588, %596 : vector<8x128xf32>
    %605 = arith.addf %603, %604 : vector<8x128xf32>
    %606 = math.tanh %605 : vector<8x128xf32>
    %607 = arith.mulf %602, %606 : vector<8x128xf32>
    %608 = vector.extract_strided_slice %582 {offsets = [0, 0], sizes = [8, 128], strides = [1, 1]} : vector<8x512xf32> to vector<8x128xf32>
    %609 = arith.negf %608 : vector<8x128xf32>
    %610 = math.exp %609 : vector<8x128xf32>
    %cst_183 = arith.constant 1.000000e+00 : f32
    %611 = vector.broadcast %cst_183 : f32 to vector<8x128xf32>
    %612 = arith.addf %611, %610 : vector<8x128xf32>
    %613 = arith.divf %611, %612 : vector<8x128xf32>
    %614 = vector.extract_strided_slice %582 {offsets = [0, 128], sizes = [8, 128], strides = [1, 1]} : vector<8x512xf32> to vector<8x128xf32>
    %615 = arith.negf %614 : vector<8x128xf32>
    %616 = math.exp %615 : vector<8x128xf32>
    %cst_184 = arith.constant 1.000000e+00 : f32
    %617 = vector.broadcast %cst_184 : f32 to vector<8x128xf32>
    %618 = arith.addf %617, %616 : vector<8x128xf32>
    %619 = arith.divf %617, %618 : vector<8x128xf32>
    %620 = vector.extract_strided_slice %582 {offsets = [0, 256], sizes = [8, 128], strides = [1, 1]} : vector<8x512xf32> to vector<8x128xf32>
    %621 = math.tanh %620 : vector<8x128xf32>
    %622 = vector.extract_strided_slice %582 {offsets = [0, 384], sizes = [8, 128], strides = [1, 1]} : vector<8x512xf32> to vector<8x128xf32>
    %623 = arith.negf %622 : vector<8x128xf32>
    %624 = math.exp %623 : vector<8x128xf32>
    %cst_185 = arith.constant 1.000000e+00 : f32
    %625 = vector.broadcast %cst_185 : f32 to vector<8x128xf32>
    %626 = arith.addf %625, %624 : vector<8x128xf32>
    %627 = arith.divf %625, %626 : vector<8x128xf32>
    %628 = arith.mulf %619, %567 : vector<8x128xf32>
    %629 = arith.mulf %613, %621 : vector<8x128xf32>
    %630 = arith.addf %628, %629 : vector<8x128xf32>
    %631 = math.tanh %630 : vector<8x128xf32>
    %632 = arith.mulf %627, %631 : vector<8x128xf32>
    %633 = arith.addf %567, %607 : vector<8x128xf32>
    %634 = arith.addf %567, %632 : vector<8x128xf32>
    %c1_i32_186 = arith.constant 1 : i32
    %c7_i32_187 = arith.constant 7 : i32
    %635 = arith.subi %c7_i32_187, %c1_i32_186 : i32
    %c8_i32_188 = arith.constant 8 : i32
    %636 = arith.muli %c1_i32_186, %c8_i32_188 : i32
    %637 = tpu.assume_multiple %636, 8 : i32
    %c8_i32_189 = arith.constant 8 : i32
    %638 = arith.muli %635, %c8_i32_189 : i32
    %639 = tpu.assume_multiple %638, 8 : i32
    %640 = arith.index_cast %637 : i32 to index
    %c0_190 = arith.constant 0 : index
    %641 = vector.load %arg14[%640, %c0_190] : memref<64x1024xf32, #tpu.memory_space<vmem>>, vector<8x512xf32>
    %c0_191 = arith.constant 0 : index
    %c0_192 = arith.constant 0 : index
    %642 = vector.load %arg8[%c0_191, %c0_192] : memref<128x512xf32, #tpu.memory_space<vmem>>, vector<128x512xf32>
    %cst_193 = arith.constant dense<0.000000e+00> : vector<8x512xf32>
    %643 = tpu.matmul %607, %642, %cst_193 {dimension_numbers = #tpu.dot_dimension_numbers<[1], [0], [0], [1], [0, 0, 1, 1], [], []>} : vector<8x128xf32>, vector<128x512xf32>, vector<8x512xf32> -> vector<8x512xf32>
    %644 = arith.addf %641, %643 : vector<8x512xf32>
    %645 = arith.index_cast %639 : i32 to index
    %c512_194 = arith.constant 512 : index
    %646 = vector.load %arg14[%645, %c512_194] : memref<64x1024xf32, #tpu.memory_space<vmem>>, vector<8x512xf32>
    %c0_195 = arith.constant 0 : index
    %c0_196 = arith.constant 0 : index
    %647 = vector.load %arg9[%c0_195, %c0_196] : memref<128x512xf32, #tpu.memory_space<vmem>>, vector<128x512xf32>
    %cst_197 = arith.constant dense<0.000000e+00> : vector<8x512xf32>
    %648 = tpu.matmul %632, %647, %cst_197 {dimension_numbers = #tpu.dot_dimension_numbers<[1], [0], [0], [1], [0, 0, 1, 1], [], []>} : vector<8x128xf32>, vector<128x512xf32>, vector<8x512xf32> -> vector<8x512xf32>
    %649 = arith.addf %646, %648 : vector<8x512xf32>
    %650 = vector.extract_strided_slice %644 {offsets = [0, 0], sizes = [8, 128], strides = [1, 1]} : vector<8x512xf32> to vector<8x128xf32>
    %651 = arith.negf %650 : vector<8x128xf32>
    %652 = math.exp %651 : vector<8x128xf32>
    %cst_198 = arith.constant 1.000000e+00 : f32
    %653 = vector.broadcast %cst_198 : f32 to vector<8x128xf32>
    %654 = arith.addf %653, %652 : vector<8x128xf32>
    %655 = arith.divf %653, %654 : vector<8x128xf32>
    %656 = vector.extract_strided_slice %644 {offsets = [0, 128], sizes = [8, 128], strides = [1, 1]} : vector<8x512xf32> to vector<8x128xf32>
    %657 = arith.negf %656 : vector<8x128xf32>
    %658 = math.exp %657 : vector<8x128xf32>
    %cst_199 = arith.constant 1.000000e+00 : f32
    %659 = vector.broadcast %cst_199 : f32 to vector<8x128xf32>
    %660 = arith.addf %659, %658 : vector<8x128xf32>
    %661 = arith.divf %659, %660 : vector<8x128xf32>
    %662 = vector.extract_strided_slice %644 {offsets = [0, 256], sizes = [8, 128], strides = [1, 1]} : vector<8x512xf32> to vector<8x128xf32>
    %663 = math.tanh %662 : vector<8x128xf32>
    %664 = vector.extract_strided_slice %644 {offsets = [0, 384], sizes = [8, 128], strides = [1, 1]} : vector<8x512xf32> to vector<8x128xf32>
    %665 = arith.negf %664 : vector<8x128xf32>
    %666 = math.exp %665 : vector<8x128xf32>
    %cst_200 = arith.constant 1.000000e+00 : f32
    %667 = vector.broadcast %cst_200 : f32 to vector<8x128xf32>
    %668 = arith.addf %667, %666 : vector<8x128xf32>
    %669 = arith.divf %667, %668 : vector<8x128xf32>
    %670 = arith.mulf %661, %605 : vector<8x128xf32>
    %671 = arith.mulf %655, %663 : vector<8x128xf32>
    %672 = arith.addf %670, %671 : vector<8x128xf32>
    %673 = math.tanh %672 : vector<8x128xf32>
    %674 = arith.mulf %669, %673 : vector<8x128xf32>
    %675 = vector.extract_strided_slice %649 {offsets = [0, 0], sizes = [8, 128], strides = [1, 1]} : vector<8x512xf32> to vector<8x128xf32>
    %676 = arith.negf %675 : vector<8x128xf32>
    %677 = math.exp %676 : vector<8x128xf32>
    %cst_201 = arith.constant 1.000000e+00 : f32
    %678 = vector.broadcast %cst_201 : f32 to vector<8x128xf32>
    %679 = arith.addf %678, %677 : vector<8x128xf32>
    %680 = arith.divf %678, %679 : vector<8x128xf32>
    %681 = vector.extract_strided_slice %649 {offsets = [0, 128], sizes = [8, 128], strides = [1, 1]} : vector<8x512xf32> to vector<8x128xf32>
    %682 = arith.negf %681 : vector<8x128xf32>
    %683 = math.exp %682 : vector<8x128xf32>
    %cst_202 = arith.constant 1.000000e+00 : f32
    %684 = vector.broadcast %cst_202 : f32 to vector<8x128xf32>
    %685 = arith.addf %684, %683 : vector<8x128xf32>
    %686 = arith.divf %684, %685 : vector<8x128xf32>
    %687 = vector.extract_strided_slice %649 {offsets = [0, 256], sizes = [8, 128], strides = [1, 1]} : vector<8x512xf32> to vector<8x128xf32>
    %688 = math.tanh %687 : vector<8x128xf32>
    %689 = vector.extract_strided_slice %649 {offsets = [0, 384], sizes = [8, 128], strides = [1, 1]} : vector<8x512xf32> to vector<8x128xf32>
    %690 = arith.negf %689 : vector<8x128xf32>
    %691 = math.exp %690 : vector<8x128xf32>
    %cst_203 = arith.constant 1.000000e+00 : f32
    %692 = vector.broadcast %cst_203 : f32 to vector<8x128xf32>
    %693 = arith.addf %692, %691 : vector<8x128xf32>
    %694 = arith.divf %692, %693 : vector<8x128xf32>
    %695 = arith.mulf %686, %630 : vector<8x128xf32>
    %696 = arith.mulf %680, %688 : vector<8x128xf32>
    %697 = arith.addf %695, %696 : vector<8x128xf32>
    %698 = math.tanh %697 : vector<8x128xf32>
    %699 = arith.mulf %694, %698 : vector<8x128xf32>
    %700 = arith.addf %633, %674 : vector<8x128xf32>
    %701 = arith.addf %634, %699 : vector<8x128xf32>
    %c2_i32_204 = arith.constant 2 : i32
    %c7_i32_205 = arith.constant 7 : i32
    %702 = arith.subi %c7_i32_205, %c2_i32_204 : i32
    %c8_i32_206 = arith.constant 8 : i32
    %703 = arith.muli %c2_i32_204, %c8_i32_206 : i32
    %704 = tpu.assume_multiple %703, 8 : i32
    %c8_i32_207 = arith.constant 8 : i32
    %705 = arith.muli %702, %c8_i32_207 : i32
    %706 = tpu.assume_multiple %705, 8 : i32
    %707 = arith.index_cast %704 : i32 to index
    %c0_208 = arith.constant 0 : index
    %708 = vector.load %arg14[%707, %c0_208] : memref<64x1024xf32, #tpu.memory_space<vmem>>, vector<8x512xf32>
    %c0_209 = arith.constant 0 : index
    %c0_210 = arith.constant 0 : index
    %709 = vector.load %arg8[%c0_209, %c0_210] : memref<128x512xf32, #tpu.memory_space<vmem>>, vector<128x512xf32>
    %cst_211 = arith.constant dense<0.000000e+00> : vector<8x512xf32>
    %710 = tpu.matmul %674, %709, %cst_211 {dimension_numbers = #tpu.dot_dimension_numbers<[1], [0], [0], [1], [0, 0, 1, 1], [], []>} : vector<8x128xf32>, vector<128x512xf32>, vector<8x512xf32> -> vector<8x512xf32>
    %711 = arith.addf %708, %710 : vector<8x512xf32>
    %712 = arith.index_cast %706 : i32 to index
    %c512_212 = arith.constant 512 : index
    %713 = vector.load %arg14[%712, %c512_212] : memref<64x1024xf32, #tpu.memory_space<vmem>>, vector<8x512xf32>
    %c0_213 = arith.constant 0 : index
    %c0_214 = arith.constant 0 : index
    %714 = vector.load %arg9[%c0_213, %c0_214] : memref<128x512xf32, #tpu.memory_space<vmem>>, vector<128x512xf32>
    %cst_215 = arith.constant dense<0.000000e+00> : vector<8x512xf32>
    %715 = tpu.matmul %699, %714, %cst_215 {dimension_numbers = #tpu.dot_dimension_numbers<[1], [0], [0], [1], [0, 0, 1, 1], [], []>} : vector<8x128xf32>, vector<128x512xf32>, vector<8x512xf32> -> vector<8x512xf32>
    %716 = arith.addf %713, %715 : vector<8x512xf32>
    %717 = vector.extract_strided_slice %711 {offsets = [0, 0], sizes = [8, 128], strides = [1, 1]} : vector<8x512xf32> to vector<8x128xf32>
    %718 = arith.negf %717 : vector<8x128xf32>
    %719 = math.exp %718 : vector<8x128xf32>
    %cst_216 = arith.constant 1.000000e+00 : f32
    %720 = vector.broadcast %cst_216 : f32 to vector<8x128xf32>
    %721 = arith.addf %720, %719 : vector<8x128xf32>
    %722 = arith.divf %720, %721 : vector<8x128xf32>
    %723 = vector.extract_strided_slice %711 {offsets = [0, 128], sizes = [8, 128], strides = [1, 1]} : vector<8x512xf32> to vector<8x128xf32>
    %724 = arith.negf %723 : vector<8x128xf32>
    %725 = math.exp %724 : vector<8x128xf32>
    %cst_217 = arith.constant 1.000000e+00 : f32
    %726 = vector.broadcast %cst_217 : f32 to vector<8x128xf32>
    %727 = arith.addf %726, %725 : vector<8x128xf32>
    %728 = arith.divf %726, %727 : vector<8x128xf32>
    %729 = vector.extract_strided_slice %711 {offsets = [0, 256], sizes = [8, 128], strides = [1, 1]} : vector<8x512xf32> to vector<8x128xf32>
    %730 = math.tanh %729 : vector<8x128xf32>
    %731 = vector.extract_strided_slice %711 {offsets = [0, 384], sizes = [8, 128], strides = [1, 1]} : vector<8x512xf32> to vector<8x128xf32>
    %732 = arith.negf %731 : vector<8x128xf32>
    %733 = math.exp %732 : vector<8x128xf32>
    %cst_218 = arith.constant 1.000000e+00 : f32
    %734 = vector.broadcast %cst_218 : f32 to vector<8x128xf32>
    %735 = arith.addf %734, %733 : vector<8x128xf32>
    %736 = arith.divf %734, %735 : vector<8x128xf32>
    %737 = arith.mulf %728, %672 : vector<8x128xf32>
    %738 = arith.mulf %722, %730 : vector<8x128xf32>
    %739 = arith.addf %737, %738 : vector<8x128xf32>
    %740 = math.tanh %739 : vector<8x128xf32>
    %741 = arith.mulf %736, %740 : vector<8x128xf32>
    %742 = vector.extract_strided_slice %716 {offsets = [0, 0], sizes = [8, 128], strides = [1, 1]} : vector<8x512xf32> to vector<8x128xf32>
    %743 = arith.negf %742 : vector<8x128xf32>
    %744 = math.exp %743 : vector<8x128xf32>
    %cst_219 = arith.constant 1.000000e+00 : f32
    %745 = vector.broadcast %cst_219 : f32 to vector<8x128xf32>
    %746 = arith.addf %745, %744 : vector<8x128xf32>
    %747 = arith.divf %745, %746 : vector<8x128xf32>
    %748 = vector.extract_strided_slice %716 {offsets = [0, 128], sizes = [8, 128], strides = [1, 1]} : vector<8x512xf32> to vector<8x128xf32>
    %749 = arith.negf %748 : vector<8x128xf32>
    %750 = math.exp %749 : vector<8x128xf32>
    %cst_220 = arith.constant 1.000000e+00 : f32
    %751 = vector.broadcast %cst_220 : f32 to vector<8x128xf32>
    %752 = arith.addf %751, %750 : vector<8x128xf32>
    %753 = arith.divf %751, %752 : vector<8x128xf32>
    %754 = vector.extract_strided_slice %716 {offsets = [0, 256], sizes = [8, 128], strides = [1, 1]} : vector<8x512xf32> to vector<8x128xf32>
    %755 = math.tanh %754 : vector<8x128xf32>
    %756 = vector.extract_strided_slice %716 {offsets = [0, 384], sizes = [8, 128], strides = [1, 1]} : vector<8x512xf32> to vector<8x128xf32>
    %757 = arith.negf %756 : vector<8x128xf32>
    %758 = math.exp %757 : vector<8x128xf32>
    %cst_221 = arith.constant 1.000000e+00 : f32
    %759 = vector.broadcast %cst_221 : f32 to vector<8x128xf32>
    %760 = arith.addf %759, %758 : vector<8x128xf32>
    %761 = arith.divf %759, %760 : vector<8x128xf32>
    %762 = arith.mulf %753, %697 : vector<8x128xf32>
    %763 = arith.mulf %747, %755 : vector<8x128xf32>
    %764 = arith.addf %762, %763 : vector<8x128xf32>
    %765 = math.tanh %764 : vector<8x128xf32>
    %766 = arith.mulf %761, %765 : vector<8x128xf32>
    %767 = arith.addf %700, %741 : vector<8x128xf32>
    %768 = arith.addf %701, %766 : vector<8x128xf32>
    %c3_i32_222 = arith.constant 3 : i32
    %c7_i32_223 = arith.constant 7 : i32
    %769 = arith.subi %c7_i32_223, %c3_i32_222 : i32
    %c8_i32_224 = arith.constant 8 : i32
    %770 = arith.muli %c3_i32_222, %c8_i32_224 : i32
    %771 = tpu.assume_multiple %770, 8 : i32
    %c8_i32_225 = arith.constant 8 : i32
    %772 = arith.muli %769, %c8_i32_225 : i32
    %773 = tpu.assume_multiple %772, 8 : i32
    %774 = arith.index_cast %771 : i32 to index
    %c0_226 = arith.constant 0 : index
    %775 = vector.load %arg14[%774, %c0_226] : memref<64x1024xf32, #tpu.memory_space<vmem>>, vector<8x512xf32>
    %c0_227 = arith.constant 0 : index
    %c0_228 = arith.constant 0 : index
    %776 = vector.load %arg8[%c0_227, %c0_228] : memref<128x512xf32, #tpu.memory_space<vmem>>, vector<128x512xf32>
    %cst_229 = arith.constant dense<0.000000e+00> : vector<8x512xf32>
    %777 = tpu.matmul %741, %776, %cst_229 {dimension_numbers = #tpu.dot_dimension_numbers<[1], [0], [0], [1], [0, 0, 1, 1], [], []>} : vector<8x128xf32>, vector<128x512xf32>, vector<8x512xf32> -> vector<8x512xf32>
    %778 = arith.addf %775, %777 : vector<8x512xf32>
    %779 = arith.index_cast %773 : i32 to index
    %c512_230 = arith.constant 512 : index
    %780 = vector.load %arg14[%779, %c512_230] : memref<64x1024xf32, #tpu.memory_space<vmem>>, vector<8x512xf32>
    %c0_231 = arith.constant 0 : index
    %c0_232 = arith.constant 0 : index
    %781 = vector.load %arg9[%c0_231, %c0_232] : memref<128x512xf32, #tpu.memory_space<vmem>>, vector<128x512xf32>
    %cst_233 = arith.constant dense<0.000000e+00> : vector<8x512xf32>
    %782 = tpu.matmul %766, %781, %cst_233 {dimension_numbers = #tpu.dot_dimension_numbers<[1], [0], [0], [1], [0, 0, 1, 1], [], []>} : vector<8x128xf32>, vector<128x512xf32>, vector<8x512xf32> -> vector<8x512xf32>
    %783 = arith.addf %780, %782 : vector<8x512xf32>
    %784 = vector.extract_strided_slice %778 {offsets = [0, 0], sizes = [8, 128], strides = [1, 1]} : vector<8x512xf32> to vector<8x128xf32>
    %785 = arith.negf %784 : vector<8x128xf32>
    %786 = math.exp %785 : vector<8x128xf32>
    %cst_234 = arith.constant 1.000000e+00 : f32
    %787 = vector.broadcast %cst_234 : f32 to vector<8x128xf32>
    %788 = arith.addf %787, %786 : vector<8x128xf32>
    %789 = arith.divf %787, %788 : vector<8x128xf32>
    %790 = vector.extract_strided_slice %778 {offsets = [0, 128], sizes = [8, 128], strides = [1, 1]} : vector<8x512xf32> to vector<8x128xf32>
    %791 = arith.negf %790 : vector<8x128xf32>
    %792 = math.exp %791 : vector<8x128xf32>
    %cst_235 = arith.constant 1.000000e+00 : f32
    %793 = vector.broadcast %cst_235 : f32 to vector<8x128xf32>
    %794 = arith.addf %793, %792 : vector<8x128xf32>
    %795 = arith.divf %793, %794 : vector<8x128xf32>
    %796 = vector.extract_strided_slice %778 {offsets = [0, 256], sizes = [8, 128], strides = [1, 1]} : vector<8x512xf32> to vector<8x128xf32>
    %797 = math.tanh %796 : vector<8x128xf32>
    %798 = vector.extract_strided_slice %778 {offsets = [0, 384], sizes = [8, 128], strides = [1, 1]} : vector<8x512xf32> to vector<8x128xf32>
    %799 = arith.negf %798 : vector<8x128xf32>
    %800 = math.exp %799 : vector<8x128xf32>
    %cst_236 = arith.constant 1.000000e+00 : f32
    %801 = vector.broadcast %cst_236 : f32 to vector<8x128xf32>
    %802 = arith.addf %801, %800 : vector<8x128xf32>
    %803 = arith.divf %801, %802 : vector<8x128xf32>
    %804 = arith.mulf %795, %739 : vector<8x128xf32>
    %805 = arith.mulf %789, %797 : vector<8x128xf32>
    %806 = arith.addf %804, %805 : vector<8x128xf32>
    %807 = math.tanh %806 : vector<8x128xf32>
    %808 = arith.mulf %803, %807 : vector<8x128xf32>
    %809 = vector.extract_strided_slice %783 {offsets = [0, 0], sizes = [8, 128], strides = [1, 1]} : vector<8x512xf32> to vector<8x128xf32>
    %810 = arith.negf %809 : vector<8x128xf32>
    %811 = math.exp %810 : vector<8x128xf32>
    %cst_237 = arith.constant 1.000000e+00 : f32
    %812 = vector.broadcast %cst_237 : f32 to vector<8x128xf32>
    %813 = arith.addf %812, %811 : vector<8x128xf32>
    %814 = arith.divf %812, %813 : vector<8x128xf32>
    %815 = vector.extract_strided_slice %783 {offsets = [0, 128], sizes = [8, 128], strides = [1, 1]} : vector<8x512xf32> to vector<8x128xf32>
    %816 = arith.negf %815 : vector<8x128xf32>
    %817 = math.exp %816 : vector<8x128xf32>
    %cst_238 = arith.constant 1.000000e+00 : f32
    %818 = vector.broadcast %cst_238 : f32 to vector<8x128xf32>
    %819 = arith.addf %818, %817 : vector<8x128xf32>
    %820 = arith.divf %818, %819 : vector<8x128xf32>
    %821 = vector.extract_strided_slice %783 {offsets = [0, 256], sizes = [8, 128], strides = [1, 1]} : vector<8x512xf32> to vector<8x128xf32>
    %822 = math.tanh %821 : vector<8x128xf32>
    %823 = vector.extract_strided_slice %783 {offsets = [0, 384], sizes = [8, 128], strides = [1, 1]} : vector<8x512xf32> to vector<8x128xf32>
    %824 = arith.negf %823 : vector<8x128xf32>
    %825 = math.exp %824 : vector<8x128xf32>
    %cst_239 = arith.constant 1.000000e+00 : f32
    %826 = vector.broadcast %cst_239 : f32 to vector<8x128xf32>
    %827 = arith.addf %826, %825 : vector<8x128xf32>
    %828 = arith.divf %826, %827 : vector<8x128xf32>
    %829 = arith.mulf %820, %764 : vector<8x128xf32>
    %830 = arith.mulf %814, %822 : vector<8x128xf32>
    %831 = arith.addf %829, %830 : vector<8x128xf32>
    %832 = math.tanh %831 : vector<8x128xf32>
    %833 = arith.mulf %828, %832 : vector<8x128xf32>
    %834 = arith.addf %767, %808 : vector<8x128xf32>
    %835 = arith.addf %768, %833 : vector<8x128xf32>
    %c4_i32_240 = arith.constant 4 : i32
    %c7_i32_241 = arith.constant 7 : i32
    %836 = arith.subi %c7_i32_241, %c4_i32_240 : i32
    %c8_i32_242 = arith.constant 8 : i32
    %837 = arith.muli %c4_i32_240, %c8_i32_242 : i32
    %838 = tpu.assume_multiple %837, 8 : i32
    %c8_i32_243 = arith.constant 8 : i32
    %839 = arith.muli %836, %c8_i32_243 : i32
    %840 = tpu.assume_multiple %839, 8 : i32
    %841 = arith.index_cast %838 : i32 to index
    %c0_244 = arith.constant 0 : index
    %842 = vector.load %arg14[%841, %c0_244] : memref<64x1024xf32, #tpu.memory_space<vmem>>, vector<8x512xf32>
    %c0_245 = arith.constant 0 : index
    %c0_246 = arith.constant 0 : index
    %843 = vector.load %arg8[%c0_245, %c0_246] : memref<128x512xf32, #tpu.memory_space<vmem>>, vector<128x512xf32>
    %cst_247 = arith.constant dense<0.000000e+00> : vector<8x512xf32>
    %844 = tpu.matmul %808, %843, %cst_247 {dimension_numbers = #tpu.dot_dimension_numbers<[1], [0], [0], [1], [0, 0, 1, 1], [], []>} : vector<8x128xf32>, vector<128x512xf32>, vector<8x512xf32> -> vector<8x512xf32>
    %845 = arith.addf %842, %844 : vector<8x512xf32>
    %846 = arith.index_cast %840 : i32 to index
    %c512_248 = arith.constant 512 : index
    %847 = vector.load %arg14[%846, %c512_248] : memref<64x1024xf32, #tpu.memory_space<vmem>>, vector<8x512xf32>
    %c0_249 = arith.constant 0 : index
    %c0_250 = arith.constant 0 : index
    %848 = vector.load %arg9[%c0_249, %c0_250] : memref<128x512xf32, #tpu.memory_space<vmem>>, vector<128x512xf32>
    %cst_251 = arith.constant dense<0.000000e+00> : vector<8x512xf32>
    %849 = tpu.matmul %833, %848, %cst_251 {dimension_numbers = #tpu.dot_dimension_numbers<[1], [0], [0], [1], [0, 0, 1, 1], [], []>} : vector<8x128xf32>, vector<128x512xf32>, vector<8x512xf32> -> vector<8x512xf32>
    %850 = arith.addf %847, %849 : vector<8x512xf32>
    %851 = vector.extract_strided_slice %845 {offsets = [0, 0], sizes = [8, 128], strides = [1, 1]} : vector<8x512xf32> to vector<8x128xf32>
    %852 = arith.negf %851 : vector<8x128xf32>
    %853 = math.exp %852 : vector<8x128xf32>
    %cst_252 = arith.constant 1.000000e+00 : f32
    %854 = vector.broadcast %cst_252 : f32 to vector<8x128xf32>
    %855 = arith.addf %854, %853 : vector<8x128xf32>
    %856 = arith.divf %854, %855 : vector<8x128xf32>
    %857 = vector.extract_strided_slice %845 {offsets = [0, 128], sizes = [8, 128], strides = [1, 1]} : vector<8x512xf32> to vector<8x128xf32>
    %858 = arith.negf %857 : vector<8x128xf32>
    %859 = math.exp %858 : vector<8x128xf32>
    %cst_253 = arith.constant 1.000000e+00 : f32
    %860 = vector.broadcast %cst_253 : f32 to vector<8x128xf32>
    %861 = arith.addf %860, %859 : vector<8x128xf32>
    %862 = arith.divf %860, %861 : vector<8x128xf32>
    %863 = vector.extract_strided_slice %845 {offsets = [0, 256], sizes = [8, 128], strides = [1, 1]} : vector<8x512xf32> to vector<8x128xf32>
    %864 = math.tanh %863 : vector<8x128xf32>
    %865 = vector.extract_strided_slice %845 {offsets = [0, 384], sizes = [8, 128], strides = [1, 1]} : vector<8x512xf32> to vector<8x128xf32>
    %866 = arith.negf %865 : vector<8x128xf32>
    %867 = math.exp %866 : vector<8x128xf32>
    %cst_254 = arith.constant 1.000000e+00 : f32
    %868 = vector.broadcast %cst_254 : f32 to vector<8x128xf32>
    %869 = arith.addf %868, %867 : vector<8x128xf32>
    %870 = arith.divf %868, %869 : vector<8x128xf32>
    %871 = arith.mulf %862, %806 : vector<8x128xf32>
    %872 = arith.mulf %856, %864 : vector<8x128xf32>
    %873 = arith.addf %871, %872 : vector<8x128xf32>
    %874 = math.tanh %873 : vector<8x128xf32>
    %875 = arith.mulf %870, %874 : vector<8x128xf32>
    %876 = vector.extract_strided_slice %850 {offsets = [0, 0], sizes = [8, 128], strides = [1, 1]} : vector<8x512xf32> to vector<8x128xf32>
    %877 = arith.negf %876 : vector<8x128xf32>
    %878 = math.exp %877 : vector<8x128xf32>
    %cst_255 = arith.constant 1.000000e+00 : f32
    %879 = vector.broadcast %cst_255 : f32 to vector<8x128xf32>
    %880 = arith.addf %879, %878 : vector<8x128xf32>
    %881 = arith.divf %879, %880 : vector<8x128xf32>
    %882 = vector.extract_strided_slice %850 {offsets = [0, 128], sizes = [8, 128], strides = [1, 1]} : vector<8x512xf32> to vector<8x128xf32>
    %883 = arith.negf %882 : vector<8x128xf32>
    %884 = math.exp %883 : vector<8x128xf32>
    %cst_256 = arith.constant 1.000000e+00 : f32
    %885 = vector.broadcast %cst_256 : f32 to vector<8x128xf32>
    %886 = arith.addf %885, %884 : vector<8x128xf32>
    %887 = arith.divf %885, %886 : vector<8x128xf32>
    %888 = vector.extract_strided_slice %850 {offsets = [0, 256], sizes = [8, 128], strides = [1, 1]} : vector<8x512xf32> to vector<8x128xf32>
    %889 = math.tanh %888 : vector<8x128xf32>
    %890 = vector.extract_strided_slice %850 {offsets = [0, 384], sizes = [8, 128], strides = [1, 1]} : vector<8x512xf32> to vector<8x128xf32>
    %891 = arith.negf %890 : vector<8x128xf32>
    %892 = math.exp %891 : vector<8x128xf32>
    %cst_257 = arith.constant 1.000000e+00 : f32
    %893 = vector.broadcast %cst_257 : f32 to vector<8x128xf32>
    %894 = arith.addf %893, %892 : vector<8x128xf32>
    %895 = arith.divf %893, %894 : vector<8x128xf32>
    %896 = arith.mulf %887, %831 : vector<8x128xf32>
    %897 = arith.mulf %881, %889 : vector<8x128xf32>
    %898 = arith.addf %896, %897 : vector<8x128xf32>
    %899 = math.tanh %898 : vector<8x128xf32>
    %900 = arith.mulf %895, %899 : vector<8x128xf32>
    %901 = arith.addf %834, %875 : vector<8x128xf32>
    %902 = arith.addf %835, %900 : vector<8x128xf32>
    %c5_i32_258 = arith.constant 5 : i32
    %c7_i32_259 = arith.constant 7 : i32
    %903 = arith.subi %c7_i32_259, %c5_i32_258 : i32
    %c8_i32_260 = arith.constant 8 : i32
    %904 = arith.muli %c5_i32_258, %c8_i32_260 : i32
    %905 = tpu.assume_multiple %904, 8 : i32
    %c8_i32_261 = arith.constant 8 : i32
    %906 = arith.muli %903, %c8_i32_261 : i32
    %907 = tpu.assume_multiple %906, 8 : i32
    %908 = arith.index_cast %905 : i32 to index
    %c0_262 = arith.constant 0 : index
    %909 = vector.load %arg14[%908, %c0_262] : memref<64x1024xf32, #tpu.memory_space<vmem>>, vector<8x512xf32>
    %c0_263 = arith.constant 0 : index
    %c0_264 = arith.constant 0 : index
    %910 = vector.load %arg8[%c0_263, %c0_264] : memref<128x512xf32, #tpu.memory_space<vmem>>, vector<128x512xf32>
    %cst_265 = arith.constant dense<0.000000e+00> : vector<8x512xf32>
    %911 = tpu.matmul %875, %910, %cst_265 {dimension_numbers = #tpu.dot_dimension_numbers<[1], [0], [0], [1], [0, 0, 1, 1], [], []>} : vector<8x128xf32>, vector<128x512xf32>, vector<8x512xf32> -> vector<8x512xf32>
    %912 = arith.addf %909, %911 : vector<8x512xf32>
    %913 = arith.index_cast %907 : i32 to index
    %c512_266 = arith.constant 512 : index
    %914 = vector.load %arg14[%913, %c512_266] : memref<64x1024xf32, #tpu.memory_space<vmem>>, vector<8x512xf32>
    %c0_267 = arith.constant 0 : index
    %c0_268 = arith.constant 0 : index
    %915 = vector.load %arg9[%c0_267, %c0_268] : memref<128x512xf32, #tpu.memory_space<vmem>>, vector<128x512xf32>
    %cst_269 = arith.constant dense<0.000000e+00> : vector<8x512xf32>
    %916 = tpu.matmul %900, %915, %cst_269 {dimension_numbers = #tpu.dot_dimension_numbers<[1], [0], [0], [1], [0, 0, 1, 1], [], []>} : vector<8x128xf32>, vector<128x512xf32>, vector<8x512xf32> -> vector<8x512xf32>
    %917 = arith.addf %914, %916 : vector<8x512xf32>
    %918 = vector.extract_strided_slice %912 {offsets = [0, 0], sizes = [8, 128], strides = [1, 1]} : vector<8x512xf32> to vector<8x128xf32>
    %919 = arith.negf %918 : vector<8x128xf32>
    %920 = math.exp %919 : vector<8x128xf32>
    %cst_270 = arith.constant 1.000000e+00 : f32
    %921 = vector.broadcast %cst_270 : f32 to vector<8x128xf32>
    %922 = arith.addf %921, %920 : vector<8x128xf32>
    %923 = arith.divf %921, %922 : vector<8x128xf32>
    %924 = vector.extract_strided_slice %912 {offsets = [0, 128], sizes = [8, 128], strides = [1, 1]} : vector<8x512xf32> to vector<8x128xf32>
    %925 = arith.negf %924 : vector<8x128xf32>
    %926 = math.exp %925 : vector<8x128xf32>
    %cst_271 = arith.constant 1.000000e+00 : f32
    %927 = vector.broadcast %cst_271 : f32 to vector<8x128xf32>
    %928 = arith.addf %927, %926 : vector<8x128xf32>
    %929 = arith.divf %927, %928 : vector<8x128xf32>
    %930 = vector.extract_strided_slice %912 {offsets = [0, 256], sizes = [8, 128], strides = [1, 1]} : vector<8x512xf32> to vector<8x128xf32>
    %931 = math.tanh %930 : vector<8x128xf32>
    %932 = vector.extract_strided_slice %912 {offsets = [0, 384], sizes = [8, 128], strides = [1, 1]} : vector<8x512xf32> to vector<8x128xf32>
    %933 = arith.negf %932 : vector<8x128xf32>
    %934 = math.exp %933 : vector<8x128xf32>
    %cst_272 = arith.constant 1.000000e+00 : f32
    %935 = vector.broadcast %cst_272 : f32 to vector<8x128xf32>
    %936 = arith.addf %935, %934 : vector<8x128xf32>
    %937 = arith.divf %935, %936 : vector<8x128xf32>
    %938 = arith.mulf %929, %873 : vector<8x128xf32>
    %939 = arith.mulf %923, %931 : vector<8x128xf32>
    %940 = arith.addf %938, %939 : vector<8x128xf32>
    %941 = math.tanh %940 : vector<8x128xf32>
    %942 = arith.mulf %937, %941 : vector<8x128xf32>
    %943 = vector.extract_strided_slice %917 {offsets = [0, 0], sizes = [8, 128], strides = [1, 1]} : vector<8x512xf32> to vector<8x128xf32>
    %944 = arith.negf %943 : vector<8x128xf32>
    %945 = math.exp %944 : vector<8x128xf32>
    %cst_273 = arith.constant 1.000000e+00 : f32
    %946 = vector.broadcast %cst_273 : f32 to vector<8x128xf32>
    %947 = arith.addf %946, %945 : vector<8x128xf32>
    %948 = arith.divf %946, %947 : vector<8x128xf32>
    %949 = vector.extract_strided_slice %917 {offsets = [0, 128], sizes = [8, 128], strides = [1, 1]} : vector<8x512xf32> to vector<8x128xf32>
    %950 = arith.negf %949 : vector<8x128xf32>
    %951 = math.exp %950 : vector<8x128xf32>
    %cst_274 = arith.constant 1.000000e+00 : f32
    %952 = vector.broadcast %cst_274 : f32 to vector<8x128xf32>
    %953 = arith.addf %952, %951 : vector<8x128xf32>
    %954 = arith.divf %952, %953 : vector<8x128xf32>
    %955 = vector.extract_strided_slice %917 {offsets = [0, 256], sizes = [8, 128], strides = [1, 1]} : vector<8x512xf32> to vector<8x128xf32>
    %956 = math.tanh %955 : vector<8x128xf32>
    %957 = vector.extract_strided_slice %917 {offsets = [0, 384], sizes = [8, 128], strides = [1, 1]} : vector<8x512xf32> to vector<8x128xf32>
    %958 = arith.negf %957 : vector<8x128xf32>
    %959 = math.exp %958 : vector<8x128xf32>
    %cst_275 = arith.constant 1.000000e+00 : f32
    %960 = vector.broadcast %cst_275 : f32 to vector<8x128xf32>
    %961 = arith.addf %960, %959 : vector<8x128xf32>
    %962 = arith.divf %960, %961 : vector<8x128xf32>
    %963 = arith.mulf %954, %898 : vector<8x128xf32>
    %964 = arith.mulf %948, %956 : vector<8x128xf32>
    %965 = arith.addf %963, %964 : vector<8x128xf32>
    %966 = math.tanh %965 : vector<8x128xf32>
    %967 = arith.mulf %962, %966 : vector<8x128xf32>
    %968 = arith.addf %901, %942 : vector<8x128xf32>
    %969 = arith.addf %902, %967 : vector<8x128xf32>
    %c6_i32_276 = arith.constant 6 : i32
    %c7_i32_277 = arith.constant 7 : i32
    %970 = arith.subi %c7_i32_277, %c6_i32_276 : i32
    %c8_i32_278 = arith.constant 8 : i32
    %971 = arith.muli %c6_i32_276, %c8_i32_278 : i32
    %972 = tpu.assume_multiple %971, 8 : i32
    %c8_i32_279 = arith.constant 8 : i32
    %973 = arith.muli %970, %c8_i32_279 : i32
    %974 = tpu.assume_multiple %973, 8 : i32
    %975 = arith.index_cast %972 : i32 to index
    %c0_280 = arith.constant 0 : index
    %976 = vector.load %arg14[%975, %c0_280] : memref<64x1024xf32, #tpu.memory_space<vmem>>, vector<8x512xf32>
    %c0_281 = arith.constant 0 : index
    %c0_282 = arith.constant 0 : index
    %977 = vector.load %arg8[%c0_281, %c0_282] : memref<128x512xf32, #tpu.memory_space<vmem>>, vector<128x512xf32>
    %cst_283 = arith.constant dense<0.000000e+00> : vector<8x512xf32>
    %978 = tpu.matmul %942, %977, %cst_283 {dimension_numbers = #tpu.dot_dimension_numbers<[1], [0], [0], [1], [0, 0, 1, 1], [], []>} : vector<8x128xf32>, vector<128x512xf32>, vector<8x512xf32> -> vector<8x512xf32>
    %979 = arith.addf %976, %978 : vector<8x512xf32>
    %980 = arith.index_cast %974 : i32 to index
    %c512_284 = arith.constant 512 : index
    %981 = vector.load %arg14[%980, %c512_284] : memref<64x1024xf32, #tpu.memory_space<vmem>>, vector<8x512xf32>
    %c0_285 = arith.constant 0 : index
    %c0_286 = arith.constant 0 : index
    %982 = vector.load %arg9[%c0_285, %c0_286] : memref<128x512xf32, #tpu.memory_space<vmem>>, vector<128x512xf32>
    %cst_287 = arith.constant dense<0.000000e+00> : vector<8x512xf32>
    %983 = tpu.matmul %967, %982, %cst_287 {dimension_numbers = #tpu.dot_dimension_numbers<[1], [0], [0], [1], [0, 0, 1, 1], [], []>} : vector<8x128xf32>, vector<128x512xf32>, vector<8x512xf32> -> vector<8x512xf32>
    %984 = arith.addf %981, %983 : vector<8x512xf32>
    %985 = vector.extract_strided_slice %979 {offsets = [0, 0], sizes = [8, 128], strides = [1, 1]} : vector<8x512xf32> to vector<8x128xf32>
    %986 = arith.negf %985 : vector<8x128xf32>
    %987 = math.exp %986 : vector<8x128xf32>
    %cst_288 = arith.constant 1.000000e+00 : f32
    %988 = vector.broadcast %cst_288 : f32 to vector<8x128xf32>
    %989 = arith.addf %988, %987 : vector<8x128xf32>
    %990 = arith.divf %988, %989 : vector<8x128xf32>
    %991 = vector.extract_strided_slice %979 {offsets = [0, 128], sizes = [8, 128], strides = [1, 1]} : vector<8x512xf32> to vector<8x128xf32>
    %992 = arith.negf %991 : vector<8x128xf32>
    %993 = math.exp %992 : vector<8x128xf32>
    %cst_289 = arith.constant 1.000000e+00 : f32
    %994 = vector.broadcast %cst_289 : f32 to vector<8x128xf32>
    %995 = arith.addf %994, %993 : vector<8x128xf32>
    %996 = arith.divf %994, %995 : vector<8x128xf32>
    %997 = vector.extract_strided_slice %979 {offsets = [0, 256], sizes = [8, 128], strides = [1, 1]} : vector<8x512xf32> to vector<8x128xf32>
    %998 = math.tanh %997 : vector<8x128xf32>
    %999 = vector.extract_strided_slice %979 {offsets = [0, 384], sizes = [8, 128], strides = [1, 1]} : vector<8x512xf32> to vector<8x128xf32>
    %1000 = arith.negf %999 : vector<8x128xf32>
    %1001 = math.exp %1000 : vector<8x128xf32>
    %cst_290 = arith.constant 1.000000e+00 : f32
    %1002 = vector.broadcast %cst_290 : f32 to vector<8x128xf32>
    %1003 = arith.addf %1002, %1001 : vector<8x128xf32>
    %1004 = arith.divf %1002, %1003 : vector<8x128xf32>
    %1005 = arith.mulf %996, %940 : vector<8x128xf32>
    %1006 = arith.mulf %990, %998 : vector<8x128xf32>
    %1007 = arith.addf %1005, %1006 : vector<8x128xf32>
    %1008 = math.tanh %1007 : vector<8x128xf32>
    %1009 = arith.mulf %1004, %1008 : vector<8x128xf32>
    %1010 = vector.extract_strided_slice %984 {offsets = [0, 0], sizes = [8, 128], strides = [1, 1]} : vector<8x512xf32> to vector<8x128xf32>
    %1011 = arith.negf %1010 : vector<8x128xf32>
    %1012 = math.exp %1011 : vector<8x128xf32>
    %cst_291 = arith.constant 1.000000e+00 : f32
    %1013 = vector.broadcast %cst_291 : f32 to vector<8x128xf32>
    %1014 = arith.addf %1013, %1012 : vector<8x128xf32>
    %1015 = arith.divf %1013, %1014 : vector<8x128xf32>
    %1016 = vector.extract_strided_slice %984 {offsets = [0, 128], sizes = [8, 128], strides = [1, 1]} : vector<8x512xf32> to vector<8x128xf32>
    %1017 = arith.negf %1016 : vector<8x128xf32>
    %1018 = math.exp %1017 : vector<8x128xf32>
    %cst_292 = arith.constant 1.000000e+00 : f32
    %1019 = vector.broadcast %cst_292 : f32 to vector<8x128xf32>
    %1020 = arith.addf %1019, %1018 : vector<8x128xf32>
    %1021 = arith.divf %1019, %1020 : vector<8x128xf32>
    %1022 = vector.extract_strided_slice %984 {offsets = [0, 256], sizes = [8, 128], strides = [1, 1]} : vector<8x512xf32> to vector<8x128xf32>
    %1023 = math.tanh %1022 : vector<8x128xf32>
    %1024 = vector.extract_strided_slice %984 {offsets = [0, 384], sizes = [8, 128], strides = [1, 1]} : vector<8x512xf32> to vector<8x128xf32>
    %1025 = arith.negf %1024 : vector<8x128xf32>
    %1026 = math.exp %1025 : vector<8x128xf32>
    %cst_293 = arith.constant 1.000000e+00 : f32
    %1027 = vector.broadcast %cst_293 : f32 to vector<8x128xf32>
    %1028 = arith.addf %1027, %1026 : vector<8x128xf32>
    %1029 = arith.divf %1027, %1028 : vector<8x128xf32>
    %1030 = arith.mulf %1021, %965 : vector<8x128xf32>
    %1031 = arith.mulf %1015, %1023 : vector<8x128xf32>
    %1032 = arith.addf %1030, %1031 : vector<8x128xf32>
    %1033 = math.tanh %1032 : vector<8x128xf32>
    %1034 = arith.mulf %1029, %1033 : vector<8x128xf32>
    %1035 = arith.addf %968, %1009 : vector<8x128xf32>
    %1036 = arith.addf %969, %1034 : vector<8x128xf32>
    %c7_i32_294 = arith.constant 7 : i32
    %c7_i32_295 = arith.constant 7 : i32
    %1037 = arith.subi %c7_i32_295, %c7_i32_294 : i32
    %c8_i32_296 = arith.constant 8 : i32
    %1038 = arith.muli %c7_i32_294, %c8_i32_296 : i32
    %1039 = tpu.assume_multiple %1038, 8 : i32
    %c8_i32_297 = arith.constant 8 : i32
    %1040 = arith.muli %1037, %c8_i32_297 : i32
    %1041 = tpu.assume_multiple %1040, 8 : i32
    %1042 = arith.index_cast %1039 : i32 to index
    %c0_298 = arith.constant 0 : index
    %1043 = vector.load %arg14[%1042, %c0_298] : memref<64x1024xf32, #tpu.memory_space<vmem>>, vector<8x512xf32>
    %c0_299 = arith.constant 0 : index
    %c0_300 = arith.constant 0 : index
    %1044 = vector.load %arg8[%c0_299, %c0_300] : memref<128x512xf32, #tpu.memory_space<vmem>>, vector<128x512xf32>
    %cst_301 = arith.constant dense<0.000000e+00> : vector<8x512xf32>
    %1045 = tpu.matmul %1009, %1044, %cst_301 {dimension_numbers = #tpu.dot_dimension_numbers<[1], [0], [0], [1], [0, 0, 1, 1], [], []>} : vector<8x128xf32>, vector<128x512xf32>, vector<8x512xf32> -> vector<8x512xf32>
    %1046 = arith.addf %1043, %1045 : vector<8x512xf32>
    %1047 = arith.index_cast %1041 : i32 to index
    %c512_302 = arith.constant 512 : index
    %1048 = vector.load %arg14[%1047, %c512_302] : memref<64x1024xf32, #tpu.memory_space<vmem>>, vector<8x512xf32>
    %c0_303 = arith.constant 0 : index
    %c0_304 = arith.constant 0 : index
    %1049 = vector.load %arg9[%c0_303, %c0_304] : memref<128x512xf32, #tpu.memory_space<vmem>>, vector<128x512xf32>
    %cst_305 = arith.constant dense<0.000000e+00> : vector<8x512xf32>
    %1050 = tpu.matmul %1034, %1049, %cst_305 {dimension_numbers = #tpu.dot_dimension_numbers<[1], [0], [0], [1], [0, 0, 1, 1], [], []>} : vector<8x128xf32>, vector<128x512xf32>, vector<8x512xf32> -> vector<8x512xf32>
    %1051 = arith.addf %1048, %1050 : vector<8x512xf32>
    %1052 = vector.extract_strided_slice %1046 {offsets = [0, 0], sizes = [8, 128], strides = [1, 1]} : vector<8x512xf32> to vector<8x128xf32>
    %1053 = arith.negf %1052 : vector<8x128xf32>
    %1054 = math.exp %1053 : vector<8x128xf32>
    %cst_306 = arith.constant 1.000000e+00 : f32
    %1055 = vector.broadcast %cst_306 : f32 to vector<8x128xf32>
    %1056 = arith.addf %1055, %1054 : vector<8x128xf32>
    %1057 = arith.divf %1055, %1056 : vector<8x128xf32>
    %1058 = vector.extract_strided_slice %1046 {offsets = [0, 128], sizes = [8, 128], strides = [1, 1]} : vector<8x512xf32> to vector<8x128xf32>
    %1059 = arith.negf %1058 : vector<8x128xf32>
    %1060 = math.exp %1059 : vector<8x128xf32>
    %cst_307 = arith.constant 1.000000e+00 : f32
    %1061 = vector.broadcast %cst_307 : f32 to vector<8x128xf32>
    %1062 = arith.addf %1061, %1060 : vector<8x128xf32>
    %1063 = arith.divf %1061, %1062 : vector<8x128xf32>
    %1064 = vector.extract_strided_slice %1046 {offsets = [0, 256], sizes = [8, 128], strides = [1, 1]} : vector<8x512xf32> to vector<8x128xf32>
    %1065 = math.tanh %1064 : vector<8x128xf32>
    %1066 = vector.extract_strided_slice %1046 {offsets = [0, 384], sizes = [8, 128], strides = [1, 1]} : vector<8x512xf32> to vector<8x128xf32>
    %1067 = arith.negf %1066 : vector<8x128xf32>
    %1068 = math.exp %1067 : vector<8x128xf32>
    %cst_308 = arith.constant 1.000000e+00 : f32
    %1069 = vector.broadcast %cst_308 : f32 to vector<8x128xf32>
    %1070 = arith.addf %1069, %1068 : vector<8x128xf32>
    %1071 = arith.divf %1069, %1070 : vector<8x128xf32>
    %1072 = arith.mulf %1063, %1007 : vector<8x128xf32>
    %1073 = arith.mulf %1057, %1065 : vector<8x128xf32>
    %1074 = arith.addf %1072, %1073 : vector<8x128xf32>
    %1075 = math.tanh %1074 : vector<8x128xf32>
    %1076 = arith.mulf %1071, %1075 : vector<8x128xf32>
    %1077 = vector.extract_strided_slice %1051 {offsets = [0, 0], sizes = [8, 128], strides = [1, 1]} : vector<8x512xf32> to vector<8x128xf32>
    %1078 = arith.negf %1077 : vector<8x128xf32>
    %1079 = math.exp %1078 : vector<8x128xf32>
    %cst_309 = arith.constant 1.000000e+00 : f32
    %1080 = vector.broadcast %cst_309 : f32 to vector<8x128xf32>
    %1081 = arith.addf %1080, %1079 : vector<8x128xf32>
    %1082 = arith.divf %1080, %1081 : vector<8x128xf32>
    %1083 = vector.extract_strided_slice %1051 {offsets = [0, 128], sizes = [8, 128], strides = [1, 1]} : vector<8x512xf32> to vector<8x128xf32>
    %1084 = arith.negf %1083 : vector<8x128xf32>
    %1085 = math.exp %1084 : vector<8x128xf32>
    %cst_310 = arith.constant 1.000000e+00 : f32
    %1086 = vector.broadcast %cst_310 : f32 to vector<8x128xf32>
    %1087 = arith.addf %1086, %1085 : vector<8x128xf32>
    %1088 = arith.divf %1086, %1087 : vector<8x128xf32>
    %1089 = vector.extract_strided_slice %1051 {offsets = [0, 256], sizes = [8, 128], strides = [1, 1]} : vector<8x512xf32> to vector<8x128xf32>
    %1090 = math.tanh %1089 : vector<8x128xf32>
    %1091 = vector.extract_strided_slice %1051 {offsets = [0, 384], sizes = [8, 128], strides = [1, 1]} : vector<8x512xf32> to vector<8x128xf32>
    %1092 = arith.negf %1091 : vector<8x128xf32>
    %1093 = math.exp %1092 : vector<8x128xf32>
    %cst_311 = arith.constant 1.000000e+00 : f32
    %1094 = vector.broadcast %cst_311 : f32 to vector<8x128xf32>
    %1095 = arith.addf %1094, %1093 : vector<8x128xf32>
    %1096 = arith.divf %1094, %1095 : vector<8x128xf32>
    %1097 = arith.mulf %1088, %1032 : vector<8x128xf32>
    %1098 = arith.mulf %1082, %1090 : vector<8x128xf32>
    %1099 = arith.addf %1097, %1098 : vector<8x128xf32>
    %1100 = math.tanh %1099 : vector<8x128xf32>
    %1101 = arith.mulf %1096, %1100 : vector<8x128xf32>
    %1102 = arith.addf %1035, %1076 : vector<8x128xf32>
    %1103 = arith.addf %1036, %1101 : vector<8x128xf32>
    %c8_i32_312 = arith.constant 8 : i32
    %cst_313 = arith.constant 1.250000e-01 : f32
    %1104 = vector.broadcast %cst_313 : f32 to vector<8x128xf32>
    %1105 = arith.mulf %1102, %1104 : vector<8x128xf32>
    %c0_314 = arith.constant 0 : index
    %c0_315 = arith.constant 0 : index
    %1106 = vector.load %arg10[%c0_314, %c0_315] : memref<128x128xf32, #tpu.memory_space<vmem>>, vector<128x128xf32>
    %cst_316 = arith.constant dense<0.000000e+00> : vector<8x128xf32>
    %1107 = tpu.matmul %1105, %1106, %cst_316 {dimension_numbers = #tpu.dot_dimension_numbers<[1], [0], [0], [1], [0, 0, 1, 1], [], []>} : vector<8x128xf32>, vector<128x128xf32>, vector<8x128xf32> -> vector<8x128xf32>
    %cst_317 = arith.constant 1.250000e-01 : f32
    %1108 = vector.broadcast %cst_317 : f32 to vector<8x128xf32>
    %1109 = arith.mulf %1103, %1108 : vector<8x128xf32>
    %c0_318 = arith.constant 0 : index
    %c0_319 = arith.constant 0 : index
    %1110 = vector.load %arg11[%c0_318, %c0_319] : memref<128x128xf32, #tpu.memory_space<vmem>>, vector<128x128xf32>
    %cst_320 = arith.constant dense<0.000000e+00> : vector<8x128xf32>
    %1111 = tpu.matmul %1109, %1110, %cst_320 {dimension_numbers = #tpu.dot_dimension_numbers<[1], [0], [0], [1], [0, 0, 1, 1], [], []>} : vector<8x128xf32>, vector<128x128xf32>, vector<8x128xf32> -> vector<8x128xf32>
    %1112 = arith.addf %1107, %1111 : vector<8x128xf32>
    %c0_321 = arith.constant 0 : index
    %c0_322 = arith.constant 0 : index
    %1113 = vector.load %arg12[%c0_321, %c0_322] : memref<1x128xf32, #tpu.memory_space<vmem>>, vector<1x128xf32>
    %1114 = vector.broadcast %1113 : vector<1x128xf32> to vector<8x128xf32>
    %1115 = arith.addf %1112, %1114 : vector<8x128xf32>
    %c0_323 = arith.constant 0 : index
    %c0_324 = arith.constant 0 : index
    %1116 = vector.load %arg13[%c0_323, %c0_324] : memref<8x128xf32, #tpu.memory_space<vmem>>, vector<8x128xf32>
    tpu.vector_store %arg13[%c0_323, %c0_324], %1115 {strides = array<i32>} : memref<8x128xf32, #tpu.memory_space<vmem>>, vector<8x128xf32>,
    return
  }
  func.func @transform_0(%arg0: i32) -> (i32, i32) {
    %c0_i32 = arith.constant 0 : i32
    %c0_i32_0 = arith.constant 0 : i32
    %c0_i32_1 = arith.constant 0 : i32
    return %c0_i32, %c0_i32_0 : i32, i32
  }
  func.func @transform_1(%arg0: i32) -> (i32, i32) {
    %c0_i32 = arith.constant 0 : i32
    %c0_i32_0 = arith.constant 0 : i32
    %c0_i32_1 = arith.constant 0 : i32
    return %c0_i32, %c0_i32_0 : i32, i32
  }
  func.func @transform_2(%arg0: i32) -> (i32, i32) {
    %c0_i32 = arith.constant 0 : i32
    %c0_i32_0 = arith.constant 0 : i32
    %c0_i32_1 = arith.constant 0 : i32
    return %c0_i32, %c0_i32_0 : i32, i32
  }
  func.func @transform_3(%arg0: i32) -> (i32, i32) {
    %c0_i32 = arith.constant 0 : i32
    %c0_i32_0 = arith.constant 0 : i32
    %c0_i32_1 = arith.constant 0 : i32
    return %c0_i32, %c0_i32_0 : i32, i32
  }
  func.func @transform_4(%arg0: i32) -> (i32, i32) {
    %c0_i32 = arith.constant 0 : i32
    %c0_i32_0 = arith.constant 0 : i32
    %c0_i32_1 = arith.constant 0 : i32
    return %c0_i32, %c0_i32_0 : i32, i32
  }
  func.func @transform_5(%arg0: i32) -> (i32, i32) {
    %c0_i32 = arith.constant 0 : i32
    %c0_i32_0 = arith.constant 0 : i32
    %c0_i32_1 = arith.constant 0 : i32
    return %c0_i32, %c0_i32_0 : i32, i32
  }
  func.func @transform_6(%arg0: i32) -> (i32, i32) {
    %c0_i32 = arith.constant 0 : i32
    %c0_i32_0 = arith.constant 0 : i32
    %c0_i32_1 = arith.constant 0 : i32
    return %c0_i32, %c0_i32_0 : i32, i32
  }
  func.func @transform_7(%arg0: i32) -> (i32, i32) {
    %c0_i32 = arith.constant 0 : i32
    %c0_i32_0 = arith.constant 0 : i32
    %c0_i32_1 = arith.constant 0 : i32
    return %c0_i32, %c0_i32_0 : i32, i32
  }
  func.func @transform_8(%arg0: i32) -> (i32, i32) {
    %c0_i32 = arith.constant 0 : i32
    %c0_i32_0 = arith.constant 0 : i32
    %c0_i32_1 = arith.constant 0 : i32
    return %c0_i32, %c0_i32_0 : i32, i32
  }
  func.func @transform_9(%arg0: i32) -> (i32, i32) {
    %c0_i32 = arith.constant 0 : i32
    %c0_i32_0 = arith.constant 0 : i32
    %c0_i32_1 = arith.constant 0 : i32
    return %c0_i32, %c0_i32_0 : i32, i32
  }
  func.func @transform_10(%arg0: i32) -> (i32, i32) {
    %c0_i32 = arith.constant 0 : i32
    %c0_i32_0 = arith.constant 0 : i32
    %c0_i32_1 = arith.constant 0 : i32
    return %c0_i32, %c0_i32_0 : i32, i32
  }
  func.func @transform_11(%arg0: i32) -> (i32, i32) {
    %c0_i32 = arith.constant 0 : i32
    %c0_i32_0 = arith.constant 0 : i32
    %c0_i32_1 = arith.constant 0 : i32
    return %c0_i32, %c0_i32_0 : i32, i32
  }
  func.func @transform_12(%arg0: i32) -> (i32, i32) {
    %c0_i32 = arith.constant 0 : i32
    %c0_i32_0 = arith.constant 0 : i32
    %c0_i32_1 = arith.constant 0 : i32
    return %c0_i32, %c0_i32_0 : i32, i32
  }
}

</mosaic_0001>

<bundles_post_ra>
// kernel: lstm_model.1
= control target key start
LH: loop header
LB: loop body
LE: loop exit
PB: predicated region body
PF: predicated region fallthrough
CT: control target
= control target key end

     0   :  { %17 = vsyncpa [#allocation5], 0  ;;  %s14840_s0 = inlined_call_operand.vmem [shape: f32[64,32], index: 0, kind: input, shape index: {}]   ;;  %s14841_s1 = inlined_call_operand.vmem [shape: f32[32,1024], index: 1, kind: input, shape index: {}]   ;;  %s14842_s2 = inlined_call_operand.vmem [shape: f32[1,1024], index: 2, kind: input, shape index: {}]   ;;  %s14843_s3 = inlined_call_operand.hbm [shape: f32[128,512], index: 3, kind: input, shape index: {}]   ;;  %s14844_s4 = inlined_call_operand.hbm [shape: f32[128,512], index: 4, kind: input, shape index: {}]   ;;  %s14845_s5 = inlined_call_operand.hbm [shape: f32[256,1024], index: 5, kind: input, shape index: {}]   ;;  %s14846_s6 = inlined_call_operand.vmem [shape: f32[1,1024], index: 6, kind: input, shape index: {}]   ;;  %s14847_s7 = inlined_call_operand.hbm [shape: f32[128,512], index: 7, kind: input, shape index: {}]   ;;  %s14848_s8 = inlined_call_operand.hbm [shape: f32[128,512], index: 8, kind: input, shape index: {}]   ;;  %s14849_s9 = inlined_call_operand.vmem [shape: f32[128,128], index: 9, kind: input, shape index: {}]   ;;  %s14850_s10 = inlined_call_operand.hbm [shape: f32[128,128], index: 10, kind: input, shape index: {}]   ;;  %s14851_s11 = inlined_call_operand.vmem [shape: f32[1,128], index: 11, kind: input, shape index: {}]   ;;  %s14852_s12 = inlined_call_operand.vmem [shape: f32[8,128], index: 12, kind: output, shape index: {}]  }
   0x1   :  { %18 = vsyncpa [#allocation7], 0 }
   0x2   :  { %19 = vsyncpa [#allocation10], 0 }
   0x3   :  { %20 = vsyncpa [#allocation13], 0  ;;  %s12121_s21 = smov [#allocation6]   ;;  %s12122_s23 = smov [#allocation9]  }
   0x4   :  { %s44_s22 = sshll.u32 %s12121_s21, 4  ;;  %s70_s24 = sshll.u32 %s12122_s23, 4  ;;  %s45_s22 = int_to_ptr.vmem [resolvable:$true] %s44_s22  ;;  %s12201_s24 = int_to_ptr.vmem [resolvable:$true] %s70_s24 }
   0x5   :  { %s11981_s27 = scalar_lea.hbm %s14844_s4, 8192 }
   0x6   :  { %p11982_p0 = scmp.ne.s32.totalorder %s14844_s4, %s11981_s27  ;;  %p11985_p1 = scmp.lt.u32.totalorder %s11981_s27, %s14844_s4 }
   0x8   :  { %p11987_p2 = pnand %p11985_p1, %p11982_p0 }
   0xa   :  { %11990 = shalt.err (!%p11987_p2)
}
   0xb   :  { %s11991_s14 = scalar_lea.vmem %s45_s22, 8192  ;;  %p11996_p4 = scmp.lt.s32.totalorder %s45_s22, %s45_s22 }
   0xc   :  { %p11992_p3 = scmp.ne.s32.totalorder %s45_s22, %s11991_s14  ;;  %p11997_p5 = scmp.lt.s32.totalorder %s11991_s14, %s11991_s14 }
   0xe   :  { %p11998_p6 = por %p11997_p5, %p11996_p4 }
  0x10   :  { %p11999_p7 = pnand %p11998_p6, %p11992_p3 }
  0x12   :  { %12002 = shalt.err (!%p11999_p7)
}
  0x13   :  { %s12123_s15 = smov 512   ;;  %s12124_s16 = smov 32  }
  0x14   :  { %50 = dma.hbm_to_vmem [thread:$0]  %s14844_s4, 8192, %s45_s22, [#allocation7], %s12123_s15, %s12123_s15, %s12124_s16  }
  0x15   :  { %s12003_s21 = scalar_lea.hbm %s14847_s7, 8192 }
  0x16   :  { %p12004_p8 = scmp.ne.s32.totalorder %s14847_s7, %s12003_s21  ;;  %p12007_p9 = scmp.lt.u32.totalorder %s12003_s21, %s14847_s7 }
  0x18   :  { %p12009_p10 = pnand %p12007_p9, %p12004_p8 }
  0x1a   :  { %12012 = shalt.err (!%p12009_p10)
}
  0x1b   :  { %s12013_s28 = scalar_lea.vmem %s12201_s24, 8192  ;;  %p12018_p12 = scmp.lt.s32.totalorder %s12201_s24, %s12201_s24 }
  0x1c   :  { %p12014_p11 = scmp.ne.s32.totalorder %s12201_s24, %s12013_s28  ;;  %p12019_p13 = scmp.lt.s32.totalorder %s12013_s28, %s12013_s28 }
  0x1e   :  { %p12020_p0 = por %p12019_p13, %p12018_p12 }
  0x20   :  { %p12021_p1 = pnand %p12020_p0, %p12014_p11 }
  0x22   :  { %12024 = shalt.err (!%p12021_p1)
}
  0x23   :  { %76 = dma.hbm_to_vmem [thread:$0]  %s14847_s7, 8192, %s12201_s24, [#allocation10], %s12123_s15, %s12123_s15, %s12124_s16  }
  0x24   :  { %s12125_s29 = smov [#allocation4]   ;;  %s12126_s13 = smov [#allocation8]  }
  0x25   :  { %s32_s30 = sshll.u32 %s12125_s29, 4  ;;  %s56_s14 = sshll.u32 %s12126_s13, 4  ;;  %s33_s30 = int_to_ptr.vmem [resolvable:$true] %s32_s30  ;;  %s12238_s14 = int_to_ptr.vmem [resolvable:$true] %s56_s14 }
  0x26   :  { %s12025_s19 = scalar_lea.hbm %s14843_s3, 8192 }
  0x27   :  { %p12026_p2 = scmp.ne.s32.totalorder %s14843_s3, %s12025_s19  ;;  %p12029_p3 = scmp.lt.u32.totalorder %s12025_s19, %s14843_s3 }
  0x29   :  { %p12031_p4 = pnand %p12029_p3, %p12026_p2 }
  0x2b   :  { %12034 = shalt.err (!%p12031_p4)
}
  0x2c   :  { %s12035_s7 = scalar_lea.vmem %s33_s30, 8192  ;;  %p12040_p6 = scmp.lt.s32.totalorder %s33_s30, %s33_s30 }
  0x2d   :  { %p12036_p5 = scmp.ne.s32.totalorder %s33_s30, %s12035_s7  ;;  %p12041_p7 = scmp.lt.s32.totalorder %s12035_s7, %s12035_s7 }
  0x2f   :  { %p12042_p8 = por %p12041_p7, %p12040_p6 }
  0x31   :  { %p12043_p9 = pnand %p12042_p8, %p12036_p5 }
  0x33   :  { %12046 = shalt.err (!%p12043_p9)
}
  0x34   :  { %38 = dma.hbm_to_vmem [thread:$0]  %s14843_s3, 8192, %s33_s30, [#allocation5], %s12123_s15, %s12123_s15, %s12124_s16  }
  0x35   :  { %s12047_s4 = scalar_lea.hbm %s14845_s5, 32768 }
  0x36   :  { %p12048_p10 = scmp.ne.s32.totalorder %s14845_s5, %s12047_s4  ;;  %p12051_p11 = scmp.lt.u32.totalorder %s12047_s4, %s14845_s5 }
  0x38   :  { %p12053_p12 = pnand %p12051_p11, %p12048_p10 }
  0x3a   :  { %12056 = shalt.err (!%p12053_p12)
}
  0x3b   :  { %s12057_s18 = scalar_lea.vmem %s12238_s14, 32768  ;;  %p12062_p0 = scmp.lt.s32.totalorder %s12238_s14, %s12238_s14 }
  0x3c   :  { %p12058_p13 = scmp.ne.s32.totalorder %s12238_s14, %s12057_s18  ;;  %p12063_p1 = scmp.lt.s32.totalorder %s12057_s18, %s12057_s18 }
  0x3e   :  { %p12064_p2 = por %p12063_p1, %p12062_p0 }
  0x40   :  { %p12065_p3 = pnand %p12064_p2, %p12058_p13 }
  0x42   :  { %12068 = shalt.err (!%p12065_p3)
}
  0x43   :  { %s12127_s3 = smov 1024   ;;  %s12128_s30 = smov 64  }
  0x44   :  { %62 = dma.hbm_to_vmem [thread:$0]  %s14845_s5, 32768, %s12238_s14, [#allocation7], %s12127_s3, %s12127_s3, %s12128_s30  }
  0x45   :  { %s12129_s21 = smov [#allocation11]   ;;  %s12130_s25 = smov [#allocation12]  }
  0x46   :  { %s82_s23 = sshll.u32 %s12129_s21, 4  ;;  %s96_s7 = sshll.u32 %s12130_s25, 4  ;;  %s83_s23 = int_to_ptr.vmem [resolvable:$true] %s82_s23  ;;  %s12272_s7 = int_to_ptr.vmem [resolvable:$true] %s96_s7 }
  0x47   :  { %s12069_s27 = scalar_lea.hbm %s14848_s8, 8192 }
  0x48   :  { %p12070_p4 = scmp.ne.s32.totalorder %s14848_s8, %s12069_s27  ;;  %p12073_p5 = scmp.lt.u32.totalorder %s12069_s27, %s14848_s8 }
  0x4a   :  { %p12075_p6 = pnand %p12073_p5, %p12070_p4 }
  0x4c   :  { %12078 = shalt.err (!%p12075_p6)
}
  0x4d   :  { %s12079_s5 = scalar_lea.vmem %s83_s23, 8192  ;;  %p12084_p8 = scmp.lt.s32.totalorder %s83_s23, %s83_s23 }
  0x4e   :  { %p12080_p7 = scmp.ne.s32.totalorder %s83_s23, %s12079_s5  ;;  %p12085_p9 = scmp.lt.s32.totalorder %s12079_s5, %s12079_s5 }
  0x50   :  { %p12086_p10 = por %p12085_p9, %p12084_p8 }
  0x52   :  { %p12087_p11 = pnand %p12086_p10, %p12080_p7 }
  0x54   :  { %12090 = shalt.err (!%p12087_p11)
}
  0x55   :  { %88 = dma.hbm_to_vmem [thread:$0]  %s14848_s8, 8192, %s83_s23, [#allocation10], %s12123_s15, %s12123_s15, %s12124_s16  }
  0x56   :  { %s12091_s3 = scalar_lea.hbm %s14850_s10, 2048 }
  0x57   :  { %p12092_p12 = scmp.ne.s32.totalorder %s14850_s10, %s12091_s3  ;;  %p12095_p13 = scmp.lt.u32.totalorder %s12091_s3, %s14850_s10 }
  0x59   :  { %p12097_p0 = pnand %p12095_p13, %p12092_p12 }
  0x5b   :  { %12100 = shalt.err (!%p12097_p0)
}
  0x5c   :  { %s12101_s25 = scalar_lea.vmem %s12272_s7, 2048  ;;  %p12106_p2 = scmp.lt.s32.totalorder %s12272_s7, %s12272_s7 }
  0x5d   :  { %p12102_p1 = scmp.ne.s32.totalorder %s12272_s7, %s12101_s25  ;;  %p12107_p3 = scmp.lt.s32.totalorder %s12101_s25, %s12101_s25 }
  0x5f   :  { %p12108_p4 = por %p12107_p3, %p12106_p2 }
  0x61   :  { %p12109_p5 = pnand %p12108_p4, %p12102_p1 }
  0x63   :  { %12112 = shalt.err (!%p12109_p5)
}
  0x64   :  { %s12131_s8 = smov 128   ;;  %s12132_s15 = smov 8  }
  0x65   :  { %102 = dma.hbm_to_vmem [thread:$0]  %s14850_s10, 2048, %s12272_s7, [#allocation13], %s12131_s8, %s12131_s8, %s12132_s15  }
  0x66   :  { %12113 = dma.done.wait [#allocation5], 8192  }
  0x67   :  { %12114 = vsyncadd [#allocation5], 4294959104 }
  0x68   :  { %12115 = dma.done.wait [#allocation7], 40960  }
  0x69   :  { %12116 = vsyncadd [#allocation7], 4294926336 }
  0x6a   :  { %12117 = dma.done.wait [#allocation10], 16384  }
  0x6b   :  { %12118 = vsyncadd [#allocation10], 4294950912 }
  0x6c   :  { %12119 = dma.done.wait [#allocation13], 2048  }
  0x6d   :  { %12120 = vsyncadd [#allocation13], 4294965248  ;;  %v14853_v0 = vmov 0.0   ;;  %v132_v1 = vld [vmem:[%s14841_s1 + $0x8] sm:$0xff]  ;;  %v134_v3 = vld [vmem:[%s14841_s1 + $0x18] sm:$0xff]  ;;  %vm205_vm0 = vcmask 261120  }
  0x6e   :  { %294 = vmatprep.mubr.f32.mxu0 %v14853_v0  ;;  %407 = vmatprep.mubr.f32.mxu1 %v14853_v0  ;;  %v140_v2 = vld [vmem:[%s14841_s1 + $0x48] sm:$0xff]  ;;  %v142_v5 = vld [vmem:[%s14841_s1 + $0x58] sm:$0xff]  ;;  %v131_v6 = vld [vmem:[%s14841_s1] sm:$0xff]  ;;  %vm12135_vm1 = vmmov 0  }
  0x6f   :  { %v8814_v4 = vpack.c.bf16 %v140_v2, %v132_v1  ;;  %v139_v7 = vld [vmem:[%s14841_s1 + $0x40] sm:$0xff]  ;;  %v8822_v8 = vpack.c.bf16 %v142_v5, %v134_v3  ;;  %v133_v10 = vld [vmem:[%s14841_s1 + $0x10] sm:$0xff]  ;;  %v148_v12 = vld [vmem:[%s14841_s1 + $0x88] sm:$0xff] }
  0x70   :  { %v8816_v9 = vpack.c.bf16 %v139_v7, %v131_v6  ;;  %v141_v11 = vld [vmem:[%s14841_s1 + $0x50] sm:$0xff]  ;;  %v156_v14 = vld [vmem:[%s14841_s1 + $0xc8] sm:$0xff]  ;;  %v150_v15 = vld [vmem:[%s14841_s1 + $0x98] sm:$0xff] }
  0x71   :  { %8815 = vmatprep.subr.bf16.mxu0 %v8814_v4  ;;  %v8824_v13 = vpack.c.bf16 %v141_v11, %v133_v10  ;;  %v158_v16 = vld [vmem:[%s14841_s1 + $0xd8] sm:$0xff]  ;;  %8823 = vmatprep.subr.bf16.mxu1 %v8822_v8  ;;  %v8818_v17 = vpack.c.bf16 %v156_v14, %v148_v12  ;;  %v147_v19 = vld [vmem:[%s14841_s1 + $0x80] sm:$0xff]  ;;  %v149_v21 = vld [vmem:[%s14841_s1 + $0x90] sm:$0xff] }
  0x72   :  { %8817 = vmatpush1.bf16.msra.mxu0 %v8816_v9  ;;  %v8826_v18 = vpack.c.bf16 %v158_v16, %v150_v15  ;;  %v155_v20 = vld [vmem:[%s14841_s1 + $0xc0] sm:$0xff]  ;;  %v157_v23 = vld [vmem:[%s14841_s1 + $0xd0] sm:$0xff]  ;;  %v136_v24 = vld [vmem:[%s14841_s1 + $0x28] sm:$0xff] }
  0x73   :  { %8825 = vmatpush1.bf16.msra.mxu1 %v8824_v13  ;;  %v8820_v22 = vpack.c.bf16 %v155_v20, %v147_v19  ;;  %8819 = vmatprep.subr.bf16.mxu0 %v8818_v17  ;;  %v8828_v25 = vpack.c.bf16 %v157_v23, %v149_v21  ;;  %v144_v26 = vld [vmem:[%s14841_s1 + $0x68] sm:$0xff]  ;;  %v135_v27 = vld [vmem:[%s14841_s1 + $0x20] sm:$0xff]  ;;  %v138_v32 = vld [vmem:[%s14841_s1 + $0x38] sm:$0xff] }
  0x74   :  { %8827 = vmatprep.subr.bf16.mxu1 %v8826_v18  ;;  %v143_v28 = vld [vmem:[%s14841_s1 + $0x60] sm:$0xff]  ;;  %v8830_v29 = vpack.c.bf16 %v144_v26, %v136_v24  ;;  %v146_v33 = vld [vmem:[%s14841_s1 + $0x78] sm:$0xff]  ;;  %v152_v35 = vld [vmem:[%s14841_s1 + $0xa8] sm:$0xff] }
  0x75   :  { %v12371_v30 = vld [vmem:[%s14840_s0] sm:$0xff]  ;;  %v8832_v31 = vpack.c.bf16 %v143_v28, %v135_v27  ;;  %v8838_v34 = vpack.c.bf16 %v146_v33, %v138_v32  ;;  %v160_v36 = vld [vmem:[%s14841_s1 + $0xe8] sm:$0xff]  ;;  %v137_v37 = vld [vmem:[%s14841_s1 + $0x30] sm:$0xff] }
  0x76   :  { %8821 = vmatpush1.bf16.msra.mxu0 %v8820_v22  ;;  %v8834_v38 = vpack.c.bf16 %v160_v36, %v152_v35  ;;  %v145_v39 = vld [vmem:[%s14841_s1 + $0x70] sm:$0xff]  ;;  %v151_v40 = vld [vmem:[%s14841_s1 + $0xa0] sm:$0xff]  ;;  %v154_v43 = vld [vmem:[%s14841_s1 + $0xb8] sm:$0xff] }
  0x77   :  { %8829 = vmatpush1.bf16.msra.mxu1 %v8828_v25  ;;  %8831 = vmatprep.subr.bf16.mxu0 %v8830_v29  ;;  %v159_v41 = vld [vmem:[%s14841_s1 + $0xe0] sm:$0xff]  ;;  %v8840_v42 = vpack.c.bf16 %v145_v39, %v137_v37  ;;  %v12407_v44 = vld [vmem:[%s14840_s0 + $0x8] sm:$0xff]  ;;  %v162_v45 = vld [vmem:[%s14841_s1 + $0xf8] sm:$0xff] }
  0x78   :  { %8839 = vmatprep.subr.bf16.mxu1 %v8838_v34  ;;  %v153_v46 = vld [vmem:[%s14841_s1 + $0xb0] sm:$0xff]  ;;  %v8836_v47 = vpack.c.bf16 %v159_v41, %v151_v40  ;;  %v8842_v48 = vpack.c.bf16 %v162_v45, %v154_v43  ;;  %v754_v50 = vld [vmem:[#allocation4 + $0x8] sm:$0xff]  ;;  %v756_v54 = vld [vmem:[#allocation4 + $0x18] sm:$0xff] }
  0x79   :  { %8581 = vmatmul.mubr.msk.f32.vlgmr.msra.gmra.mrb[0].mxu0 %vm205_vm0, %v12371_v30  ;;  %v161_v49 = vld [vmem:[%s14841_s1 + $0xf0] sm:$0xff]  ;;  %v758_v51 = vld [vmem:[#allocation4 + $0x28] sm:$0xff]  ;;  %v760_v55 = vld [vmem:[#allocation4 + $0x38] sm:$0xff] }
  0x7a   :  { %8589 = vmatmul.mubr.msk.f32.vlgmr.msra.gmra.mrb[0].mxu1 %vm205_vm0, %v12371_v30  ;;  %8833 = vmatpush1.bf16.msra.mxu0 %v8832_v31  ;;  %v8844_v52 = vpack.c.bf16 %v161_v49, %v153_v46  ;;  %v12420_v53 = vpack.c.bf16 %v758_v51, %v754_v50  ;;  %v12424_v56 = vpack.c.bf16 %v760_v55, %v756_v54  ;;  %v12432_v57 = vld [vmem:[%s14840_s0 + $0x10] sm:$0xff]  ;;  %v12445_v58 = vld [vmem:[%s14840_s0 + $0x18] sm:$0xff]  ;;  %v12456_v59 = vld [vmem:[%s14840_s0 + $0x20] sm:$0xff] }
  0x7b   :  { %300 = vmatprep.mubr.f32.mxu0 %v14853_v0  ;;  %413 = vmatprep.mubr.f32.mxu1 %v14853_v0  ;;  %v12467_v60 = vld [vmem:[%s14840_s0 + $0x28] sm:$0xff]  ;;  %v12478_v61 = vld [vmem:[%s14840_s0 + $0x30] sm:$0xff]  ;;  %v12489_v62 = vld [vmem:[%s14840_s0 + $0x38] sm:$0xff] }
  0x7c   :  { %8835 = vmatprep.subr.bf16.mxu0 %v8834_v38  ;;  %8841 = vmatpush1.bf16.msra.mxu1 %v8840_v42  ;;  %v753_v63 = vld [vmem:[#allocation4] sm:$0xff]  ;;  %v755_v2 = vld [vmem:[#allocation4 + $0x10] sm:$0xff]  ;;  %v762_v4 = vld [vmem:[#allocation4 + $0x48] sm:$0xff] }
  0x7d   :  { %8582 = vmatmul.mubr.msk.f32.gmra.mrb[2].mxu0 %vm205_vm0, %v12407_v44  ;;  %8843 = vmatprep.subr.bf16.mxu1 %v8842_v48  ;;  %v757_v1 = vld [vmem:[#allocation4 + $0x20] sm:$0xff]  ;;  %v759_v3 = vld [vmem:[#allocation4 + $0x30] sm:$0xff]  ;;  %v766_v5 = vld [vmem:[#allocation4 + $0x68] sm:$0xff] }
  0x7e   :  { %8590 = vmatmul.mubr.msk.f32.gmra.mrb[2].mxu1 %vm205_vm0, %v12407_v44  ;;  %306 = vmatprep.mubr.f32.mxu0 %v14853_v0  ;;  %v12497_v6 = vpack.c.bf16 %v757_v1, %v753_v63  ;;  %v764_v7 = vld [vmem:[#allocation4 + $0x58] sm:$0xff]  ;;  %v12500_v9 = vpack.c.bf16 %v759_v3, %v755_v2  ;;  %v761_v10 = vld [vmem:[#allocation4 + $0x40] sm:$0xff]  ;;  %v12502_v12 = vpack.c.bf16 %v766_v5, %v762_v4  ;;  %v763_v13 = vld [vmem:[#allocation4 + $0x50] sm:$0xff] }
  0x7f   :  { %419 = vmatprep.mubr.f32.mxu1 %v14853_v0  ;;  %8837 = vmatpush1.bf16.msra.mxu0 %v8836_v47  ;;  %v768_v8 = vld [vmem:[#allocation4 + $0x78] sm:$0xff]  ;;  %v765_v11 = vld [vmem:[#allocation4 + $0x60] sm:$0xff]  ;;  %v767_v14 = vld [vmem:[#allocation4 + $0x70] sm:$0xff] }
  0x80   :  { %8845 = vmatpush1.bf16.msra.mxu1 %v8844_v52  ;;  %8847 = vmatprep.subr.bf16.mxu0 %v12420_v53  ;;  %v12506_v15 = vpack.c.bf16 %v768_v8, %v764_v7  ;;  %v770_v16 = vld [vmem:[#allocation4 + $0x88] sm:$0xff]  ;;  %v12511_v18 = vpack.c.bf16 %v765_v11, %v761_v10  ;;  %v772_v19 = vld [vmem:[#allocation4 + $0x98] sm:$0xff]  ;;  %v12515_v21 = vpack.c.bf16 %v767_v14, %v763_v13  ;;  %v769_v22 = vld [vmem:[#allocation4 + $0x80] sm:$0xff] }
  0x81   :  { %8583 = vmatmul.mubr.msk.f32.gmra.mrb[4].mxu0 %vm205_vm0, %v12432_v57  ;;  %8879 = vmatprep.subr.bf16.mxu1 %v12424_v56  ;;  %v774_v17 = vld [vmem:[#allocation4 + $0xa8] sm:$0xff]  ;;  %v776_v20 = vld [vmem:[#allocation4 + $0xb8] sm:$0xff]  ;;  %v773_v23 = vld [vmem:[#allocation4 + $0xa0] sm:$0xff] }
  0x82   :  { %8591 = vmatmul.mubr.msk.f32.gmra.mrb[4].mxu1 %vm205_vm0, %v12432_v57  ;;  %312 = vmatprep.mubr.f32.mxu0 %v14853_v0  ;;  %v12519_v24 = vpack.c.bf16 %v774_v17, %v770_v16  ;;  %v771_v25 = vld [vmem:[#allocation4 + $0x90] sm:$0xff]  ;;  %v12524_v27 = vpack.c.bf16 %v776_v20, %v772_v19  ;;  %v778_v28 = vld [vmem:[#allocation4 + $0xc8] sm:$0xff]  ;;  %v780_v31 = vld [vmem:[#allocation4 + $0xd8] sm:$0xff] }
  0x83   :  { %425 = vmatprep.mubr.f32.mxu1 %v14853_v0  ;;  %v775_v26 = vld [vmem:[#allocation4 + $0xb0] sm:$0xff]  ;;  %v782_v29 = vld [vmem:[#allocation4 + $0xe8] sm:$0xff]  ;;  %v784_v32 = vld [vmem:[#allocation4 + $0xf8] sm:$0xff] }
  0x84   :  { %v12533_v33 = vpack.c.bf16 %v775_v26, %v771_v25  ;;  %v777_v34 = vld [vmem:[#allocation4 + $0xc0] sm:$0xff]  ;;  %v12537_v36 = vpack.c.bf16 %v782_v29, %v778_v28  ;;  %v779_v37 = vld [vmem:[#allocation4 + $0xd0] sm:$0xff]  ;;  %v12542_v39 = vpack.c.bf16 %v784_v32, %v780_v31  ;;  %v786_v40 = vld [vmem:[#allocation4 + $0x108] sm:$0xff] }
  0x85   :  { %8584 = vmatmul.mubr.msk.f32.gmra.mrb[6].mxu0 %vm205_vm0, %v12445_v58  ;;  %v781_v35 = vld [vmem:[#allocation4 + $0xe0] sm:$0xff]  ;;  %v783_v38 = vld [vmem:[#allocation4 + $0xf0] sm:$0xff]  ;;  %v790_v41 = vld [vmem:[#allocation4 + $0x128] sm:$0xff] }
  0x86   :  { %8592 = vmatmul.mubr.msk.f32.gmra.mrb[6].mxu1 %vm205_vm0, %v12445_v58  ;;  %318 = vmatprep.mubr.f32.mxu0 %v14853_v0  ;;  %v12547_v42 = vpack.c.bf16 %v781_v35, %v777_v34  ;;  %v788_v43 = vld [vmem:[#allocation4 + $0x118] sm:$0xff]  ;;  %v12551_v45 = vpack.c.bf16 %v783_v38, %v779_v37  ;;  %v785_v46 = vld [vmem:[#allocation4 + $0x100] sm:$0xff]  ;;  %v12555_v48 = vpack.c.bf16 %v790_v41, %v786_v40  ;;  %v787_v49 = vld [vmem:[#allocation4 + $0x110] sm:$0xff] }
  0x87   :  { %431 = vmatprep.mubr.f32.mxu1 %v14853_v0  ;;  %v789_v47 = vld [vmem:[#allocation4 + $0x120] sm:$0xff]  ;;  %v791_v50 = vld [vmem:[#allocation4 + $0x130] sm:$0xff]  ;;  %v794_v52 = vld [vmem:[#allocation4 + $0x148] sm:$0xff] }
  0x88   :  { %v798_v54 = vld [vmem:[#allocation4 + $0x168] sm:$0xff]  ;;  %v12565_v55 = vpack.c.bf16 %v789_v47, %v785_v46  ;;  %v800_v63 = vld [vmem:[#allocation4 + $0x178] sm:$0xff]  ;;  %v12569_v1 = vpack.c.bf16 %v791_v50, %v787_v49  ;;  %v793_v2 = vld [vmem:[#allocation4 + $0x140] sm:$0xff] }
  0x89   :  { %8585 = vmatmul.mubr.msk.f32.gmra.mrb[8].mxu0 %vm205_vm0, %v12456_v59  ;;  %v797_v3 = vld [vmem:[#allocation4 + $0x160] sm:$0xff]  ;;  %v12573_v4 = vpack.c.bf16 %v798_v54, %v794_v52  ;;  %v799_v5 = vld [vmem:[#allocation4 + $0x170] sm:$0xff]  ;;  %v802_v8 = vld [vmem:[#allocation4 + $0x188] sm:$0xff] }
  0x8a   :  { %8593 = vmatmul.mubr.msk.f32.gmra.mrb[8].mxu1 %vm205_vm0, %v12456_v59  ;;  %324 = vmatprep.mubr.f32.mxu0 %v14853_v0  ;;  %v806_v10 = vld [vmem:[#allocation4 + $0x1a8] sm:$0xff]  ;;  %v12583_v11 = vpack.c.bf16 %v797_v3, %v793_v2  ;;  %v804_v13 = vld [vmem:[#allocation4 + $0x198] sm:$0xff]  ;;  %v801_v17 = vld [vmem:[#allocation4 + $0x180] sm:$0xff] }
  0x8b   :  { %437 = vmatprep.mubr.f32.mxu1 %v14853_v0  ;;  %v808_v14 = vld [vmem:[#allocation4 + $0x1b8] sm:$0xff]  ;;  %v805_v19 = vld [vmem:[#allocation4 + $0x1a0] sm:$0xff]  ;;  %v12591_v20 = vpack.c.bf16 %v806_v10, %v802_v8  ;;  %v810_v25 = vld [vmem:[#allocation4 + $0x1c8] sm:$0xff] }
  0x8c   :  { %v814_v26 = vld [vmem:[#allocation4 + $0x1e8] sm:$0xff]  ;;  %v12601_v28 = vpack.c.bf16 %v805_v19, %v801_v17  ;;  %v812_v29 = vld [vmem:[#allocation4 + $0x1d8] sm:$0xff]  ;;  %v809_v34 = vld [vmem:[#allocation4 + $0x1c0] sm:$0xff] }
  0x8d   :  { %8586 = vmatmul.mubr.msk.f32.gmra.mrb[10].mxu0 %vm205_vm0, %v12467_v60  ;;  %v816_v31 = vld [vmem:[#allocation4 + $0x1f8] sm:$0xff]  ;;  %v813_v35 = vld [vmem:[#allocation4 + $0x1e0] sm:$0xff]  ;;  %v12609_v37 = vpack.c.bf16 %v814_v26, %v810_v25  ;;  %v815_v38 = vld [vmem:[#allocation4 + $0x1f0] sm:$0xff] }
  0x8e   :  { %8594 = vmatmul.mubr.msk.f32.gmra.mrb[10].mxu1 %vm205_vm0, %v12467_v60  ;;  %330 = vmatprep.mubr.f32.mxu0 %v14853_v0  ;;  %v12614_v40 = vpack.c.bf16 %v816_v31, %v812_v29  ;;  %v971_v41 = vld [vmem:[#allocation6 + $0x8] sm:$0xff]  ;;  %v973_v46 = vld [vmem:[#allocation6 + $0x18] sm:$0xff]  ;;  %v970_v50 = vld [vmem:[#allocation6] sm:$0xff] }
  0x8f   :  { %443 = vmatprep.mubr.f32.mxu1 %v14853_v0  ;;  %v977_v47 = vld [vmem:[#allocation6 + $0x38] sm:$0xff]  ;;  %v974_v52 = vld [vmem:[#allocation6 + $0x20] sm:$0xff]  ;;  %v972_v54 = vld [vmem:[#allocation6 + $0x10] sm:$0xff] }
  0x90   :  { %v983_v2 = vld [vmem:[#allocation6 + $0x68] sm:$0xff]  ;;  %v12632_v3 = vpack.c.bf16 %v977_v47, %v973_v46  ;;  %v12637_v8 = vpack.c.bf16 %v974_v52, %v970_v50  ;;  %v982_v17 = vld [vmem:[#allocation6 + $0x60] sm:$0xff]  ;;  %v980_v19 = vld [vmem:[#allocation6 + $0x50] sm:$0xff] }
  0x91   :  { %8587 = vmatmul.mubr.msk.f32.gmra.mrb[12].mxu0 %vm205_vm0, %v12478_v61  ;;  %v991_v25 = vld [vmem:[#allocation6 + $0xa8] sm:$0xff]  ;;  %v989_v26 = vld [vmem:[#allocation6 + $0x98] sm:$0xff]  ;;  %v992_v46 = vld [vmem:[#allocation6 + $0xb0] sm:$0xff] }
  0x92   :  { %8595 = vmatmul.mubr.msk.f32.gmra.mrb[12].mxu1 %vm205_vm0, %v12478_v61  ;;  %336 = vmatprep.mubr.f32.mxu0 %v14853_v0  ;;  %v993_v29 = vld [vmem:[#allocation6 + $0xb8] sm:$0xff]  ;;  %v995_v47 = vld [vmem:[#allocation6 + $0xc8] sm:$0xff] }
  0x93   :  { %449 = vmatprep.mubr.f32.mxu1 %v14853_v0  ;;  %v999_v50 = vld [vmem:[#allocation6 + $0xe8] sm:$0xff]  ;;  %v997_v52 = vld [vmem:[#allocation6 + $0xd8] sm:$0xff] }
  0x95   :  { %8588 = vmatmul.mubr.msk.f32.gmra.mrb[14].mxu0 %vm205_vm0, %v12489_v62 }
  0x96   :  { %8596 = vmatmul.mubr.msk.f32.gmra.mrb[14].mxu1 %vm205_vm0, %v12489_v62  ;;  %520 = vmatprep.mubr.f32.mxu0 %v14853_v0 }
  0x97   :  { %633 = vmatprep.mubr.f32.mxu1 %v14853_v0 }
  0x99   :  { %8597 = vmatmul.mubr.msk.f32.vlgmr.msra.gmra.mrb[16].mxu0 %vm205_vm0, %v12371_v30 }
  0x9a   :  { %8605 = vmatmul.mubr.msk.f32.vlgmr.msra.gmra.mrb[16].mxu1 %vm205_vm0, %v12371_v30  ;;  %8849 = vmatpush1.bf16.msra.mxu0 %v12497_v6  ;;  %v12529_v30 = vpack.c.bf16 %v773_v23, %v769_v22  ;;  %v807_v22 = vld [vmem:[#allocation4 + $0x1b0] sm:$0xff]  ;;  %v12596_v23 = vpack.c.bf16 %v808_v14, %v804_v13  ;;  %v978_v14 = vld [vmem:[#allocation6 + $0x40] sm:$0xff] }
  0x9b   :  { %8881 = vmatpush1.bf16.msra.mxu1 %v12500_v9  ;;  %526 = vmatprep.mubr.f32.mxu0 %v14853_v0  ;;  %v12653_v31 = vpack.c.bf16 %v982_v17, %v978_v14  ;;  %v996_v14 = vld [vmem:[#allocation6 + $0xd0] sm:$0xff] }
  0x9c   :  { %639 = vmatprep.mubr.f32.mxu1 %v14853_v0  ;;  %8851 = vmatprep.subr.bf16.mxu0 %v12502_v12 }
  0x9d   :  { %8883 = vmatprep.subr.bf16.mxu1 %v12506_v15  ;;  %8598 = vmatmul.mubr.msk.f32.gmra.mrb[18].mxu0 %vm205_vm0, %v12407_v44 }
  0x9e   :  { %8606 = vmatmul.mubr.msk.f32.gmra.mrb[18].mxu1 %vm205_vm0, %v12407_v44  ;;  %8853 = vmatpush1.bf16.msra.mxu0 %v12511_v18  ;;  %v792_v44 = vld [vmem:[#allocation4 + $0x138] sm:$0xff] }
  0x9f   :  { %8885 = vmatpush1.bf16.msra.mxu1 %v12515_v21  ;;  %532 = vmatprep.mubr.f32.mxu0 %v14853_v0  ;;  %v12560_v51 = vpack.c.bf16 %v792_v44, %v788_v43  ;;  %v975_v43 = vld [vmem:[#allocation6 + $0x28] sm:$0xff]  ;;  %v12619_v44 = vpack.c.bf16 %v813_v35, %v809_v34 }
  0xa0   :  { %645 = vmatprep.mubr.f32.mxu1 %v14853_v0  ;;  %8855 = vmatprep.subr.bf16.mxu0 %v12519_v24 }
  0xa1   :  { %8887 = vmatprep.subr.bf16.mxu1 %v12524_v27  ;;  %8599 = vmatmul.mubr.msk.f32.gmra.mrb[20].mxu0 %vm205_vm0, %v12432_v57 }
  0xa2   :  { %8607 = vmatmul.mubr.msk.f32.gmra.mrb[20].mxu1 %vm205_vm0, %v12432_v57  ;;  %8857 = vmatpush1.bf16.msra.mxu0 %v12529_v30  ;;  %v796_v57 = vld [vmem:[#allocation4 + $0x158] sm:$0xff] }
  0xa3   :  { %8889 = vmatpush1.bf16.msra.mxu1 %v12533_v33  ;;  %538 = vmatprep.mubr.f32.mxu0 %v14853_v0  ;;  %v12578_v7 = vpack.c.bf16 %v800_v63, %v796_v57  ;;  %v976_v57 = vld [vmem:[#allocation6 + $0x30] sm:$0xff]  ;;  %v979_v63 = vld [vmem:[#allocation6 + $0x48] sm:$0xff] }
  0xa4   :  { %651 = vmatprep.mubr.f32.mxu1 %v14853_v0  ;;  %8859 = vmatprep.subr.bf16.mxu0 %v12537_v36  ;;  %v12641_v10 = vpack.c.bf16 %v976_v57, %v972_v54  ;;  %v12643_v13 = vpack.c.bf16 %v983_v2, %v979_v63  ;;  %v1001_v54 = vld [vmem:[#allocation6 + $0xf8] sm:$0xff]  ;;  %v12673_v2 = vpack.c.bf16 %v999_v50, %v995_v47  ;;  %v1004_v47 = vld [vmem:[#allocation6 + $0x110] sm:$0xff] }
  0xa5   :  { %8891 = vmatprep.subr.bf16.mxu1 %v12542_v39  ;;  %8600 = vmatmul.mubr.msk.f32.gmra.mrb[22].mxu0 %vm205_vm0, %v12445_v58  ;;  %v12676_v17 = vpack.c.bf16 %v1001_v54, %v997_v52  ;;  %v1008_v52 = vld [vmem:[#allocation6 + $0x130] sm:$0xff]  ;;  %v1011_v54 = vld [vmem:[#allocation6 + $0x148] sm:$0xff] }
  0xa6   :  { %8608 = vmatmul.mubr.msk.f32.gmra.mrb[22].mxu1 %vm205_vm0, %v12445_v58  ;;  %8861 = vmatpush1.bf16.msra.mxu0 %v12547_v42  ;;  %v795_v58 = vld [vmem:[#allocation4 + $0x150] sm:$0xff]  ;;  %15061 = vst [vmem:[#allocation19_spill] sm:$0xff] %v12673_v2 }
  0xa7   :  { %8893 = vmatpush1.bf16.msra.mxu1 %v12551_v45  ;;  %544 = vmatprep.mubr.f32.mxu0 %v14853_v0  ;;  %v12587_v16 = vpack.c.bf16 %v799_v5, %v795_v58  ;;  %v981_v58 = vld [vmem:[#allocation6 + $0x58] sm:$0xff]  ;;  %15062 = vst [vmem:[#allocation20_spill] sm:$0xff] %v12676_v17 }
  0xa8   :  { %657 = vmatprep.mubr.f32.mxu1 %v14853_v0  ;;  %8863 = vmatprep.subr.bf16.mxu0 %v12555_v48  ;;  %v985_v5 = vld [vmem:[#allocation6 + $0x78] sm:$0xff] }
  0xa9   :  { %8895 = vmatprep.subr.bf16.mxu1 %v12560_v51  ;;  %8601 = vmatmul.mubr.msk.f32.gmra.mrb[24].mxu0 %vm205_vm0, %v12456_v59 }
  0xaa   :  { %8609 = vmatmul.mubr.msk.f32.gmra.mrb[24].mxu1 %vm205_vm0, %v12456_v59  ;;  %8865 = vmatpush1.bf16.msra.mxu0 %v12565_v55  ;;  %v803_v59 = vld [vmem:[#allocation4 + $0x190] sm:$0xff] }
  0xab   :  { %8897 = vmatpush1.bf16.msra.mxu1 %v12569_v1  ;;  %550 = vmatprep.mubr.f32.mxu0 %v14853_v0  ;;  %v12605_v32 = vpack.c.bf16 %v807_v22, %v803_v59  ;;  %v984_v59 = vld [vmem:[#allocation6 + $0x70] sm:$0xff]  ;;  %v987_v22 = vld [vmem:[#allocation6 + $0x88] sm:$0xff] }
  0xac   :  { %663 = vmatprep.mubr.f32.mxu1 %v14853_v0  ;;  %8867 = vmatprep.subr.bf16.mxu0 %v12573_v4  ;;  %v12657_v34 = vpack.c.bf16 %v984_v59, %v980_v19  ;;  %v12659_v35 = vpack.c.bf16 %v991_v25, %v987_v22  ;;  %v1000_v19 = vld [vmem:[#allocation6 + $0xf0] sm:$0xff]  ;;  %v1003_v59 = vld [vmem:[#allocation6 + $0x108] sm:$0xff]  ;;  %v1005_v25 = vld [vmem:[#allocation6 + $0x118] sm:$0xff] }
  0xad   :  { %8899 = vmatprep.subr.bf16.mxu1 %v12578_v7  ;;  %8602 = vmatmul.mubr.msk.f32.gmra.mrb[26].mxu0 %vm205_vm0, %v12467_v60  ;;  %v1007_v22 = vld [vmem:[#allocation6 + $0x128] sm:$0xff] }
  0xae   :  { %8610 = vmatmul.mubr.msk.f32.gmra.mrb[26].mxu1 %vm205_vm0, %v12467_v60  ;;  %8869 = vmatpush1.bf16.msra.mxu0 %v12583_v11  ;;  %v811_v60 = vld [vmem:[#allocation4 + $0x1d0] sm:$0xff] }
  0xaf   :  { %8901 = vmatpush1.bf16.msra.mxu1 %v12587_v16  ;;  %556 = vmatprep.mubr.f32.mxu0 %v14853_v0  ;;  %v12623_v49 = vpack.c.bf16 %v815_v38, %v811_v60  ;;  %v986_v60 = vld [vmem:[#allocation6 + $0x80] sm:$0xff] }
  0xb0   :  { %669 = vmatprep.mubr.f32.mxu1 %v14853_v0  ;;  %8871 = vmatprep.subr.bf16.mxu0 %v12591_v20  ;;  %v990_v38 = vld [vmem:[#allocation6 + $0xa0] sm:$0xff] }
  0xb1   :  { %8903 = vmatprep.subr.bf16.mxu1 %v12596_v23  ;;  %8603 = vmatmul.mubr.msk.f32.gmra.mrb[28].mxu0 %vm205_vm0, %v12478_v61  ;;  %v12667_v57 = vpack.c.bf16 %v990_v38, %v986_v60  ;;  %v12683_v60 = vpack.c.bf16 %v1000_v19, %v996_v14  ;;  %v12685_v38 = vpack.c.bf16 %v1007_v22, %v1003_v59  ;;  %v1010_v59 = vld [vmem:[#allocation6 + $0x140] sm:$0xff] }
  0xb2   :  { %8611 = vmatmul.mubr.msk.f32.gmra.mrb[28].mxu1 %vm205_vm0, %v12478_v61  ;;  %8873 = vmatpush1.bf16.msra.mxu0 %v12601_v28  ;;  %v12627_v61 = vpack.c.bf16 %v975_v43, %v971_v41  ;;  %v988_v41 = vld [vmem:[#allocation6 + $0x90] sm:$0xff]  ;;  %v12662_v43 = vpack.c.bf16 %v993_v29, %v989_v26  ;;  %v1009_v26 = vld [vmem:[#allocation6 + $0x138] sm:$0xff]  ;;  %v12695_v14 = vpack.c.bf16 %v1008_v52, %v1004_v47  ;;  %v1014_v22 = vld [vmem:[#allocation6 + $0x160] sm:$0xff] }
  0xb3   :  { %8905 = vmatpush1.bf16.msra.mxu1 %v12605_v32  ;;  %562 = vmatprep.mubr.f32.mxu0 %v14853_v0  ;;  %v12671_v63 = vpack.c.bf16 %v992_v46, %v988_v41  ;;  %15064 = vst [vmem:[#allocation22_spill] sm:$0xff] %v12683_v60  ;;  %15065 = vst [vmem:[#allocation23_spill] sm:$0xff] %v12685_v38  ;;  %v1002_v41 = vld [vmem:[#allocation6 + $0x100] sm:$0xff]  ;;  %v12688_v50 = vpack.c.bf16 %v1009_v26, %v1005_v25  ;;  %v1012_v25 = vld [vmem:[#allocation6 + $0x150] sm:$0xff] }
  0xb4   :  { %675 = vmatprep.mubr.f32.mxu1 %v14853_v0  ;;  %8875 = vmatprep.subr.bf16.mxu0 %v12609_v37  ;;  %v1006_v46 = vld [vmem:[#allocation6 + $0x120] sm:$0xff]  ;;  %15068 = vst [vmem:[#allocation26_spill] sm:$0xff] %v12695_v14 }
  0xb5   :  { %8907 = vmatprep.subr.bf16.mxu1 %v12614_v40  ;;  %8604 = vmatmul.mubr.msk.f32.gmra.mrb[30].mxu0 %vm205_vm0, %v12489_v62  ;;  %15060 = vst [vmem:[#allocation18_spill] sm:$0xff] %v12671_v63  ;;  %15066 = vst [vmem:[#allocation24_spill] sm:$0xff] %v12688_v50  ;;  %v1018_v52 = vld [vmem:[#allocation6 + $0x180] sm:$0xff] }
  0xb6   :  { %8612 = vmatmul.mubr.msk.f32.gmra.mrb[30].mxu1 %vm205_vm0, %v12489_v62  ;;  %8877 = vmatpush1.bf16.msra.mxu0 %v12619_v44  ;;  %v12647_v62 = vpack.c.bf16 %v985_v5, %v981_v58  ;;  %v994_v58 = vld [vmem:[#allocation6 + $0xc0] sm:$0xff] }
  0xb7   :  { %8909 = vmatpush1.bf16.msra.mxu1 %v12623_v49  ;;  %881 = vmatprep.mubr.f32.mxu0 %v14853_v0  ;;  %v998_v5 = vld [vmem:[#allocation6 + $0xe0] sm:$0xff] }
  0xb8   :  { %952 = vmatprep.mubr.f32.mxu1 %v14853_v0  ;;  %8911 = vmatprep.subr.bf16.mxu0 %v12627_v61  ;;  %v12679_v29 = vpack.c.bf16 %v998_v5, %v994_v58  ;;  %v1013_v58 = vld [vmem:[#allocation6 + $0x158] sm:$0xff] }
  0xb9   :  { %8943 = vmatprep.subr.bf16.mxu1 %v12632_v3  ;;  %882 = vmatmul.mubr.f32.vlgmr.msra.gmra.mrb[0].mxu0 %v14853_v0  ;;  %v1017_v5 = vld [vmem:[#allocation6 + $0x178] sm:$0xff] }
  0xba   :  { %953 = vmatmul.mubr.f32.vlgmr.msra.gmra.mrb[0].mxu1 %v14853_v0  ;;  %8913 = vmatpush1.bf16.msra.mxu0 %v12637_v8  ;;  %15063 = vst [vmem:[#allocation21_spill] sm:$0xff] %v12679_v29  ;;  %v12700_v26 = vpack.c.bf16 %v1017_v5, %v1013_v58  ;;  %v1020_v58 = vld [vmem:[#allocation6 + $0x190] sm:$0xff] }
  0xbb   :  { %8945 = vmatpush1.bf16.msra.mxu1 %v12641_v10  ;;  %8915 = vmatprep.subr.bf16.mxu0 %v12643_v13 }
  0xbc   :  { %8947 = vmatprep.subr.bf16.mxu1 %v12647_v62  ;;  %1098 = vmatprep.mubr.f32.mxu0 %v14853_v0  ;;  %15069 = vst [vmem:[#allocation27_spill] sm:$0xff] %v12700_v26 }
  0xbd   :  { %1169 = vmatprep.mubr.f32.mxu1 %v14853_v0  ;;  %v1015_v0 = vld [vmem:[#allocation6 + $0x168] sm:$0xff] }
  0xbe   :  { %8917 = vmatpush1.bf16.msra.mxu0 %v12653_v31  ;;  %v12697_v19 = vpack.c.bf16 %v1015_v0, %v1011_v54  ;;  %v1022_v54 = vld [vmem:[#allocation6 + $0x1a0] sm:$0xff] }
  0xbf   :  { %8949 = vmatpush1.bf16.msra.mxu1 %v12657_v34  ;;  %8919 = vmatprep.subr.bf16.mxu0 %v12659_v35 }
  0xc0   :  { %8951 = vmatprep.subr.bf16.mxu1 %v12662_v43 }
  0xc2   :  { %8921 = vmatpush1.bf16.msra.mxu0 %v12667_v57 }
  0xc3   :  { %8953 = vmatpush1.bf16.msra.mxu1 %v12671_v63  ;;  %8923 = vmatprep.subr.bf16.mxu0 %v12673_v2  ;;  %v12691_v63 = vpack.c.bf16 %v1006_v46, %v1002_v41  ;;  %v1019_v2 = vld [vmem:[#allocation6 + $0x188] sm:$0xff]  ;;  %v1021_v41 = vld [vmem:[#allocation6 + $0x198] sm:$0xff] }
  0xc4   :  { %8955 = vmatprep.subr.bf16.mxu1 %v12676_v17  ;;  %v1016_v17 = vld [vmem:[#allocation6 + $0x170] sm:$0xff]  ;;  %v1025_v46 = vld [vmem:[#allocation6 + $0x1b8] sm:$0xff] }
  0xc5   :  { %15067 = vst [vmem:[#allocation25_spill] sm:$0xff] %v12691_v63  ;;  %v12707_v0 = vpack.c.bf16 %v1016_v17, %v1012_v25  ;;  %v12712_v5 = vpack.c.bf16 %v1025_v46, %v1021_v41  ;;  %v1030_v25 = vld [vmem:[#allocation6 + $0x1e0] sm:$0xff]  ;;  %v1028_v46 = vld [vmem:[#allocation6 + $0x1d0] sm:$0xff] }
  0xc6   :  { %8925 = vmatpush1.bf16.msra.mxu0 %v12679_v29  ;;  %v1023_v29 = vld [vmem:[#allocation6 + $0x1a8] sm:$0xff] }
  0xc7   :  { %8957 = vmatpush1.bf16.msra.mxu1 %v12683_v60  ;;  %8927 = vmatprep.subr.bf16.mxu0 %v12685_v38  ;;  %v12703_v60 = vpack.c.bf16 %v1014_v22, %v1010_v59  ;;  %v12709_v47 = vpack.c.bf16 %v1023_v29, %v1019_v2  ;;  %v1027_v38 = vld [vmem:[#allocation6 + $0x1c8] sm:$0xff]  ;;  %v1029_v59 = vld [vmem:[#allocation6 + $0x1d8] sm:$0xff]  ;;  %v1026_v29 = vld [vmem:[#allocation6 + $0x1c0] sm:$0xff] }
  0xc8   :  { %8959 = vmatprep.subr.bf16.mxu1 %v12688_v50  ;;  %v1024_v50 = vld [vmem:[#allocation6 + $0x1b0] sm:$0xff]  ;;  %v1033_v22 = vld [vmem:[#allocation6 + $0x1f8] sm:$0xff] }
  0xc9   :  { %v12719_v2 = vpack.c.bf16 %v1024_v50, %v1020_v58  ;;  %v12724_v41 = vpack.c.bf16 %v1033_v22, %v1029_v59 }
  0xca   :  { %8929 = vmatpush1.bf16.msra.mxu0 %v12691_v63  ;;  %v1031_v63 = vld [vmem:[#allocation6 + $0x1e8] sm:$0xff] }
  0xcb   :  { %8961 = vmatpush1.bf16.msra.mxu1 %v12695_v14  ;;  %8931 = vmatprep.subr.bf16.mxu0 %v12697_v19  ;;  %v12715_v14 = vpack.c.bf16 %v1022_v54, %v1018_v52  ;;  %v12721_v17 = vpack.c.bf16 %v1031_v63, %v1027_v38  ;;  %v12727_v52 = vpack.c.bf16 %v1030_v25, %v1026_v29  ;;  %v15070_v63 = vmov 0.0  }
  0xcc   :  { %8963 = vmatprep.subr.bf16.mxu1 %v12700_v26  ;;  %v1032_v26 = vld [vmem:[#allocation6 + $0x1f0] sm:$0xff] }
  0xcd   :  { %v12731_v50 = vpack.c.bf16 %v1032_v26, %v1028_v46 }
  0xce   :  { %8933 = vmatpush1.bf16.msra.mxu0 %v12703_v60 }
  0xcf   :  { %8965 = vmatpush1.bf16.msra.mxu1 %v12707_v0  ;;  %8935 = vmatprep.subr.bf16.mxu0 %v12709_v47 }
  0xd0   :  { %8967 = vmatprep.subr.bf16.mxu1 %v12712_v5 }
  0xd2   :  { %8937 = vmatpush1.bf16.msra.mxu0 %v12715_v14 }
  0xd3   :  { %8969 = vmatpush1.bf16.msra.mxu1 %v12719_v2  ;;  %8939 = vmatprep.subr.bf16.mxu0 %v12721_v17 }
  0xd4   :  { %8971 = vmatprep.subr.bf16.mxu1 %v12724_v41 }
  0xd6   :  { %8941 = vmatpush1.bf16.msra.mxu0 %v12727_v52 }
  0xd7   :  { %8973 = vmatpush1.bf16.msra.mxu1 %v12731_v50  ;;  %8975 = vmatprep.subr.bf16.mxu0 %v12420_v53  ;;  %v165_v53 = vlaneseq }
  0xd8   :  { %9007 = vmatprep.subr.bf16.mxu1 %v12424_v56 }
  0xd9   :  { %1099 = vmatmul.mubr.f32.vlgmr.msra.gmra.mrb[30].mxu0 %v15070_v63  ;;  %v12774_v56 = vshrl.u32 %v165_v53, 7 }
  0xda   :  { %1170 = vmatmul.mubr.f32.vlgmr.msra.gmra.mrb[30].mxu1 %v15070_v63  ;;  %8977 = vmatpush1.bf16.msra.mxu0 %v12497_v6 }
  0xdb   :  { %9009 = vmatpush1.bf16.msra.mxu1 %v12500_v9  ;;  %8979 = vmatprep.subr.bf16.mxu0 %v12502_v12  ;;  %15071 = vst [vmem:[#allocation28_spill] sm:$0xff] %v12774_v56  ;;  %v14872_v6 = vsub.s32 0, %v12774_v56  ;;  %v163_v9 = vld [vmem:[%s14842_s2] sm:$0xff]  ;;  %v14871_v12 = vsub.s32 1, %v12774_v56  ;;  %v14866_v22 = vsub.s32 7, %v12774_v56 }
  0xdc   :  { %9011 = vmatprep.subr.bf16.mxu1 %v12506_v15  ;;  %1371 = vmatprep.mubr.f32.mxu0 %v15070_v63 }
  0xdd   :  { %1442 = vmatprep.mubr.f32.mxu1 %v15070_v63  ;;  %v12783_v15 = vrot.slane %v163_v9, %v14872_v6 }
  0xde   :  { %8981 = vmatpush1.bf16.msra.mxu0 %v12511_v18  ;;  %v12787_v18 = vrot.slane %v163_v9, %v14871_v12 }
  0xdf   :  { %9013 = vmatpush1.bf16.msra.mxu1 %v12515_v21  ;;  %8983 = vmatprep.subr.bf16.mxu0 %v12519_v24  ;;  %v14870_v24 = vsub.s32 3, %v12774_v56 }
  0xe0   :  { %9015 = vmatprep.subr.bf16.mxu1 %v12524_v27  ;;  %15072 = vst [vmem:[#allocation29_spill] sm:$0xff] %v12787_v18 }
  0xe2   :  { %8985 = vmatpush1.bf16.msra.mxu0 %v12529_v30 }
  0xe3   :  { %9017 = vmatpush1.bf16.msra.mxu1 %v12533_v33  ;;  %8987 = vmatprep.subr.bf16.mxu0 %v12537_v36 }
  0xe4   :  { %9019 = vmatprep.subr.bf16.mxu1 %v12542_v39 }
  0xe6   :  { %8989 = vmatpush1.bf16.msra.mxu0 %v12547_v42 }
  0xe7   :  { %9021 = vmatpush1.bf16.msra.mxu1 %v12551_v45  ;;  %8991 = vmatprep.subr.bf16.mxu0 %v12555_v48  ;;  %v12794_v48 = vrot.slane %v163_v9, %v14870_v24 }
  0xe8   :  { %9023 = vmatprep.subr.bf16.mxu1 %v12560_v51  ;;  %v14869_v51 = vsub.s32 2, %v12774_v56 }
  0xe9   :  { %15073 = vst [vmem:[#allocation30_spill] sm:$0xff] %v12794_v48 }
  0xea   :  { %8993 = vmatpush1.bf16.msra.mxu0 %v12565_v55 }
  0xeb   :  { %9025 = vmatpush1.bf16.msra.mxu1 %v12569_v1  ;;  %8995 = vmatprep.subr.bf16.mxu0 %v12573_v4  ;;  %v12800_v1 = vrot.slane %v163_v9, %v14869_v51 }
  0xec   :  { %9027 = vmatprep.subr.bf16.mxu1 %v12578_v7 }
  0xed   :  { %15074 = vst [vmem:[#allocation31_spill] sm:$0xff] %v12800_v1 }
  0xee   :  { %8997 = vmatpush1.bf16.msra.mxu0 %v12583_v11 }
  0xef   :  { %9029 = vmatpush1.bf16.msra.mxu1 %v12587_v16  ;;  %8999 = vmatprep.subr.bf16.mxu0 %v12591_v20 }
  0xf0   :  { %9031 = vmatprep.subr.bf16.mxu1 %v12596_v23 }
  0xf2   :  { %9001 = vmatpush1.bf16.msra.mxu0 %v12601_v28  ;;  %v14868_v28 = vsub.s32 4, %v12774_v56 }
  0xf3   :  { %9033 = vmatpush1.bf16.msra.mxu1 %v12605_v32  ;;  %9003 = vmatprep.subr.bf16.mxu0 %v12609_v37  ;;  %v14867_v37 = vsub.s32 5, %v12774_v56 }
  0xf4   :  { %9035 = vmatprep.subr.bf16.mxu1 %v12614_v40  ;;  %v12807_v38 = vrot.slane %v163_v9, %v14868_v28 }
  0xf5   :  { %v12811_v54 = vrot.slane %v163_v9, %v14867_v37 }
  0xf6   :  { %9005 = vmatpush1.bf16.msra.mxu0 %v12619_v44  ;;  %15075 = vst [vmem:[#allocation32_spill] sm:$0xff] %v12807_v38 }
  0xf7   :  { %9037 = vmatpush1.bf16.msra.mxu1 %v12623_v49  ;;  %9039 = vmatprep.subr.bf16.mxu0 %v12627_v61  ;;  %15076 = vst [vmem:[#allocation33_spill] sm:$0xff] %v12811_v54 }
  0xf8   :  { %9071 = vmatprep.subr.bf16.mxu1 %v12632_v3 }
 0x18c   :  { %v883_v21 = vpop.f32.mrb[0].mxu0 }
 0x18d   :  { %v11198_v27 = vadd.f32 %v883_v21, %v12783_v15  ;;  %v954_v30 = vpop.f32.mrb[0].mxu1  ;;  %v885_v33 = vpop.f32.mrb[1].mxu0 }
 0x18e   :  { %v11199_v36 = vadd.f32 %v885_v33, %v12787_v18  ;;  %v956_v39 = vpop.f32.mrb[1].mxu1  ;;  %v11214_v7 = vadd.f32 %v954_v30, %v12800_v1  ;;  %v12821_v33 = vrot.slane %v163_v9, %v14866_v22 }
 0x18f   :  { %v8613_v42 = vmul.f32 -1.442695, %v11198_v27  ;;  %v11215_v55 = vadd.f32 %v956_v39, %v12794_v48 }
 0x190   :  { %v8614_v45 = vmul.f32 -1.442695, %v11199_v36  ;;  %15077 = vst [vmem:[#allocation34_spill] sm:$0xff] %v12821_v33  ;;  %v14865_v36 = vsub.s32 6, %v12774_v56 }
 0x191   :  { %11469 = vpow2.f32 %v8613_v42  ;;  %v8615_v4 = vmul.f32 -1.442695, %v11215_v55 }
 0x192   :  { %11471 = vpow2.f32 %v8614_v45  ;;  %v12827_v42 = vrot.slane %v163_v9, %v14865_v36 }
 0x193   :  { %11473 = vpow2.f32 %v8615_v4 }
 0x194   :  { %11475 = vtanh.f32 %v11214_v7 }
 0x19b   :  { %v11470_v11 = vpop.eup %11469 }
 0x19c   :  { %v11472_v16 = vpop.eup %11471  ;;  %v1183_v20 = vadd.f32 1.0, %v11470_v11 }
 0x19d   :  { %v1189_v23 = vadd.f32 1.0, %v11472_v16  ;;  %v11474_v32 = vpop.eup %11473 }
 0x19e   :  { %11477 = vrcp.f32 %v1183_v20  ;;  %v11476_v40 = vpop.eup %11475  ;;  %v1196_v3 = vadd.f32 1.0, %v11474_v32 }
 0x19f   :  { %11479 = vrcp.f32 %v1189_v23 }
 0x1a0   :  { %11481 = vrcp.f32 %v1196_v3 }
 0x1a8   :  { %v11478_v44 = vpop.eup %11477 }
 0x1a9   :  { %v11480_v49 = vpop.eup %11479  ;;  %v1200_v61 = vmul.f32 %v11478_v44, %v11476_v40  ;;  %v15082_v44 = vld [vmem:[#allocation21_spill] sm:$0xff] }
 0x1aa   :  { %v1199_v26 = vmul.f32 0.0, %v11480_v49  ;;  %v11482_v45 = vpop.eup %11481 }
 0x1ac   :  { %v12813_v58 = vadd.f32 %v1200_v61, %v1199_v26  ;;  %v1100_v59 = vpop.f32.mrb[30].mxu0  ;;  %v15084_v61 = vld [vmem:[#allocation23_spill] sm:$0xff]  ;;  %v15086_v26 = vld [vmem:[#allocation25_spill] sm:$0xff] }
 0x1ad   :  { %v11244_v29 = vadd.f32 %v1100_v59, %v12807_v38  ;;  %v1171_v25 = vpop.f32.mrb[30].mxu1  ;;  %v1102_v46 = vpop.f32.mrb[31].mxu0  ;;  %v15087_v59 = vld [vmem:[#allocation26_spill] sm:$0xff] }
 0x1ae   :  { %11483 = vtanh.f32 %v12813_v58  ;;  %v11245_v53 = vadd.f32 %v1102_v46, %v12811_v54  ;;  %v1173_v21 = vpop.f32.mrb[31].mxu1  ;;  %v11260_v11 = vadd.f32 %v1171_v25, %v12827_v42  ;;  %v1735_v46 = vld [vmem:[#allocation4 + $0x10] sm:$0xff] }
 0x1af   :  { %v8616_v27 = vmul.f32 -1.442695, %v11244_v29  ;;  %v11261_v39 = vadd.f32 %v1173_v21, %v12821_v33  ;;  %v15088_v29 = vld [vmem:[#allocation27_spill] sm:$0xff] }
 0x1b0   :  { %v8617_v30 = vmul.f32 -1.442695, %v11245_v53  ;;  %v1739_v53 = vld [vmem:[#allocation4 + $0x30] sm:$0xff] }
 0x1b1   :  { %11485 = vpow2.f32 %v8616_v27  ;;  %v8618_v4 = vmul.f32 -1.442695, %v11261_v39  ;;  %v12882_v21 = vpack.c.bf16 %v1739_v53, %v1735_v46  ;;  %v1742_v27 = vld [vmem:[#allocation4 + $0x48] sm:$0xff]  ;;  %v1744_v39 = vld [vmem:[#allocation4 + $0x58] sm:$0xff] }
 0x1b2   :  { %11487 = vpow2.f32 %v8617_v30  ;;  %v1746_v30 = vld [vmem:[#allocation4 + $0x68] sm:$0xff] }
 0x1b3   :  { %11489 = vpow2.f32 %v8618_v4  ;;  %v1741_v4 = vld [vmem:[#allocation4 + $0x40] sm:$0xff]  ;;  %v1766_v46 = vld [vmem:[#allocation4 + $0x108] sm:$0xff] }
 0x1b4   :  { %11491 = vtanh.f32 %v11260_v11  ;;  %v1745_v11 = vld [vmem:[#allocation4 + $0x60] sm:$0xff]  ;;  %v1770_v53 = vld [vmem:[#allocation4 + $0x128] sm:$0xff] }
 0x1b8   :  { %v11484_v55 = vpop.eup %11483 }
 0x1b9   :  { %v12829_v7 = vmul.f32 %v11484_v55, %v11482_v45  ;;  %v12887_v45 = vpack.c.bf16 %v1746_v30, %v1742_v27  ;;  %v1748_v55 = vld [vmem:[#allocation4 + $0x78] sm:$0xff]  ;;  %v12923_v30 = vpack.c.bf16 %v1770_v53, %v1766_v46 }
 0x1ba   :  { %v1768_v27 = vld [vmem:[#allocation4 + $0x118] sm:$0xff] }
 0x1bb   :  { %15078 = vst [vmem:[#allocation35_spill] sm:$0xff] %v12829_v7  ;;  %v11486_v16 = vpop.eup %11485  ;;  %1372 = vmatmul.mubr.f32.vlgmr.msra.gmra.mrb[2].mxu0 %v12829_v7  ;;  %1443 = vmatmul.mubr.f32.vlgmr.msra.gmra.mrb[2].mxu1 %v12829_v7  ;;  %v1784_v46 = vld [vmem:[#allocation4 + $0x198] sm:$0xff] }
 0x1bc   :  { %v11488_v20 = vpop.eup %11487  ;;  %v1207_v23 = vadd.f32 1.0, %v11486_v16  ;;  %9041 = vmatpush1.bf16.msra.mxu0 %v12637_v8  ;;  %9073 = vmatpush1.bf16.msra.mxu1 %v12641_v10  ;;  %v15079_v8 = vld [vmem:[#allocation18_spill] sm:$0xff]  ;;  %v15080_v10 = vld [vmem:[#allocation19_spill] sm:$0xff]  ;;  %v12889_v16 = vpack.c.bf16 %v1748_v55, %v1744_v39  ;;  %v1772_v39 = vld [vmem:[#allocation4 + $0x138] sm:$0xff] }
 0x1bd   :  { %v1213_v9 = vadd.f32 1.0, %v11488_v20  ;;  %9043 = vmatprep.subr.bf16.mxu0 %v12643_v13  ;;  %9075 = vmatprep.subr.bf16.mxu1 %v12647_v62  ;;  %v15081_v13 = vld [vmem:[#allocation20_spill] sm:$0xff]  ;;  %v11490_v62 = vpop.eup %11489  ;;  %v12891_v20 = vpack.c.bf16 %v1745_v11, %v1741_v4  ;;  %v1765_v55 = vld [vmem:[#allocation4 + $0x100] sm:$0xff]  ;;  %v12925_v11 = vpack.c.bf16 %v1772_v39, %v1768_v27  ;;  %v1788_v27 = vld [vmem:[#allocation4 + $0x1b8] sm:$0xff] }
 0x1be   :  { %11493 = vrcp.f32 %v1207_v23  ;;  %1588 = vmatprep.mubr.f32.mxu0 %v15070_v63  ;;  %1659 = vmatprep.mubr.f32.mxu1 %v15070_v63  ;;  %v11492_v32 = vpop.eup %11491  ;;  %v1743_v23 = vld [vmem:[#allocation4 + $0x50] sm:$0xff]  ;;  %v1769_v4 = vld [vmem:[#allocation4 + $0x120] sm:$0xff] }
 0x1bf   :  { %11495 = vrcp.f32 %v1213_v9  ;;  %v1747_v9 = vld [vmem:[#allocation4 + $0x70] sm:$0xff]  ;;  %v1781_v39 = vld [vmem:[#allocation4 + $0x180] sm:$0xff] }
 0x1c0   :  { %9045 = vmatpush1.bf16.msra.mxu0 %v12653_v31  ;;  %9077 = vmatpush1.bf16.msra.mxu1 %v12657_v34  ;;  %v15083_v31 = vld [vmem:[#allocation22_spill] sm:$0xff] }
 0x1c1   :  { %9047 = vmatprep.subr.bf16.mxu0 %v12659_v35  ;;  %9079 = vmatprep.subr.bf16.mxu1 %v12662_v43  ;;  %v1220_v35 = vadd.f32 1.0, %v11490_v62  ;;  %v15085_v43 = vld [vmem:[#allocation24_spill] sm:$0xff]  ;;  %v1752_v62 = vld [vmem:[#allocation4 + $0x98] sm:$0xff] }
 0x1c3   :  { %11497 = vrcp.f32 %v1220_v35  ;;  %v1751_v35 = vld [vmem:[#allocation4 + $0x90] sm:$0xff] }
 0x1c4   :  { %9049 = vmatpush1.bf16.msra.mxu0 %v12667_v57  ;;  %9081 = vmatpush1.bf16.msra.mxu1 %v15079_v8  ;;  %v12894_v8 = vpack.c.bf16 %v1747_v9, %v1743_v23  ;;  %v12927_v23 = vpack.c.bf16 %v1769_v4, %v1765_v55  ;;  %v1767_v9 = vld [vmem:[#allocation4 + $0x110] sm:$0xff]  ;;  %v1785_v55 = vld [vmem:[#allocation4 + $0x1a0] sm:$0xff]  ;;  %v12949_v4 = vpack.c.bf16 %v1788_v27, %v1784_v46 }
 0x1c5   :  { %9051 = vmatprep.subr.bf16.mxu0 %v15080_v10  ;;  %9083 = vmatprep.subr.bf16.mxu1 %v15081_v13  ;;  %v1750_v10 = vld [vmem:[#allocation4 + $0x88] sm:$0xff]  ;;  %v1791_v27 = vld [vmem:[#allocation4 + $0x1d0] sm:$0xff] }
 0x1c6   :  { %v1754_v13 = vld [vmem:[#allocation4 + $0xa8] sm:$0xff] }
 0x1c8   :  { %v11494_v40 = vpop.eup %11493  ;;  %9053 = vmatpush1.bf16.msra.mxu0 %v15082_v44  ;;  %9085 = vmatpush1.bf16.msra.mxu1 %v15083_v31  ;;  %v1749_v44 = vld [vmem:[#allocation4 + $0x80] sm:$0xff] }
 0x1c9   :  { %v11496_v34 = vpop.eup %11495  ;;  %v1224_v49 = vmul.f32 %v11494_v40, %v11492_v32  ;;  %9055 = vmatprep.subr.bf16.mxu0 %v15084_v61  ;;  %9087 = vmatprep.subr.bf16.mxu1 %v15085_v43  ;;  %v12899_v32 = vpack.c.bf16 %v1754_v13, %v1750_v10  ;;  %v1756_v40 = vld [vmem:[#allocation4 + $0xb8] sm:$0xff]  ;;  %v1753_v31 = vld [vmem:[#allocation4 + $0xa0] sm:$0xff]  ;;  %v1755_v61 = vld [vmem:[#allocation4 + $0xb0] sm:$0xff] }
 0x1ca   :  { %v1223_v57 = vmul.f32 0.0, %v11496_v34  ;;  %v12901_v34 = vpack.c.bf16 %v1756_v40, %v1752_v62  ;;  %v12906_v43 = vpack.c.bf16 %v1755_v61, %v1751_v35  ;;  %v1771_v10 = vld [vmem:[#allocation4 + $0x130] sm:$0xff]  ;;  %v1774_v62 = vld [vmem:[#allocation4 + $0x148] sm:$0xff]  ;;  %v1780_v35 = vld [vmem:[#allocation4 + $0x178] sm:$0xff] }
 0x1cb   :  { %v12930_v13 = vpack.c.bf16 %v1771_v10, %v1767_v9  ;;  %v1778_v40 = vld [vmem:[#allocation4 + $0x168] sm:$0xff]  ;;  %v1773_v61 = vld [vmem:[#allocation4 + $0x140] sm:$0xff]  ;;  %v12951_v9 = vpack.c.bf16 %v1785_v55, %v1781_v39  ;;  %v1783_v10 = vld [vmem:[#allocation4 + $0x190] sm:$0xff] }
 0x1cc   :  { %v12852_v3 = vadd.f32 %v1224_v49, %v1223_v57  ;;  %9057 = vmatpush1.bf16.msra.mxu0 %v15086_v26  ;;  %9089 = vmatpush1.bf16.msra.mxu1 %v15087_v59  ;;  %v12903_v49 = vpack.c.bf16 %v1753_v31, %v1749_v44  ;;  %v1758_v57 = vld [vmem:[#allocation4 + $0xc8] sm:$0xff]  ;;  %v1760_v59 = vld [vmem:[#allocation4 + $0xd8] sm:$0xff]  ;;  %v12935_v31 = vpack.c.bf16 %v1778_v40, %v1774_v62  ;;  %v1787_v62 = vld [vmem:[#allocation4 + $0x1b0] sm:$0xff] }
 0x1cd   :  { %9059 = vmatprep.subr.bf16.mxu0 %v12697_v19  ;;  %9091 = vmatprep.subr.bf16.mxu1 %v15088_v29  ;;  %v11498_v19 = vpop.eup %11497  ;;  %v1762_v26 = vld [vmem:[#allocation4 + $0xe8] sm:$0xff]  ;;  %v1776_v44 = vld [vmem:[#allocation4 + $0x158] sm:$0xff]  ;;  %v12954_v40 = vpack.c.bf16 %v1787_v62, %v1783_v10  ;;  %v1795_v39 = vld [vmem:[#allocation4 + $0x1f0] sm:$0xff] }
 0x1ce   :  { %11499 = vtanh.f32 %v12852_v3  ;;  %v12911_v29 = vpack.c.bf16 %v1762_v26, %v1758_v57  ;;  %v1777_v57 = vld [vmem:[#allocation4 + $0x160] sm:$0xff]  ;;  %v12937_v26 = vpack.c.bf16 %v1780_v35, %v1776_v44  ;;  %v1790_v44 = vld [vmem:[#allocation4 + $0x1c8] sm:$0xff]  ;;  %v12966_v55 = vpack.c.bf16 %v1795_v39, %v1791_v27 }
 0x1cf   :  { %v1794_v35 = vld [vmem:[#allocation4 + $0x1e8] sm:$0xff] }
 0x1d0   :  { %9061 = vmatpush1.bf16.msra.mxu0 %v12703_v60  ;;  %9093 = vmatpush1.bf16.msra.mxu1 %v12707_v0  ;;  %v1738_v0 = vld [vmem:[#allocation4 + $0x28] sm:$0xff] }
 0x1d1   :  { %9063 = vmatprep.subr.bf16.mxu0 %v12709_v47  ;;  %9095 = vmatprep.subr.bf16.mxu1 %v12712_v5  ;;  %v1736_v47 = vld [vmem:[#allocation4 + $0x18] sm:$0xff]  ;;  %v1951_v10 = vld [vmem:[#allocation6 + $0x8] sm:$0xff] }
 0x1d2   :  { %v1955_v62 = vld [vmem:[#allocation6 + $0x28] sm:$0xff] }
 0x1d4   :  { %9065 = vmatpush1.bf16.msra.mxu0 %v12715_v14  ;;  %9097 = vmatpush1.bf16.msra.mxu1 %v12719_v2  ;;  %v1734_v14 = vld [vmem:[#allocation4 + $0x8] sm:$0xff]  ;;  %v1740_v2 = vld [vmem:[#allocation4 + $0x38] sm:$0xff] }
 0x1d5   :  { %9067 = vmatprep.subr.bf16.mxu0 %v12721_v17  ;;  %9099 = vmatprep.subr.bf16.mxu1 %v12724_v41  ;;  %v12875_v5 = vpack.c.bf16 %v1738_v0, %v1734_v14  ;;  %v1733_v17 = vld [vmem:[#allocation4] sm:$0xff] }
 0x1d6   :  { %v1737_v41 = vld [vmem:[#allocation4 + $0x20] sm:$0xff] }
 0x1d7   :  { %v1761_v14 = vld [vmem:[#allocation4 + $0xe0] sm:$0xff] }
 0x1d8   :  { %v11500_v25 = vpop.eup %11499  ;;  %9069 = vmatpush1.bf16.msra.mxu0 %v12727_v52  ;;  %9101 = vmatpush1.bf16.msra.mxu1 %v12731_v50  ;;  %v12877_v52 = vpack.c.bf16 %v1740_v2, %v1736_v47  ;;  %v12879_v50 = vpack.c.bf16 %v1737_v41, %v1733_v17  ;;  %v1759_v2 = vld [vmem:[#allocation4 + $0xd0] sm:$0xff] }
 0x1d9   :  { %v12869_v60 = vmul.f32 %v11500_v25, %v11498_v19  ;;  %9103 = vmatprep.subr.bf16.mxu0 %v12875_v5  ;;  %v1764_v19 = vld [vmem:[#allocation4 + $0xf8] sm:$0xff]  ;;  %v1757_v25 = vld [vmem:[#allocation4 + $0xc0] sm:$0xff]  ;;  %v1763_v17 = vld [vmem:[#allocation4 + $0xf0] sm:$0xff] }
 0x1da   :  { %9135 = vmatprep.subr.bf16.mxu1 %v12877_v52  ;;  %v12913_v0 = vpack.c.bf16 %v1764_v19, %v1760_v59  ;;  %v12915_v47 = vpack.c.bf16 %v1761_v14, %v1757_v25  ;;  %v12918_v41 = vpack.c.bf16 %v1763_v17, %v1759_v2  ;;  %v12939_v59 = vpack.c.bf16 %v1777_v57, %v1773_v61  ;;  %v1775_v19 = vld [vmem:[#allocation4 + $0x150] sm:$0xff]  ;;  %v1782_v2 = vld [vmem:[#allocation4 + $0x188] sm:$0xff]  ;;  %v1792_v61 = vld [vmem:[#allocation4 + $0x1d8] sm:$0xff] }
 0x1db   :  { %15089 = vst [vmem:[#allocation18_spill] sm:$0xff] %v12869_v60  ;;  %1589 = vmatmul.mubr.f32.vlgmr.msra.gmra.mrb[28].mxu0 %v12869_v60  ;;  %1660 = vmatmul.mubr.f32.vlgmr.msra.gmra.mrb[28].mxu1 %v12869_v60  ;;  %v1779_v25 = vld [vmem:[#allocation4 + $0x170] sm:$0xff]  ;;  %v1786_v17 = vld [vmem:[#allocation4 + $0x1a8] sm:$0xff]  ;;  %v12959_v57 = vpack.c.bf16 %v1794_v35, %v1790_v44  ;;  %v1953_v44 = vld [vmem:[#allocation6 + $0x18] sm:$0xff]  ;;  %v12971_v35 = vpack.c.bf16 %v1955_v62, %v1951_v10 }
 0x1dc   :  { %1861 = vmatprep.mubr.f32.mxu0 %v15070_v63  ;;  %1932 = vmatprep.mubr.f32.mxu1 %v15070_v63  ;;  %v12942_v14 = vpack.c.bf16 %v1779_v25, %v1775_v19  ;;  %v12947_v53 = vpack.c.bf16 %v1786_v17, %v1782_v2  ;;  %v1796_v19 = vld [vmem:[#allocation4 + $0x1f8] sm:$0xff]  ;;  %v1789_v25 = vld [vmem:[#allocation4 + $0x1c0] sm:$0xff] }
 0x1dd   :  { %9105 = vmatpush1.bf16.msra.mxu0 %v12879_v50  ;;  %9137 = vmatpush1.bf16.msra.mxu1 %v12882_v21  ;;  %v1793_v2 = vld [vmem:[#allocation4 + $0x1e0] sm:$0xff]  ;;  %v12961_v17 = vpack.c.bf16 %v1796_v19, %v1792_v61  ;;  %v1957_v61 = vld [vmem:[#allocation6 + $0x38] sm:$0xff] }
 0x1de   :  { %9107 = vmatprep.subr.bf16.mxu0 %v12887_v45  ;;  %9139 = vmatprep.subr.bf16.mxu1 %v12889_v16  ;;  %v12963_v46 = vpack.c.bf16 %v1793_v2, %v1789_v25  ;;  %v12973_v19 = vpack.c.bf16 %v1957_v61, %v1953_v44 }
 0x1e1   :  { %9109 = vmatpush1.bf16.msra.mxu0 %v12891_v20  ;;  %9141 = vmatpush1.bf16.msra.mxu1 %v12894_v8 }
 0x1e2   :  { %9111 = vmatprep.subr.bf16.mxu0 %v12899_v32  ;;  %9143 = vmatprep.subr.bf16.mxu1 %v12901_v34 }
 0x1e5   :  { %9113 = vmatpush1.bf16.msra.mxu0 %v12903_v49  ;;  %9145 = vmatpush1.bf16.msra.mxu1 %v12906_v43 }
 0x1e6   :  { %9115 = vmatprep.subr.bf16.mxu0 %v12911_v29  ;;  %9147 = vmatprep.subr.bf16.mxu1 %v12913_v0 }
 0x1e9   :  { %9117 = vmatpush1.bf16.msra.mxu0 %v12915_v47  ;;  %9149 = vmatpush1.bf16.msra.mxu1 %v12918_v41 }
 0x1ea   :  { %9119 = vmatprep.subr.bf16.mxu0 %v12923_v30  ;;  %9151 = vmatprep.subr.bf16.mxu1 %v12925_v11 }
 0x1ed   :  { %9121 = vmatpush1.bf16.msra.mxu0 %v12927_v23  ;;  %9153 = vmatpush1.bf16.msra.mxu1 %v12930_v13 }
 0x1ee   :  { %9123 = vmatprep.subr.bf16.mxu0 %v12935_v31  ;;  %9155 = vmatprep.subr.bf16.mxu1 %v12937_v26 }
 0x1f1   :  { %9125 = vmatpush1.bf16.msra.mxu0 %v12939_v59  ;;  %9157 = vmatpush1.bf16.msra.mxu1 %v12942_v14 }
 0x1f2   :  { %9127 = vmatprep.subr.bf16.mxu0 %v12947_v53  ;;  %9159 = vmatprep.subr.bf16.mxu1 %v12949_v4 }
 0x1f5   :  { %9129 = vmatpush1.bf16.msra.mxu0 %v12951_v9  ;;  %9161 = vmatpush1.bf16.msra.mxu1 %v12954_v40 }
 0x1f6   :  { %9131 = vmatprep.subr.bf16.mxu0 %v12959_v57  ;;  %9163 = vmatprep.subr.bf16.mxu1 %v12961_v17 }
 0x1f9   :  { %9133 = vmatpush1.bf16.msra.mxu0 %v12963_v46  ;;  %9165 = vmatpush1.bf16.msra.mxu1 %v12966_v55 }
 0x1fa   :  { %9167 = vmatprep.subr.bf16.mxu0 %v12971_v35  ;;  %9199 = vmatprep.subr.bf16.mxu1 %v12973_v19 }
 0x28e   :  { %v1373_v25 = vpop.f32.mrb[2].mxu0  ;;  %v1444_v2 = vpop.f32.mrb[2].mxu1 }
 0x28f   :  { %v11200_v27 = vadd.f32 %v1373_v25, %v12783_v15  ;;  %v1375_v39 = vpop.f32.mrb[3].mxu0  ;;  %v1446_v36 = vpop.f32.mrb[3].mxu1  ;;  %v11216_v44 = vadd.f32 %v1444_v2, %v12800_v1  ;;  %v1967_v1 = vld [vmem:[#allocation6 + $0x88] sm:$0xff] }
 0x290   :  { %v11201_v22 = vadd.f32 %v1375_v39, %v12787_v18  ;;  %v11217_v10 = vadd.f32 %v1446_v36, %v12794_v48  ;;  %v1971_v48 = vld [vmem:[#allocation6 + $0xa8] sm:$0xff]  ;;  %v1969_v18 = vld [vmem:[#allocation6 + $0x98] sm:$0xff] }
 0x291   :  { %v8619_v37 = vmul.f32 -1.442695, %v11200_v27 }
 0x292   :  { %v8620_v28 = vmul.f32 -1.442695, %v11201_v22  ;;  %v8621_v62 = vmul.f32 -1.442695, %v11217_v10 }
 0x293   :  { %11501 = vpow2.f32 %v8619_v37 }
 0x294   :  { %11503 = vpow2.f32 %v8620_v28 }
 0x295   :  { %11505 = vpow2.f32 %v8621_v62 }
 0x296   :  { %11507 = vtanh.f32 %v11216_v44 }
 0x29d   :  { %v11502_v61 = vpop.eup %11501 }
 0x29e   :  { %v11504_v51 = vpop.eup %11503  ;;  %v1673_v24 = vadd.f32 1.0, %v11502_v61 }
 0x29f   :  { %v1679_v12 = vadd.f32 1.0, %v11504_v51  ;;  %v11506_v25 = vpop.eup %11505 }
 0x2a0   :  { %11509 = vrcp.f32 %v1673_v24  ;;  %v11508_v6 = vpop.eup %11507  ;;  %v1686_v37 = vadd.f32 1.0, %v11506_v25  ;;  %v1954_v25 = vld [vmem:[#allocation6 + $0x20] sm:$0xff] }
 0x2a1   :  { %11511 = vrcp.f32 %v1679_v12 }
 0x2a2   :  { %11513 = vrcp.f32 %v1686_v37  ;;  %v1963_v37 = vld [vmem:[#allocation6 + $0x68] sm:$0xff] }
 0x2aa   :  { %v11510_v39 = vpop.eup %11509 }
 0x2ab   :  { %v11512_v27 = vpop.eup %11511  ;;  %v1690_v22 = vmul.f32 %v11510_v39, %v11508_v6  ;;  %v1952_v39 = vld [vmem:[#allocation6 + $0x10] sm:$0xff] }
 0x2ac   :  { %v1689_v28 = vmul.f32 %v11512_v27, %v12813_v58  ;;  %v1950_v58 = vld [vmem:[#allocation6] sm:$0xff]  ;;  %v1956_v27 = vld [vmem:[#allocation6 + $0x30] sm:$0xff]  ;;  %v11514_v56 = vpop.eup %11513 }
 0x2ae   :  { %v12982_v36 = vadd.f32 %v1690_v22, %v1689_v28  ;;  %v1590_v10 = vpop.f32.mrb[28].mxu0  ;;  %v1661_v2 = vpop.f32.mrb[28].mxu1  ;;  %v1959_v22 = vld [vmem:[#allocation6 + $0x48] sm:$0xff]  ;;  %v1961_v28 = vld [vmem:[#allocation6 + $0x58] sm:$0xff] }
 0x2af   :  { %v11242_v61 = vadd.f32 %v1590_v10, %v12807_v38  ;;  %v1592_v62 = vpop.f32.mrb[29].mxu0  ;;  %v1663_v44 = vpop.f32.mrb[29].mxu1  ;;  %v1965_v10 = vld [vmem:[#allocation6 + $0x78] sm:$0xff]  ;;  %v12988_v38 = vpack.c.bf16 %v1954_v25, %v1950_v58 }
 0x2b0   :  { %15090 = vst [vmem:[#allocation19_spill] sm:$0xff] %v12982_v36  ;;  %11515 = vtanh.f32 %v12982_v36  ;;  %v11243_v12 = vadd.f32 %v1592_v62, %v12811_v54  ;;  %v11259_v6 = vadd.f32 %v1663_v44, %v12821_v33  ;;  %v12990_v62 = vpack.c.bf16 %v1956_v27, %v1952_v39  ;;  %v1960_v54 = vld [vmem:[#allocation6 + $0x50] sm:$0xff]  ;;  %v1966_v39 = vld [vmem:[#allocation6 + $0x80] sm:$0xff] }
 0x2b1   :  { %v8622_v24 = vmul.f32 -1.442695, %v11242_v61  ;;  %15091 = vst [vmem:[#allocation20_spill] sm:$0xff] %v12988_v38  ;;  %v1958_v61 = vld [vmem:[#allocation6 + $0x40] sm:$0xff]  ;;  %v11258_v44 = vadd.f32 %v1661_v2, %v12827_v42  ;;  %v12997_v33 = vpack.c.bf16 %v1965_v10, %v1961_v28  ;;  %v1964_v36 = vld [vmem:[#allocation6 + $0x70] sm:$0xff] }
 0x2b2   :  { %v8623_v51 = vmul.f32 -1.442695, %v11243_v12  ;;  %v8624_v7 = vmul.f32 -1.442695, %v11259_v6  ;;  %15092 = vst [vmem:[#allocation21_spill] sm:$0xff] %v12990_v62  ;;  %v1962_v12 = vld [vmem:[#allocation6 + $0x60] sm:$0xff]  ;;  %v13005_v2 = vpack.c.bf16 %v1964_v36, %v1960_v54 }
 0x2b3   :  { %11517 = vpow2.f32 %v8622_v24  ;;  %15095 = vst [vmem:[#allocation24_spill] sm:$0xff] %v12997_v33  ;;  %v1973_v6 = vld [vmem:[#allocation6 + $0xb8] sm:$0xff]  ;;  %v1970_v27 = vld [vmem:[#allocation6 + $0xa0] sm:$0xff]  ;;  %v1972_v10 = vld [vmem:[#allocation6 + $0xb0] sm:$0xff] }
 0x2b4   :  { %11519 = vpow2.f32 %v8623_v51  ;;  %v12995_v51 = vpack.c.bf16 %v1963_v37, %v1959_v22  ;;  %15097 = vst [vmem:[#allocation26_spill] sm:$0xff] %v13005_v2  ;;  %v13009_v37 = vpack.c.bf16 %v1971_v48, %v1967_v1  ;;  %v13011_v28 = vpack.c.bf16 %v1973_v6, %v1969_v18  ;;  %v1981_v54 = vld [vmem:[#allocation6 + $0xf8] sm:$0xff]  ;;  %v1974_v1 = vld [vmem:[#allocation6 + $0xc0] sm:$0xff] }
 0x2b5   :  { %11521 = vpow2.f32 %v8624_v7  ;;  %v1968_v7 = vld [vmem:[#allocation6 + $0x90] sm:$0xff]  ;;  %v13017_v48 = vpack.c.bf16 %v1970_v27, %v1966_v39  ;;  %v1978_v36 = vld [vmem:[#allocation6 + $0xe0] sm:$0xff] }
 0x2b6   :  { %15094 = vst [vmem:[#allocation23_spill] sm:$0xff] %v12995_v51  ;;  %11523 = vtanh.f32 %v11258_v44  ;;  %15098 = vst [vmem:[#allocation27_spill] sm:$0xff] %v13009_v37  ;;  %v13019_v18 = vpack.c.bf16 %v1972_v10, %v1968_v7  ;;  %v13029_v39 = vpack.c.bf16 %v1978_v36, %v1974_v1  ;;  %v1982_v7 = vld [vmem:[#allocation6 + $0x100] sm:$0xff]  ;;  %v1997_v1 = vld [vmem:[#allocation6 + $0x178] sm:$0xff] }
 0x2b7   :  { %15099 = vst [vmem:[#allocation36_spill] sm:$0xff] %v13011_v28  ;;  %15100 = vst [vmem:[#allocation37_spill] sm:$0xff] %v13017_v48  ;;  %v1986_v10 = vld [vmem:[#allocation6 + $0x120] sm:$0xff] }
 0x2b8   :  { %15101 = vst [vmem:[#allocation38_spill] sm:$0xff] %v13019_v18  ;;  %15104 = vst [vmem:[#allocation41_spill] sm:$0xff] %v13029_v39 }
 0x2ba   :  { %v11516_v60 = vpop.eup %11515 }
 0x2bb   :  { %v12992_v24 = vmul.f32 %v11516_v60, %v11514_v56  ;;  %v13003_v60 = vpack.c.bf16 %v1962_v12, %v1958_v61  ;;  %v1979_v61 = vld [vmem:[#allocation6 + $0xe8] sm:$0xff]  ;;  %v1977_v12 = vld [vmem:[#allocation6 + $0xd8] sm:$0xff] }
 0x2bc   :  { %v13025_v6 = vpack.c.bf16 %v1981_v54, %v1977_v12  ;;  %v1984_v12 = vld [vmem:[#allocation6 + $0x110] sm:$0xff] }
 0x2bd   :  { %15093 = vst [vmem:[#allocation22_spill] sm:$0xff] %v12992_v24  ;;  %v11518_v58 = vpop.eup %11517  ;;  %1862 = vmatmul.mubr.f32.vlgmr.msra.gmra.mrb[4].mxu0 %v12992_v24  ;;  %1933 = vmatmul.mubr.f32.vlgmr.msra.gmra.mrb[4].mxu1 %v12992_v24  ;;  %15096 = vst [vmem:[#allocation25_spill] sm:$0xff] %v13003_v60  ;;  %v1987_v24 = vld [vmem:[#allocation6 + $0x128] sm:$0xff]  ;;  %v1988_v54 = vld [vmem:[#allocation6 + $0x130] sm:$0xff] }
 0x2be   :  { %v11520_v25 = vpop.eup %11519  ;;  %v1697_v56 = vadd.f32 1.0, %v11518_v58  ;;  %9169 = vmatpush1.bf16.msra.mxu0 %v12988_v38  ;;  %9201 = vmatpush1.bf16.msra.mxu1 %v12990_v62  ;;  %v1975_v58 = vld [vmem:[#allocation6 + $0xc8] sm:$0xff]  ;;  %15103 = vst [vmem:[#allocation40_spill] sm:$0xff] %v13025_v6  ;;  %v1996_v62 = vld [vmem:[#allocation6 + $0x170] sm:$0xff] }
 0x2bf   :  { %v1703_v22 = vadd.f32 1.0, %v11520_v25  ;;  %9171 = vmatprep.subr.bf16.mxu0 %v12995_v51  ;;  %9203 = vmatprep.subr.bf16.mxu1 %v12997_v33  ;;  %v13023_v44 = vpack.c.bf16 %v1979_v61, %v1975_v58  ;;  %v1976_v25 = vld [vmem:[#allocation6 + $0xd0] sm:$0xff] }
 0x2c0   :  { %11525 = vrcp.f32 %v1697_v56  ;;  %2078 = vmatprep.mubr.f32.mxu0 %v15070_v63  ;;  %2149 = vmatprep.mubr.f32.mxu1 %v15070_v63  ;;  %v1980_v56 = vld [vmem:[#allocation6 + $0xf0] sm:$0xff] }
 0x2c1   :  { %11527 = vrcp.f32 %v1703_v22  ;;  %15102 = vst [vmem:[#allocation39_spill] sm:$0xff] %v13023_v44  ;;  %v1983_v22 = vld [vmem:[#allocation6 + $0x108] sm:$0xff]  ;;  %v13031_v27 = vpack.c.bf16 %v1980_v56, %v1976_v25  ;;  %v13041_v56 = vpack.c.bf16 %v1986_v10, %v1982_v7 }
 0x2c2   :  { %9173 = vmatpush1.bf16.msra.mxu0 %v13003_v60  ;;  %9205 = vmatpush1.bf16.msra.mxu1 %v13005_v2  ;;  %v1985_v60 = vld [vmem:[#allocation6 + $0x118] sm:$0xff]  ;;  %v13035_v58 = vpack.c.bf16 %v1987_v24, %v1983_v22  ;;  %v1990_v24 = vld [vmem:[#allocation6 + $0x140] sm:$0xff]  ;;  %v2003_v10 = vld [vmem:[#allocation6 + $0x1a8] sm:$0xff] }
 0x2c3   :  { %9175 = vmatprep.subr.bf16.mxu0 %v13009_v37  ;;  %9207 = vmatprep.subr.bf16.mxu1 %v13011_v28  ;;  %v1989_v2 = vld [vmem:[#allocation6 + $0x138] sm:$0xff]  ;;  %15105 = vst [vmem:[#allocation42_spill] sm:$0xff] %v13031_v27  ;;  %v1991_v28 = vld [vmem:[#allocation6 + $0x148] sm:$0xff] }
 0x2c4   :  { %v13037_v61 = vpack.c.bf16 %v1989_v2, %v1985_v60  ;;  %v1995_v37 = vld [vmem:[#allocation6 + $0x168] sm:$0xff]  ;;  %v1994_v60 = vld [vmem:[#allocation6 + $0x160] sm:$0xff] }
 0x2c5   :  { %v13047_v33 = vpack.c.bf16 %v1995_v37, %v1991_v28  ;;  %v1998_v28 = vld [vmem:[#allocation6 + $0x180] sm:$0xff] }
 0x2c6   :  { %9177 = vmatpush1.bf16.msra.mxu0 %v13017_v48  ;;  %9209 = vmatpush1.bf16.msra.mxu1 %v13019_v18  ;;  %v11522_v48 = vpop.eup %11521  ;;  %v1993_v18 = vld [vmem:[#allocation6 + $0x158] sm:$0xff] }
 0x2c7   :  { %9179 = vmatprep.subr.bf16.mxu0 %v13023_v44  ;;  %9211 = vmatprep.subr.bf16.mxu1 %v13025_v6  ;;  %v11524_v36 = vpop.eup %11523  ;;  %v13043_v6 = vpack.c.bf16 %v1988_v54, %v1984_v12  ;;  %v1710_v44 = vadd.f32 1.0, %v11522_v48  ;;  %v13049_v51 = vpack.c.bf16 %v1997_v1, %v1993_v18  ;;  %v2001_v12 = vld [vmem:[#allocation6 + $0x198] sm:$0xff]  ;;  %v13056_v48 = vpack.c.bf16 %v1994_v60, %v1990_v24  ;;  %v2002_v18 = vld [vmem:[#allocation6 + $0x1a0] sm:$0xff]  ;;  %v2011_v24 = vld [vmem:[#allocation6 + $0x1e8] sm:$0xff] }
 0x2c8   :  { %v2005_v54 = vld [vmem:[#allocation6 + $0x1b8] sm:$0xff] }
 0x2c9   :  { %11529 = vrcp.f32 %v1710_v44  ;;  %v13064_v1 = vpack.c.bf16 %v2005_v54, %v2001_v12  ;;  %v2009_v60 = vld [vmem:[#allocation6 + $0x1d8] sm:$0xff]  ;;  %v13069_v44 = vpack.c.bf16 %v2002_v18, %v1998_v28  ;;  %v2008_v12 = vld [vmem:[#allocation6 + $0x1d0] sm:$0xff] }
 0x2ca   :  { %v11526_v25 = vpop.eup %11525  ;;  %9181 = vmatpush1.bf16.msra.mxu0 %v13029_v39  ;;  %9213 = vmatpush1.bf16.msra.mxu1 %v13031_v27  ;;  %v1992_v39 = vld [vmem:[#allocation6 + $0x150] sm:$0xff]  ;;  %v1999_v27 = vld [vmem:[#allocation6 + $0x188] sm:$0xff] }
 0x2cb   :  { %v11528_v2 = vpop.eup %11527  ;;  %v1714_v22 = vmul.f32 %v11526_v25, %v11524_v36  ;;  %9183 = vmatprep.subr.bf16.mxu0 %v13035_v58  ;;  %9215 = vmatprep.subr.bf16.mxu1 %v13037_v61  ;;  %v13058_v37 = vpack.c.bf16 %v1996_v62, %v1992_v39  ;;  %v2000_v36 = vld [vmem:[#allocation6 + $0x190] sm:$0xff]  ;;  %v2013_v62 = vld [vmem:[#allocation6 + $0x1f8] sm:$0xff] }
 0x2cc   :  { %v1713_v7 = vmul.f32 %v11528_v2, %v12852_v3  ;;  %v13062_v3 = vpack.c.bf16 %v2003_v10, %v1999_v27  ;;  %v2004_v25 = vld [vmem:[#allocation6 + $0x1b0] sm:$0xff]  ;;  %v2007_v2 = vld [vmem:[#allocation6 + $0x1c8] sm:$0xff]  ;;  %v2006_v27 = vld [vmem:[#allocation6 + $0x1c0] sm:$0xff] }
 0x2cd   :  { %v13071_v39 = vpack.c.bf16 %v2004_v25, %v2000_v36  ;;  %v2010_v10 = vld [vmem:[#allocation6 + $0x1e0] sm:$0xff]  ;;  %v2012_v54 = vld [vmem:[#allocation6 + $0x1f0] sm:$0xff] }
 0x2ce   :  { %v13052_v38 = vadd.f32 %v1714_v22, %v1713_v7  ;;  %9185 = vmatpush1.bf16.msra.mxu0 %v13041_v56  ;;  %9217 = vmatpush1.bf16.msra.mxu1 %v13043_v6  ;;  %v13075_v22 = vpack.c.bf16 %v2011_v24, %v2007_v2  ;;  %v13077_v7 = vpack.c.bf16 %v2013_v62, %v2009_v60 }
 0x2cf   :  { %9187 = vmatprep.subr.bf16.mxu0 %v13047_v33  ;;  %9219 = vmatprep.subr.bf16.mxu1 %v13049_v51  ;;  %v13081_v28 = vpack.c.bf16 %v2010_v10, %v2006_v27  ;;  %v13083_v18 = vpack.c.bf16 %v2012_v54, %v2008_v12  ;;  %v15113_v27 = vld [vmem:[#allocation34_spill] sm:$0xff] }
 0x2d0   :  { %11531 = vtanh.f32 %v13052_v38 }
 0x2d2   :  { %9189 = vmatpush1.bf16.msra.mxu0 %v13056_v48  ;;  %9221 = vmatpush1.bf16.msra.mxu1 %v13058_v37 }
 0x2d3   :  { %9191 = vmatprep.subr.bf16.mxu0 %v13062_v3  ;;  %9223 = vmatprep.subr.bf16.mxu1 %v13064_v1  ;;  %v11530_v36 = vpop.eup %11529 }
 0x2d6   :  { %9193 = vmatpush1.bf16.msra.mxu0 %v13069_v44  ;;  %9225 = vmatpush1.bf16.msra.mxu1 %v13071_v39 }
 0x2d7   :  { %9195 = vmatprep.subr.bf16.mxu0 %v13075_v22  ;;  %9227 = vmatprep.subr.bf16.mxu1 %v13077_v7 }
 0x2da   :  { %v11532_v25 = vpop.eup %11531  ;;  %9197 = vmatpush1.bf16.msra.mxu0 %v13081_v28  ;;  %9229 = vmatpush1.bf16.msra.mxu1 %v13083_v18 }
 0x2db   :  { %v13089_v2 = vmul.f32 %v11532_v25, %v11530_v36  ;;  %9231 = vmatprep.subr.bf16.mxu0 %v12875_v5  ;;  %9263 = vmatprep.subr.bf16.mxu1 %v12877_v52 }
 0x2dd   :  { %15106 = vst [vmem:[#allocation43_spill] sm:$0xff] %v13089_v2  ;;  %2079 = vmatmul.mubr.f32.vlgmr.msra.gmra.mrb[26].mxu0 %v13089_v2  ;;  %2150 = vmatmul.mubr.f32.vlgmr.msra.gmra.mrb[26].mxu1 %v13089_v2 }
 0x2de   :  { %9233 = vmatpush1.bf16.msra.mxu0 %v12879_v50  ;;  %9265 = vmatpush1.bf16.msra.mxu1 %v12882_v21 }
 0x2df   :  { %9235 = vmatprep.subr.bf16.mxu0 %v12887_v45  ;;  %9267 = vmatprep.subr.bf16.mxu1 %v12889_v16  ;;  %v15107_v16 = vld [vmem:[#allocation29_spill] sm:$0xff] }
 0x2e0   :  { %2351 = vmatprep.mubr.f32.mxu0 %v15070_v63  ;;  %2422 = vmatprep.mubr.f32.mxu1 %v15070_v63 }
 0x2e2   :  { %9237 = vmatpush1.bf16.msra.mxu0 %v12891_v20  ;;  %9269 = vmatpush1.bf16.msra.mxu1 %v12894_v8 }
 0x2e3   :  { %9239 = vmatprep.subr.bf16.mxu0 %v12899_v32  ;;  %9271 = vmatprep.subr.bf16.mxu1 %v12901_v34  ;;  %v15108_v34 = vld [vmem:[#allocation30_spill] sm:$0xff] }
 0x2e6   :  { %9241 = vmatpush1.bf16.msra.mxu0 %v12903_v49  ;;  %9273 = vmatpush1.bf16.msra.mxu1 %v12906_v43 }
 0x2e7   :  { %9243 = vmatprep.subr.bf16.mxu0 %v12911_v29  ;;  %9275 = vmatprep.subr.bf16.mxu1 %v12913_v0  ;;  %v15109_v29 = vld [vmem:[#allocation31_spill] sm:$0xff] }
 0x2ea   :  { %9245 = vmatpush1.bf16.msra.mxu0 %v12915_v47  ;;  %9277 = vmatpush1.bf16.msra.mxu1 %v12918_v41 }
 0x2eb   :  { %9247 = vmatprep.subr.bf16.mxu0 %v12923_v30  ;;  %9279 = vmatprep.subr.bf16.mxu1 %v12925_v11 }
 0x2ee   :  { %9249 = vmatpush1.bf16.msra.mxu0 %v12927_v23  ;;  %9281 = vmatpush1.bf16.msra.mxu1 %v12930_v13 }
 0x2ef   :  { %9251 = vmatprep.subr.bf16.mxu0 %v12935_v31  ;;  %9283 = vmatprep.subr.bf16.mxu1 %v12937_v26 }
 0x2f2   :  { %9253 = vmatpush1.bf16.msra.mxu0 %v12939_v59  ;;  %9285 = vmatpush1.bf16.msra.mxu1 %v12942_v14 }
 0x2f3   :  { %9255 = vmatprep.subr.bf16.mxu0 %v12947_v53  ;;  %9287 = vmatprep.subr.bf16.mxu1 %v12949_v4  ;;  %v15110_v53 = vld [vmem:[#allocation19_spill] sm:$0xff] }
 0x2f6   :  { %9257 = vmatpush1.bf16.msra.mxu0 %v12951_v9  ;;  %9289 = vmatpush1.bf16.msra.mxu1 %v12954_v40 }
 0x2f7   :  { %9259 = vmatprep.subr.bf16.mxu0 %v12959_v57  ;;  %9291 = vmatprep.subr.bf16.mxu1 %v12961_v17  ;;  %v15111_v17 = vld [vmem:[#allocation32_spill] sm:$0xff] }
 0x2fa   :  { %9261 = vmatpush1.bf16.msra.mxu0 %v12963_v46  ;;  %9293 = vmatpush1.bf16.msra.mxu1 %v12966_v55 }
 0x2fb   :  { %9295 = vmatprep.subr.bf16.mxu0 %v12971_v35  ;;  %9327 = vmatprep.subr.bf16.mxu1 %v12973_v19  ;;  %v15112_v19 = vld [vmem:[#allocation33_spill] sm:$0xff] }
 0x390   :  { %v1863_v5 = vpop.f32.mrb[4].mxu0  ;;  %v1934_v52 = vpop.f32.mrb[4].mxu1 }
 0x391   :  { %v11202_v50 = vadd.f32 %v1863_v5, %v12783_v15  ;;  %v1865_v21 = vpop.f32.mrb[5].mxu0  ;;  %v1936_v45 = vpop.f32.mrb[5].mxu1  ;;  %v11218_v0 = vadd.f32 %v1934_v52, %v15109_v29 }
 0x392   :  { %v11203_v20 = vadd.f32 %v1865_v21, %v15107_v16  ;;  %v11219_v49 = vadd.f32 %v1936_v45, %v15108_v34  ;;  %v15115_v45 = vld [vmem:[#allocation20_spill] sm:$0xff] }
 0x393   :  { %v8625_v8 = vmul.f32 -1.442695, %v11202_v50 }
 0x394   :  { %v8626_v32 = vmul.f32 -1.442695, %v11203_v20  ;;  %v8627_v43 = vmul.f32 -1.442695, %v11219_v49  ;;  %v15116_v20 = vld [vmem:[#allocation21_spill] sm:$0xff]  ;;  %v15118_v49 = vld [vmem:[#allocation24_spill] sm:$0xff] }
 0x395   :  { %11533 = vpow2.f32 %v8625_v8 }
 0x396   :  { %11535 = vpow2.f32 %v8626_v32  ;;  %v15117_v32 = vld [vmem:[#allocation23_spill] sm:$0xff] }
 0x397   :  { %11537 = vpow2.f32 %v8627_v43  ;;  %v15119_v43 = vld [vmem:[#allocation25_spill] sm:$0xff] }
 0x398   :  { %11539 = vtanh.f32 %v11218_v0  ;;  %v15120_v0 = vld [vmem:[#allocation26_spill] sm:$0xff] }
 0x39f   :  { %v11534_v47 = vpop.eup %11533 }
 0x3a0   :  { %v11536_v41 = vpop.eup %11535  ;;  %v2163_v30 = vadd.f32 1.0, %v11534_v47  ;;  %v15121_v47 = vld [vmem:[#allocation27_spill] sm:$0xff] }
 0x3a1   :  { %v2169_v11 = vadd.f32 1.0, %v11536_v41  ;;  %v11538_v23 = vpop.eup %11537  ;;  %v15122_v41 = vld [vmem:[#allocation36_spill] sm:$0xff] }
 0x3a2   :  { %11541 = vrcp.f32 %v2163_v30  ;;  %v11540_v13 = vpop.eup %11539  ;;  %v2176_v14 = vadd.f32 1.0, %v11538_v23  ;;  %v15123_v30 = vld [vmem:[#allocation37_spill] sm:$0xff]  ;;  %v15125_v23 = vld [vmem:[#allocation39_spill] sm:$0xff] }
 0x3a3   :  { %11543 = vrcp.f32 %v2169_v11  ;;  %v15124_v11 = vld [vmem:[#allocation38_spill] sm:$0xff] }
 0x3a4   :  { %11545 = vrcp.f32 %v2176_v14  ;;  %v15127_v14 = vld [vmem:[#allocation41_spill] sm:$0xff] }
 0x3ac   :  { %v11542_v31 = vpop.eup %11541 }
 0x3ad   :  { %v11544_v26 = vpop.eup %11543  ;;  %v2180_v59 = vmul.f32 %v11542_v31, %v11540_v13  ;;  %v15126_v13 = vld [vmem:[#allocation40_spill] sm:$0xff] }
 0x3ae   :  { %v2179_v4 = vmul.f32 %v11544_v26, %v15110_v53  ;;  %v11546_v12 = vpop.eup %11545  ;;  %v15128_v53 = vld [vmem:[#allocation42_spill] sm:$0xff] }
 0x3b0   :  { %v13134_v9 = vadd.f32 %v2180_v59, %v2179_v4  ;;  %v2080_v40 = vpop.f32.mrb[26].mxu0  ;;  %v2151_v57 = vpop.f32.mrb[26].mxu1 }
 0x3b1   :  { %v11240_v46 = vadd.f32 %v2080_v40, %v15111_v17  ;;  %v2082_v55 = vpop.f32.mrb[27].mxu0  ;;  %v2153_v35 = vpop.f32.mrb[27].mxu1  ;;  %v11256_v5 = vadd.f32 %v2151_v57, %v12827_v42 }
 0x3b2   :  { %11547 = vtanh.f32 %v13134_v9  ;;  %v11241_v24 = vadd.f32 %v2082_v55, %v15112_v19  ;;  %v11257_v10 = vadd.f32 %v2153_v35, %v15113_v27  ;;  %v2721_v35 = vld [vmem:[#allocation4 + $0x58] sm:$0xff] }
 0x3b3   :  { %v8628_v60 = vmul.f32 -1.442695, %v11240_v46 }
 0x3b4   :  { %v8629_v62 = vmul.f32 -1.442695, %v11241_v24  ;;  %v8630_v36 = vmul.f32 -1.442695, %v11257_v10  ;;  %v2722_v10 = vld [vmem:[#allocation4 + $0x60] sm:$0xff] }
 0x3b5   :  { %11549 = vpow2.f32 %v8628_v60  ;;  %v2725_v60 = vld [vmem:[#allocation4 + $0x78] sm:$0xff] }
 0x3b6   :  { %11551 = vpow2.f32 %v8629_v62  ;;  %v2718_v62 = vld [vmem:[#allocation4 + $0x40] sm:$0xff] }
 0x3b7   :  { %11553 = vpow2.f32 %v8630_v36  ;;  %v2720_v36 = vld [vmem:[#allocation4 + $0x50] sm:$0xff] }
 0x3b8   :  { %11555 = vtanh.f32 %v11256_v5  ;;  %v2724_v5 = vld [vmem:[#allocation4 + $0x70] sm:$0xff] }
 0x3bc   :  { %v11548_v54 = vpop.eup %11547 }
 0x3bd   :  { %v13140_v25 = vmul.f32 %v11548_v54, %v11546_v12  ;;  %v13201_v12 = vpack.c.bf16 %v2725_v60, %v2721_v35  ;;  %v13203_v54 = vpack.c.bf16 %v2722_v10, %v2718_v62  ;;  %v2751_v35 = vld [vmem:[#allocation4 + $0x148] sm:$0xff]  ;;  %v2753_v62 = vld [vmem:[#allocation4 + $0x158] sm:$0xff] }
 0x3be   :  { %v2755_v60 = vld [vmem:[#allocation4 + $0x168] sm:$0xff] }
 0x3bf   :  { %15114 = vst [vmem:[#allocation19_spill] sm:$0xff] %v13140_v25  ;;  %v11550_v52 = vpop.eup %11549  ;;  %2352 = vmatmul.mubr.f32.vlgmr.msra.gmra.mrb[6].mxu0 %v13140_v25  ;;  %2423 = vmatmul.mubr.f32.vlgmr.msra.gmra.mrb[6].mxu1 %v13140_v25  ;;  %v13247_v10 = vpack.c.bf16 %v2755_v60, %v2751_v35  ;;  %v2770_v35 = vld [vmem:[#allocation4 + $0x1e0] sm:$0xff] }
 0x3c0   :  { %v11552_v50 = vpop.eup %11551  ;;  %v2187_v21 = vadd.f32 1.0, %v11550_v52  ;;  %9297 = vmatpush1.bf16.msra.mxu0 %v15115_v45  ;;  %9329 = vmatpush1.bf16.msra.mxu1 %v15116_v20  ;;  %v13206_v52 = vpack.c.bf16 %v2724_v5, %v2720_v36  ;;  %v2729_v45 = vld [vmem:[#allocation4 + $0x98] sm:$0xff]  ;;  %v2750_v5 = vld [vmem:[#allocation4 + $0x140] sm:$0xff] }
 0x3c1   :  { %v2193_v8 = vadd.f32 1.0, %v11552_v50  ;;  %9299 = vmatprep.subr.bf16.mxu0 %v15117_v32  ;;  %9331 = vmatprep.subr.bf16.mxu1 %v15118_v49  ;;  %v11554_v31 = vpop.eup %11553  ;;  %v2727_v50 = vld [vmem:[#allocation4 + $0x88] sm:$0xff]  ;;  %v2726_v32 = vld [vmem:[#allocation4 + $0x80] sm:$0xff]  ;;  %v2757_v36 = vld [vmem:[#allocation4 + $0x178] sm:$0xff] }
 0x3c2   :  { %11557 = vrcp.f32 %v2187_v21  ;;  %2568 = vmatprep.mubr.f32.mxu0 %v15070_v63  ;;  %2639 = vmatprep.mubr.f32.mxu1 %v15070_v63  ;;  %v11556_v26 = vpop.eup %11555  ;;  %v2200_v57 = vadd.f32 1.0, %v11554_v31  ;;  %v2731_v21 = vld [vmem:[#allocation4 + $0xa8] sm:$0xff]  ;;  %v2730_v49 = vld [vmem:[#allocation4 + $0xa0] sm:$0xff] }
 0x3c3   :  { %11559 = vrcp.f32 %v2193_v8  ;;  %v13211_v20 = vpack.c.bf16 %v2731_v21, %v2727_v50  ;;  %v2733_v8 = vld [vmem:[#allocation4 + $0xb8] sm:$0xff]  ;;  %v2754_v50 = vld [vmem:[#allocation4 + $0x160] sm:$0xff]  ;;  %v13249_v21 = vpack.c.bf16 %v2757_v36, %v2753_v62  ;;  %v2768_v36 = vld [vmem:[#allocation4 + $0x1d0] sm:$0xff] }
 0x3c4   :  { %9301 = vmatpush1.bf16.msra.mxu0 %v15119_v43  ;;  %9333 = vmatpush1.bf16.msra.mxu1 %v15120_v0  ;;  %11561 = vrcp.f32 %v2200_v57  ;;  %v13213_v43 = vpack.c.bf16 %v2733_v8, %v2729_v45  ;;  %v13215_v0 = vpack.c.bf16 %v2730_v49, %v2726_v32  ;;  %v2740_v57 = vld [vmem:[#allocation4 + $0xf0] sm:$0xff]  ;;  %v13251_v45 = vpack.c.bf16 %v2754_v50, %v2750_v5 }
 0x3c5   :  { %9303 = vmatprep.subr.bf16.mxu0 %v15121_v47  ;;  %9335 = vmatprep.subr.bf16.mxu1 %v15122_v41  ;;  %v2728_v47 = vld [vmem:[#allocation4 + $0x90] sm:$0xff] }
 0x3c6   :  { %v2732_v41 = vld [vmem:[#allocation4 + $0xb0] sm:$0xff] }
 0x3c7   :  { %v2752_v8 = vld [vmem:[#allocation4 + $0x150] sm:$0xff] }
 0x3c8   :  { %9305 = vmatpush1.bf16.msra.mxu0 %v15123_v30  ;;  %9337 = vmatpush1.bf16.msra.mxu1 %v15124_v11  ;;  %v13218_v30 = vpack.c.bf16 %v2732_v41, %v2728_v47  ;;  %v2735_v11 = vld [vmem:[#allocation4 + $0xc8] sm:$0xff]  ;;  %v2756_v32 = vld [vmem:[#allocation4 + $0x170] sm:$0xff] }
 0x3c9   :  { %9307 = vmatprep.subr.bf16.mxu0 %v15125_v23  ;;  %9339 = vmatprep.subr.bf16.mxu1 %v15126_v13  ;;  %v2739_v23 = vld [vmem:[#allocation4 + $0xe8] sm:$0xff]  ;;  %v2737_v13 = vld [vmem:[#allocation4 + $0xd8] sm:$0xff]  ;;  %v13254_v49 = vpack.c.bf16 %v2756_v32, %v2752_v8  ;;  %v2772_v5 = vld [vmem:[#allocation4 + $0x1f0] sm:$0xff] }
 0x3ca   :  { %v13223_v31 = vpack.c.bf16 %v2739_v23, %v2735_v11  ;;  %v2759_v47 = vld [vmem:[#allocation4 + $0x188] sm:$0xff]  ;;  %v2761_v11 = vld [vmem:[#allocation4 + $0x198] sm:$0xff]  ;;  %v13278_v50 = vpack.c.bf16 %v2772_v5, %v2768_v36 }
 0x3cb   :  { %v2763_v41 = vld [vmem:[#allocation4 + $0x1a8] sm:$0xff] }
 0x3cc   :  { %v11558_v59 = vpop.eup %11557  ;;  %9309 = vmatpush1.bf16.msra.mxu0 %v15127_v14  ;;  %9341 = vmatpush1.bf16.msra.mxu1 %v15128_v53  ;;  %v2738_v14 = vld [vmem:[#allocation4 + $0xe0] sm:$0xff]  ;;  %v13259_v23 = vpack.c.bf16 %v2763_v41, %v2759_v47  ;;  %v2925_v8 = vld [vmem:[#allocation6 + $0x8] sm:$0xff]  ;;  %v2927_v47 = vld [vmem:[#allocation6 + $0x18] sm:$0xff] }
 0x3cd   :  { %v11560_v4 = vpop.eup %11559  ;;  %v2204_v40 = vmul.f32 %v11558_v59, %v11556_v26  ;;  %9311 = vmatprep.subr.bf16.mxu0 %v13035_v58  ;;  %9343 = vmatprep.subr.bf16.mxu1 %v13037_v61  ;;  %v2715_v58 = vld [vmem:[#allocation4 + $0x28] sm:$0xff]  ;;  %v2713_v61 = vld [vmem:[#allocation4 + $0x18] sm:$0xff]  ;;  %v2734_v59 = vld [vmem:[#allocation4 + $0xc0] sm:$0xff] }
 0x3ce   :  { %v2203_v46 = vmul.f32 %v11560_v4, %v13052_v38  ;;  %v11562_v38 = vpop.eup %11561  ;;  %v2741_v26 = vld [vmem:[#allocation4 + $0xf8] sm:$0xff]  ;;  %v13227_v4 = vpack.c.bf16 %v2738_v14, %v2734_v59  ;;  %v2762_v59 = vld [vmem:[#allocation4 + $0x1a0] sm:$0xff]  ;;  %v2929_v32 = vld [vmem:[#allocation6 + $0x28] sm:$0xff] }
 0x3cf   :  { %v13225_v53 = vpack.c.bf16 %v2741_v26, %v2737_v13  ;;  %v2765_v13 = vld [vmem:[#allocation4 + $0x1b8] sm:$0xff]  ;;  %v2758_v26 = vld [vmem:[#allocation4 + $0x180] sm:$0xff]  ;;  %v13283_v41 = vpack.c.bf16 %v2929_v32, %v2925_v8 }
 0x3d0   :  { %v13164_v55 = vadd.f32 %v2204_v40, %v2203_v46  ;;  %9313 = vmatpush1.bf16.msra.mxu0 %v13041_v56  ;;  %9345 = vmatpush1.bf16.msra.mxu1 %v13043_v6  ;;  %v2711_v6 = vld [vmem:[#allocation4 + $0x8] sm:$0xff]  ;;  %v2736_v40 = vld [vmem:[#allocation4 + $0xd0] sm:$0xff]  ;;  %v13261_v14 = vpack.c.bf16 %v2765_v13, %v2761_v11  ;;  %v2931_v11 = vld [vmem:[#allocation6 + $0x38] sm:$0xff] }
 0x3d1   :  { %9315 = vmatprep.subr.bf16.mxu0 %v13047_v33  ;;  %9347 = vmatprep.subr.bf16.mxu1 %v13049_v51  ;;  %v13187_v56 = vpack.c.bf16 %v2715_v58, %v2711_v6  ;;  %v13230_v46 = vpack.c.bf16 %v2740_v57, %v2736_v40  ;;  %v2745_v6 = vld [vmem:[#allocation4 + $0x118] sm:$0xff]  ;;  %v13263_v40 = vpack.c.bf16 %v2762_v59, %v2758_v26  ;;  %v2760_v57 = vld [vmem:[#allocation4 + $0x190] sm:$0xff] }
 0x3d2   :  { %11563 = vtanh.f32 %v13164_v55  ;;  %v13285_v13 = vpack.c.bf16 %v2931_v11, %v2927_v47 }
 0x3d4   :  { %9317 = vmatpush1.bf16.msra.mxu0 %v13056_v48  ;;  %9349 = vmatpush1.bf16.msra.mxu1 %v13058_v37  ;;  %v2717_v48 = vld [vmem:[#allocation4 + $0x38] sm:$0xff]  ;;  %v2710_v37 = vld [vmem:[#allocation4] sm:$0xff] }
 0x3d5   :  { %9319 = vmatprep.subr.bf16.mxu0 %v13062_v3  ;;  %9351 = vmatprep.subr.bf16.mxu1 %v13064_v1  ;;  %v2714_v3 = vld [vmem:[#allocation4 + $0x20] sm:$0xff]  ;;  %v13189_v1 = vpack.c.bf16 %v2717_v48, %v2713_v61  ;;  %v2749_v61 = vld [vmem:[#allocation4 + $0x138] sm:$0xff] }
 0x3d6   :  { %v2742_v48 = vld [vmem:[#allocation4 + $0x100] sm:$0xff] }
 0x3d8   :  { %9321 = vmatpush1.bf16.msra.mxu0 %v13069_v44  ;;  %9353 = vmatpush1.bf16.msra.mxu1 %v13071_v39  ;;  %v13191_v44 = vpack.c.bf16 %v2714_v3, %v2710_v37  ;;  %v2712_v39 = vld [vmem:[#allocation4 + $0x10] sm:$0xff]  ;;  %v2746_v37 = vld [vmem:[#allocation4 + $0x120] sm:$0xff]  ;;  %v13237_v3 = vpack.c.bf16 %v2749_v61, %v2745_v6  ;;  %v2767_v6 = vld [vmem:[#allocation4 + $0x1c8] sm:$0xff] }
 0x3d9   :  { %9323 = vmatprep.subr.bf16.mxu0 %v13075_v22  ;;  %9355 = vmatprep.subr.bf16.mxu1 %v13077_v7  ;;  %v2716_v22 = vld [vmem:[#allocation4 + $0x30] sm:$0xff]  ;;  %v2771_v61 = vld [vmem:[#allocation4 + $0x1e8] sm:$0xff] }
 0x3da   :  { %v13194_v7 = vpack.c.bf16 %v2716_v22, %v2712_v39  ;;  %v13239_v39 = vpack.c.bf16 %v2746_v37, %v2742_v48  ;;  %v2744_v22 = vld [vmem:[#allocation4 + $0x110] sm:$0xff]  ;;  %v2769_v48 = vld [vmem:[#allocation4 + $0x1d8] sm:$0xff]  ;;  %v13271_v37 = vpack.c.bf16 %v2771_v61, %v2767_v6 }
 0x3dc   :  { %v11564_v33 = vpop.eup %11563  ;;  %9325 = vmatpush1.bf16.msra.mxu0 %v13081_v28  ;;  %9357 = vmatpush1.bf16.msra.mxu1 %v13083_v18  ;;  %v2719_v28 = vld [vmem:[#allocation4 + $0x48] sm:$0xff] }
 0x3dd   :  { %v13181_v51 = vmul.f32 %v11564_v33, %v11562_v38  ;;  %9359 = vmatprep.subr.bf16.mxu0 %v13187_v56  ;;  %9391 = vmatprep.subr.bf16.mxu1 %v13189_v1  ;;  %v2723_v18 = vld [vmem:[#allocation4 + $0x68] sm:$0xff] }
 0x3de   :  { %v13199_v24 = vpack.c.bf16 %v2723_v18, %v2719_v28  ;;  %v2743_v38 = vld [vmem:[#allocation4 + $0x108] sm:$0xff]  ;;  %v2748_v28 = vld [vmem:[#allocation4 + $0x130] sm:$0xff] }
 0x3df   :  { %15129 = vst [vmem:[#allocation20_spill] sm:$0xff] %v13181_v51  ;;  %2569 = vmatmul.mubr.f32.vlgmr.msra.gmra.mrb[24].mxu0 %v13181_v51  ;;  %2640 = vmatmul.mubr.f32.vlgmr.msra.gmra.mrb[24].mxu1 %v13181_v51  ;;  %v2747_v33 = vld [vmem:[#allocation4 + $0x128] sm:$0xff]  ;;  %v13242_v18 = vpack.c.bf16 %v2748_v28, %v2744_v22  ;;  %v2773_v22 = vld [vmem:[#allocation4 + $0x1f8] sm:$0xff]  ;;  %v2766_v28 = vld [vmem:[#allocation4 + $0x1c0] sm:$0xff] }
 0x3e0   :  { %2838 = vmatprep.mubr.f32.mxu0 %v15070_v63  ;;  %2909 = vmatprep.mubr.f32.mxu1 %v15070_v63  ;;  %v13235_v58 = vpack.c.bf16 %v2747_v33, %v2743_v38  ;;  %v2764_v38 = vld [vmem:[#allocation4 + $0x1b0] sm:$0xff]  ;;  %v13273_v60 = vpack.c.bf16 %v2773_v22, %v2769_v48  ;;  %v13275_v62 = vpack.c.bf16 %v2770_v35, %v2766_v28 }
 0x3e1   :  { %9361 = vmatpush1.bf16.msra.mxu0 %v13191_v44  ;;  %9393 = vmatpush1.bf16.msra.mxu1 %v13194_v7  ;;  %v13266_v33 = vpack.c.bf16 %v2764_v38, %v2760_v57 }
 0x3e2   :  { %9363 = vmatprep.subr.bf16.mxu0 %v13199_v24  ;;  %9395 = vmatprep.subr.bf16.mxu1 %v13201_v12 }
 0x3e5   :  { %9365 = vmatpush1.bf16.msra.mxu0 %v13203_v54  ;;  %9397 = vmatpush1.bf16.msra.mxu1 %v13206_v52 }
 0x3e6   :  { %9367 = vmatprep.subr.bf16.mxu0 %v13211_v20  ;;  %9399 = vmatprep.subr.bf16.mxu1 %v13213_v43 }
 0x3e9   :  { %9369 = vmatpush1.bf16.msra.mxu0 %v13215_v0  ;;  %9401 = vmatpush1.bf16.msra.mxu1 %v13218_v30 }
 0x3ea   :  { %9371 = vmatprep.subr.bf16.mxu0 %v13223_v31  ;;  %9403 = vmatprep.subr.bf16.mxu1 %v13225_v53 }
 0x3ed   :  { %9373 = vmatpush1.bf16.msra.mxu0 %v13227_v4  ;;  %9405 = vmatpush1.bf16.msra.mxu1 %v13230_v46 }
 0x3ee   :  { %9375 = vmatprep.subr.bf16.mxu0 %v13235_v58  ;;  %9407 = vmatprep.subr.bf16.mxu1 %v13237_v3 }
 0x3f1   :  { %9377 = vmatpush1.bf16.msra.mxu0 %v13239_v39  ;;  %9409 = vmatpush1.bf16.msra.mxu1 %v13242_v18 }
 0x3f2   :  { %9379 = vmatprep.subr.bf16.mxu0 %v13247_v10  ;;  %9411 = vmatprep.subr.bf16.mxu1 %v13249_v21 }
 0x3f5   :  { %9381 = vmatpush1.bf16.msra.mxu0 %v13251_v45  ;;  %9413 = vmatpush1.bf16.msra.mxu1 %v13254_v49 }
 0x3f6   :  { %9383 = vmatprep.subr.bf16.mxu0 %v13259_v23  ;;  %9415 = vmatprep.subr.bf16.mxu1 %v13261_v14 }
 0x3f9   :  { %9385 = vmatpush1.bf16.msra.mxu0 %v13263_v40  ;;  %9417 = vmatpush1.bf16.msra.mxu1 %v13266_v33 }
 0x3fa   :  { %9387 = vmatprep.subr.bf16.mxu0 %v13271_v37  ;;  %9419 = vmatprep.subr.bf16.mxu1 %v13273_v60 }
 0x3fd   :  { %9389 = vmatpush1.bf16.msra.mxu0 %v13275_v62  ;;  %9421 = vmatpush1.bf16.msra.mxu1 %v13278_v50 }
 0x3fe   :  { %9423 = vmatprep.subr.bf16.mxu0 %v13283_v41  ;;  %9455 = vmatprep.subr.bf16.mxu1 %v13285_v13 }
 0x492   :  { %v2353_v26 = vpop.f32.mrb[6].mxu0  ;;  %v2424_v59 = vpop.f32.mrb[6].mxu1 }
 0x493   :  { %v11204_v57 = vadd.f32 %v2353_v26, %v12783_v15  ;;  %v2355_v38 = vpop.f32.mrb[7].mxu0  ;;  %v2426_v6 = vpop.f32.mrb[7].mxu1  ;;  %v11220_v36 = vadd.f32 %v2424_v59, %v15109_v29  ;;  %v2941_v29 = vld [vmem:[#allocation6 + $0x88] sm:$0xff] }
 0x494   :  { %v11205_v61 = vadd.f32 %v2355_v38, %v15107_v16  ;;  %v11221_v28 = vadd.f32 %v2426_v6, %v15108_v34  ;;  %v2945_v34 = vld [vmem:[#allocation6 + $0xa8] sm:$0xff]  ;;  %v2943_v16 = vld [vmem:[#allocation6 + $0x98] sm:$0xff] }
 0x495   :  { %v8631_v48 = vmul.f32 -1.442695, %v11204_v57 }
 0x496   :  { %v8632_v22 = vmul.f32 -1.442695, %v11205_v61  ;;  %v8633_v35 = vmul.f32 -1.442695, %v11221_v28 }
 0x497   :  { %11565 = vpow2.f32 %v8631_v48 }
 0x498   :  { %11567 = vpow2.f32 %v8632_v22 }
 0x499   :  { %11569 = vpow2.f32 %v8633_v35 }
 0x49a   :  { %11571 = vtanh.f32 %v11220_v36 }
 0x4a1   :  { %v11566_v5 = vpop.eup %11565 }
 0x4a2   :  { %v11568_v8 = vpop.eup %11567  ;;  %v2653_v32 = vadd.f32 1.0, %v11566_v5 }
 0x4a3   :  { %v2659_v47 = vadd.f32 1.0, %v11568_v8  ;;  %v11570_v11 = vpop.eup %11569 }
 0x4a4   :  { %11573 = vrcp.f32 %v2653_v32  ;;  %v11572_v26 = vpop.eup %11571  ;;  %v2666_v48 = vadd.f32 1.0, %v11570_v11 }
 0x4a5   :  { %11575 = vrcp.f32 %v2659_v47 }
 0x4a6   :  { %11577 = vrcp.f32 %v2666_v48  ;;  %v2937_v48 = vld [vmem:[#allocation6 + $0x68] sm:$0xff] }
 0x4ae   :  { %v11574_v38 = vpop.eup %11573 }
 0x4af   :  { %v11576_v57 = vpop.eup %11575  ;;  %v2670_v61 = vmul.f32 %v11574_v38, %v11572_v26  ;;  %v2928_v26 = vld [vmem:[#allocation6 + $0x20] sm:$0xff]  ;;  %v2926_v38 = vld [vmem:[#allocation6 + $0x10] sm:$0xff] }
 0x4b0   :  { %v2669_v22 = vmul.f32 %v11576_v57, %v13134_v9  ;;  %v2924_v9 = vld [vmem:[#allocation6] sm:$0xff]  ;;  %v2930_v57 = vld [vmem:[#allocation6 + $0x30] sm:$0xff]  ;;  %v11578_v2 = vpop.eup %11577 }
 0x4b2   :  { %v13294_v6 = vadd.f32 %v2670_v61, %v2669_v22  ;;  %v2570_v28 = vpop.f32.mrb[24].mxu0  ;;  %v2641_v59 = vpop.f32.mrb[24].mxu1  ;;  %v2933_v61 = vld [vmem:[#allocation6 + $0x48] sm:$0xff]  ;;  %v2935_v22 = vld [vmem:[#allocation6 + $0x58] sm:$0xff] }
 0x4b3   :  { %v11238_v5 = vadd.f32 %v2570_v28, %v15111_v17  ;;  %v2572_v35 = vpop.f32.mrb[25].mxu0  ;;  %v2643_v36 = vpop.f32.mrb[25].mxu1  ;;  %v2939_v28 = vld [vmem:[#allocation6 + $0x78] sm:$0xff]  ;;  %v13300_v17 = vpack.c.bf16 %v2928_v26, %v2924_v9 }
 0x4b4   :  { %15130 = vst [vmem:[#allocation21_spill] sm:$0xff] %v13294_v6  ;;  %11579 = vtanh.f32 %v13294_v6  ;;  %v11239_v8 = vadd.f32 %v2572_v35, %v15112_v19  ;;  %v11255_v11 = vadd.f32 %v2643_v36, %v15113_v27  ;;  %v13302_v35 = vpack.c.bf16 %v2930_v57, %v2926_v38  ;;  %v2934_v19 = vld [vmem:[#allocation6 + $0x50] sm:$0xff]  ;;  %v2940_v38 = vld [vmem:[#allocation6 + $0x80] sm:$0xff] }
 0x4b5   :  { %v8634_v32 = vmul.f32 -1.442695, %v11238_v5  ;;  %15131 = vst [vmem:[#allocation23_spill] sm:$0xff] %v13300_v17  ;;  %v2932_v5 = vld [vmem:[#allocation6 + $0x40] sm:$0xff]  ;;  %v11254_v36 = vadd.f32 %v2641_v59, %v12827_v42  ;;  %v13309_v27 = vpack.c.bf16 %v2939_v28, %v2935_v22  ;;  %v2938_v6 = vld [vmem:[#allocation6 + $0x70] sm:$0xff] }
 0x4b6   :  { %v8635_v47 = vmul.f32 -1.442695, %v11239_v8  ;;  %v8636_v25 = vmul.f32 -1.442695, %v11255_v11  ;;  %15132 = vst [vmem:[#allocation24_spill] sm:$0xff] %v13302_v35  ;;  %v2936_v8 = vld [vmem:[#allocation6 + $0x60] sm:$0xff]  ;;  %v13317_v59 = vpack.c.bf16 %v2938_v6, %v2934_v19 }
 0x4b7   :  { %11581 = vpow2.f32 %v8634_v32  ;;  %15135 = vst [vmem:[#allocation27_spill] sm:$0xff] %v13309_v27  ;;  %v2947_v11 = vld [vmem:[#allocation6 + $0xb8] sm:$0xff]  ;;  %v2944_v57 = vld [vmem:[#allocation6 + $0xa0] sm:$0xff]  ;;  %v2946_v28 = vld [vmem:[#allocation6 + $0xb0] sm:$0xff] }
 0x4b8   :  { %11583 = vpow2.f32 %v8635_v47  ;;  %v13307_v47 = vpack.c.bf16 %v2937_v48, %v2933_v61  ;;  %15137 = vst [vmem:[#allocation37_spill] sm:$0xff] %v13317_v59  ;;  %v13321_v48 = vpack.c.bf16 %v2945_v34, %v2941_v29  ;;  %v13323_v22 = vpack.c.bf16 %v2947_v11, %v2943_v16  ;;  %v2955_v19 = vld [vmem:[#allocation6 + $0xf8] sm:$0xff]  ;;  %v2948_v29 = vld [vmem:[#allocation6 + $0xc0] sm:$0xff] }
 0x4b9   :  { %11585 = vpow2.f32 %v8636_v25  ;;  %v2942_v25 = vld [vmem:[#allocation6 + $0x90] sm:$0xff]  ;;  %v13329_v34 = vpack.c.bf16 %v2944_v57, %v2940_v38  ;;  %v2952_v6 = vld [vmem:[#allocation6 + $0xe0] sm:$0xff] }
 0x4ba   :  { %15134 = vst [vmem:[#allocation26_spill] sm:$0xff] %v13307_v47  ;;  %11587 = vtanh.f32 %v11254_v36  ;;  %15138 = vst [vmem:[#allocation38_spill] sm:$0xff] %v13321_v48  ;;  %v13331_v16 = vpack.c.bf16 %v2946_v28, %v2942_v25  ;;  %v13341_v38 = vpack.c.bf16 %v2952_v6, %v2948_v29  ;;  %v2956_v25 = vld [vmem:[#allocation6 + $0x100] sm:$0xff]  ;;  %v2971_v29 = vld [vmem:[#allocation6 + $0x178] sm:$0xff] }
 0x4bb   :  { %15139 = vst [vmem:[#allocation39_spill] sm:$0xff] %v13323_v22  ;;  %15140 = vst [vmem:[#allocation40_spill] sm:$0xff] %v13329_v34  ;;  %v2960_v28 = vld [vmem:[#allocation6 + $0x120] sm:$0xff] }
 0x4bc   :  { %15141 = vst [vmem:[#allocation41_spill] sm:$0xff] %v13331_v16  ;;  %15144 = vst [vmem:[#allocation45_spill] sm:$0xff] %v13341_v38 }
 0x4be   :  { %v11580_v51 = vpop.eup %11579 }
 0x4bf   :  { %v13304_v32 = vmul.f32 %v11580_v51, %v11578_v2  ;;  %v13315_v51 = vpack.c.bf16 %v2936_v8, %v2932_v5  ;;  %v2953_v5 = vld [vmem:[#allocation6 + $0xe8] sm:$0xff]  ;;  %v2951_v8 = vld [vmem:[#allocation6 + $0xd8] sm:$0xff] }
 0x4c0   :  { %v13337_v11 = vpack.c.bf16 %v2955_v19, %v2951_v8  ;;  %v2958_v8 = vld [vmem:[#allocation6 + $0x110] sm:$0xff] }
 0x4c1   :  { %15133 = vst [vmem:[#allocation25_spill] sm:$0xff] %v13304_v32  ;;  %v11582_v9 = vpop.eup %11581  ;;  %2839 = vmatmul.mubr.f32.vlgmr.msra.gmra.mrb[8].mxu0 %v13304_v32  ;;  %2910 = vmatmul.mubr.f32.vlgmr.msra.gmra.mrb[8].mxu1 %v13304_v32  ;;  %15136 = vst [vmem:[#allocation36_spill] sm:$0xff] %v13315_v51  ;;  %v2961_v32 = vld [vmem:[#allocation6 + $0x128] sm:$0xff]  ;;  %v2962_v19 = vld [vmem:[#allocation6 + $0x130] sm:$0xff] }
 0x4c2   :  { %v11584_v26 = vpop.eup %11583  ;;  %v2677_v2 = vadd.f32 1.0, %v11582_v9  ;;  %9425 = vmatpush1.bf16.msra.mxu0 %v13300_v17  ;;  %9457 = vmatpush1.bf16.msra.mxu1 %v13302_v35  ;;  %v2949_v9 = vld [vmem:[#allocation6 + $0xc8] sm:$0xff]  ;;  %15143 = vst [vmem:[#allocation44_spill] sm:$0xff] %v13337_v11  ;;  %v2970_v35 = vld [vmem:[#allocation6 + $0x170] sm:$0xff] }
 0x4c3   :  { %v2683_v61 = vadd.f32 1.0, %v11584_v26  ;;  %9427 = vmatprep.subr.bf16.mxu0 %v13307_v47  ;;  %9459 = vmatprep.subr.bf16.mxu1 %v13309_v27  ;;  %v13335_v36 = vpack.c.bf16 %v2953_v5, %v2949_v9  ;;  %v2950_v26 = vld [vmem:[#allocation6 + $0xd0] sm:$0xff] }
 0x4c4   :  { %11589 = vrcp.f32 %v2677_v2  ;;  %3052 = vmatprep.mubr.f32.mxu0 %v15070_v63  ;;  %3123 = vmatprep.mubr.f32.mxu1 %v15070_v63  ;;  %v2954_v2 = vld [vmem:[#allocation6 + $0xf0] sm:$0xff] }
 0x4c5   :  { %11591 = vrcp.f32 %v2683_v61  ;;  %15142 = vst [vmem:[#allocation42_spill] sm:$0xff] %v13335_v36  ;;  %v2957_v61 = vld [vmem:[#allocation6 + $0x108] sm:$0xff]  ;;  %v13343_v57 = vpack.c.bf16 %v2954_v2, %v2950_v26  ;;  %v13353_v2 = vpack.c.bf16 %v2960_v28, %v2956_v25 }
 0x4c6   :  { %9429 = vmatpush1.bf16.msra.mxu0 %v13315_v51  ;;  %9461 = vmatpush1.bf16.msra.mxu1 %v13317_v59  ;;  %v2959_v51 = vld [vmem:[#allocation6 + $0x118] sm:$0xff]  ;;  %v13347_v9 = vpack.c.bf16 %v2961_v32, %v2957_v61  ;;  %v2964_v32 = vld [vmem:[#allocation6 + $0x140] sm:$0xff]  ;;  %v2977_v28 = vld [vmem:[#allocation6 + $0x1a8] sm:$0xff] }
 0x4c7   :  { %9431 = vmatprep.subr.bf16.mxu0 %v13321_v48  ;;  %9463 = vmatprep.subr.bf16.mxu1 %v13323_v22  ;;  %v2963_v59 = vld [vmem:[#allocation6 + $0x138] sm:$0xff]  ;;  %15145 = vst [vmem:[#allocation46_spill] sm:$0xff] %v13343_v57  ;;  %v2965_v22 = vld [vmem:[#allocation6 + $0x148] sm:$0xff] }
 0x4c8   :  { %v13349_v5 = vpack.c.bf16 %v2963_v59, %v2959_v51  ;;  %v2969_v48 = vld [vmem:[#allocation6 + $0x168] sm:$0xff]  ;;  %v2968_v51 = vld [vmem:[#allocation6 + $0x160] sm:$0xff] }
 0x4c9   :  { %v13359_v27 = vpack.c.bf16 %v2969_v48, %v2965_v22  ;;  %v2972_v22 = vld [vmem:[#allocation6 + $0x180] sm:$0xff] }
 0x4ca   :  { %9433 = vmatpush1.bf16.msra.mxu0 %v13329_v34  ;;  %9465 = vmatpush1.bf16.msra.mxu1 %v13331_v16  ;;  %v11586_v34 = vpop.eup %11585  ;;  %v2967_v16 = vld [vmem:[#allocation6 + $0x158] sm:$0xff] }
 0x4cb   :  { %9435 = vmatprep.subr.bf16.mxu0 %v13335_v36  ;;  %9467 = vmatprep.subr.bf16.mxu1 %v13337_v11  ;;  %v11588_v6 = vpop.eup %11587  ;;  %v13355_v11 = vpack.c.bf16 %v2962_v19, %v2958_v8  ;;  %v2690_v36 = vadd.f32 1.0, %v11586_v34  ;;  %v13361_v47 = vpack.c.bf16 %v2971_v29, %v2967_v16  ;;  %v2975_v8 = vld [vmem:[#allocation6 + $0x198] sm:$0xff]  ;;  %v13368_v34 = vpack.c.bf16 %v2968_v51, %v2964_v32  ;;  %v2976_v16 = vld [vmem:[#allocation6 + $0x1a0] sm:$0xff]  ;;  %v2985_v32 = vld [vmem:[#allocation6 + $0x1e8] sm:$0xff] }
 0x4cc   :  { %v2979_v19 = vld [vmem:[#allocation6 + $0x1b8] sm:$0xff] }
 0x4cd   :  { %11593 = vrcp.f32 %v2690_v36  ;;  %v13376_v29 = vpack.c.bf16 %v2979_v19, %v2975_v8  ;;  %v2983_v51 = vld [vmem:[#allocation6 + $0x1d8] sm:$0xff]  ;;  %v13381_v36 = vpack.c.bf16 %v2976_v16, %v2972_v22  ;;  %v2982_v8 = vld [vmem:[#allocation6 + $0x1d0] sm:$0xff] }
 0x4ce   :  { %v11590_v26 = vpop.eup %11589  ;;  %9437 = vmatpush1.bf16.msra.mxu0 %v13341_v38  ;;  %9469 = vmatpush1.bf16.msra.mxu1 %v13343_v57  ;;  %v2966_v38 = vld [vmem:[#allocation6 + $0x150] sm:$0xff]  ;;  %v2973_v57 = vld [vmem:[#allocation6 + $0x188] sm:$0xff] }
 0x4cf   :  { %v11592_v59 = vpop.eup %11591  ;;  %v2694_v61 = vmul.f32 %v11590_v26, %v11588_v6  ;;  %9439 = vmatprep.subr.bf16.mxu0 %v13347_v9  ;;  %9471 = vmatprep.subr.bf16.mxu1 %v13349_v5  ;;  %v13370_v48 = vpack.c.bf16 %v2970_v35, %v2966_v38  ;;  %v2974_v6 = vld [vmem:[#allocation6 + $0x190] sm:$0xff]  ;;  %v2987_v35 = vld [vmem:[#allocation6 + $0x1f8] sm:$0xff] }
 0x4d0   :  { %v2693_v25 = vmul.f32 %v11592_v59, %v13164_v55  ;;  %v13374_v55 = vpack.c.bf16 %v2977_v28, %v2973_v57  ;;  %v2978_v26 = vld [vmem:[#allocation6 + $0x1b0] sm:$0xff]  ;;  %v2981_v59 = vld [vmem:[#allocation6 + $0x1c8] sm:$0xff]  ;;  %v2980_v57 = vld [vmem:[#allocation6 + $0x1c0] sm:$0xff] }
 0x4d1   :  { %v13383_v38 = vpack.c.bf16 %v2978_v26, %v2974_v6  ;;  %v2984_v28 = vld [vmem:[#allocation6 + $0x1e0] sm:$0xff]  ;;  %v2986_v19 = vld [vmem:[#allocation6 + $0x1f0] sm:$0xff] }
 0x4d2   :  { %v13364_v17 = vadd.f32 %v2694_v61, %v2693_v25  ;;  %9441 = vmatpush1.bf16.msra.mxu0 %v13353_v2  ;;  %9473 = vmatpush1.bf16.msra.mxu1 %v13355_v11  ;;  %v13387_v61 = vpack.c.bf16 %v2985_v32, %v2981_v59  ;;  %v13389_v25 = vpack.c.bf16 %v2987_v35, %v2983_v51 }
 0x4d3   :  { %9443 = vmatprep.subr.bf16.mxu0 %v13359_v27  ;;  %9475 = vmatprep.subr.bf16.mxu1 %v13361_v47  ;;  %v13393_v22 = vpack.c.bf16 %v2984_v28, %v2980_v57  ;;  %v13395_v16 = vpack.c.bf16 %v2986_v19, %v2982_v8  ;;  %v15153_v57 = vld [vmem:[#allocation34_spill] sm:$0xff] }
 0x4d4   :  { %11595 = vtanh.f32 %v13364_v17 }
 0x4d6   :  { %9445 = vmatpush1.bf16.msra.mxu0 %v13368_v34  ;;  %9477 = vmatpush1.bf16.msra.mxu1 %v13370_v48 }
 0x4d7   :  { %9447 = vmatprep.subr.bf16.mxu0 %v13374_v55  ;;  %9479 = vmatprep.subr.bf16.mxu1 %v13376_v29  ;;  %v11594_v6 = vpop.eup %11593 }
 0x4da   :  { %9449 = vmatpush1.bf16.msra.mxu0 %v13381_v36  ;;  %9481 = vmatpush1.bf16.msra.mxu1 %v13383_v38 }
 0x4db   :  { %9451 = vmatprep.subr.bf16.mxu0 %v13387_v61  ;;  %9483 = vmatprep.subr.bf16.mxu1 %v13389_v25 }
 0x4de   :  { %v11596_v26 = vpop.eup %11595  ;;  %9453 = vmatpush1.bf16.msra.mxu0 %v13393_v22  ;;  %9485 = vmatpush1.bf16.msra.mxu1 %v13395_v16 }
 0x4df   :  { %v13401_v59 = vmul.f32 %v11596_v26, %v11594_v6  ;;  %9487 = vmatprep.subr.bf16.mxu0 %v13187_v56  ;;  %9519 = vmatprep.subr.bf16.mxu1 %v13189_v1 }
 0x4e1   :  { %15146 = vst [vmem:[#allocation47_spill] sm:$0xff] %v13401_v59  ;;  %3053 = vmatmul.mubr.f32.vlgmr.msra.gmra.mrb[22].mxu0 %v13401_v59  ;;  %3124 = vmatmul.mubr.f32.vlgmr.msra.gmra.mrb[22].mxu1 %v13401_v59 }
 0x4e2   :  { %9489 = vmatpush1.bf16.msra.mxu0 %v13191_v44  ;;  %9521 = vmatpush1.bf16.msra.mxu1 %v13194_v7 }
 0x4e3   :  { %9491 = vmatprep.subr.bf16.mxu0 %v13199_v24  ;;  %9523 = vmatprep.subr.bf16.mxu1 %v13201_v12  ;;  %v15147_v12 = vld [vmem:[#allocation29_spill] sm:$0xff] }
 0x4e4   :  { %3316 = vmatprep.mubr.f32.mxu0 %v15070_v63  ;;  %3387 = vmatprep.mubr.f32.mxu1 %v15070_v63 }
 0x4e6   :  { %9493 = vmatpush1.bf16.msra.mxu0 %v13203_v54  ;;  %9525 = vmatpush1.bf16.msra.mxu1 %v13206_v52 }
 0x4e7   :  { %9495 = vmatprep.subr.bf16.mxu0 %v13211_v20  ;;  %9527 = vmatprep.subr.bf16.mxu1 %v13213_v43  ;;  %v15148_v43 = vld [vmem:[#allocation30_spill] sm:$0xff] }
 0x4ea   :  { %9497 = vmatpush1.bf16.msra.mxu0 %v13215_v0  ;;  %9529 = vmatpush1.bf16.msra.mxu1 %v13218_v30 }
 0x4eb   :  { %9499 = vmatprep.subr.bf16.mxu0 %v13223_v31  ;;  %9531 = vmatprep.subr.bf16.mxu1 %v13225_v53  ;;  %v15149_v31 = vld [vmem:[#allocation31_spill] sm:$0xff] }
 0x4ee   :  { %9501 = vmatpush1.bf16.msra.mxu0 %v13227_v4  ;;  %9533 = vmatpush1.bf16.msra.mxu1 %v13230_v46 }
 0x4ef   :  { %9503 = vmatprep.subr.bf16.mxu0 %v13235_v58  ;;  %9535 = vmatprep.subr.bf16.mxu1 %v13237_v3 }
 0x4f2   :  { %9505 = vmatpush1.bf16.msra.mxu0 %v13239_v39  ;;  %9537 = vmatpush1.bf16.msra.mxu1 %v13242_v18 }
 0x4f3   :  { %9507 = vmatprep.subr.bf16.mxu0 %v13247_v10  ;;  %9539 = vmatprep.subr.bf16.mxu1 %v13249_v21 }
 0x4f6   :  { %9509 = vmatpush1.bf16.msra.mxu0 %v13251_v45  ;;  %9541 = vmatpush1.bf16.msra.mxu1 %v13254_v49 }
 0x4f7   :  { %9511 = vmatprep.subr.bf16.mxu0 %v13259_v23  ;;  %9543 = vmatprep.subr.bf16.mxu1 %v13261_v14  ;;  %v15150_v23 = vld [vmem:[#allocation21_spill] sm:$0xff] }
 0x4fa   :  { %9513 = vmatpush1.bf16.msra.mxu0 %v13263_v40  ;;  %9545 = vmatpush1.bf16.msra.mxu1 %v13266_v33 }
 0x4fb   :  { %9515 = vmatprep.subr.bf16.mxu0 %v13271_v37  ;;  %9547 = vmatprep.subr.bf16.mxu1 %v13273_v60  ;;  %v15151_v60 = vld [vmem:[#allocation32_spill] sm:$0xff] }
 0x4fe   :  { %9517 = vmatpush1.bf16.msra.mxu0 %v13275_v62  ;;  %9549 = vmatpush1.bf16.msra.mxu1 %v13278_v50 }
 0x4ff   :  { %9551 = vmatprep.subr.bf16.mxu0 %v13283_v41  ;;  %9583 = vmatprep.subr.bf16.mxu1 %v13285_v13  ;;  %v15152_v13 = vld [vmem:[#allocation33_spill] sm:$0xff] }
 0x594   :  { %v2840_v56 = vpop.f32.mrb[8].mxu0  ;;  %v2911_v1 = vpop.f32.mrb[8].mxu1 }
 0x595   :  { %v11206_v44 = vadd.f32 %v2840_v56, %v12783_v15  ;;  %v2842_v7 = vpop.f32.mrb[9].mxu0  ;;  %v2913_v24 = vpop.f32.mrb[9].mxu1  ;;  %v11222_v53 = vadd.f32 %v2911_v1, %v15149_v31 }
 0x596   :  { %v11207_v54 = vadd.f32 %v2842_v7, %v15147_v12  ;;  %v11223_v0 = vadd.f32 %v2913_v24, %v15148_v43  ;;  %v15155_v24 = vld [vmem:[#allocation23_spill] sm:$0xff] }
 0x597   :  { %v8637_v52 = vmul.f32 -1.442695, %v11206_v44 }
 0x598   :  { %v8638_v20 = vmul.f32 -1.442695, %v11207_v54  ;;  %v8639_v30 = vmul.f32 -1.442695, %v11223_v0  ;;  %v15156_v54 = vld [vmem:[#allocation24_spill] sm:$0xff]  ;;  %v15158_v0 = vld [vmem:[#allocation27_spill] sm:$0xff] }
 0x599   :  { %11597 = vpow2.f32 %v8637_v52 }
 0x59a   :  { %11599 = vpow2.f32 %v8638_v20  ;;  %v15157_v20 = vld [vmem:[#allocation26_spill] sm:$0xff] }
 0x59b   :  { %11601 = vpow2.f32 %v8639_v30  ;;  %v15159_v30 = vld [vmem:[#allocation36_spill] sm:$0xff] }
 0x59c   :  { %11603 = vtanh.f32 %v11222_v53  ;;  %v15160_v53 = vld [vmem:[#allocation37_spill] sm:$0xff] }
 0x5a3   :  { %v11598_v4 = vpop.eup %11597 }
 0x5a4   :  { %v11600_v46 = vpop.eup %11599  ;;  %v3137_v58 = vadd.f32 1.0, %v11598_v4  ;;  %v15161_v4 = vld [vmem:[#allocation38_spill] sm:$0xff] }
 0x5a5   :  { %v3143_v3 = vadd.f32 1.0, %v11600_v46  ;;  %v11602_v39 = vpop.eup %11601  ;;  %v15162_v46 = vld [vmem:[#allocation39_spill] sm:$0xff] }
 0x5a6   :  { %11605 = vrcp.f32 %v3137_v58  ;;  %v11604_v18 = vpop.eup %11603  ;;  %v3150_v49 = vadd.f32 1.0, %v11602_v39  ;;  %v15163_v58 = vld [vmem:[#allocation40_spill] sm:$0xff]  ;;  %v15165_v39 = vld [vmem:[#allocation42_spill] sm:$0xff] }
 0x5a7   :  { %11607 = vrcp.f32 %v3143_v3  ;;  %v15164_v3 = vld [vmem:[#allocation41_spill] sm:$0xff] }
 0x5a8   :  { %11609 = vrcp.f32 %v3150_v49  ;;  %v15167_v49 = vld [vmem:[#allocation45_spill] sm:$0xff] }
 0x5b0   :  { %v11606_v10 = vpop.eup %11605 }
 0x5b1   :  { %v11608_v21 = vpop.eup %11607  ;;  %v3154_v45 = vmul.f32 %v11606_v10, %v11604_v18  ;;  %v15166_v18 = vld [vmem:[#allocation44_spill] sm:$0xff] }
 0x5b2   :  { %v3153_v14 = vmul.f32 %v11608_v21, %v15150_v23  ;;  %v11610_v8 = vpop.eup %11609  ;;  %v15168_v23 = vld [vmem:[#allocation46_spill] sm:$0xff] }
 0x5b4   :  { %v13446_v40 = vadd.f32 %v3154_v45, %v3153_v14  ;;  %v3054_v33 = vpop.f32.mrb[22].mxu0  ;;  %v3125_v37 = vpop.f32.mrb[22].mxu1 }
 0x5b5   :  { %v11236_v62 = vadd.f32 %v3054_v33, %v15151_v60  ;;  %v3056_v50 = vpop.f32.mrb[23].mxu0  ;;  %v3127_v41 = vpop.f32.mrb[23].mxu1  ;;  %v11252_v56 = vadd.f32 %v3125_v37, %v12827_v42 }
 0x5b6   :  { %11611 = vtanh.f32 %v13446_v40  ;;  %v11237_v32 = vadd.f32 %v3056_v50, %v15152_v13  ;;  %v11253_v28 = vadd.f32 %v3127_v41, %v15153_v57  ;;  %v3677_v41 = vld [vmem:[#allocation4 + $0x58] sm:$0xff] }
 0x5b7   :  { %v8640_v51 = vmul.f32 -1.442695, %v11236_v62 }
 0x5b8   :  { %v8641_v35 = vmul.f32 -1.442695, %v11237_v32  ;;  %v8642_v6 = vmul.f32 -1.442695, %v11253_v28  ;;  %v3678_v28 = vld [vmem:[#allocation4 + $0x60] sm:$0xff] }
 0x5b9   :  { %11613 = vpow2.f32 %v8640_v51  ;;  %v3681_v51 = vld [vmem:[#allocation4 + $0x78] sm:$0xff] }
 0x5ba   :  { %11615 = vpow2.f32 %v8641_v35  ;;  %v3674_v35 = vld [vmem:[#allocation4 + $0x40] sm:$0xff] }
 0x5bb   :  { %11617 = vpow2.f32 %v8642_v6  ;;  %v3676_v6 = vld [vmem:[#allocation4 + $0x50] sm:$0xff] }
 0x5bc   :  { %11619 = vtanh.f32 %v11252_v56  ;;  %v3680_v56 = vld [vmem:[#allocation4 + $0x70] sm:$0xff] }
 0x5c0   :  { %v11612_v19 = vpop.eup %11611 }
 0x5c1   :  { %v13452_v26 = vmul.f32 %v11612_v19, %v11610_v8  ;;  %v13513_v8 = vpack.c.bf16 %v3681_v51, %v3677_v41  ;;  %v13515_v19 = vpack.c.bf16 %v3678_v28, %v3674_v35  ;;  %v3707_v41 = vld [vmem:[#allocation4 + $0x148] sm:$0xff]  ;;  %v3709_v35 = vld [vmem:[#allocation4 + $0x158] sm:$0xff] }
 0x5c2   :  { %v3711_v51 = vld [vmem:[#allocation4 + $0x168] sm:$0xff] }
 0x5c3   :  { %15154 = vst [vmem:[#allocation21_spill] sm:$0xff] %v13452_v26  ;;  %v11614_v1 = vpop.eup %11613  ;;  %3317 = vmatmul.mubr.f32.vlgmr.msra.gmra.mrb[10].mxu0 %v13452_v26  ;;  %3388 = vmatmul.mubr.f32.vlgmr.msra.gmra.mrb[10].mxu1 %v13452_v26  ;;  %v13559_v28 = vpack.c.bf16 %v3711_v51, %v3707_v41  ;;  %v3726_v41 = vld [vmem:[#allocation4 + $0x1e0] sm:$0xff] }
 0x5c4   :  { %v11616_v44 = vpop.eup %11615  ;;  %v3161_v7 = vadd.f32 1.0, %v11614_v1  ;;  %9553 = vmatpush1.bf16.msra.mxu0 %v15155_v24  ;;  %9585 = vmatpush1.bf16.msra.mxu1 %v15156_v54  ;;  %v13518_v1 = vpack.c.bf16 %v3680_v56, %v3676_v6  ;;  %v3685_v24 = vld [vmem:[#allocation4 + $0x98] sm:$0xff]  ;;  %v3706_v56 = vld [vmem:[#allocation4 + $0x140] sm:$0xff] }
 0x5c5   :  { %v3167_v52 = vadd.f32 1.0, %v11616_v44  ;;  %9555 = vmatprep.subr.bf16.mxu0 %v15157_v20  ;;  %9587 = vmatprep.subr.bf16.mxu1 %v15158_v0  ;;  %v11618_v10 = vpop.eup %11617  ;;  %v3683_v44 = vld [vmem:[#allocation4 + $0x88] sm:$0xff]  ;;  %v3682_v20 = vld [vmem:[#allocation4 + $0x80] sm:$0xff]  ;;  %v3713_v6 = vld [vmem:[#allocation4 + $0x178] sm:$0xff] }
 0x5c6   :  { %11621 = vrcp.f32 %v3161_v7  ;;  %3530 = vmatprep.mubr.f32.mxu0 %v15070_v63  ;;  %3601 = vmatprep.mubr.f32.mxu1 %v15070_v63  ;;  %v11620_v21 = vpop.eup %11619  ;;  %v3174_v37 = vadd.f32 1.0, %v11618_v10  ;;  %v3687_v7 = vld [vmem:[#allocation4 + $0xa8] sm:$0xff]  ;;  %v3686_v0 = vld [vmem:[#allocation4 + $0xa0] sm:$0xff] }
 0x5c7   :  { %11623 = vrcp.f32 %v3167_v52  ;;  %v13523_v54 = vpack.c.bf16 %v3687_v7, %v3683_v44  ;;  %v3689_v52 = vld [vmem:[#allocation4 + $0xb8] sm:$0xff]  ;;  %v3710_v44 = vld [vmem:[#allocation4 + $0x160] sm:$0xff]  ;;  %v13561_v7 = vpack.c.bf16 %v3713_v6, %v3709_v35  ;;  %v3724_v6 = vld [vmem:[#allocation4 + $0x1d0] sm:$0xff] }
 0x5c8   :  { %9557 = vmatpush1.bf16.msra.mxu0 %v15159_v30  ;;  %9589 = vmatpush1.bf16.msra.mxu1 %v15160_v53  ;;  %11625 = vrcp.f32 %v3174_v37  ;;  %v13525_v30 = vpack.c.bf16 %v3689_v52, %v3685_v24  ;;  %v13527_v53 = vpack.c.bf16 %v3686_v0, %v3682_v20  ;;  %v3696_v37 = vld [vmem:[#allocation4 + $0xf0] sm:$0xff]  ;;  %v13563_v24 = vpack.c.bf16 %v3710_v44, %v3706_v56 }
 0x5c9   :  { %9559 = vmatprep.subr.bf16.mxu0 %v15161_v4  ;;  %9591 = vmatprep.subr.bf16.mxu1 %v15162_v46  ;;  %v3684_v4 = vld [vmem:[#allocation4 + $0x90] sm:$0xff] }
 0x5ca   :  { %v3688_v46 = vld [vmem:[#allocation4 + $0xb0] sm:$0xff] }
 0x5cb   :  { %v3708_v52 = vld [vmem:[#allocation4 + $0x150] sm:$0xff] }
 0x5cc   :  { %9561 = vmatpush1.bf16.msra.mxu0 %v15163_v58  ;;  %9593 = vmatpush1.bf16.msra.mxu1 %v15164_v3  ;;  %v13530_v58 = vpack.c.bf16 %v3688_v46, %v3684_v4  ;;  %v3691_v3 = vld [vmem:[#allocation4 + $0xc8] sm:$0xff]  ;;  %v3712_v20 = vld [vmem:[#allocation4 + $0x170] sm:$0xff] }
 0x5cd   :  { %9563 = vmatprep.subr.bf16.mxu0 %v15165_v39  ;;  %9595 = vmatprep.subr.bf16.mxu1 %v15166_v18  ;;  %v3695_v39 = vld [vmem:[#allocation4 + $0xe8] sm:$0xff]  ;;  %v3693_v18 = vld [vmem:[#allocation4 + $0xd8] sm:$0xff]  ;;  %v13566_v0 = vpack.c.bf16 %v3712_v20, %v3708_v52  ;;  %v3728_v56 = vld [vmem:[#allocation4 + $0x1f0] sm:$0xff] }
 0x5ce   :  { %v13535_v10 = vpack.c.bf16 %v3695_v39, %v3691_v3  ;;  %v3715_v4 = vld [vmem:[#allocation4 + $0x188] sm:$0xff]  ;;  %v3717_v3 = vld [vmem:[#allocation4 + $0x198] sm:$0xff]  ;;  %v13590_v44 = vpack.c.bf16 %v3728_v56, %v3724_v6 }
 0x5cf   :  { %v3719_v46 = vld [vmem:[#allocation4 + $0x1a8] sm:$0xff] }
 0x5d0   :  { %v11622_v45 = vpop.eup %11621  ;;  %9565 = vmatpush1.bf16.msra.mxu0 %v15167_v49  ;;  %9597 = vmatpush1.bf16.msra.mxu1 %v15168_v23  ;;  %v3694_v49 = vld [vmem:[#allocation4 + $0xe0] sm:$0xff]  ;;  %v13571_v39 = vpack.c.bf16 %v3719_v46, %v3715_v4  ;;  %v3881_v52 = vld [vmem:[#allocation6 + $0x8] sm:$0xff]  ;;  %v3883_v4 = vld [vmem:[#allocation6 + $0x18] sm:$0xff] }
 0x5d1   :  { %v11624_v14 = vpop.eup %11623  ;;  %v3178_v33 = vmul.f32 %v11622_v45, %v11620_v21  ;;  %9567 = vmatprep.subr.bf16.mxu0 %v13347_v9  ;;  %9599 = vmatprep.subr.bf16.mxu1 %v13349_v5  ;;  %v3671_v9 = vld [vmem:[#allocation4 + $0x28] sm:$0xff]  ;;  %v3669_v5 = vld [vmem:[#allocation4 + $0x18] sm:$0xff]  ;;  %v3690_v45 = vld [vmem:[#allocation4 + $0xc0] sm:$0xff] }
 0x5d2   :  { %v3177_v62 = vmul.f32 %v11624_v14, %v13364_v17  ;;  %v11626_v17 = vpop.eup %11625  ;;  %v3697_v21 = vld [vmem:[#allocation4 + $0xf8] sm:$0xff]  ;;  %v13539_v14 = vpack.c.bf16 %v3694_v49, %v3690_v45  ;;  %v3718_v45 = vld [vmem:[#allocation4 + $0x1a0] sm:$0xff]  ;;  %v3885_v20 = vld [vmem:[#allocation6 + $0x28] sm:$0xff] }
 0x5d3   :  { %v13537_v23 = vpack.c.bf16 %v3697_v21, %v3693_v18  ;;  %v3721_v18 = vld [vmem:[#allocation4 + $0x1b8] sm:$0xff]  ;;  %v3714_v21 = vld [vmem:[#allocation4 + $0x180] sm:$0xff]  ;;  %v13595_v46 = vpack.c.bf16 %v3885_v20, %v3881_v52 }
 0x5d4   :  { %v13476_v50 = vadd.f32 %v3178_v33, %v3177_v62  ;;  %9569 = vmatpush1.bf16.msra.mxu0 %v13353_v2  ;;  %9601 = vmatpush1.bf16.msra.mxu1 %v13355_v11  ;;  %v3667_v11 = vld [vmem:[#allocation4 + $0x8] sm:$0xff]  ;;  %v3692_v33 = vld [vmem:[#allocation4 + $0xd0] sm:$0xff]  ;;  %v13573_v49 = vpack.c.bf16 %v3721_v18, %v3717_v3  ;;  %v3887_v3 = vld [vmem:[#allocation6 + $0x38] sm:$0xff] }
 0x5d5   :  { %9571 = vmatprep.subr.bf16.mxu0 %v13359_v27  ;;  %9603 = vmatprep.subr.bf16.mxu1 %v13361_v47  ;;  %v13499_v2 = vpack.c.bf16 %v3671_v9, %v3667_v11  ;;  %v13542_v62 = vpack.c.bf16 %v3696_v37, %v3692_v33  ;;  %v3701_v11 = vld [vmem:[#allocation4 + $0x118] sm:$0xff]  ;;  %v13575_v33 = vpack.c.bf16 %v3718_v45, %v3714_v21  ;;  %v3716_v37 = vld [vmem:[#allocation4 + $0x190] sm:$0xff] }
 0x5d6   :  { %11627 = vtanh.f32 %v13476_v50  ;;  %v13597_v18 = vpack.c.bf16 %v3887_v3, %v3883_v4 }
 0x5d8   :  { %9573 = vmatpush1.bf16.msra.mxu0 %v13368_v34  ;;  %9605 = vmatpush1.bf16.msra.mxu1 %v13370_v48  ;;  %v3673_v34 = vld [vmem:[#allocation4 + $0x38] sm:$0xff]  ;;  %v3666_v48 = vld [vmem:[#allocation4] sm:$0xff] }
 0x5d9   :  { %9575 = vmatprep.subr.bf16.mxu0 %v13374_v55  ;;  %9607 = vmatprep.subr.bf16.mxu1 %v13376_v29  ;;  %v3670_v55 = vld [vmem:[#allocation4 + $0x20] sm:$0xff]  ;;  %v13501_v29 = vpack.c.bf16 %v3673_v34, %v3669_v5  ;;  %v3705_v5 = vld [vmem:[#allocation4 + $0x138] sm:$0xff] }
 0x5da   :  { %v3698_v34 = vld [vmem:[#allocation4 + $0x100] sm:$0xff] }
 0x5dc   :  { %9577 = vmatpush1.bf16.msra.mxu0 %v13381_v36  ;;  %9609 = vmatpush1.bf16.msra.mxu1 %v13383_v38  ;;  %v13503_v36 = vpack.c.bf16 %v3670_v55, %v3666_v48  ;;  %v3668_v38 = vld [vmem:[#allocation4 + $0x10] sm:$0xff]  ;;  %v3702_v48 = vld [vmem:[#allocation4 + $0x120] sm:$0xff]  ;;  %v13549_v55 = vpack.c.bf16 %v3705_v5, %v3701_v11  ;;  %v3723_v11 = vld [vmem:[#allocation4 + $0x1c8] sm:$0xff] }
 0x5dd   :  { %9579 = vmatprep.subr.bf16.mxu0 %v13387_v61  ;;  %9611 = vmatprep.subr.bf16.mxu1 %v13389_v25  ;;  %v3672_v61 = vld [vmem:[#allocation4 + $0x30] sm:$0xff]  ;;  %v3727_v5 = vld [vmem:[#allocation4 + $0x1e8] sm:$0xff] }
 0x5de   :  { %v13506_v25 = vpack.c.bf16 %v3672_v61, %v3668_v38  ;;  %v13551_v38 = vpack.c.bf16 %v3702_v48, %v3698_v34  ;;  %v3700_v61 = vld [vmem:[#allocation4 + $0x110] sm:$0xff]  ;;  %v3725_v34 = vld [vmem:[#allocation4 + $0x1d8] sm:$0xff]  ;;  %v13583_v48 = vpack.c.bf16 %v3727_v5, %v3723_v11 }
 0x5e0   :  { %v11628_v27 = vpop.eup %11627  ;;  %9581 = vmatpush1.bf16.msra.mxu0 %v13393_v22  ;;  %9613 = vmatpush1.bf16.msra.mxu1 %v13395_v16  ;;  %v3675_v22 = vld [vmem:[#allocation4 + $0x48] sm:$0xff] }
 0x5e1   :  { %v13493_v47 = vmul.f32 %v11628_v27, %v11626_v17  ;;  %9615 = vmatprep.subr.bf16.mxu0 %v13499_v2  ;;  %9647 = vmatprep.subr.bf16.mxu1 %v13501_v29  ;;  %v3679_v16 = vld [vmem:[#allocation4 + $0x68] sm:$0xff] }
 0x5e2   :  { %v13511_v32 = vpack.c.bf16 %v3679_v16, %v3675_v22  ;;  %v3699_v17 = vld [vmem:[#allocation4 + $0x108] sm:$0xff]  ;;  %v3704_v22 = vld [vmem:[#allocation4 + $0x130] sm:$0xff] }
 0x5e3   :  { %15169 = vst [vmem:[#allocation23_spill] sm:$0xff] %v13493_v47  ;;  %3531 = vmatmul.mubr.f32.vlgmr.msra.gmra.mrb[20].mxu0 %v13493_v47  ;;  %3602 = vmatmul.mubr.f32.vlgmr.msra.gmra.mrb[20].mxu1 %v13493_v47  ;;  %v3703_v27 = vld [vmem:[#allocation4 + $0x128] sm:$0xff]  ;;  %v13554_v16 = vpack.c.bf16 %v3704_v22, %v3700_v61  ;;  %v3729_v61 = vld [vmem:[#allocation4 + $0x1f8] sm:$0xff]  ;;  %v3722_v22 = vld [vmem:[#allocation4 + $0x1c0] sm:$0xff] }
 0x5e4   :  { %3794 = vmatprep.mubr.f32.mxu0 %v15070_v63  ;;  %3865 = vmatprep.mubr.f32.mxu1 %v15070_v63  ;;  %v13547_v9 = vpack.c.bf16 %v3703_v27, %v3699_v17  ;;  %v3720_v17 = vld [vmem:[#allocation4 + $0x1b0] sm:$0xff]  ;;  %v13585_v51 = vpack.c.bf16 %v3729_v61, %v3725_v34  ;;  %v13587_v35 = vpack.c.bf16 %v3726_v41, %v3722_v22 }
 0x5e5   :  { %9617 = vmatpush1.bf16.msra.mxu0 %v13503_v36  ;;  %9649 = vmatpush1.bf16.msra.mxu1 %v13506_v25  ;;  %v13578_v27 = vpack.c.bf16 %v3720_v17, %v3716_v37 }
 0x5e6   :  { %9619 = vmatprep.subr.bf16.mxu0 %v13511_v32  ;;  %9651 = vmatprep.subr.bf16.mxu1 %v13513_v8 }
 0x5e9   :  { %9621 = vmatpush1.bf16.msra.mxu0 %v13515_v19  ;;  %9653 = vmatpush1.bf16.msra.mxu1 %v13518_v1 }
 0x5ea   :  { %9623 = vmatprep.subr.bf16.mxu0 %v13523_v54  ;;  %9655 = vmatprep.subr.bf16.mxu1 %v13525_v30 }
 0x5ed   :  { %9625 = vmatpush1.bf16.msra.mxu0 %v13527_v53  ;;  %9657 = vmatpush1.bf16.msra.mxu1 %v13530_v58 }
 0x5ee   :  { %9627 = vmatprep.subr.bf16.mxu0 %v13535_v10  ;;  %9659 = vmatprep.subr.bf16.mxu1 %v13537_v23 }
 0x5f1   :  { %9629 = vmatpush1.bf16.msra.mxu0 %v13539_v14  ;;  %9661 = vmatpush1.bf16.msra.mxu1 %v13542_v62 }
 0x5f2   :  { %9631 = vmatprep.subr.bf16.mxu0 %v13547_v9  ;;  %9663 = vmatprep.subr.bf16.mxu1 %v13549_v55 }
 0x5f5   :  { %9633 = vmatpush1.bf16.msra.mxu0 %v13551_v38  ;;  %9665 = vmatpush1.bf16.msra.mxu1 %v13554_v16 }
 0x5f6   :  { %9635 = vmatprep.subr.bf16.mxu0 %v13559_v28  ;;  %9667 = vmatprep.subr.bf16.mxu1 %v13561_v7 }
 0x5f9   :  { %9637 = vmatpush1.bf16.msra.mxu0 %v13563_v24  ;;  %9669 = vmatpush1.bf16.msra.mxu1 %v13566_v0 }
 0x5fa   :  { %9639 = vmatprep.subr.bf16.mxu0 %v13571_v39  ;;  %9671 = vmatprep.subr.bf16.mxu1 %v13573_v49 }
 0x5fd   :  { %9641 = vmatpush1.bf16.msra.mxu0 %v13575_v33  ;;  %9673 = vmatpush1.bf16.msra.mxu1 %v13578_v27 }
 0x5fe   :  { %9643 = vmatprep.subr.bf16.mxu0 %v13583_v48  ;;  %9675 = vmatprep.subr.bf16.mxu1 %v13585_v51 }
 0x601   :  { %9645 = vmatpush1.bf16.msra.mxu0 %v13587_v35  ;;  %9677 = vmatpush1.bf16.msra.mxu1 %v13590_v44 }
 0x602   :  { %9679 = vmatprep.subr.bf16.mxu0 %v13595_v46  ;;  %9711 = vmatprep.subr.bf16.mxu1 %v13597_v18 }
 0x696   :  { %v3318_v21 = vpop.f32.mrb[10].mxu0  ;;  %v3389_v45 = vpop.f32.mrb[10].mxu1 }
 0x697   :  { %v11208_v37 = vadd.f32 %v3318_v21, %v12783_v15  ;;  %v3320_v17 = vpop.f32.mrb[11].mxu0  ;;  %v3391_v11 = vpop.f32.mrb[11].mxu1  ;;  %v11224_v6 = vadd.f32 %v3389_v45, %v15149_v31  ;;  %v3897_v31 = vld [vmem:[#allocation6 + $0x88] sm:$0xff] }
 0x698   :  { %v11209_v5 = vadd.f32 %v3320_v17, %v15147_v12  ;;  %v11225_v22 = vadd.f32 %v3391_v11, %v15148_v43  ;;  %v3901_v43 = vld [vmem:[#allocation6 + $0xa8] sm:$0xff]  ;;  %v3899_v12 = vld [vmem:[#allocation6 + $0x98] sm:$0xff] }
 0x699   :  { %v8643_v34 = vmul.f32 -1.442695, %v11208_v37 }
 0x69a   :  { %v8644_v61 = vmul.f32 -1.442695, %v11209_v5  ;;  %v8645_v41 = vmul.f32 -1.442695, %v11225_v22 }
 0x69b   :  { %11629 = vpow2.f32 %v8643_v34 }
 0x69c   :  { %11631 = vpow2.f32 %v8644_v61 }
 0x69d   :  { %11633 = vpow2.f32 %v8645_v41 }
 0x69e   :  { %11635 = vtanh.f32 %v11224_v6 }
 0x6a5   :  { %v11630_v56 = vpop.eup %11629 }
 0x6a6   :  { %v11632_v52 = vpop.eup %11631  ;;  %v3615_v20 = vadd.f32 1.0, %v11630_v56 }
 0x6a7   :  { %v3621_v4 = vadd.f32 1.0, %v11632_v52  ;;  %v11634_v3 = vpop.eup %11633 }
 0x6a8   :  { %11637 = vrcp.f32 %v3615_v20  ;;  %v11636_v21 = vpop.eup %11635  ;;  %v3628_v34 = vadd.f32 1.0, %v11634_v3 }
 0x6a9   :  { %11639 = vrcp.f32 %v3621_v4 }
 0x6aa   :  { %11641 = vrcp.f32 %v3628_v34  ;;  %v3893_v34 = vld [vmem:[#allocation6 + $0x68] sm:$0xff] }
 0x6b2   :  { %v11638_v17 = vpop.eup %11637 }
 0x6b3   :  { %v11640_v37 = vpop.eup %11639  ;;  %v3632_v5 = vmul.f32 %v11638_v17, %v11636_v21  ;;  %v3884_v21 = vld [vmem:[#allocation6 + $0x20] sm:$0xff]  ;;  %v3882_v17 = vld [vmem:[#allocation6 + $0x10] sm:$0xff] }
 0x6b4   :  { %v3631_v61 = vmul.f32 %v11640_v37, %v13446_v40  ;;  %v3880_v40 = vld [vmem:[#allocation6] sm:$0xff]  ;;  %v3886_v37 = vld [vmem:[#allocation6 + $0x30] sm:$0xff]  ;;  %v11642_v26 = vpop.eup %11641 }
 0x6b6   :  { %v13606_v11 = vadd.f32 %v3632_v5, %v3631_v61  ;;  %v3532_v22 = vpop.f32.mrb[20].mxu0  ;;  %v3603_v45 = vpop.f32.mrb[20].mxu1  ;;  %v3889_v5 = vld [vmem:[#allocation6 + $0x48] sm:$0xff]  ;;  %v3891_v61 = vld [vmem:[#allocation6 + $0x58] sm:$0xff] }
 0x6b7   :  { %v11234_v56 = vadd.f32 %v3532_v22, %v15151_v60  ;;  %v3534_v41 = vpop.f32.mrb[21].mxu0  ;;  %v3605_v6 = vpop.f32.mrb[21].mxu1  ;;  %v3895_v22 = vld [vmem:[#allocation6 + $0x78] sm:$0xff]  ;;  %v13612_v60 = vpack.c.bf16 %v3884_v21, %v3880_v40 }
 0x6b8   :  { %15170 = vst [vmem:[#allocation24_spill] sm:$0xff] %v13606_v11  ;;  %11643 = vtanh.f32 %v13606_v11  ;;  %v11235_v52 = vadd.f32 %v3534_v41, %v15152_v13  ;;  %v11251_v3 = vadd.f32 %v3605_v6, %v15153_v57  ;;  %v13614_v41 = vpack.c.bf16 %v3886_v37, %v3882_v17  ;;  %v3890_v13 = vld [vmem:[#allocation6 + $0x50] sm:$0xff]  ;;  %v3896_v17 = vld [vmem:[#allocation6 + $0x80] sm:$0xff] }
 0x6b9   :  { %v8646_v20 = vmul.f32 -1.442695, %v11234_v56  ;;  %15171 = vst [vmem:[#allocation26_spill] sm:$0xff] %v13612_v60  ;;  %v3888_v56 = vld [vmem:[#allocation6 + $0x40] sm:$0xff]  ;;  %v11250_v6 = vadd.f32 %v3603_v45, %v12827_v42  ;;  %v13621_v57 = vpack.c.bf16 %v3895_v22, %v3891_v61  ;;  %v3894_v11 = vld [vmem:[#allocation6 + $0x70] sm:$0xff] }
 0x6ba   :  { %v8647_v4 = vmul.f32 -1.442695, %v11235_v52  ;;  %v8648_v47 = vmul.f32 -1.442695, %v11251_v3  ;;  %15172 = vst [vmem:[#allocation27_spill] sm:$0xff] %v13614_v41  ;;  %v3892_v52 = vld [vmem:[#allocation6 + $0x60] sm:$0xff]  ;;  %v13629_v45 = vpack.c.bf16 %v3894_v11, %v3890_v13 }
 0x6bb   :  { %11645 = vpow2.f32 %v8646_v20  ;;  %15175 = vst [vmem:[#allocation38_spill] sm:$0xff] %v13621_v57  ;;  %v3903_v3 = vld [vmem:[#allocation6 + $0xb8] sm:$0xff]  ;;  %v3900_v37 = vld [vmem:[#allocation6 + $0xa0] sm:$0xff]  ;;  %v3902_v22 = vld [vmem:[#allocation6 + $0xb0] sm:$0xff] }
 0x6bc   :  { %11647 = vpow2.f32 %v8647_v4  ;;  %v13619_v4 = vpack.c.bf16 %v3893_v34, %v3889_v5  ;;  %15177 = vst [vmem:[#allocation40_spill] sm:$0xff] %v13629_v45  ;;  %v13633_v34 = vpack.c.bf16 %v3901_v43, %v3897_v31  ;;  %v13635_v61 = vpack.c.bf16 %v3903_v3, %v3899_v12  ;;  %v3911_v13 = vld [vmem:[#allocation6 + $0xf8] sm:$0xff]  ;;  %v3904_v31 = vld [vmem:[#allocation6 + $0xc0] sm:$0xff] }
 0x6bd   :  { %11649 = vpow2.f32 %v8648_v47  ;;  %v3898_v47 = vld [vmem:[#allocation6 + $0x90] sm:$0xff]  ;;  %v13641_v43 = vpack.c.bf16 %v3900_v37, %v3896_v17  ;;  %v3908_v11 = vld [vmem:[#allocation6 + $0xe0] sm:$0xff] }
 0x6be   :  { %15174 = vst [vmem:[#allocation37_spill] sm:$0xff] %v13619_v4  ;;  %11651 = vtanh.f32 %v11250_v6  ;;  %15178 = vst [vmem:[#allocation41_spill] sm:$0xff] %v13633_v34  ;;  %v13643_v12 = vpack.c.bf16 %v3902_v22, %v3898_v47  ;;  %v13653_v17 = vpack.c.bf16 %v3908_v11, %v3904_v31  ;;  %v3912_v47 = vld [vmem:[#allocation6 + $0x100] sm:$0xff]  ;;  %v3927_v31 = vld [vmem:[#allocation6 + $0x178] sm:$0xff] }
 0x6bf   :  { %15179 = vst [vmem:[#allocation42_spill] sm:$0xff] %v13635_v61  ;;  %15180 = vst [vmem:[#allocation44_spill] sm:$0xff] %v13641_v43  ;;  %v3916_v22 = vld [vmem:[#allocation6 + $0x120] sm:$0xff] }
 0x6c0   :  { %15181 = vst [vmem:[#allocation45_spill] sm:$0xff] %v13643_v12  ;;  %15184 = vst [vmem:[#allocation49_spill] sm:$0xff] %v13653_v17 }
 0x6c2   :  { %v11644_v59 = vpop.eup %11643 }
 0x6c3   :  { %v13616_v20 = vmul.f32 %v11644_v59, %v11642_v26  ;;  %v13627_v26 = vpack.c.bf16 %v3892_v52, %v3888_v56  ;;  %v3909_v56 = vld [vmem:[#allocation6 + $0xe8] sm:$0xff]  ;;  %v3907_v52 = vld [vmem:[#allocation6 + $0xd8] sm:$0xff] }
 0x6c4   :  { %v13649_v3 = vpack.c.bf16 %v3911_v13, %v3907_v52  ;;  %v3914_v52 = vld [vmem:[#allocation6 + $0x110] sm:$0xff] }
 0x6c5   :  { %15173 = vst [vmem:[#allocation36_spill] sm:$0xff] %v13616_v20  ;;  %v11646_v40 = vpop.eup %11645  ;;  %3795 = vmatmul.mubr.f32.vlgmr.msra.gmra.mrb[12].mxu0 %v13616_v20  ;;  %3866 = vmatmul.mubr.f32.vlgmr.msra.gmra.mrb[12].mxu1 %v13616_v20  ;;  %15176 = vst [vmem:[#allocation39_spill] sm:$0xff] %v13627_v26  ;;  %v3917_v20 = vld [vmem:[#allocation6 + $0x128] sm:$0xff]  ;;  %v3918_v13 = vld [vmem:[#allocation6 + $0x130] sm:$0xff] }
 0x6c6   :  { %v11648_v21 = vpop.eup %11647  ;;  %v3639_v59 = vadd.f32 1.0, %v11646_v40  ;;  %9681 = vmatpush1.bf16.msra.mxu0 %v13612_v60  ;;  %9713 = vmatpush1.bf16.msra.mxu1 %v13614_v41  ;;  %v3905_v40 = vld [vmem:[#allocation6 + $0xc8] sm:$0xff]  ;;  %15183 = vst [vmem:[#allocation48_spill] sm:$0xff] %v13649_v3  ;;  %v3926_v41 = vld [vmem:[#allocation6 + $0x170] sm:$0xff] }
 0x6c7   :  { %v3645_v5 = vadd.f32 1.0, %v11648_v21  ;;  %9683 = vmatprep.subr.bf16.mxu0 %v13619_v4  ;;  %9715 = vmatprep.subr.bf16.mxu1 %v13621_v57  ;;  %v13647_v6 = vpack.c.bf16 %v3909_v56, %v3905_v40  ;;  %v3906_v21 = vld [vmem:[#allocation6 + $0xd0] sm:$0xff] }
 0x6c8   :  { %11653 = vrcp.f32 %v3639_v59  ;;  %4008 = vmatprep.mubr.f32.mxu0 %v15070_v63  ;;  %4079 = vmatprep.mubr.f32.mxu1 %v15070_v63  ;;  %v3910_v59 = vld [vmem:[#allocation6 + $0xf0] sm:$0xff] }
 0x6c9   :  { %11655 = vrcp.f32 %v3645_v5  ;;  %15182 = vst [vmem:[#allocation46_spill] sm:$0xff] %v13647_v6  ;;  %v3913_v5 = vld [vmem:[#allocation6 + $0x108] sm:$0xff]  ;;  %v13655_v37 = vpack.c.bf16 %v3910_v59, %v3906_v21  ;;  %v13665_v59 = vpack.c.bf16 %v3916_v22, %v3912_v47 }
 0x6ca   :  { %9685 = vmatpush1.bf16.msra.mxu0 %v13627_v26  ;;  %9717 = vmatpush1.bf16.msra.mxu1 %v13629_v45  ;;  %v3915_v26 = vld [vmem:[#allocation6 + $0x118] sm:$0xff]  ;;  %v13659_v40 = vpack.c.bf16 %v3917_v20, %v3913_v5  ;;  %v3920_v20 = vld [vmem:[#allocation6 + $0x140] sm:$0xff]  ;;  %v3933_v22 = vld [vmem:[#allocation6 + $0x1a8] sm:$0xff] }
 0x6cb   :  { %9687 = vmatprep.subr.bf16.mxu0 %v13633_v34  ;;  %9719 = vmatprep.subr.bf16.mxu1 %v13635_v61  ;;  %v3919_v45 = vld [vmem:[#allocation6 + $0x138] sm:$0xff]  ;;  %15185 = vst [vmem:[#allocation50_spill] sm:$0xff] %v13655_v37  ;;  %v3921_v61 = vld [vmem:[#allocation6 + $0x148] sm:$0xff] }
 0x6cc   :  { %v13661_v56 = vpack.c.bf16 %v3919_v45, %v3915_v26  ;;  %v3925_v34 = vld [vmem:[#allocation6 + $0x168] sm:$0xff]  ;;  %v3924_v26 = vld [vmem:[#allocation6 + $0x160] sm:$0xff] }
 0x6cd   :  { %v13671_v57 = vpack.c.bf16 %v3925_v34, %v3921_v61  ;;  %v3928_v61 = vld [vmem:[#allocation6 + $0x180] sm:$0xff] }
 0x6ce   :  { %9689 = vmatpush1.bf16.msra.mxu0 %v13641_v43  ;;  %9721 = vmatpush1.bf16.msra.mxu1 %v13643_v12  ;;  %v11650_v43 = vpop.eup %11649  ;;  %v3923_v12 = vld [vmem:[#allocation6 + $0x158] sm:$0xff] }
 0x6cf   :  { %9691 = vmatprep.subr.bf16.mxu0 %v13647_v6  ;;  %9723 = vmatprep.subr.bf16.mxu1 %v13649_v3  ;;  %v11652_v11 = vpop.eup %11651  ;;  %v13667_v3 = vpack.c.bf16 %v3918_v13, %v3914_v52  ;;  %v3652_v6 = vadd.f32 1.0, %v11650_v43  ;;  %v13673_v4 = vpack.c.bf16 %v3927_v31, %v3923_v12  ;;  %v3931_v52 = vld [vmem:[#allocation6 + $0x198] sm:$0xff]  ;;  %v13680_v43 = vpack.c.bf16 %v3924_v26, %v3920_v20  ;;  %v3932_v12 = vld [vmem:[#allocation6 + $0x1a0] sm:$0xff]  ;;  %v3941_v20 = vld [vmem:[#allocation6 + $0x1e8] sm:$0xff] }
 0x6d0   :  { %v3935_v13 = vld [vmem:[#allocation6 + $0x1b8] sm:$0xff] }
 0x6d1   :  { %11657 = vrcp.f32 %v3652_v6  ;;  %v13688_v31 = vpack.c.bf16 %v3935_v13, %v3931_v52  ;;  %v3939_v26 = vld [vmem:[#allocation6 + $0x1d8] sm:$0xff]  ;;  %v13693_v6 = vpack.c.bf16 %v3932_v12, %v3928_v61  ;;  %v3938_v52 = vld [vmem:[#allocation6 + $0x1d0] sm:$0xff] }
 0x6d2   :  { %v11654_v21 = vpop.eup %11653  ;;  %9693 = vmatpush1.bf16.msra.mxu0 %v13653_v17  ;;  %9725 = vmatpush1.bf16.msra.mxu1 %v13655_v37  ;;  %v3922_v17 = vld [vmem:[#allocation6 + $0x150] sm:$0xff]  ;;  %v3929_v37 = vld [vmem:[#allocation6 + $0x188] sm:$0xff] }
 0x6d3   :  { %v11656_v45 = vpop.eup %11655  ;;  %v3656_v5 = vmul.f32 %v11654_v21, %v11652_v11  ;;  %9695 = vmatprep.subr.bf16.mxu0 %v13659_v40  ;;  %9727 = vmatprep.subr.bf16.mxu1 %v13661_v56  ;;  %v13682_v34 = vpack.c.bf16 %v3926_v41, %v3922_v17  ;;  %v3930_v11 = vld [vmem:[#allocation6 + $0x190] sm:$0xff]  ;;  %v3943_v41 = vld [vmem:[#allocation6 + $0x1f8] sm:$0xff] }
 0x6d4   :  { %v3655_v47 = vmul.f32 %v11656_v45, %v13476_v50  ;;  %v13686_v50 = vpack.c.bf16 %v3933_v22, %v3929_v37  ;;  %v3934_v21 = vld [vmem:[#allocation6 + $0x1b0] sm:$0xff]  ;;  %v3937_v45 = vld [vmem:[#allocation6 + $0x1c8] sm:$0xff]  ;;  %v3936_v37 = vld [vmem:[#allocation6 + $0x1c0] sm:$0xff] }
 0x6d5   :  { %v13695_v17 = vpack.c.bf16 %v3934_v21, %v3930_v11  ;;  %v3940_v22 = vld [vmem:[#allocation6 + $0x1e0] sm:$0xff]  ;;  %v3942_v13 = vld [vmem:[#allocation6 + $0x1f0] sm:$0xff] }
 0x6d6   :  { %v13676_v60 = vadd.f32 %v3656_v5, %v3655_v47  ;;  %9697 = vmatpush1.bf16.msra.mxu0 %v13665_v59  ;;  %9729 = vmatpush1.bf16.msra.mxu1 %v13667_v3  ;;  %v13699_v5 = vpack.c.bf16 %v3941_v20, %v3937_v45  ;;  %v13701_v47 = vpack.c.bf16 %v3943_v41, %v3939_v26 }
 0x6d7   :  { %9699 = vmatprep.subr.bf16.mxu0 %v13671_v57  ;;  %9731 = vmatprep.subr.bf16.mxu1 %v13673_v4  ;;  %v13705_v61 = vpack.c.bf16 %v3940_v22, %v3936_v37  ;;  %v13707_v12 = vpack.c.bf16 %v3942_v13, %v3938_v52  ;;  %v15192_v37 = vld [vmem:[#allocation34_spill] sm:$0xff] }
 0x6d8   :  { %11659 = vtanh.f32 %v13676_v60 }
 0x6da   :  { %9701 = vmatpush1.bf16.msra.mxu0 %v13680_v43  ;;  %9733 = vmatpush1.bf16.msra.mxu1 %v13682_v34 }
 0x6db   :  { %9703 = vmatprep.subr.bf16.mxu0 %v13686_v50  ;;  %9735 = vmatprep.subr.bf16.mxu1 %v13688_v31  ;;  %v11658_v11 = vpop.eup %11657 }
 0x6de   :  { %9705 = vmatpush1.bf16.msra.mxu0 %v13693_v6  ;;  %9737 = vmatpush1.bf16.msra.mxu1 %v13695_v17 }
 0x6df   :  { %9707 = vmatprep.subr.bf16.mxu0 %v13699_v5  ;;  %9739 = vmatprep.subr.bf16.mxu1 %v13701_v47 }
 0x6e2   :  { %v11660_v21 = vpop.eup %11659  ;;  %9709 = vmatpush1.bf16.msra.mxu0 %v13705_v61  ;;  %9741 = vmatpush1.bf16.msra.mxu1 %v13707_v12 }
 0x6e3   :  { %v13713_v45 = vmul.f32 %v11660_v21, %v11658_v11  ;;  %9743 = vmatprep.subr.bf16.mxu0 %v13499_v2  ;;  %9775 = vmatprep.subr.bf16.mxu1 %v13501_v29 }
 0x6e5   :  { %4009 = vmatmul.mubr.f32.vlgmr.msra.gmra.mrb[18].mxu0 %v13713_v45  ;;  %4080 = vmatmul.mubr.f32.vlgmr.msra.gmra.mrb[18].mxu1 %v13713_v45 }
 0x6e6   :  { %9745 = vmatpush1.bf16.msra.mxu0 %v13503_v36  ;;  %9777 = vmatpush1.bf16.msra.mxu1 %v13506_v25 }
 0x6e7   :  { %9747 = vmatprep.subr.bf16.mxu0 %v13511_v32  ;;  %9779 = vmatprep.subr.bf16.mxu1 %v13513_v8  ;;  %v15186_v8 = vld [vmem:[#allocation29_spill] sm:$0xff] }
 0x6e8   :  { %4272 = vmatprep.mubr.f32.mxu0 %v15070_v63  ;;  %4343 = vmatprep.mubr.f32.mxu1 %v15070_v63 }
 0x6ea   :  { %9749 = vmatpush1.bf16.msra.mxu0 %v13515_v19  ;;  %9781 = vmatpush1.bf16.msra.mxu1 %v13518_v1 }
 0x6eb   :  { %9751 = vmatprep.subr.bf16.mxu0 %v13523_v54  ;;  %9783 = vmatprep.subr.bf16.mxu1 %v13525_v30  ;;  %v15187_v30 = vld [vmem:[#allocation30_spill] sm:$0xff] }
 0x6ee   :  { %9753 = vmatpush1.bf16.msra.mxu0 %v13527_v53  ;;  %9785 = vmatpush1.bf16.msra.mxu1 %v13530_v58 }
 0x6ef   :  { %9755 = vmatprep.subr.bf16.mxu0 %v13535_v10  ;;  %9787 = vmatprep.subr.bf16.mxu1 %v13537_v23  ;;  %v15188_v10 = vld [vmem:[#allocation31_spill] sm:$0xff] }
 0x6f2   :  { %9757 = vmatpush1.bf16.msra.mxu0 %v13539_v14  ;;  %9789 = vmatpush1.bf16.msra.mxu1 %v13542_v62 }
 0x6f3   :  { %9759 = vmatprep.subr.bf16.mxu0 %v13547_v9  ;;  %9791 = vmatprep.subr.bf16.mxu1 %v13549_v55 }
 0x6f6   :  { %9761 = vmatpush1.bf16.msra.mxu0 %v13551_v38  ;;  %9793 = vmatpush1.bf16.msra.mxu1 %v13554_v16 }
 0x6f7   :  { %9763 = vmatprep.subr.bf16.mxu0 %v13559_v28  ;;  %9795 = vmatprep.subr.bf16.mxu1 %v13561_v7 }
 0x6fa   :  { %9765 = vmatpush1.bf16.msra.mxu0 %v13563_v24  ;;  %9797 = vmatpush1.bf16.msra.mxu1 %v13566_v0 }
 0x6fb   :  { %9767 = vmatprep.subr.bf16.mxu0 %v13571_v39  ;;  %9799 = vmatprep.subr.bf16.mxu1 %v13573_v49  ;;  %v15189_v39 = vld [vmem:[#allocation24_spill] sm:$0xff] }
 0x6fe   :  { %9769 = vmatpush1.bf16.msra.mxu0 %v13575_v33  ;;  %9801 = vmatpush1.bf16.msra.mxu1 %v13578_v27 }
 0x6ff   :  { %9771 = vmatprep.subr.bf16.mxu0 %v13583_v48  ;;  %9803 = vmatprep.subr.bf16.mxu1 %v13585_v51  ;;  %v15190_v51 = vld [vmem:[#allocation32_spill] sm:$0xff] }
 0x702   :  { %9773 = vmatpush1.bf16.msra.mxu0 %v13587_v35  ;;  %9805 = vmatpush1.bf16.msra.mxu1 %v13590_v44 }
 0x703   :  { %9807 = vmatprep.subr.bf16.mxu0 %v13595_v46  ;;  %9839 = vmatprep.subr.bf16.mxu1 %v13597_v18  ;;  %v15191_v18 = vld [vmem:[#allocation33_spill] sm:$0xff] }
 0x798   :  { %v3796_v2 = vpop.f32.mrb[12].mxu0  ;;  %v3867_v29 = vpop.f32.mrb[12].mxu1 }
 0x799   :  { %v11210_v36 = vadd.f32 %v3796_v2, %v12783_v15  ;;  %v3798_v25 = vpop.f32.mrb[13].mxu0  ;;  %v3869_v32 = vpop.f32.mrb[13].mxu1  ;;  %v11226_v23 = vadd.f32 %v3867_v29, %v15188_v10 }
 0x79a   :  { %v11211_v19 = vadd.f32 %v3798_v25, %v15186_v8  ;;  %v11227_v53 = vadd.f32 %v3869_v32, %v15187_v30  ;;  %v15193_v32 = vld [vmem:[#allocation26_spill] sm:$0xff] }
 0x79b   :  { %v8649_v1 = vmul.f32 -1.442695, %v11210_v36 }
 0x79c   :  { %v8650_v54 = vmul.f32 -1.442695, %v11211_v19  ;;  %v8651_v58 = vmul.f32 -1.442695, %v11227_v53  ;;  %v15194_v19 = vld [vmem:[#allocation27_spill] sm:$0xff]  ;;  %v15196_v53 = vld [vmem:[#allocation38_spill] sm:$0xff] }
 0x79d   :  { %11661 = vpow2.f32 %v8649_v1 }
 0x79e   :  { %11663 = vpow2.f32 %v8650_v54  ;;  %v15195_v54 = vld [vmem:[#allocation37_spill] sm:$0xff] }
 0x79f   :  { %11665 = vpow2.f32 %v8651_v58  ;;  %v15197_v58 = vld [vmem:[#allocation39_spill] sm:$0xff] }
 0x7a0   :  { %11667 = vtanh.f32 %v11226_v23  ;;  %v15198_v23 = vld [vmem:[#allocation40_spill] sm:$0xff] }
 0x7a7   :  { %v11662_v14 = vpop.eup %11661 }
 0x7a8   :  { %v11664_v62 = vpop.eup %11663  ;;  %v4093_v9 = vadd.f32 1.0, %v11662_v14  ;;  %v15199_v14 = vld [vmem:[#allocation41_spill] sm:$0xff] }
 0x7a9   :  { %v4099_v55 = vadd.f32 1.0, %v11664_v62  ;;  %v11666_v38 = vpop.eup %11665  ;;  %v15200_v62 = vld [vmem:[#allocation42_spill] sm:$0xff] }
 0x7aa   :  { %11669 = vrcp.f32 %v4093_v9  ;;  %v11668_v16 = vpop.eup %11667  ;;  %v4106_v0 = vadd.f32 1.0, %v11666_v38  ;;  %v15201_v9 = vld [vmem:[#allocation44_spill] sm:$0xff]  ;;  %v15203_v38 = vld [vmem:[#allocation46_spill] sm:$0xff] }
 0x7ab   :  { %11671 = vrcp.f32 %v4099_v55  ;;  %v15202_v55 = vld [vmem:[#allocation45_spill] sm:$0xff] }
 0x7ac   :  { %11673 = vrcp.f32 %v4106_v0  ;;  %v15205_v0 = vld [vmem:[#allocation49_spill] sm:$0xff] }
 0x7b4   :  { %v11670_v28 = vpop.eup %11669 }
 0x7b5   :  { %v11672_v7 = vpop.eup %11671  ;;  %v4110_v24 = vmul.f32 %v11670_v28, %v11668_v16  ;;  %v15204_v16 = vld [vmem:[#allocation48_spill] sm:$0xff] }
 0x7b6   :  { %v4109_v49 = vmul.f32 %v11672_v7, %v15189_v39  ;;  %v11674_v52 = vpop.eup %11673  ;;  %v15206_v39 = vld [vmem:[#allocation50_spill] sm:$0xff] }
 0x7b8   :  { %v13758_v33 = vadd.f32 %v4110_v24, %v4109_v49  ;;  %v4010_v27 = vpop.f32.mrb[18].mxu0  ;;  %v4081_v48 = vpop.f32.mrb[18].mxu1 }
 0x7b9   :  { %v11232_v35 = vadd.f32 %v4010_v27, %v15190_v51  ;;  %v4012_v44 = vpop.f32.mrb[19].mxu0  ;;  %v4083_v46 = vpop.f32.mrb[19].mxu1  ;;  %v11248_v2 = vadd.f32 %v4081_v48, %v12827_v42 }
 0x7ba   :  { %11675 = vtanh.f32 %v13758_v33  ;;  %v11233_v20 = vadd.f32 %v4012_v44, %v15191_v18  ;;  %v11249_v22 = vadd.f32 %v4083_v46, %v15192_v37  ;;  %v4653_v46 = vld [vmem:[#allocation8 + $0x98] sm:$0xff] }
 0x7bb   :  { %v8652_v26 = vmul.f32 -1.442695, %v11232_v35 }
 0x7bc   :  { %v8653_v41 = vmul.f32 -1.442695, %v11233_v20  ;;  %v8654_v11 = vmul.f32 -1.442695, %v11249_v22  ;;  %v4658_v22 = vld [vmem:[#allocation8 + $0xc0] sm:$0xff] }
 0x7bd   :  { %11677 = vpow2.f32 %v8652_v26  ;;  %v4661_v26 = vld [vmem:[#allocation8 + $0xd8] sm:$0xff] }
 0x7be   :  { %11679 = vpow2.f32 %v8653_v41  ;;  %v4650_v41 = vld [vmem:[#allocation8 + $0x80] sm:$0xff] }
 0x7bf   :  { %11681 = vpow2.f32 %v8654_v11  ;;  %v4652_v11 = vld [vmem:[#allocation8 + $0x90] sm:$0xff] }
 0x7c0   :  { %11683 = vtanh.f32 %v11248_v2  ;;  %v4660_v2 = vld [vmem:[#allocation8 + $0xd0] sm:$0xff] }
 0x7c4   :  { %v11676_v13 = vpop.eup %11675 }
 0x7c5   :  { %v13764_v21 = vmul.f32 %v11676_v13, %v11674_v52  ;;  %v9938_v52 = vpack.c.bf16 %v4661_v26, %v4653_v46  ;;  %v9876_v13 = vpack.c.bf16 %v4658_v22, %v4650_v41  ;;  %v4725_v46 = vld [vmem:[#allocation8 + $0x2d8] sm:$0xff]  ;;  %v4722_v26 = vld [vmem:[#allocation8 + $0x2c0] sm:$0xff] }
 0x7c7   :  { %v11678_v29 = vpop.eup %11677  ;;  %4273 = vmatmul.mubr.f32.vlgmr.msra.gmra.mrb[14].mxu0 %v13764_v21  ;;  %4344 = vmatmul.mubr.f32.vlgmr.msra.gmra.mrb[14].mxu1 %v13764_v21 }
 0x7c8   :  { %v11680_v36 = vpop.eup %11679  ;;  %v4117_v25 = vadd.f32 1.0, %v11678_v29  ;;  %9809 = vmatpush1.bf16.msra.mxu0 %v15193_v32  ;;  %9841 = vmatpush1.bf16.msra.mxu1 %v15194_v19  ;;  %v9940_v29 = vpack.c.bf16 %v4660_v2, %v4652_v11  ;;  %v4669_v32 = vld [vmem:[#allocation8 + $0x118] sm:$0xff]  ;;  %v4731_v2 = vld [vmem:[#allocation8 + $0x308] sm:$0xff] }
 0x7c9   :  { %v4123_v1 = vadd.f32 1.0, %v11680_v36  ;;  %9811 = vmatprep.subr.bf16.mxu0 %v15195_v54  ;;  %9843 = vmatprep.subr.bf16.mxu1 %v15196_v53  ;;  %v11682_v28 = vpop.eup %11681  ;;  %v4667_v36 = vld [vmem:[#allocation8 + $0x108] sm:$0xff]  ;;  %v4666_v54 = vld [vmem:[#allocation8 + $0x100] sm:$0xff] }
 0x7ca   :  { %11685 = vrcp.f32 %v4117_v25  ;;  %4486 = vmatprep.mubr.f32.mxu0 %v15070_v63  ;;  %4557 = vmatprep.mubr.f32.mxu1 %v15070_v63  ;;  %v11684_v7 = vpop.eup %11683  ;;  %v4130_v48 = vadd.f32 1.0, %v11682_v28  ;;  %v4675_v25 = vld [vmem:[#allocation8 + $0x148] sm:$0xff]  ;;  %v4674_v53 = vld [vmem:[#allocation8 + $0x140] sm:$0xff] }
 0x7cb   :  { %11687 = vrcp.f32 %v4123_v1  ;;  %v9878_v19 = vpack.c.bf16 %v4675_v25, %v4667_v36  ;;  %v4677_v1 = vld [vmem:[#allocation8 + $0x158] sm:$0xff] }
 0x7cc   :  { %9813 = vmatpush1.bf16.msra.mxu0 %v15197_v58  ;;  %9845 = vmatpush1.bf16.msra.mxu1 %v15198_v23  ;;  %11689 = vrcp.f32 %v4130_v48  ;;  %v9942_v58 = vpack.c.bf16 %v4677_v1, %v4669_v32  ;;  %v9880_v23 = vpack.c.bf16 %v4674_v53, %v4666_v54  ;;  %v4692_v48 = vld [vmem:[#allocation8 + $0x1d0] sm:$0xff]  ;;  %v4733_v36 = vld [vmem:[#allocation8 + $0x318] sm:$0xff]  ;;  %v4738_v1 = vld [vmem:[#allocation8 + $0x340] sm:$0xff] }
 0x7cd   :  { %9815 = vmatprep.subr.bf16.mxu0 %v15199_v14  ;;  %9847 = vmatprep.subr.bf16.mxu1 %v15200_v62  ;;  %v4668_v14 = vld [vmem:[#allocation8 + $0x110] sm:$0xff]  ;;  %v4741_v32 = vld [vmem:[#allocation8 + $0x358] sm:$0xff] }
 0x7ce   :  { %v4676_v62 = vld [vmem:[#allocation8 + $0x150] sm:$0xff]  ;;  %v9958_v54 = vpack.c.bf16 %v4741_v32, %v4733_v36  ;;  %v4805_v36 = vld [vmem:[#allocation8 + $0x558] sm:$0xff]  ;;  %v4802_v32 = vld [vmem:[#allocation8 + $0x540] sm:$0xff] }
 0x7d0   :  { %9817 = vmatpush1.bf16.msra.mxu0 %v15201_v9  ;;  %9849 = vmatpush1.bf16.msra.mxu1 %v15202_v55  ;;  %v9944_v9 = vpack.c.bf16 %v4676_v62, %v4668_v14  ;;  %v4683_v55 = vld [vmem:[#allocation8 + $0x188] sm:$0xff] }
 0x7d1   :  { %9819 = vmatprep.subr.bf16.mxu0 %v15203_v38  ;;  %9851 = vmatprep.subr.bf16.mxu1 %v15204_v16  ;;  %v4691_v38 = vld [vmem:[#allocation8 + $0x1c8] sm:$0xff]  ;;  %v4685_v16 = vld [vmem:[#allocation8 + $0x198] sm:$0xff] }
 0x7d2   :  { %v9882_v28 = vpack.c.bf16 %v4691_v38, %v4683_v55  ;;  %v4747_v62 = vld [vmem:[#allocation8 + $0x388] sm:$0xff]  ;;  %v4749_v55 = vld [vmem:[#allocation8 + $0x398] sm:$0xff] }
 0x7d4   :  { %v11686_v24 = vpop.eup %11685  ;;  %9821 = vmatpush1.bf16.msra.mxu0 %v15205_v0  ;;  %9853 = vmatpush1.bf16.msra.mxu1 %v15206_v39  ;;  %v4690_v0 = vld [vmem:[#allocation8 + $0x1c0] sm:$0xff] }
 0x7d5   :  { %v11688_v49 = vpop.eup %11687  ;;  %v4134_v27 = vmul.f32 %v11686_v24, %v11684_v7  ;;  %9823 = vmatprep.subr.bf16.mxu0 %v13659_v40  ;;  %9855 = vmatprep.subr.bf16.mxu1 %v13661_v56  ;;  %v4643_v40 = vld [vmem:[#allocation8 + $0x48] sm:$0xff]  ;;  %v4637_v56 = vld [vmem:[#allocation8 + $0x18] sm:$0xff]  ;;  %v4682_v24 = vld [vmem:[#allocation8 + $0x180] sm:$0xff] }
 0x7d6   :  { %v4133_v35 = vmul.f32 %v11688_v49, %v13676_v60  ;;  %v11690_v60 = vpop.eup %11689  ;;  %v4693_v7 = vld [vmem:[#allocation8 + $0x1d8] sm:$0xff]  ;;  %v9884_v49 = vpack.c.bf16 %v4690_v0, %v4682_v24 }
 0x7d7   :  { %v9946_v39 = vpack.c.bf16 %v4693_v7, %v4685_v16  ;;  %v4757_v16 = vld [vmem:[#allocation8 + $0x3d8] sm:$0xff]  ;;  %v4754_v7 = vld [vmem:[#allocation8 + $0x3c0] sm:$0xff] }
 0x7d8   :  { %v13788_v44 = vadd.f32 %v4134_v27, %v4133_v35  ;;  %9825 = vmatpush1.bf16.msra.mxu0 %v13665_v59  ;;  %9857 = vmatpush1.bf16.msra.mxu1 %v13667_v3  ;;  %v4635_v3 = vld [vmem:[#allocation8 + $0x8] sm:$0xff]  ;;  %v4684_v27 = vld [vmem:[#allocation8 + $0x190] sm:$0xff]  ;;  %v9962_v24 = vpack.c.bf16 %v4757_v16, %v4749_v55  ;;  %v4821_v55 = vld [vmem:[#allocation8 + $0x5d8] sm:$0xff] }
 0x7d9   :  { %9827 = vmatprep.subr.bf16.mxu0 %v13671_v57  ;;  %9859 = vmatprep.subr.bf16.mxu1 %v13673_v4  ;;  %v9870_v59 = vpack.c.bf16 %v4643_v40, %v4635_v3  ;;  %v9948_v35 = vpack.c.bf16 %v4692_v48, %v4684_v27  ;;  %v4701_v3 = vld [vmem:[#allocation8 + $0x218] sm:$0xff]  ;;  %v4763_v48 = vld [vmem:[#allocation8 + $0x408] sm:$0xff]  ;;  %v4818_v16 = vld [vmem:[#allocation8 + $0x5c0] sm:$0xff] }
 0x7da   :  { %11691 = vtanh.f32 %v13788_v44 }
 0x7dc   :  { %9829 = vmatpush1.bf16.msra.mxu0 %v13680_v43  ;;  %9861 = vmatpush1.bf16.msra.mxu1 %v13682_v34  ;;  %v4645_v43 = vld [vmem:[#allocation8 + $0x58] sm:$0xff]  ;;  %v4634_v34 = vld [vmem:[#allocation8] sm:$0xff] }
 0x7dd   :  { %9831 = vmatprep.subr.bf16.mxu0 %v13686_v50  ;;  %9863 = vmatprep.subr.bf16.mxu1 %v13688_v31  ;;  %v4642_v50 = vld [vmem:[#allocation8 + $0x40] sm:$0xff]  ;;  %v9934_v31 = vpack.c.bf16 %v4645_v43, %v4637_v56  ;;  %v4709_v56 = vld [vmem:[#allocation8 + $0x258] sm:$0xff] }
 0x7de   :  { %v4706_v43 = vld [vmem:[#allocation8 + $0x240] sm:$0xff] }
 0x7e0   :  { %9833 = vmatpush1.bf16.msra.mxu0 %v13693_v6  ;;  %9865 = vmatpush1.bf16.msra.mxu1 %v13695_v17  ;;  %v9872_v6 = vpack.c.bf16 %v4642_v50, %v4634_v34  ;;  %v4636_v17 = vld [vmem:[#allocation8 + $0x10] sm:$0xff]  ;;  %v9950_v34 = vpack.c.bf16 %v4709_v56, %v4701_v3  ;;  %v4773_v3 = vld [vmem:[#allocation8 + $0x458] sm:$0xff]  ;;  %v4770_v56 = vld [vmem:[#allocation8 + $0x440] sm:$0xff] }
 0x7e1   :  { %9835 = vmatprep.subr.bf16.mxu0 %v13699_v5  ;;  %9867 = vmatprep.subr.bf16.mxu1 %v13701_v47  ;;  %v4644_v5 = vld [vmem:[#allocation8 + $0x50] sm:$0xff] }
 0x7e2   :  { %v9936_v47 = vpack.c.bf16 %v4644_v5, %v4636_v17  ;;  %v4715_v5 = vld [vmem:[#allocation8 + $0x288] sm:$0xff] }
 0x7e4   :  { %v11692_v57 = vpop.eup %11691  ;;  %9837 = vmatpush1.bf16.msra.mxu0 %v13705_v61  ;;  %9869 = vmatpush1.bf16.msra.mxu1 %v13707_v12  ;;  %v4651_v61 = vld [vmem:[#allocation8 + $0x88] sm:$0xff] }
 0x7e5   :  { %v13805_v4 = vmul.f32 %v11692_v57, %v11690_v60  ;;  %9871 = vmatprep.subr.bf16.mxu0 %v9870_v59  ;;  %9935 = vmatprep.subr.bf16.mxu1 %v9934_v31  ;;  %v4659_v12 = vld [vmem:[#allocation8 + $0xc8] sm:$0xff]  ;;  %v4698_v59 = vld [vmem:[#allocation8 + $0x200] sm:$0xff]  ;;  %v4700_v31 = vld [vmem:[#allocation8 + $0x210] sm:$0xff] }
 0x7e6   :  { %v9874_v20 = vpack.c.bf16 %v4659_v12, %v4651_v61  ;;  %v4699_v60 = vld [vmem:[#allocation8 + $0x208] sm:$0xff]  ;;  %v9888_v50 = vpack.c.bf16 %v4706_v43, %v4698_v59  ;;  %v4717_v61 = vld [vmem:[#allocation8 + $0x298] sm:$0xff] }
 0x7e7   :  { %4487 = vmatmul.mubr.f32.vlgmr.msra.gmra.mrb[16].mxu0 %v13805_v4  ;;  %4558 = vmatmul.mubr.f32.vlgmr.msra.gmra.mrb[16].mxu1 %v13805_v4  ;;  %v4707_v57 = vld [vmem:[#allocation8 + $0x248] sm:$0xff]  ;;  %v9954_v41 = vpack.c.bf16 %v4725_v46, %v4717_v61  ;;  %v4789_v61 = vld [vmem:[#allocation8 + $0x4d8] sm:$0xff]  ;;  %v4786_v46 = vld [vmem:[#allocation8 + $0x4c0] sm:$0xff] }
 0x7e8   :  { %9873 = vmatpush1.bf16.msra.mxu0 %v9872_v6  ;;  %9937 = vmatpush1.bf16.msra.mxu1 %v9936_v47  ;;  %v9886_v40 = vpack.c.bf16 %v4707_v57, %v4699_v60  ;;  %v4708_v6 = vld [vmem:[#allocation8 + $0x250] sm:$0xff]  ;;  %v4723_v47 = vld [vmem:[#allocation8 + $0x2c8] sm:$0xff]  ;;  %v4765_v60 = vld [vmem:[#allocation8 + $0x418] sm:$0xff] }
 0x7e9   :  { %9875 = vmatprep.subr.bf16.mxu0 %v9874_v20  ;;  %9939 = vmatprep.subr.bf16.mxu1 %v9938_v52  ;;  %v9952_v17 = vpack.c.bf16 %v4708_v6, %v4700_v31  ;;  %v9890_v12 = vpack.c.bf16 %v4723_v47, %v4715_v5  ;;  %v4714_v20 = vld [vmem:[#allocation8 + $0x280] sm:$0xff]  ;;  %v4716_v52 = vld [vmem:[#allocation8 + $0x290] sm:$0xff]  ;;  %v9966_v59 = vpack.c.bf16 %v4773_v3, %v4765_v60  ;;  %v4779_v6 = vld [vmem:[#allocation8 + $0x488] sm:$0xff] }
 0x7ea   :  { %v9892_v22 = vpack.c.bf16 %v4722_v26, %v4714_v20  ;;  %v4781_v5 = vld [vmem:[#allocation8 + $0x498] sm:$0xff]  ;;  %v4834_v3 = vld [vmem:[#allocation8 + $0x640] sm:$0xff] }
 0x7eb   :  { %v9970_v20 = vpack.c.bf16 %v4789_v61, %v4781_v5  ;;  %v4837_v60 = vld [vmem:[#allocation8 + $0x658] sm:$0xff]  ;;  %v4850_v61 = vld [vmem:[#allocation8 + $0x6c0] sm:$0xff] }
 0x7ec   :  { %9877 = vmatpush1.bf16.msra.mxu0 %v9876_v13  ;;  %9941 = vmatpush1.bf16.msra.mxu1 %v9940_v29  ;;  %v4724_v13 = vld [vmem:[#allocation8 + $0x2d0] sm:$0xff]  ;;  %v4739_v29 = vld [vmem:[#allocation8 + $0x348] sm:$0xff]  ;;  %v4853_v5 = vld [vmem:[#allocation8 + $0x6d8] sm:$0xff] }
 0x7ed   :  { %9879 = vmatprep.subr.bf16.mxu0 %v9878_v19  ;;  %9943 = vmatprep.subr.bf16.mxu1 %v9942_v58  ;;  %v9956_v11 = vpack.c.bf16 %v4724_v13, %v4716_v52  ;;  %v9894_v25 = vpack.c.bf16 %v4739_v29, %v4731_v2  ;;  %v4730_v19 = vld [vmem:[#allocation8 + $0x300] sm:$0xff]  ;;  %v4732_v58 = vld [vmem:[#allocation8 + $0x310] sm:$0xff]  ;;  %v4795_v13 = vld [vmem:[#allocation8 + $0x508] sm:$0xff] }
 0x7ee   :  { %v9896_v53 = vpack.c.bf16 %v4738_v1, %v4730_v19  ;;  %v4797_v2 = vld [vmem:[#allocation8 + $0x518] sm:$0xff] }
 0x7ef   :  { %v9974_v19 = vpack.c.bf16 %v4805_v36, %v4797_v2  ;;  %v4858_v36 = vld [vmem:[#allocation8 + $0x700] sm:$0xff] }
 0x7f0   :  { %9881 = vmatpush1.bf16.msra.mxu0 %v9880_v23  ;;  %9945 = vmatpush1.bf16.msra.mxu1 %v9944_v9  ;;  %v4740_v23 = vld [vmem:[#allocation8 + $0x350] sm:$0xff]  ;;  %v4755_v9 = vld [vmem:[#allocation8 + $0x3c8] sm:$0xff] }
 0x7f1   :  { %9883 = vmatprep.subr.bf16.mxu0 %v9882_v28  ;;  %9947 = vmatprep.subr.bf16.mxu1 %v9946_v39  ;;  %v9960_v14 = vpack.c.bf16 %v4740_v23, %v4732_v58  ;;  %v9898_v38 = vpack.c.bf16 %v4755_v9, %v4747_v62  ;;  %v4746_v28 = vld [vmem:[#allocation8 + $0x380] sm:$0xff]  ;;  %v4748_v39 = vld [vmem:[#allocation8 + $0x390] sm:$0xff]  ;;  %v4811_v23 = vld [vmem:[#allocation8 + $0x588] sm:$0xff] }
 0x7f2   :  { %v9900_v0 = vpack.c.bf16 %v4754_v7, %v4746_v28  ;;  %v4813_v62 = vld [vmem:[#allocation8 + $0x598] sm:$0xff] }
 0x7f3   :  { %v9978_v28 = vpack.c.bf16 %v4821_v55, %v4813_v62  ;;  %v4885_v62 = vld [vmem:[#allocation8 + $0x7d8] sm:$0xff] }
 0x7f4   :  { %9885 = vmatpush1.bf16.msra.mxu0 %v9884_v49  ;;  %9949 = vmatpush1.bf16.msra.mxu1 %v9948_v35  ;;  %v4756_v49 = vld [vmem:[#allocation8 + $0x3d0] sm:$0xff]  ;;  %v4771_v35 = vld [vmem:[#allocation8 + $0x448] sm:$0xff] }
 0x7f5   :  { %9887 = vmatprep.subr.bf16.mxu0 %v9886_v40  ;;  %9951 = vmatprep.subr.bf16.mxu1 %v9950_v34  ;;  %v9964_v27 = vpack.c.bf16 %v4756_v49, %v4748_v39  ;;  %v9902_v57 = vpack.c.bf16 %v4771_v35, %v4763_v48  ;;  %v4762_v40 = vld [vmem:[#allocation8 + $0x400] sm:$0xff]  ;;  %v4764_v34 = vld [vmem:[#allocation8 + $0x410] sm:$0xff]  ;;  %v4827_v49 = vld [vmem:[#allocation8 + $0x608] sm:$0xff] }
 0x7f6   :  { %v9904_v43 = vpack.c.bf16 %v4770_v56, %v4762_v40  ;;  %v4829_v48 = vld [vmem:[#allocation8 + $0x618] sm:$0xff] }
 0x7f7   :  { %v9982_v40 = vpack.c.bf16 %v4837_v60, %v4829_v48  ;;  %v4649_v48 = vld [vmem:[#allocation8 + $0x78] sm:$0xff] }
 0x7f8   :  { %9889 = vmatpush1.bf16.msra.mxu0 %v9888_v50  ;;  %9953 = vmatpush1.bf16.msra.mxu1 %v9952_v17  ;;  %v4772_v50 = vld [vmem:[#allocation8 + $0x450] sm:$0xff]  ;;  %v4787_v17 = vld [vmem:[#allocation8 + $0x4c8] sm:$0xff] }
 0x7f9   :  { %9891 = vmatprep.subr.bf16.mxu0 %v9890_v12  ;;  %9955 = vmatprep.subr.bf16.mxu1 %v9954_v41  ;;  %v9968_v31 = vpack.c.bf16 %v4772_v50, %v4764_v34  ;;  %v9906_v47 = vpack.c.bf16 %v4787_v17, %v4779_v6  ;;  %v4778_v12 = vld [vmem:[#allocation8 + $0x480] sm:$0xff]  ;;  %v4780_v41 = vld [vmem:[#allocation8 + $0x490] sm:$0xff]  ;;  %v4843_v50 = vld [vmem:[#allocation8 + $0x688] sm:$0xff] }
 0x7fa   :  { %v9908_v26 = vpack.c.bf16 %v4786_v46, %v4778_v12  ;;  %v4845_v6 = vld [vmem:[#allocation8 + $0x698] sm:$0xff] }
 0x7fb   :  { %v9986_v12 = vpack.c.bf16 %v4853_v5, %v4845_v6 }
 0x7fc   :  { %9893 = vmatpush1.bf16.msra.mxu0 %v9892_v22  ;;  %9957 = vmatpush1.bf16.msra.mxu1 %v9956_v11  ;;  %v4788_v22 = vld [vmem:[#allocation8 + $0x4d0] sm:$0xff]  ;;  %v4803_v11 = vld [vmem:[#allocation8 + $0x548] sm:$0xff] }
 0x7fd   :  { %9895 = vmatprep.subr.bf16.mxu0 %v9894_v25  ;;  %9959 = vmatprep.subr.bf16.mxu1 %v9958_v54  ;;  %v9972_v52 = vpack.c.bf16 %v4788_v22, %v4780_v41  ;;  %v9910_v29 = vpack.c.bf16 %v4803_v11, %v4795_v13  ;;  %v4794_v25 = vld [vmem:[#allocation8 + $0x500] sm:$0xff]  ;;  %v4796_v54 = vld [vmem:[#allocation8 + $0x510] sm:$0xff]  ;;  %v4859_v41 = vld [vmem:[#allocation8 + $0x708] sm:$0xff] }
 0x7fe   :  { %v9912_v1 = vpack.c.bf16 %v4802_v32, %v4794_v25  ;;  %v4861_v13 = vld [vmem:[#allocation8 + $0x718] sm:$0xff]  ;;  %v4866_v25 = vld [vmem:[#allocation8 + $0x740] sm:$0xff]  ;;  %v4860_v32 = vld [vmem:[#allocation8 + $0x710] sm:$0xff] }
 0x7ff   :  { %v4869_v11 = vld [vmem:[#allocation8 + $0x758] sm:$0xff] }
 0x800   :  { %9897 = vmatpush1.bf16.msra.mxu0 %v9896_v53  ;;  %9961 = vmatpush1.bf16.msra.mxu1 %v9960_v14  ;;  %v4804_v53 = vld [vmem:[#allocation8 + $0x550] sm:$0xff]  ;;  %v4819_v14 = vld [vmem:[#allocation8 + $0x5c8] sm:$0xff] }
 0x801   :  { %9899 = vmatprep.subr.bf16.mxu0 %v9898_v38  ;;  %9963 = vmatprep.subr.bf16.mxu1 %v9962_v24  ;;  %v9976_v58 = vpack.c.bf16 %v4804_v53, %v4796_v54  ;;  %v9914_v9 = vpack.c.bf16 %v4819_v14, %v4811_v23  ;;  %v4810_v38 = vld [vmem:[#allocation8 + $0x580] sm:$0xff]  ;;  %v4812_v24 = vld [vmem:[#allocation8 + $0x590] sm:$0xff]  ;;  %v4875_v54 = vld [vmem:[#allocation8 + $0x788] sm:$0xff] }
 0x802   :  { %v9916_v7 = vpack.c.bf16 %v4818_v16, %v4810_v38  ;;  %v4883_v53 = vld [vmem:[#allocation8 + $0x7c8] sm:$0xff]  ;;  %v4877_v14 = vld [vmem:[#allocation8 + $0x798] sm:$0xff]  ;;  %v4882_v38 = vld [vmem:[#allocation8 + $0x7c0] sm:$0xff] }
 0x803   :  { %v9930_v23 = vpack.c.bf16 %v4883_v53, %v4875_v54  ;;  %v9994_v55 = vpack.c.bf16 %v4885_v62, %v4877_v14  ;;  %v4876_v16 = vld [vmem:[#allocation8 + $0x790] sm:$0xff] }
 0x804   :  { %9901 = vmatpush1.bf16.msra.mxu0 %v9900_v0  ;;  %9965 = vmatpush1.bf16.msra.mxu1 %v9964_v27  ;;  %v4820_v0 = vld [vmem:[#allocation8 + $0x5d0] sm:$0xff]  ;;  %v4835_v27 = vld [vmem:[#allocation8 + $0x648] sm:$0xff] }
 0x805   :  { %9903 = vmatprep.subr.bf16.mxu0 %v9902_v57  ;;  %9967 = vmatprep.subr.bf16.mxu1 %v9966_v59  ;;  %v9980_v39 = vpack.c.bf16 %v4820_v0, %v4812_v24  ;;  %v9918_v35 = vpack.c.bf16 %v4835_v27, %v4827_v49  ;;  %v4826_v57 = vld [vmem:[#allocation8 + $0x600] sm:$0xff]  ;;  %v4828_v59 = vld [vmem:[#allocation8 + $0x610] sm:$0xff]  ;;  %v4639_v0 = vld [vmem:[#allocation8 + $0x28] sm:$0xff] }
 0x806   :  { %v9920_v56 = vpack.c.bf16 %v4834_v3, %v4826_v57  ;;  %v4641_v49 = vld [vmem:[#allocation8 + $0x38] sm:$0xff] }
 0x808   :  { %9905 = vmatpush1.bf16.msra.mxu0 %v9904_v43  ;;  %9969 = vmatpush1.bf16.msra.mxu1 %v9968_v31  ;;  %v4836_v43 = vld [vmem:[#allocation8 + $0x650] sm:$0xff]  ;;  %v4851_v31 = vld [vmem:[#allocation8 + $0x6c8] sm:$0xff] }
 0x809   :  { %9907 = vmatprep.subr.bf16.mxu0 %v9906_v47  ;;  %9971 = vmatprep.subr.bf16.mxu1 %v9970_v20  ;;  %v9984_v34 = vpack.c.bf16 %v4836_v43, %v4828_v59  ;;  %v9922_v17 = vpack.c.bf16 %v4851_v31, %v4843_v50  ;;  %v4842_v47 = vld [vmem:[#allocation8 + $0x680] sm:$0xff]  ;;  %v4844_v20 = vld [vmem:[#allocation8 + $0x690] sm:$0xff] }
 0x80a   :  { %v9924_v46 = vpack.c.bf16 %v4850_v61, %v4842_v47 }
 0x80c   :  { %9909 = vmatpush1.bf16.msra.mxu0 %v9908_v26  ;;  %9973 = vmatpush1.bf16.msra.mxu1 %v9972_v52  ;;  %v4852_v26 = vld [vmem:[#allocation8 + $0x6d0] sm:$0xff]  ;;  %v4867_v52 = vld [vmem:[#allocation8 + $0x748] sm:$0xff] }
 0x80d   :  { %9911 = vmatprep.subr.bf16.mxu0 %v9910_v29  ;;  %9975 = vmatprep.subr.bf16.mxu1 %v9974_v19  ;;  %v9988_v22 = vpack.c.bf16 %v4852_v26, %v4844_v20  ;;  %v9926_v2 = vpack.c.bf16 %v4867_v52, %v4859_v41  ;;  %v9990_v29 = vpack.c.bf16 %v4869_v11, %v4861_v13 }
 0x80e   :  { %v9928_v19 = vpack.c.bf16 %v4866_v25, %v4858_v36 }
 0x810   :  { %9913 = vmatpush1.bf16.msra.mxu0 %v9912_v1  ;;  %9977 = vmatpush1.bf16.msra.mxu1 %v9976_v58  ;;  %v4868_v1 = vld [vmem:[#allocation8 + $0x750] sm:$0xff] }
 0x811   :  { %9915 = vmatprep.subr.bf16.mxu0 %v9914_v9  ;;  %9979 = vmatprep.subr.bf16.mxu1 %v9978_v28  ;;  %v9992_v58 = vpack.c.bf16 %v4868_v1, %v4860_v32  ;;  %v4874_v9 = vld [vmem:[#allocation8 + $0x780] sm:$0xff]  ;;  %v4884_v28 = vld [vmem:[#allocation8 + $0x7d0] sm:$0xff] }
 0x812   :  { %v9996_v24 = vpack.c.bf16 %v4884_v28, %v4876_v16  ;;  %v4646_v28 = vld [vmem:[#allocation8 + $0x60] sm:$0xff] }
 0x814   :  { %9917 = vmatpush1.bf16.msra.mxu0 %v9916_v7  ;;  %9981 = vmatpush1.bf16.msra.mxu1 %v9980_v39  ;;  %v9932_v7 = vpack.c.bf16 %v4882_v38, %v4874_v9  ;;  %v4647_v39 = vld [vmem:[#allocation8 + $0x68] sm:$0xff] }
 0x815   :  { %9919 = vmatprep.subr.bf16.mxu0 %v9918_v35  ;;  %9983 = vmatprep.subr.bf16.mxu1 %v9982_v40  ;;  %v9998_v27 = vpack.c.bf16 %v4647_v39, %v4639_v0  ;;  %v10062_v35 = vpack.c.bf16 %v4649_v48, %v4641_v49  ;;  %v4655_v39 = vld [vmem:[#allocation8 + $0xa8] sm:$0xff]  ;;  %v4657_v48 = vld [vmem:[#allocation8 + $0xb8] sm:$0xff] }
 0x818   :  { %9921 = vmatpush1.bf16.msra.mxu0 %v9920_v56  ;;  %9985 = vmatpush1.bf16.msra.mxu1 %v9984_v34 }
 0x819   :  { %9923 = vmatprep.subr.bf16.mxu0 %v9922_v17  ;;  %9987 = vmatprep.subr.bf16.mxu1 %v9986_v12 }
 0x81c   :  { %9925 = vmatpush1.bf16.msra.mxu0 %v9924_v46  ;;  %9989 = vmatpush1.bf16.msra.mxu1 %v9988_v22 }
 0x81d   :  { %9927 = vmatprep.subr.bf16.mxu0 %v9926_v2  ;;  %9991 = vmatprep.subr.bf16.mxu1 %v9990_v29 }
 0x820   :  { %9929 = vmatpush1.bf16.msra.mxu0 %v9928_v19  ;;  %9993 = vmatpush1.bf16.msra.mxu1 %v9992_v58 }
 0x821   :  { %9931 = vmatprep.subr.bf16.mxu0 %v9930_v23  ;;  %9995 = vmatprep.subr.bf16.mxu1 %v9994_v55 }
 0x824   :  { %9933 = vmatpush1.bf16.msra.mxu0 %v9932_v7  ;;  %9997 = vmatpush1.bf16.msra.mxu1 %v9996_v24  ;;  %v4640_v7 = vld [vmem:[#allocation8 + $0x30] sm:$0xff] }
 0x825   :  { %9999 = vmatprep.subr.bf16.mxu0 %v9998_v27  ;;  %10063 = vmatprep.subr.bf16.mxu1 %v10062_v35  ;;  %v4648_v24 = vld [vmem:[#allocation8 + $0x70] sm:$0xff]  ;;  %v4663_v27 = vld [vmem:[#allocation8 + $0xe8] sm:$0xff]  ;;  %v4665_v35 = vld [vmem:[#allocation8 + $0xf8] sm:$0xff] }
 0x89a   :  { %v4274_v60 = vpop.f32.mrb[14].mxu0  ;;  %v4345_v57 = vpop.f32.mrb[14].mxu1 }
 0x89b   :  { %v11212_v3 = vadd.f32 %v4274_v60, %v12783_v15  ;;  %v4276_v40 = vpop.f32.mrb[15].mxu0  ;;  %v4347_v56 = vpop.f32.mrb[15].mxu1  ;;  %v11228_v6 = vadd.f32 %v4345_v57, %v15188_v10 }
 0x89c   :  { %v11213_v59 = vadd.f32 %v4276_v40, %v15186_v8  ;;  %v11229_v50 = vadd.f32 %v4347_v56, %v15187_v30  ;;  %v4654_v40 = vld [vmem:[#allocation8 + $0xa0] sm:$0xff] }
 0x89d   :  { %v8655_v43 = vmul.f32 -1.442695, %v11212_v3  ;;  %v10064_v3 = vpack.c.bf16 %v4648_v24, %v4640_v7  ;;  %v4662_v56 = vld [vmem:[#allocation8 + $0xe0] sm:$0xff]  ;;  %v4727_v7 = vld [vmem:[#allocation8 + $0x2e8] sm:$0xff]  ;;  %v4721_v24 = vld [vmem:[#allocation8 + $0x2b8] sm:$0xff] }
 0x89e   :  { %v8656_v34 = vmul.f32 -1.442695, %v11213_v59  ;;  %v8657_v31 = vmul.f32 -1.442695, %v11229_v50  ;;  %v4664_v59 = vld [vmem:[#allocation8 + $0xf0] sm:$0xff]  ;;  %v4671_v50 = vld [vmem:[#allocation8 + $0x128] sm:$0xff] }
 0x89f   :  { %11693 = vpow2.f32 %v8655_v43  ;;  %v10002_v43 = vpack.c.bf16 %v4663_v27, %v4655_v39  ;;  %v4718_v27 = vld [vmem:[#allocation8 + $0x2a0] sm:$0xff] }
 0x8a0   :  { %11695 = vpow2.f32 %v8656_v34  ;;  %v10066_v34 = vpack.c.bf16 %v4665_v35, %v4657_v48  ;;  %v15212_v48 = vld [vmem:[#allocation47_spill] sm:$0xff]  ;;  %v4726_v35 = vld [vmem:[#allocation8 + $0x2e0] sm:$0xff] }
 0x8a1   :  { %11697 = vpow2.f32 %v8657_v31  ;;  %v15207_v31 = vld [vmem:[#allocation35_spill] sm:$0xff] }
 0x8a2   :  { %11699 = vtanh.f32 %v11228_v6  ;;  %v4679_v6 = vld [vmem:[#allocation8 + $0x168] sm:$0xff] }
 0x8a9   :  { %v11694_v17 = vpop.eup %11693 }
 0x8aa   :  { %v11696_v5 = vpop.eup %11695  ;;  %v4571_v47 = vadd.f32 1.0, %v11694_v17  ;;  %v4673_v17 = vld [vmem:[#allocation8 + $0x138] sm:$0xff] }
 0x8ab   :  { %v4577_v61 = vadd.f32 1.0, %v11696_v5  ;;  %v11698_v15 = vpop.eup %11697  ;;  %v4681_v5 = vld [vmem:[#allocation8 + $0x178] sm:$0xff] }
 0x8ac   :  { %11701 = vrcp.f32 %v4571_v47  ;;  %v11700_v12 = vpop.eup %11699  ;;  %v4584_v26 = vadd.f32 1.0, %v11698_v15  ;;  %v10004_v47 = vpack.c.bf16 %v4662_v56, %v4654_v40  ;;  %v4670_v15 = vld [vmem:[#allocation8 + $0x120] sm:$0xff] }
 0x8ad   :  { %11703 = vrcp.f32 %v4577_v61 }
 0x8ae   :  { %11705 = vrcp.f32 %v4584_v26  ;;  %v10070_v26 = vpack.c.bf16 %v4681_v5, %v4673_v17  ;;  %v4734_v5 = vld [vmem:[#allocation8 + $0x320] sm:$0xff] }
 0x8b6   :  { %v11702_v8 = vpop.eup %11701 }
 0x8b7   :  { %v11704_v46 = vpop.eup %11703  ;;  %v4588_v20 = vmul.f32 %v11702_v8, %v11700_v12  ;;  %v4678_v12 = vld [vmem:[#allocation8 + $0x160] sm:$0xff]  ;;  %v4672_v8 = vld [vmem:[#allocation8 + $0x130] sm:$0xff] }
 0x8b8   :  { %v4587_v41 = vmul.f32 %v11704_v46, %v13758_v33  ;;  %v11706_v32 = vpop.eup %11705  ;;  %v4680_v46 = vld [vmem:[#allocation8 + $0x170] sm:$0xff] }
 0x8ba   :  { %v4589_v30 = vadd.f32 %v4588_v20, %v4587_v41  ;;  %v4488_v22 = vpop.f32.mrb[16].mxu0  ;;  %v4559_v52 = vpop.f32.mrb[16].mxu1  ;;  %v10006_v20 = vpack.c.bf16 %v4679_v6, %v4671_v50  ;;  %v4687_v41 = vld [vmem:[#allocation8 + $0x1a8] sm:$0xff]  ;;  %v4745_v50 = vld [vmem:[#allocation8 + $0x378] sm:$0xff]  ;;  %v10020_v6 = vpack.c.bf16 %v4726_v35, %v4718_v27  ;;  %v4782_v35 = vld [vmem:[#allocation8 + $0x4a0] sm:$0xff] }
 0x8bb   :  { %v11230_v10 = vadd.f32 %v4488_v22, %v15190_v51  ;;  %v4490_v13 = vpop.f32.mrb[17].mxu0  ;;  %v4561_v11 = vpop.f32.mrb[17].mxu1  ;;  %v11246_v1 = vadd.f32 %v4559_v52, %v12827_v42  ;;  %v4638_v42 = vld [vmem:[#allocation8 + $0x20] sm:$0xff]  ;;  %v4695_v22 = vld [vmem:[#allocation8 + $0x1e8] sm:$0xff]  ;;  %v4689_v52 = vld [vmem:[#allocation8 + $0x1b8] sm:$0xff] }
 0x8bc   :  { %11707 = vtanh.f32 %v4589_v30  ;;  %v11231_v2 = vadd.f32 %v4490_v13, %v15191_v18  ;;  %v11247_v25 = vadd.f32 %v4561_v11, %v15192_v37  ;;  %v10000_v57 = vpack.c.bf16 %v4646_v28, %v4638_v42  ;;  %v15208_v30 = vld [vmem:[#allocation22_spill] sm:$0xff]  ;;  %v4719_v42 = vld [vmem:[#allocation8 + $0x2a8] sm:$0xff]  ;;  %v15211_v28 = vld [vmem:[#allocation25_spill] sm:$0xff] }
 0x8bd   :  { %v8658_v29 = vmul.f32 -1.442695, %v11230_v10  ;;  %v4697_v10 = vld [vmem:[#allocation8 + $0x1f8] sm:$0xff]  ;;  %v10008_v13 = vpack.c.bf16 %v4678_v12, %v4670_v15  ;;  %v10072_v11 = vpack.c.bf16 %v4680_v46, %v4672_v8  ;;  %v10018_v40 = vpack.c.bf16 %v4727_v7, %v4719_v42  ;;  %v4736_v15 = vld [vmem:[#allocation8 + $0x330] sm:$0xff] }
 0x8be   :  { %v8659_v36 = vmul.f32 -1.442695, %v11231_v2  ;;  %v8660_v33 = vmul.f32 -1.442695, %v11247_v25  ;;  %v4686_v2 = vld [vmem:[#allocation8 + $0x1a0] sm:$0xff]  ;;  %v4696_v25 = vld [vmem:[#allocation8 + $0x1f0] sm:$0xff] }
 0x8bf   :  { %11709 = vpow2.f32 %v8658_v29  ;;  %v4694_v29 = vld [vmem:[#allocation8 + $0x1e0] sm:$0xff]  ;;  %v4744_v12 = vld [vmem:[#allocation8 + $0x370] sm:$0xff] }
 0x8c0   :  { %11711 = vpow2.f32 %v8659_v36  ;;  %v4688_v36 = vld [vmem:[#allocation8 + $0x1b0] sm:$0xff] }
 0x8c1   :  { %11713 = vpow2.f32 %v8660_v33  ;;  %v4703_v33 = vld [vmem:[#allocation8 + $0x228] sm:$0xff] }
 0x8c2   :  { %11715 = vtanh.f32 %v11246_v1  ;;  %v15209_v1 = vld [vmem:[#allocation19_spill] sm:$0xff] }
 0x8c6   :  { %v11708_v19 = vpop.eup %11707 }
 0x8c7   :  { %v13818_v54 = vmul.f32 %v11708_v19, %v11706_v32  ;;  %v10010_v32 = vpack.c.bf16 %v4695_v22, %v4687_v41  ;;  %v10074_v19 = vpack.c.bf16 %v4697_v10, %v4689_v52  ;;  %v4759_v41 = vld [vmem:[#allocation8 + $0x3e8] sm:$0xff]  ;;  %v4753_v22 = vld [vmem:[#allocation8 + $0x3b8] sm:$0xff] }
 0x8c8   :  { %v4761_v52 = vld [vmem:[#allocation8 + $0x3f8] sm:$0xff] }
 0x8c9   :  { %v11710_v53 = vpop.eup %11709 }
 0x8ca   :  { %v11712_v51 = vpop.eup %11711  ;;  %v4595_v58 = vadd.f32 1.0, %v11710_v53  ;;  %v4711_v53 = vld [vmem:[#allocation8 + $0x268] sm:$0xff] }
 0x8cb   :  { %v4601_v23 = vadd.f32 1.0, %v11712_v51  ;;  %v11714_v18 = vpop.eup %11713  ;;  %v4705_v51 = vld [vmem:[#allocation8 + $0x238] sm:$0xff] }
 0x8cc   :  { %11717 = vrcp.f32 %v4595_v58  ;;  %v11716_v14 = vpop.eup %11715  ;;  %v4608_v55 = vadd.f32 1.0, %v11714_v18  ;;  %v4713_v58 = vld [vmem:[#allocation8 + $0x278] sm:$0xff]  ;;  %v10076_v18 = vpack.c.bf16 %v4696_v25, %v4688_v36  ;;  %v4752_v36 = vld [vmem:[#allocation8 + $0x3b0] sm:$0xff] }
 0x8cd   :  { %11719 = vrcp.f32 %v4601_v23  ;;  %v10012_v23 = vpack.c.bf16 %v4694_v29, %v4686_v2  ;;  %v15216_v2 = vld [vmem:[#allocation43_spill] sm:$0xff]  ;;  %v4758_v29 = vld [vmem:[#allocation8 + $0x3e0] sm:$0xff]  ;;  %v4760_v25 = vld [vmem:[#allocation8 + $0x3f0] sm:$0xff] }
 0x8ce   :  { %11721 = vrcp.f32 %v4608_v55  ;;  %v4712_v55 = vld [vmem:[#allocation8 + $0x270] sm:$0xff] }
 0x8d6   :  { %v11718_v62 = vpop.eup %11717 }
 0x8d7   :  { %v11720_v9 = vpop.eup %11719  ;;  %v4612_v37 = vmul.f32 %v11718_v62, %v11716_v14  ;;  %v4702_v14 = vld [vmem:[#allocation8 + $0x220] sm:$0xff]  ;;  %v15210_v62 = vld [vmem:[#allocation23_spill] sm:$0xff] }
 0x8d8   :  { %v4611_v38 = vmul.f32 %v11720_v9, %v13788_v44  ;;  %v11722_v0 = vpop.eup %11721  ;;  %v4656_v44 = vld [vmem:[#allocation8 + $0xb0] sm:$0xff]  ;;  %v4710_v9 = vld [vmem:[#allocation8 + $0x260] sm:$0xff] }
 0x8d9   :  { %v10068_v61 = vpack.c.bf16 %v4664_v59, %v4656_v44  ;;  %v10016_v39 = vpack.c.bf16 %v4710_v9, %v4702_v14  ;;  %v4735_v44 = vld [vmem:[#allocation8 + $0x328] sm:$0xff]  ;;  %v15213_v59 = vld [vmem:[#allocation21_spill] sm:$0xff]  ;;  %v4766_v14 = vld [vmem:[#allocation8 + $0x420] sm:$0xff] }
 0x8da   :  { %v4613_v16 = vadd.f32 %v4612_v37, %v4611_v38  ;;  %v4704_v37 = vld [vmem:[#allocation8 + $0x230] sm:$0xff]  ;;  %v10014_v38 = vpack.c.bf16 %v4711_v53, %v4703_v33  ;;  %v4767_v33 = vld [vmem:[#allocation8 + $0x428] sm:$0xff]  ;;  %v4774_v9 = vld [vmem:[#allocation8 + $0x460] sm:$0xff] }
 0x8db   :  { %v4775_v53 = vld [vmem:[#allocation8 + $0x468] sm:$0xff] }
 0x8dc   :  { %11723 = vtanh.f32 %v4613_v16  ;;  %v10078_v16 = vpack.c.bf16 %v4713_v58, %v4705_v51  ;;  %v4769_v51 = vld [vmem:[#allocation8 + $0x438] sm:$0xff]  ;;  %v10030_v42 = vpack.c.bf16 %v4775_v53, %v4767_v33  ;;  %v4831_v33 = vld [vmem:[#allocation8 + $0x628] sm:$0xff] }
 0x8dd   :  { %v4777_v58 = vld [vmem:[#allocation8 + $0x478] sm:$0xff]  ;;  %v4839_v53 = vld [vmem:[#allocation8 + $0x668] sm:$0xff] }
 0x8de   :  { %v10094_v7 = vpack.c.bf16 %v4777_v58, %v4769_v51  ;;  %v4833_v51 = vld [vmem:[#allocation8 + $0x638] sm:$0xff] }
 0x8df   :  { %v4841_v58 = vld [vmem:[#allocation8 + $0x678] sm:$0xff] }
 0x8e6   :  { %v11724_v49 = vpop.eup %11723 }
 0x8e7   :  { %v13821_v60 = vmul.f32 %v11724_v49, %v11722_v0  ;;  %v4729_v0 = vld [vmem:[#allocation8 + $0x2f8] sm:$0xff]  ;;  %v10080_v49 = vpack.c.bf16 %v4712_v55, %v4704_v37  ;;  %v15217_v37 = vld [vmem:[#allocation18_spill] sm:$0xff]  ;;  %v4768_v55 = vld [vmem:[#allocation8 + $0x430] sm:$0xff] }
 0x8e8   :  { %v10082_v56 = vpack.c.bf16 %v4729_v0, %v4721_v24  ;;  %v4791_v24 = vld [vmem:[#allocation8 + $0x4e8] sm:$0xff]  ;;  %v4785_v0 = vld [vmem:[#allocation8 + $0x4b8] sm:$0xff] }
 0x8e9   :  { %4996 = vmatprep.mubr.f32.mxu0 %v13821_v60  ;;  %5109 = vmatprep.mubr.f32.mxu1 %v13821_v60 }
 0x8ea   :  { %4997 = vmatmul.mubr.f32.vlgmr.msra.gmra.mrb[32].mxu0 %v15207_v31  ;;  %5110 = vmatmul.mubr.f32.vlgmr.msra.gmra.mrb[32].mxu1 %v15207_v31 }
 0x8eb   :  { %10001 = vmatpush1.bf16.msra.mxu0 %v10000_v57  ;;  %10065 = vmatpush1.bf16.msra.mxu1 %v10064_v3  ;;  %v4720_v57 = vld [vmem:[#allocation8 + $0x2b0] sm:$0xff] }
 0x8ec   :  { %5002 = vmatprep.mubr.f32.mxu0 %v13805_v4  ;;  %5115 = vmatprep.mubr.f32.mxu1 %v13805_v4  ;;  %v4728_v3 = vld [vmem:[#allocation8 + $0x2f0] sm:$0xff] }
 0x8ed   :  { %10003 = vmatprep.subr.bf16.mxu0 %v10002_v43  ;;  %10067 = vmatprep.subr.bf16.mxu1 %v10066_v34  ;;  %v4743_v43 = vld [vmem:[#allocation8 + $0x368] sm:$0xff]  ;;  %v4737_v34 = vld [vmem:[#allocation8 + $0x338] sm:$0xff]  ;;  %v10084_v17 = vpack.c.bf16 %v4728_v3, %v4720_v57  ;;  %v4790_v57 = vld [vmem:[#allocation8 + $0x4e0] sm:$0xff] }
 0x8ee   :  { %5003 = vmatmul.mubr.f32.gmra.mrb[34].mxu0 %v15208_v30  ;;  %5116 = vmatmul.mubr.f32.gmra.mrb[34].mxu1 %v15208_v30  ;;  %v10022_v8 = vpack.c.bf16 %v4743_v43, %v4735_v44  ;;  %v10086_v46 = vpack.c.bf16 %v4745_v50, %v4737_v34  ;;  %v4792_v44 = vld [vmem:[#allocation8 + $0x4f0] sm:$0xff]  ;;  %v4799_v43 = vld [vmem:[#allocation8 + $0x528] sm:$0xff]  ;;  %v4801_v50 = vld [vmem:[#allocation8 + $0x538] sm:$0xff] }
 0x8ef   :  { %10005 = vmatpush1.bf16.msra.mxu0 %v10004_v47  ;;  %10069 = vmatpush1.bf16.msra.mxu1 %v10068_v61  ;;  %v15214_v47 = vld [vmem:[#allocation20_spill] sm:$0xff]  ;;  %v4742_v61 = vld [vmem:[#allocation8 + $0x360] sm:$0xff]  ;;  %v4807_v34 = vld [vmem:[#allocation8 + $0x568] sm:$0xff] }
 0x8f0   :  { %5008 = vmatprep.mubr.f32.mxu0 %v13713_v45  ;;  %5121 = vmatprep.mubr.f32.mxu1 %v13713_v45  ;;  %v10024_v10 = vpack.c.bf16 %v4742_v61, %v4734_v5  ;;  %v4798_v61 = vld [vmem:[#allocation8 + $0x520] sm:$0xff] }
 0x8f1   :  { %10007 = vmatprep.subr.bf16.mxu0 %v10006_v20  ;;  %10071 = vmatprep.subr.bf16.mxu1 %v10070_v26  ;;  %v4751_v20 = vld [vmem:[#allocation8 + $0x3a8] sm:$0xff]  ;;  %v15215_v26 = vld [vmem:[#allocation36_spill] sm:$0xff] }
 0x8f2   :  { %5009 = vmatmul.mubr.f32.gmra.mrb[36].mxu0 %v15209_v1  ;;  %5122 = vmatmul.mubr.f32.gmra.mrb[36].mxu1 %v15209_v1 }
 0x8f3   :  { %10009 = vmatpush1.bf16.msra.mxu0 %v10008_v13  ;;  %10073 = vmatpush1.bf16.msra.mxu1 %v10072_v11  ;;  %v10088_v13 = vpack.c.bf16 %v4744_v12, %v4736_v15  ;;  %v4750_v11 = vld [vmem:[#allocation8 + $0x3a0] sm:$0xff]  ;;  %v10038_v12 = vpack.c.bf16 %v4807_v34, %v4799_v43  ;;  %v4863_v43 = vld [vmem:[#allocation8 + $0x728] sm:$0xff] }
 0x8f4   :  { %5014 = vmatprep.mubr.f32.mxu0 %v15210_v62  ;;  %5127 = vmatprep.mubr.f32.mxu1 %v15210_v62  ;;  %v4806_v15 = vld [vmem:[#allocation8 + $0x560] sm:$0xff]  ;;  %v4871_v34 = vld [vmem:[#allocation8 + $0x768] sm:$0xff] }
 0x8f5   :  { %10011 = vmatprep.subr.bf16.mxu0 %v10010_v32  ;;  %10075 = vmatprep.subr.bf16.mxu1 %v10074_v19  ;;  %v10026_v32 = vpack.c.bf16 %v4759_v41, %v4751_v20  ;;  %v10090_v19 = vpack.c.bf16 %v4761_v52, %v4753_v22  ;;  %v4815_v20 = vld [vmem:[#allocation8 + $0x5a8] sm:$0xff]  ;;  %v4817_v22 = vld [vmem:[#allocation8 + $0x5b8] sm:$0xff] }
 0x8f6   :  { %5015 = vmatmul.mubr.f32.gmra.mrb[38].mxu0 %v15211_v28  ;;  %5128 = vmatmul.mubr.f32.gmra.mrb[38].mxu1 %v15211_v28  ;;  %v4823_v41 = vld [vmem:[#allocation8 + $0x5e8] sm:$0xff]  ;;  %v4825_v52 = vld [vmem:[#allocation8 + $0x5f8] sm:$0xff] }
 0x8f7   :  { %10013 = vmatpush1.bf16.msra.mxu0 %v10012_v23  ;;  %10077 = vmatpush1.bf16.msra.mxu1 %v10076_v18  ;;  %v10028_v23 = vpack.c.bf16 %v4758_v29, %v4750_v11  ;;  %v10092_v18 = vpack.c.bf16 %v4760_v25, %v4752_v36  ;;  %v4814_v11 = vld [vmem:[#allocation8 + $0x5a0] sm:$0xff]  ;;  %v10042_v36 = vpack.c.bf16 %v4823_v41, %v4815_v20  ;;  %v4879_v20 = vld [vmem:[#allocation8 + $0x7a8] sm:$0xff] }
 0x8f8   :  { %5020 = vmatprep.mubr.f32.mxu0 %v15212_v48  ;;  %5133 = vmatprep.mubr.f32.mxu1 %v15212_v48  ;;  %v4822_v29 = vld [vmem:[#allocation8 + $0x5e0] sm:$0xff]  ;;  %v10106_v25 = vpack.c.bf16 %v4825_v52, %v4817_v22  ;;  %v4887_v41 = vld [vmem:[#allocation8 + $0x7e8] sm:$0xff]  ;;  %v4881_v22 = vld [vmem:[#allocation8 + $0x7b8] sm:$0xff] }
 0x8f9   :  { %10015 = vmatprep.subr.bf16.mxu0 %v10014_v38  ;;  %10079 = vmatprep.subr.bf16.mxu1 %v10078_v16  ;;  %v4776_v38 = vld [vmem:[#allocation8 + $0x470] sm:$0xff]  ;;  %v4783_v16 = vld [vmem:[#allocation8 + $0x4a8] sm:$0xff]  ;;  %v4889_v52 = vld [vmem:[#allocation8 + $0x7f8] sm:$0xff] }
 0x8fa   :  { %5021 = vmatmul.mubr.f32.gmra.mrb[40].mxu0 %v15213_v59  ;;  %5134 = vmatmul.mubr.f32.gmra.mrb[40].mxu1 %v15213_v59  ;;  %v10096_v27 = vpack.c.bf16 %v4776_v38, %v4768_v55  ;;  %v10034_v3 = vpack.c.bf16 %v4791_v24, %v4783_v16  ;;  %v10046_v55 = vpack.c.bf16 %v4839_v53, %v4831_v33  ;;  %v4832_v16 = vld [vmem:[#allocation8 + $0x630] sm:$0xff]  ;;  %v4855_v24 = vld [vmem:[#allocation8 + $0x6e8] sm:$0xff] }
 0x8fb   :  { %10017 = vmatpush1.bf16.msra.mxu0 %v10016_v39  ;;  %10081 = vmatpush1.bf16.msra.mxu1 %v10080_v49  ;;  %v4793_v39 = vld [vmem:[#allocation8 + $0x4f8] sm:$0xff]  ;;  %v10032_v49 = vpack.c.bf16 %v4774_v9, %v4766_v14  ;;  %v4830_v14 = vld [vmem:[#allocation8 + $0x620] sm:$0xff]  ;;  %v10110_v38 = vpack.c.bf16 %v4841_v58, %v4833_v51  ;;  %v5453_v33 = vld [vmem:[#allocation9 + $0x8] sm:$0xff] }
 0x8fc   :  { %5026 = vmatprep.mubr.f32.mxu0 %v15214_v47  ;;  %5139 = vmatprep.mubr.f32.mxu1 %v15214_v47  ;;  %v4838_v9 = vld [vmem:[#allocation8 + $0x660] sm:$0xff]  ;;  %v5457_v53 = vld [vmem:[#allocation9 + $0x28] sm:$0xff]  ;;  %v5455_v51 = vld [vmem:[#allocation9 + $0x18] sm:$0xff] }
 0x8fd   :  { %10019 = vmatprep.subr.bf16.mxu0 %v10018_v40  ;;  %10083 = vmatprep.subr.bf16.mxu1 %v10082_v56  ;;  %v10098_v40 = vpack.c.bf16 %v4793_v39, %v4785_v0  ;;  %v4784_v56 = vld [vmem:[#allocation8 + $0x4b0] sm:$0xff]  ;;  %v4849_v0 = vld [vmem:[#allocation8 + $0x6b8] sm:$0xff] }
 0x8fe   :  { %5027 = vmatmul.mubr.f32.gmra.mrb[42].mxu0 %v15215_v26  ;;  %5140 = vmatmul.mubr.f32.gmra.mrb[42].mxu1 %v15215_v26  ;;  %v10100_v5 = vpack.c.bf16 %v4792_v44, %v4784_v56  ;;  %v4857_v39 = vld [vmem:[#allocation8 + $0x6f8] sm:$0xff]  ;;  %v4848_v56 = vld [vmem:[#allocation8 + $0x6b0] sm:$0xff] }
 0x8ff   :  { %10021 = vmatpush1.bf16.msra.mxu0 %v10020_v6  ;;  %10085 = vmatpush1.bf16.msra.mxu1 %v10084_v17  ;;  %v4809_v6 = vld [vmem:[#allocation8 + $0x578] sm:$0xff]  ;;  %v10036_v17 = vpack.c.bf16 %v4790_v57, %v4782_v35  ;;  %v4846_v35 = vld [vmem:[#allocation8 + $0x6a0] sm:$0xff]  ;;  %v4856_v44 = vld [vmem:[#allocation8 + $0x6f0] sm:$0xff] }
 0x900   :  { %5032 = vmatprep.mubr.f32.mxu0 %v15216_v2  ;;  %5145 = vmatprep.mubr.f32.mxu1 %v15216_v2  ;;  %v4854_v57 = vld [vmem:[#allocation8 + $0x6e0] sm:$0xff]  ;;  %v5459_v58 = vld [vmem:[#allocation9 + $0x38] sm:$0xff] }
 0x901   :  { %10023 = vmatprep.subr.bf16.mxu0 %v10022_v8  ;;  %10087 = vmatprep.subr.bf16.mxu1 %v10086_v46  ;;  %v4800_v8 = vld [vmem:[#allocation8 + $0x530] sm:$0xff] }
 0x902   :  { %5033 = vmatmul.mubr.f32.gmra.mrb[44].mxu0 %v13764_v21  ;;  %5146 = vmatmul.mubr.f32.gmra.mrb[44].mxu1 %v13764_v21  ;;  %v4808_v46 = vld [vmem:[#allocation8 + $0x570] sm:$0xff] }
 0x903   :  { %10025 = vmatpush1.bf16.msra.mxu0 %v10024_v10  ;;  %10089 = vmatpush1.bf16.msra.mxu1 %v10088_v13  ;;  %v10040_v10 = vpack.c.bf16 %v4806_v15, %v4798_v61  ;;  %v10104_v13 = vpack.c.bf16 %v4808_v46, %v4800_v8  ;;  %v4862_v61 = vld [vmem:[#allocation8 + $0x720] sm:$0xff]  ;;  %v4864_v8 = vld [vmem:[#allocation8 + $0x730] sm:$0xff] }
 0x904   :  { %5038 = vmatprep.mubr.f32.mxu0 %v15217_v37  ;;  %5151 = vmatprep.mubr.f32.mxu1 %v15217_v37  ;;  %v4870_v15 = vld [vmem:[#allocation8 + $0x760] sm:$0xff]  ;;  %v4872_v46 = vld [vmem:[#allocation8 + $0x770] sm:$0xff] }
 0x905   :  { %10027 = vmatprep.subr.bf16.mxu0 %v10026_v32  ;;  %10091 = vmatprep.subr.bf16.mxu1 %v10090_v19  ;;  %v4816_v32 = vld [vmem:[#allocation8 + $0x5b0] sm:$0xff] }
 0x906   :  { %5039 = vmatmul.mubr.f32.gmra.mrb[46].mxu0 %v13818_v54  ;;  %5152 = vmatmul.mubr.f32.gmra.mrb[46].mxu1 %v13818_v54  ;;  %v4824_v19 = vld [vmem:[#allocation8 + $0x5f0] sm:$0xff] }
 0x907   :  { %10029 = vmatpush1.bf16.msra.mxu0 %v10028_v23  ;;  %10093 = vmatpush1.bf16.msra.mxu1 %v10092_v18  ;;  %v10044_v23 = vpack.c.bf16 %v4822_v29, %v4814_v11  ;;  %v10108_v18 = vpack.c.bf16 %v4824_v19, %v4816_v32  ;;  %v4878_v11 = vld [vmem:[#allocation8 + $0x7a0] sm:$0xff]  ;;  %v4880_v32 = vld [vmem:[#allocation8 + $0x7b0] sm:$0xff] }
 0x908   :  { %5222 = vmatprep.mubr.f32.mxu0 %v13821_v60  ;;  %5335 = vmatprep.mubr.f32.mxu1 %v13821_v60  ;;  %v10102_v60 = vpack.c.bf16 %v4809_v6, %v4801_v50  ;;  %v4865_v50 = vld [vmem:[#allocation8 + $0x738] sm:$0xff]  ;;  %v4886_v29 = vld [vmem:[#allocation8 + $0x7e0] sm:$0xff]  ;;  %v4888_v19 = vld [vmem:[#allocation8 + $0x7f0] sm:$0xff] }
 0x909   :  { %10031 = vmatprep.subr.bf16.mxu0 %v10030_v42  ;;  %10095 = vmatprep.subr.bf16.mxu1 %v10094_v7  ;;  %v4840_v42 = vld [vmem:[#allocation8 + $0x670] sm:$0xff]  ;;  %v4847_v7 = vld [vmem:[#allocation8 + $0x6a8] sm:$0xff]  ;;  %v4873_v6 = vld [vmem:[#allocation8 + $0x778] sm:$0xff] }
 0x90b   :  { %10033 = vmatpush1.bf16.msra.mxu0 %v10032_v49  ;;  %10097 = vmatpush1.bf16.msra.mxu1 %v10096_v27  ;;  %v10048_v49 = vpack.c.bf16 %v4838_v9, %v4830_v14  ;;  %v10112_v27 = vpack.c.bf16 %v4840_v42, %v4832_v16  ;;  %v13857_v14 = vpack.c.bf16 %v5457_v53, %v5453_v33  ;;  %v5454_v16 = vld [vmem:[#allocation9 + $0x10] sm:$0xff] }
 0x90c   :  { %10035 = vmatprep.subr.bf16.mxu0 %v10034_v3  ;;  %10099 = vmatprep.subr.bf16.mxu1 %v10098_v40  ;;  %v10050_v3 = vpack.c.bf16 %v4855_v24, %v4847_v7  ;;  %v10114_v40 = vpack.c.bf16 %v4857_v39, %v4849_v0  ;;  %v13859_v9 = vpack.c.bf16 %v5459_v58, %v5455_v51  ;;  %v5458_v42 = vld [vmem:[#allocation9 + $0x30] sm:$0xff]  ;;  %v5461_v7 = vld [vmem:[#allocation9 + $0x48] sm:$0xff]  ;;  %v5463_v0 = vld [vmem:[#allocation9 + $0x58] sm:$0xff] }
 0x90d   :  { %v5465_v24 = vld [vmem:[#allocation9 + $0x68] sm:$0xff]  ;;  %v5467_v39 = vld [vmem:[#allocation9 + $0x78] sm:$0xff]  ;;  %v5484_v51 = vld [vmem:[#allocation9 + $0x100] sm:$0xff] }
 0x90e   :  { %v5488_v58 = vld [vmem:[#allocation9 + $0x120] sm:$0xff] }
 0x90f   :  { %10037 = vmatpush1.bf16.msra.mxu0 %v10036_v17  ;;  %10101 = vmatpush1.bf16.msra.mxu1 %v10100_v5  ;;  %v10052_v17 = vpack.c.bf16 %v4854_v57, %v4846_v35  ;;  %v10116_v5 = vpack.c.bf16 %v4856_v44, %v4848_v56  ;;  %v5460_v35 = vld [vmem:[#allocation9 + $0x40] sm:$0xff]  ;;  %v5462_v56 = vld [vmem:[#allocation9 + $0x50] sm:$0xff] }
 0x910   :  { %10039 = vmatprep.subr.bf16.mxu0 %v10038_v12  ;;  %10103 = vmatprep.subr.bf16.mxu1 %v10102_v60  ;;  %v10054_v12 = vpack.c.bf16 %v4871_v34, %v4863_v43  ;;  %v10118_v60 = vpack.c.bf16 %v4873_v6, %v4865_v50  ;;  %v5464_v57 = vld [vmem:[#allocation9 + $0x60] sm:$0xff]  ;;  %v5466_v44 = vld [vmem:[#allocation9 + $0x70] sm:$0xff]  ;;  %v5469_v43 = vld [vmem:[#allocation9 + $0x88] sm:$0xff] }
 0x911   :  { %v5473_v34 = vld [vmem:[#allocation9 + $0xa8] sm:$0xff]  ;;  %v5471_v50 = vld [vmem:[#allocation9 + $0x98] sm:$0xff] }
 0x912   :  { %v5475_v6 = vld [vmem:[#allocation9 + $0xb8] sm:$0xff] }
 0x913   :  { %10041 = vmatpush1.bf16.msra.mxu0 %v10040_v10  ;;  %10105 = vmatpush1.bf16.msra.mxu1 %v10104_v13  ;;  %v10056_v10 = vpack.c.bf16 %v4870_v15, %v4862_v61  ;;  %v10120_v13 = vpack.c.bf16 %v4872_v46, %v4864_v8  ;;  %v5468_v61 = vld [vmem:[#allocation9 + $0x80] sm:$0xff]  ;;  %v5477_v8 = vld [vmem:[#allocation9 + $0xc8] sm:$0xff] }
 0x914   :  { %10043 = vmatprep.subr.bf16.mxu0 %v10042_v36  ;;  %10107 = vmatprep.subr.bf16.mxu1 %v10106_v25  ;;  %v10058_v36 = vpack.c.bf16 %v4887_v41, %v4879_v20  ;;  %v10122_v25 = vpack.c.bf16 %v4889_v52, %v4881_v22  ;;  %v5472_v15 = vld [vmem:[#allocation9 + $0xa0] sm:$0xff]  ;;  %v5481_v46 = vld [vmem:[#allocation9 + $0xe8] sm:$0xff]  ;;  %v5479_v20 = vld [vmem:[#allocation9 + $0xd8] sm:$0xff] }
 0x915   :  { %v5483_v41 = vld [vmem:[#allocation9 + $0xf8] sm:$0xff]  ;;  %v13893_v22 = vpack.c.bf16 %v5472_v15, %v5468_v61  ;;  %v5500_v61 = vld [vmem:[#allocation9 + $0x180] sm:$0xff] }
 0x916   :  { %v5504_v15 = vld [vmem:[#allocation9 + $0x1a0] sm:$0xff] }
 0x917   :  { %10045 = vmatpush1.bf16.msra.mxu0 %v10044_v23  ;;  %10109 = vmatpush1.bf16.msra.mxu1 %v10108_v18  ;;  %v10060_v23 = vpack.c.bf16 %v4886_v29, %v4878_v11  ;;  %v10124_v18 = vpack.c.bf16 %v4888_v19, %v4880_v32  ;;  %15222 = vst [vmem:[#allocation32_spill] sm:$0xff] %v13893_v22  ;;  %v5478_v29 = vld [vmem:[#allocation9 + $0xd0] sm:$0xff]  ;;  %v5487_v32 = vld [vmem:[#allocation9 + $0x118] sm:$0xff] }
 0x918   :  { %10047 = vmatprep.subr.bf16.mxu0 %v10046_v55  ;;  %10111 = vmatprep.subr.bf16.mxu1 %v10110_v38  ;;  %v5452_v55 = vld [vmem:[#allocation9] sm:$0xff]  ;;  %v13901_v11 = vpack.c.bf16 %v5483_v41, %v5479_v20  ;;  %v5491_v19 = vld [vmem:[#allocation9 + $0x138] sm:$0xff] }
 0x919   :  { %v5456_v38 = vld [vmem:[#allocation9 + $0x20] sm:$0xff]  ;;  %v5511_v20 = vld [vmem:[#allocation9 + $0x1d8] sm:$0xff] }
 0x91a   :  { %15225 = vst [vmem:[#allocation26_spill] sm:$0xff] %v13901_v11  ;;  %v5515_v41 = vld [vmem:[#allocation9 + $0x1f8] sm:$0xff] }
 0x91b   :  { %10049 = vmatpush1.bf16.msra.mxu0 %v10048_v49  ;;  %10113 = vmatpush1.bf16.msra.mxu1 %v10112_v27  ;;  %v13863_v49 = vpack.c.bf16 %v5456_v38, %v5452_v55  ;;  %v13865_v27 = vpack.c.bf16 %v5458_v42, %v5454_v16  ;;  %v5493_v55 = vld [vmem:[#allocation9 + $0x148] sm:$0xff]  ;;  %v5495_v16 = vld [vmem:[#allocation9 + $0x158] sm:$0xff] }
 0x91c   :  { %10051 = vmatprep.subr.bf16.mxu0 %v10050_v3  ;;  %10115 = vmatprep.subr.bf16.mxu1 %v10114_v40  ;;  %v13867_v3 = vpack.c.bf16 %v5465_v24, %v5461_v7  ;;  %v13869_v40 = vpack.c.bf16 %v5467_v39, %v5463_v0  ;;  %v5497_v38 = vld [vmem:[#allocation9 + $0x168] sm:$0xff]  ;;  %v5499_v42 = vld [vmem:[#allocation9 + $0x178] sm:$0xff]  ;;  %v13925_v7 = vpack.c.bf16 %v5488_v58, %v5484_v51  ;;  %v5492_v0 = vld [vmem:[#allocation9 + $0x140] sm:$0xff] }
 0x91d   :  { %v5496_v39 = vld [vmem:[#allocation9 + $0x160] sm:$0xff]  ;;  %v5669_v51 = vld [vmem:[#allocation11 + $0x18] sm:$0xff] }
 0x91e   :  { %15230 = vst [vmem:[#allocation40_spill] sm:$0xff] %v13925_v7  ;;  %v5673_v58 = vld [vmem:[#allocation11 + $0x38] sm:$0xff] }
 0x91f   :  { %10053 = vmatpush1.bf16.msra.mxu0 %v10052_v17  ;;  %10117 = vmatpush1.bf16.msra.mxu1 %v10116_v5  ;;  %v13877_v17 = vpack.c.bf16 %v5464_v57, %v5460_v35  ;;  %v13879_v5 = vpack.c.bf16 %v5466_v44, %v5462_v56  ;;  %v13933_v35 = vpack.c.bf16 %v5499_v42, %v5495_v16  ;;  %v5494_v57 = vld [vmem:[#allocation9 + $0x150] sm:$0xff]  ;;  %v5501_v56 = vld [vmem:[#allocation9 + $0x188] sm:$0xff] }
 0x920   :  { %10055 = vmatprep.subr.bf16.mxu0 %v10054_v12  ;;  %10119 = vmatprep.subr.bf16.mxu1 %v10118_v60  ;;  %v13885_v12 = vpack.c.bf16 %v5475_v6, %v5471_v50  ;;  %v5470_v60 = vld [vmem:[#allocation9 + $0x90] sm:$0xff]  ;;  %v5505_v44 = vld [vmem:[#allocation9 + $0x1a8] sm:$0xff]  ;;  %v13941_v50 = vpack.c.bf16 %v5496_v39, %v5492_v0  ;;  %v13981_v16 = vpack.c.bf16 %v5673_v58, %v5669_v51 }
 0x921   :  { %15218 = vst [vmem:[#allocation29_spill] sm:$0xff] %v13877_v17  ;;  %15219 = vst [vmem:[#allocation30_spill] sm:$0xff] %v13879_v5  ;;  %v5668_v42 = vld [vmem:[#allocation11 + $0x10] sm:$0xff]  ;;  %v5675_v0 = vld [vmem:[#allocation11 + $0x48] sm:$0xff] }
 0x922   :  { %15221 = vst [vmem:[#allocation24_spill] sm:$0xff] %v13885_v12  ;;  %15233 = vst [vmem:[#allocation44_spill] sm:$0xff] %v13933_v35  ;;  %v5679_v39 = vld [vmem:[#allocation11 + $0x68] sm:$0xff]  ;;  %v5688_v51 = vld [vmem:[#allocation11 + $0xb0] sm:$0xff] }
 0x923   :  { %10057 = vmatpush1.bf16.msra.mxu0 %v10056_v10  ;;  %10121 = vmatpush1.bf16.msra.mxu1 %v10120_v13  ;;  %v5476_v10 = vld [vmem:[#allocation9 + $0xc0] sm:$0xff]  ;;  %15234 = vst [vmem:[#allocation45_spill] sm:$0xff] %v13941_v50  ;;  %15245 = vst [vmem:[#allocation21_spill] sm:$0xff] %v13981_v16  ;;  %v5691_v58 = vld [vmem:[#allocation11 + $0xc8] sm:$0xff] }
 0x924   :  { %10059 = vmatprep.subr.bf16.mxu0 %v10058_v36  ;;  %10123 = vmatprep.subr.bf16.mxu1 %v10122_v25  ;;  %v5480_v13 = vld [vmem:[#allocation9 + $0xe0] sm:$0xff]  ;;  %v5485_v36 = vld [vmem:[#allocation9 + $0x108] sm:$0xff] }
 0x925   :  { %v5489_v25 = vld [vmem:[#allocation9 + $0x128] sm:$0xff]  ;;  %v13909_v33 = vpack.c.bf16 %v5480_v13, %v5476_v10  ;;  %v13957_v10 = vpack.c.bf16 %v5504_v15, %v5500_v61  ;;  %v5676_v15 = vld [vmem:[#allocation11 + $0x50] sm:$0xff] }
 0x927   :  { %10061 = vmatpush1.bf16.msra.mxu0 %v10060_v23  ;;  %10125 = vmatpush1.bf16.msra.mxu1 %v10124_v18  ;;  %15226 = vst [vmem:[#allocation27_spill] sm:$0xff] %v13909_v33  ;;  %v13917_v23 = vpack.c.bf16 %v5491_v19, %v5487_v32  ;;  %v5486_v18 = vld [vmem:[#allocation9 + $0x110] sm:$0xff]  ;;  %15238 = vst [vmem:[#allocation50_spill] sm:$0xff] %v13957_v10  ;;  %v5667_v32 = vld [vmem:[#allocation11 + $0x8] sm:$0xff] }
 0x928   :  { %10127 = vmatprep.subr.bf16.mxu0 %v13857_v14  ;;  %10159 = vmatprep.subr.bf16.mxu1 %v13859_v9  ;;  %v5671_v19 = vld [vmem:[#allocation11 + $0x28] sm:$0xff] }
 0x929   :  { %15229 = vst [vmem:[#allocation39_spill] sm:$0xff] %v13917_v23 }
 0x92a   :  { %5223 = vmatmul.mubr.f32.vlgmr.msra.gmra.mrb[48].mxu0 %v15207_v31  ;;  %5336 = vmatmul.mubr.f32.vlgmr.msra.gmra.mrb[48].mxu1 %v15207_v31  ;;  %v13883_v31 = vpack.c.bf16 %v5473_v34, %v5469_v43  ;;  %v5503_v43 = vld [vmem:[#allocation9 + $0x198] sm:$0xff] }
 0x92b   :  { %5228 = vmatprep.mubr.f32.mxu0 %v13805_v4  ;;  %5341 = vmatprep.mubr.f32.mxu1 %v13805_v4  ;;  %v5474_v4 = vld [vmem:[#allocation9 + $0xb0] sm:$0xff]  ;;  %v5507_v34 = vld [vmem:[#allocation9 + $0x1b8] sm:$0xff] }
 0x92c   :  { %10129 = vmatpush1.bf16.msra.mxu0 %v13863_v49  ;;  %10161 = vmatpush1.bf16.msra.mxu1 %v13865_v27  ;;  %15220 = vst [vmem:[#allocation31_spill] sm:$0xff] %v13883_v31  ;;  %v13895_v52 = vpack.c.bf16 %v5474_v4, %v5470_v60  ;;  %v13949_v60 = vpack.c.bf16 %v5507_v34, %v5503_v43  ;;  %v5502_v4 = vld [vmem:[#allocation9 + $0x190] sm:$0xff]  ;;  %v5674_v43 = vld [vmem:[#allocation11 + $0x40] sm:$0xff] }
 0x92d   :  { %10131 = vmatprep.subr.bf16.mxu0 %v13867_v3  ;;  %10163 = vmatprep.subr.bf16.mxu1 %v13869_v40  ;;  %v5678_v34 = vld [vmem:[#allocation11 + $0x60] sm:$0xff] }
 0x92e   :  { %5229 = vmatmul.mubr.f32.gmra.mrb[50].mxu0 %v15208_v30  ;;  %5342 = vmatmul.mubr.f32.gmra.mrb[50].mxu1 %v15208_v30  ;;  %15223 = vst [vmem:[#allocation33_spill] sm:$0xff] %v13895_v52  ;;  %v13899_v30 = vpack.c.bf16 %v5481_v46, %v5477_v8  ;;  %15237 = vst [vmem:[#allocation49_spill] sm:$0xff] %v13949_v60  ;;  %v5509_v8 = vld [vmem:[#allocation9 + $0x1c8] sm:$0xff] }
 0x92f   :  { %5234 = vmatprep.mubr.f32.mxu0 %v13713_v45  ;;  %5347 = vmatprep.mubr.f32.mxu1 %v13713_v45  ;;  %v5482_v45 = vld [vmem:[#allocation9 + $0xf0] sm:$0xff]  ;;  %v5513_v46 = vld [vmem:[#allocation9 + $0x1e8] sm:$0xff] }
 0x930   :  { %10133 = vmatpush1.bf16.msra.mxu0 %v13877_v17  ;;  %10165 = vmatpush1.bf16.msra.mxu1 %v13879_v5  ;;  %15224 = vst [vmem:[#allocation34_spill] sm:$0xff] %v13899_v30  ;;  %v13911_v53 = vpack.c.bf16 %v5482_v45, %v5478_v29  ;;  %v5508_v29 = vld [vmem:[#allocation9 + $0x1c0] sm:$0xff] }
 0x931   :  { %10135 = vmatprep.subr.bf16.mxu0 %v13883_v31  ;;  %10167 = vmatprep.subr.bf16.mxu1 %v13885_v12  ;;  %v5512_v45 = vld [vmem:[#allocation9 + $0x1e0] sm:$0xff] }
 0x932   :  { %5235 = vmatmul.mubr.f32.gmra.mrb[52].mxu0 %v15209_v1  ;;  %5348 = vmatmul.mubr.f32.gmra.mrb[52].mxu1 %v15209_v1  ;;  %15227 = vst [vmem:[#allocation37_spill] sm:$0xff] %v13911_v53  ;;  %v13915_v1 = vpack.c.bf16 %v5489_v25, %v5485_v36  ;;  %v13965_v36 = vpack.c.bf16 %v5515_v41, %v5511_v20  ;;  %v5510_v25 = vld [vmem:[#allocation9 + $0x1d0] sm:$0xff]  ;;  %v5689_v20 = vld [vmem:[#allocation11 + $0xb8] sm:$0xff] }
 0x933   :  { %5240 = vmatprep.mubr.f32.mxu0 %v15210_v62  ;;  %5353 = vmatprep.mubr.f32.mxu1 %v15210_v62  ;;  %v5490_v62 = vld [vmem:[#allocation9 + $0x130] sm:$0xff]  ;;  %v14003_v41 = vpack.c.bf16 %v5678_v34, %v5674_v43 }
 0x934   :  { %10137 = vmatpush1.bf16.msra.mxu0 %v13893_v22  ;;  %10169 = vmatpush1.bf16.msra.mxu1 %v13895_v52  ;;  %15228 = vst [vmem:[#allocation38_spill] sm:$0xff] %v13915_v1  ;;  %v13927_v24 = vpack.c.bf16 %v5490_v62, %v5486_v18  ;;  %15241 = vst [vmem:[#allocation19_spill] sm:$0xff] %v13965_v36  ;;  %v13973_v18 = vpack.c.bf16 %v5512_v45, %v5508_v29  ;;  %v5682_v45 = vld [vmem:[#allocation11 + $0x80] sm:$0xff]  ;;  %v5692_v34 = vld [vmem:[#allocation11 + $0xd0] sm:$0xff] }
 0x935   :  { %10139 = vmatprep.subr.bf16.mxu0 %v13899_v30  ;;  %10171 = vmatprep.subr.bf16.mxu1 %v13901_v11 }
 0x936   :  { %5241 = vmatmul.mubr.f32.gmra.mrb[54].mxu0 %v15211_v28  ;;  %5354 = vmatmul.mubr.f32.gmra.mrb[54].mxu1 %v15211_v28  ;;  %15231 = vst [vmem:[#allocation41_spill] sm:$0xff] %v13927_v24  ;;  %v13931_v28 = vpack.c.bf16 %v5497_v38, %v5493_v55  ;;  %15242 = vst [vmem:[#allocation23_spill] sm:$0xff] %v13973_v18  ;;  %v5666_v55 = vld [vmem:[#allocation11] sm:$0xff] }
 0x937   :  { %5246 = vmatprep.mubr.f32.mxu0 %v15212_v48  ;;  %5359 = vmatprep.mubr.f32.mxu1 %v15212_v48  ;;  %v5498_v48 = vld [vmem:[#allocation9 + $0x170] sm:$0xff]  ;;  %v5670_v38 = vld [vmem:[#allocation11 + $0x20] sm:$0xff] }
 0x938   :  { %10141 = vmatpush1.bf16.msra.mxu0 %v13909_v33  ;;  %10173 = vmatpush1.bf16.msra.mxu1 %v13911_v53  ;;  %15232 = vst [vmem:[#allocation42_spill] sm:$0xff] %v13931_v28  ;;  %v13943_v6 = vpack.c.bf16 %v5498_v48, %v5494_v57  ;;  %v5677_v57 = vld [vmem:[#allocation11 + $0x58] sm:$0xff] }
 0x939   :  { %10143 = vmatprep.subr.bf16.mxu0 %v13915_v1  ;;  %10175 = vmatprep.subr.bf16.mxu1 %v13917_v23  ;;  %v5681_v48 = vld [vmem:[#allocation11 + $0x78] sm:$0xff] }
 0x93a   :  { %5247 = vmatmul.mubr.f32.gmra.mrb[56].mxu0 %v15213_v59  ;;  %5360 = vmatmul.mubr.f32.gmra.mrb[56].mxu1 %v15213_v59  ;;  %15235 = vst [vmem:[#allocation46_spill] sm:$0xff] %v13943_v6  ;;  %v13947_v59 = vpack.c.bf16 %v5505_v44, %v5501_v56  ;;  %v13989_v56 = vpack.c.bf16 %v5670_v38, %v5666_v55  ;;  %v5695_v55 = vld [vmem:[#allocation11 + $0xe8] sm:$0xff]  ;;  %v5693_v38 = vld [vmem:[#allocation11 + $0xd8] sm:$0xff] }
 0x93b   :  { %5252 = vmatprep.mubr.f32.mxu0 %v15214_v47  ;;  %5365 = vmatprep.mubr.f32.mxu1 %v15214_v47  ;;  %v5506_v47 = vld [vmem:[#allocation9 + $0x1b0] sm:$0xff]  ;;  %v13997_v61 = vpack.c.bf16 %v5681_v48, %v5677_v57  ;;  %v5694_v57 = vld [vmem:[#allocation11 + $0xe0] sm:$0xff]  ;;  %v14023_v48 = vpack.c.bf16 %v5695_v55, %v5691_v58 }
 0x93c   :  { %10145 = vmatpush1.bf16.msra.mxu0 %v13925_v7  ;;  %10177 = vmatpush1.bf16.msra.mxu1 %v13927_v24  ;;  %15236 = vst [vmem:[#allocation48_spill] sm:$0xff] %v13947_v59  ;;  %v13959_v13 = vpack.c.bf16 %v5506_v47, %v5502_v4  ;;  %v5680_v4 = vld [vmem:[#allocation11 + $0x70] sm:$0xff]  ;;  %v5683_v47 = vld [vmem:[#allocation11 + $0x88] sm:$0xff] }
 0x93d   :  { %10147 = vmatprep.subr.bf16.mxu0 %v13931_v28  ;;  %10179 = vmatprep.subr.bf16.mxu1 %v13933_v35  ;;  %v14005_v29 = vpack.c.bf16 %v5680_v4, %v5676_v15  ;;  %15249 = vst [vmem:[#allocation18_spill] sm:$0xff] %v14023_v48  ;;  %v5696_v15 = vld [vmem:[#allocation11 + $0xf0] sm:$0xff]  ;;  %v5699_v4 = vld [vmem:[#allocation11 + $0x108] sm:$0xff] }
 0x93e   :  { %5253 = vmatmul.mubr.f32.gmra.mrb[58].mxu0 %v15215_v26  ;;  %5366 = vmatmul.mubr.f32.gmra.mrb[58].mxu1 %v15215_v26  ;;  %15239 = vst [vmem:[#allocation35_spill] sm:$0xff] %v13959_v13  ;;  %v13963_v26 = vpack.c.bf16 %v5513_v46, %v5509_v8  ;;  %v5687_v8 = vld [vmem:[#allocation11 + $0xa8] sm:$0xff]  ;;  %v5685_v46 = vld [vmem:[#allocation11 + $0x98] sm:$0xff]  ;;  %v5700_v55 = vld [vmem:[#allocation11 + $0x110] sm:$0xff] }
 0x93f   :  { %5258 = vmatprep.mubr.f32.mxu0 %v15216_v2  ;;  %5371 = vmatprep.mubr.f32.mxu1 %v15216_v2  ;;  %v5514_v2 = vld [vmem:[#allocation9 + $0x1f0] sm:$0xff] }
 0x940   :  { %10149 = vmatpush1.bf16.msra.mxu0 %v13941_v50  ;;  %10181 = vmatpush1.bf16.msra.mxu1 %v13943_v6  ;;  %15240 = vst [vmem:[#allocation22_spill] sm:$0xff] %v13963_v26  ;;  %v13975_v62 = vpack.c.bf16 %v5514_v2, %v5510_v25  ;;  %v5686_v25 = vld [vmem:[#allocation11 + $0xa0] sm:$0xff]  ;;  %v14009_v2 = vpack.c.bf16 %v5687_v8, %v5683_v47  ;;  %v5703_v47 = vld [vmem:[#allocation11 + $0x128] sm:$0xff]  ;;  %v5701_v8 = vld [vmem:[#allocation11 + $0x118] sm:$0xff] }
 0x941   :  { %10151 = vmatprep.subr.bf16.mxu0 %v13947_v59  ;;  %10183 = vmatprep.subr.bf16.mxu1 %v13949_v60 }
 0x942   :  { %5259 = vmatmul.mubr.f32.gmra.mrb[60].mxu0 %v13764_v21  ;;  %5372 = vmatmul.mubr.f32.gmra.mrb[60].mxu1 %v13764_v21  ;;  %15243 = vst [vmem:[#allocation25_spill] sm:$0xff] %v13975_v62  ;;  %v13979_v21 = vpack.c.bf16 %v5671_v19, %v5667_v32  ;;  %v14011_v32 = vpack.c.bf16 %v5689_v20, %v5685_v46  ;;  %v5684_v19 = vld [vmem:[#allocation11 + $0x90] sm:$0xff]  ;;  %v5705_v46 = vld [vmem:[#allocation11 + $0x138] sm:$0xff] }
 0x943   :  { %5264 = vmatprep.mubr.f32.mxu0 %v15217_v37  ;;  %5377 = vmatprep.mubr.f32.mxu1 %v15217_v37  ;;  %v5672_v37 = vld [vmem:[#allocation11 + $0x30] sm:$0xff]  ;;  %v14037_v58 = vpack.c.bf16 %v5705_v46, %v5701_v8 }
 0x944   :  { %10153 = vmatpush1.bf16.msra.mxu0 %v13957_v10  ;;  %10185 = vmatpush1.bf16.msra.mxu1 %v13959_v13  ;;  %15244 = vst [vmem:[#allocation47_spill] sm:$0xff] %v13979_v21  ;;  %v13991_v44 = vpack.c.bf16 %v5672_v37, %v5668_v42  ;;  %15246 = vst [vmem:[#allocation20_spill] sm:$0xff] %v14011_v32  ;;  %v5697_v42 = vld [vmem:[#allocation11 + $0xf8] sm:$0xff]  ;;  %v14017_v37 = vpack.c.bf16 %v5686_v25, %v5682_v45  ;;  %v5698_v25 = vld [vmem:[#allocation11 + $0x100] sm:$0xff] }
 0x945   :  { %10155 = vmatprep.subr.bf16.mxu0 %v13963_v26  ;;  %10187 = vmatprep.subr.bf16.mxu1 %v13965_v36  ;;  %v14025_v43 = vpack.c.bf16 %v5697_v42, %v5693_v38  ;;  %v14031_v45 = vpack.c.bf16 %v5696_v15, %v5692_v34  ;;  %15254 = vst [vmem:[#allocation55_spill] sm:$0xff] %v14037_v58  ;;  %v5704_v38 = vld [vmem:[#allocation11 + $0x130] sm:$0xff]  ;;  %v5707_v42 = vld [vmem:[#allocation11 + $0x148] sm:$0xff]  ;;  %v5706_v34 = vld [vmem:[#allocation11 + $0x140] sm:$0xff] }
 0x946   :  { %5265 = vmatmul.mubr.f32.gmra.mrb[62].mxu0 %v13818_v54  ;;  %5378 = vmatmul.mubr.f32.gmra.mrb[62].mxu1 %v13818_v54  ;;  %v13995_v54 = vpack.c.bf16 %v5679_v39, %v5675_v0  ;;  %15247 = vst [vmem:[#allocation36_spill] sm:$0xff] %v14017_v37  ;;  %v14019_v0 = vpack.c.bf16 %v5688_v51, %v5684_v19  ;;  %v5690_v39 = vld [vmem:[#allocation11 + $0xc0] sm:$0xff]  ;;  %v5708_v8 = vld [vmem:[#allocation11 + $0x150] sm:$0xff] }
 0x947   :  { %5580 = vmatprep.mubr.f32.mxu0 %v15070_v63  ;;  %5651 = vmatprep.mubr.f32.mxu1 %v15070_v63  ;;  %15250 = vst [vmem:[#allocation51_spill] sm:$0xff] %v14025_v43  ;;  %v14029_v20 = vpack.c.bf16 %v5694_v57, %v5690_v39  ;;  %15252 = vst [vmem:[#allocation53_spill] sm:$0xff] %v14031_v45  ;;  %v5702_v19 = vld [vmem:[#allocation11 + $0x120] sm:$0xff]  ;;  %v14035_v51 = vpack.c.bf16 %v5703_v47, %v5699_v4  ;;  %v5712_v46 = vld [vmem:[#allocation11 + $0x170] sm:$0xff] }
 0x948   :  { %10157 = vmatpush1.bf16.msra.mxu0 %v13973_v18  ;;  %10189 = vmatpush1.bf16.msra.mxu1 %v13975_v62  ;;  %15248 = vst [vmem:[#allocation43_spill] sm:$0xff] %v14019_v0  ;;  %v14041_v39 = vpack.c.bf16 %v5702_v19, %v5698_v25  ;;  %v14043_v57 = vpack.c.bf16 %v5704_v38, %v5700_v55  ;;  %v5710_v15 = vld [vmem:[#allocation11 + $0x160] sm:$0xff] }
 0x949   :  { %10191 = vmatprep.subr.bf16.mxu0 %v13979_v21  ;;  %10223 = vmatprep.subr.bf16.mxu1 %v13981_v16  ;;  %15251 = vst [vmem:[#allocation52_spill] sm:$0xff] %v14029_v20  ;;  %15253 = vst [vmem:[#allocation54_spill] sm:$0xff] %v14035_v51  ;;  %v14053_v25 = vpack.c.bf16 %v5710_v15, %v5706_v34  ;;  %v14055_v19 = vpack.c.bf16 %v5712_v46, %v5708_v8  ;;  %v5714_v55 = vld [vmem:[#allocation11 + $0x180] sm:$0xff]  ;;  %v5728_v46 = vld [vmem:[#allocation11 + $0x1f0] sm:$0xff] }
 0x94a   :  { %15255 = vst [vmem:[#allocation56_spill] sm:$0xff] %v14041_v39  ;;  %15256 = vst [vmem:[#allocation57_spill] sm:$0xff] %v14043_v57  ;;  %v5718_v38 = vld [vmem:[#allocation11 + $0x1a0] sm:$0xff] }
 0x94b   :  { %5581 = vmatmul.mubr.f32.vlgmr.msra.gmra.mrb[32].mxu0 %v15070_v63  ;;  %5652 = vmatmul.mubr.f32.vlgmr.msra.gmra.mrb[32].mxu1 %v15070_v63  ;;  %v14065_v34 = vpack.c.bf16 %v5718_v38, %v5714_v55  ;;  %v5722_v8 = vld [vmem:[#allocation11 + $0x1c0] sm:$0xff] }
 0x94c   :  { %10193 = vmatpush1.bf16.msra.mxu0 %v13989_v56  ;;  %10225 = vmatpush1.bf16.msra.mxu1 %v13991_v44 }
 0x94d   :  { %10195 = vmatprep.subr.bf16.mxu0 %v13995_v54  ;;  %10227 = vmatprep.subr.bf16.mxu1 %v13997_v61 }
 0x94e   :  { %5794 = vmatprep.mubr.f32.mxu0 %v15070_v63  ;;  %5865 = vmatprep.mubr.f32.mxu1 %v15070_v63 }
 0x950   :  { %10197 = vmatpush1.bf16.msra.mxu0 %v14003_v41  ;;  %10229 = vmatpush1.bf16.msra.mxu1 %v14005_v29 }
 0x951   :  { %10199 = vmatprep.subr.bf16.mxu0 %v14009_v2  ;;  %10231 = vmatprep.subr.bf16.mxu1 %v14011_v32  ;;  %v5709_v32 = vld [vmem:[#allocation11 + $0x158] sm:$0xff] }
 0x954   :  { %10201 = vmatpush1.bf16.msra.mxu0 %v14017_v37  ;;  %10233 = vmatpush1.bf16.msra.mxu1 %v14019_v0  ;;  %v5711_v37 = vld [vmem:[#allocation11 + $0x168] sm:$0xff]  ;;  %v5713_v0 = vld [vmem:[#allocation11 + $0x178] sm:$0xff] }
 0x955   :  { %10203 = vmatprep.subr.bf16.mxu0 %v14023_v48  ;;  %10235 = vmatprep.subr.bf16.mxu1 %v14025_v43  ;;  %v14047_v4 = vpack.c.bf16 %v5711_v37, %v5707_v42  ;;  %v14049_v47 = vpack.c.bf16 %v5713_v0, %v5709_v32  ;;  %v5715_v43 = vld [vmem:[#allocation11 + $0x188] sm:$0xff]  ;;  %v5717_v48 = vld [vmem:[#allocation11 + $0x198] sm:$0xff]  ;;  %v5716_v0 = vld [vmem:[#allocation11 + $0x190] sm:$0xff] }
 0x956   :  { %v5720_v42 = vld [vmem:[#allocation11 + $0x1b0] sm:$0xff] }
 0x957   :  { %v14067_v15 = vpack.c.bf16 %v5720_v42, %v5716_v0 }
 0x958   :  { %10205 = vmatpush1.bf16.msra.mxu0 %v14029_v20  ;;  %10237 = vmatpush1.bf16.msra.mxu1 %v14031_v45  ;;  %v5719_v20 = vld [vmem:[#allocation11 + $0x1a8] sm:$0xff]  ;;  %v5721_v45 = vld [vmem:[#allocation11 + $0x1b8] sm:$0xff] }
 0x959   :  { %10207 = vmatprep.subr.bf16.mxu0 %v14035_v51  ;;  %10239 = vmatprep.subr.bf16.mxu1 %v14037_v58  ;;  %v14059_v32 = vpack.c.bf16 %v5719_v20, %v5715_v43  ;;  %v14061_v37 = vpack.c.bf16 %v5721_v45, %v5717_v48  ;;  %v5723_v58 = vld [vmem:[#allocation11 + $0x1c8] sm:$0xff]  ;;  %v5725_v51 = vld [vmem:[#allocation11 + $0x1d8] sm:$0xff]  ;;  %v5726_v20 = vld [vmem:[#allocation11 + $0x1e0] sm:$0xff] }
 0x95a   :  { %v5724_v45 = vld [vmem:[#allocation11 + $0x1d0] sm:$0xff]  ;;  %v14077_v55 = vpack.c.bf16 %v5726_v20, %v5722_v8 }
 0x95b   :  { %v14079_v38 = vpack.c.bf16 %v5728_v46, %v5724_v45 }
 0x95c   :  { %10209 = vmatpush1.bf16.msra.mxu0 %v14041_v39  ;;  %10241 = vmatpush1.bf16.msra.mxu1 %v14043_v57  ;;  %v5727_v39 = vld [vmem:[#allocation11 + $0x1e8] sm:$0xff]  ;;  %v5729_v57 = vld [vmem:[#allocation11 + $0x1f8] sm:$0xff] }
 0x95d   :  { %10211 = vmatprep.subr.bf16.mxu0 %v14047_v4  ;;  %10243 = vmatprep.subr.bf16.mxu1 %v14049_v47  ;;  %v14071_v48 = vpack.c.bf16 %v5727_v39, %v5723_v58  ;;  %v14073_v43 = vpack.c.bf16 %v5729_v57, %v5725_v51  ;;  %v4890_v51 = vld [vmem:[%s14846_s6] sm:$0xff]  ;;  %v15257_v58 = vld [vmem:[#allocation28_spill] sm:$0xff] }
 0x95e   :  { %v15258_v39 = vsub.s32 0, %v15257_v58  ;;  %v15260_v0 = vsub.s32 1, %v15257_v58 }
 0x960   :  { %10213 = vmatpush1.bf16.msra.mxu0 %v14053_v25  ;;  %10245 = vmatpush1.bf16.msra.mxu1 %v14055_v19  ;;  %v14128_v57 = vrot.slane %v4890_v51, %v15258_v39  ;;  %v14132_v42 = vrot.slane %v4890_v51, %v15260_v0  ;;  %v15264_v0 = vsub.s32 2, %v15257_v58 }
 0x961   :  { %10215 = vmatprep.subr.bf16.mxu0 %v14059_v32  ;;  %10247 = vmatprep.subr.bf16.mxu1 %v14061_v37 }
 0x962   :  { %15259 = vst [vmem:[#allocation28_spill] sm:$0xff] %v14128_v57  ;;  %15261 = vst [vmem:[#allocation58_spill] sm:$0xff] %v14132_v42 }
 0x964   :  { %10217 = vmatpush1.bf16.msra.mxu0 %v14065_v34  ;;  %10249 = vmatpush1.bf16.msra.mxu1 %v14067_v15 }
 0x965   :  { %10219 = vmatprep.subr.bf16.mxu0 %v14071_v48  ;;  %10251 = vmatprep.subr.bf16.mxu1 %v14073_v43 }
 0x968   :  { %10221 = vmatpush1.bf16.msra.mxu0 %v14077_v55  ;;  %10253 = vmatpush1.bf16.msra.mxu1 %v14079_v38 }
 0x969   :  { %10255 = vmatprep.subr.bf16.mxu0 %v13857_v14  ;;  %10287 = vmatprep.subr.bf16.mxu1 %v13859_v9 }
 0x96b   :  { %5795 = vmatmul.mubr.f32.vlgmr.msra.gmra.mrb[62].mxu0 %v15070_v63  ;;  %5866 = vmatmul.mubr.f32.vlgmr.msra.gmra.mrb[62].mxu1 %v15070_v63 }
 0x96c   :  { %10257 = vmatpush1.bf16.msra.mxu0 %v13863_v49  ;;  %10289 = vmatpush1.bf16.msra.mxu1 %v13865_v27 }
 0x96d   :  { %10259 = vmatprep.subr.bf16.mxu0 %v13867_v3  ;;  %10291 = vmatprep.subr.bf16.mxu1 %v13869_v40 }
 0x96e   :  { %5994 = vmatprep.mubr.f32.mxu0 %v15070_v63  ;;  %6065 = vmatprep.mubr.f32.mxu1 %v15070_v63 }
 0x970   :  { %10261 = vmatpush1.bf16.msra.mxu0 %v13877_v17  ;;  %10293 = vmatpush1.bf16.msra.mxu1 %v13879_v5 }
 0x971   :  { %10263 = vmatprep.subr.bf16.mxu0 %v13883_v31  ;;  %10295 = vmatprep.subr.bf16.mxu1 %v13885_v12 }
 0x974   :  { %10265 = vmatpush1.bf16.msra.mxu0 %v13893_v22  ;;  %10297 = vmatpush1.bf16.msra.mxu1 %v13895_v52 }
 0x975   :  { %10267 = vmatprep.subr.bf16.mxu0 %v13899_v30  ;;  %10299 = vmatprep.subr.bf16.mxu1 %v13901_v11 }
 0x978   :  { %10269 = vmatpush1.bf16.msra.mxu0 %v13909_v33  ;;  %10301 = vmatpush1.bf16.msra.mxu1 %v13911_v53 }
 0x979   :  { %10271 = vmatprep.subr.bf16.mxu0 %v13915_v1  ;;  %10303 = vmatprep.subr.bf16.mxu1 %v13917_v23 }
 0x97c   :  { %10273 = vmatpush1.bf16.msra.mxu0 %v13925_v7  ;;  %10305 = vmatpush1.bf16.msra.mxu1 %v13927_v24 }
 0x97d   :  { %10275 = vmatprep.subr.bf16.mxu0 %v13931_v28  ;;  %10307 = vmatprep.subr.bf16.mxu1 %v13933_v35 }
 0x980   :  { %10277 = vmatpush1.bf16.msra.mxu0 %v13941_v50  ;;  %10309 = vmatpush1.bf16.msra.mxu1 %v13943_v6 }
 0x981   :  { %10279 = vmatprep.subr.bf16.mxu0 %v13947_v59  ;;  %10311 = vmatprep.subr.bf16.mxu1 %v13949_v60 }
 0x984   :  { %10281 = vmatpush1.bf16.msra.mxu0 %v13957_v10  ;;  %10313 = vmatpush1.bf16.msra.mxu1 %v13959_v13  ;;  %v14143_v13 = vrot.slane %v4890_v51, %v15264_v0  ;;  %v15266_v0 = vsub.s32 4, %v15257_v58 }
 0x985   :  { %10283 = vmatprep.subr.bf16.mxu0 %v13963_v26  ;;  %10315 = vmatprep.subr.bf16.mxu1 %v13965_v36  ;;  %v15262_v36 = vsub.s32 3, %v15257_v58 }
 0x986   :  { %15265 = vst [vmem:[#allocation60_spill] sm:$0xff] %v14143_v13 }
 0x987   :  { %v14138_v26 = vrot.slane %v4890_v51, %v15262_v36 }
 0x988   :  { %10285 = vmatpush1.bf16.msra.mxu0 %v13973_v18  ;;  %10317 = vmatpush1.bf16.msra.mxu1 %v13975_v62 }
 0x989   :  { %10319 = vmatprep.subr.bf16.mxu0 %v13979_v21  ;;  %10351 = vmatprep.subr.bf16.mxu1 %v13981_v16  ;;  %15263 = vst [vmem:[#allocation59_spill] sm:$0xff] %v14138_v26 }
 0xa1e   :  { %v5582_v8 = vpop.f32.mrb[32].mxu0  ;;  %v5653_v20 = vpop.f32.mrb[32].mxu1 }
 0xa1f   :  { %v11262_v45 = vadd.f32 %v5582_v8, %v14128_v57  ;;  %v5584_v46 = vpop.f32.mrb[33].mxu0  ;;  %v5655_v21 = vpop.f32.mrb[33].mxu1  ;;  %v11278_v8 = vadd.f32 %v5653_v20, %v14143_v13  ;;  %v15268_v20 = vsub.s32 5, %v15257_v58 }
 0xa20   :  { %v11263_v16 = vadd.f32 %v5584_v46, %v14132_v42  ;;  %v11279_v39 = vadd.f32 %v5655_v21, %v14138_v26  ;;  %v14148_v42 = vrot.slane %v4890_v51, %v15266_v0 }
 0xa21   :  { %v8661_v62 = vmul.f32 -1.442695, %v11262_v45  ;;  %v14152_v13 = vrot.slane %v4890_v51, %v15268_v20 }
 0xa22   :  { %v8662_v18 = vmul.f32 -1.442695, %v11263_v16  ;;  %v8663_v10 = vmul.f32 -1.442695, %v11279_v39  ;;  %15267 = vst [vmem:[#allocation61_spill] sm:$0xff] %v14148_v42 }
 0xa23   :  { %11725 = vpow2.f32 %v8661_v62 }
 0xa24   :  { %11727 = vpow2.f32 %v8662_v18 }
 0xa25   :  { %11729 = vpow2.f32 %v8663_v10 }
 0xa26   :  { %11731 = vtanh.f32 %v11278_v8 }
 0xa2d   :  { %v11726_v57 = vpop.eup %11725 }
 0xa2e   :  { %v11728_v60 = vpop.eup %11727  ;;  %v5879_v46 = vadd.f32 1.0, %v11726_v57 }
 0xa2f   :  { %v5885_v16 = vadd.f32 1.0, %v11728_v60  ;;  %v11730_v36 = vpop.eup %11729 }
 0xa30   :  { %11733 = vrcp.f32 %v5879_v46  ;;  %v11732_v62 = vpop.eup %11731  ;;  %v5892_v26 = vadd.f32 1.0, %v11730_v36 }
 0xa31   :  { %11735 = vrcp.f32 %v5885_v16 }
 0xa32   :  { %11737 = vrcp.f32 %v5892_v26  ;;  %v15271_v26 = vsub.s32 6, %v15257_v58 }
 0xa3a   :  { %v11734_v18 = vpop.eup %11733 }
 0xa3b   :  { %v11736_v45 = vpop.eup %11735  ;;  %v5896_v21 = vmul.f32 %v11734_v18, %v11732_v62 }
 0xa3c   :  { %v5895_v39 = vmul.f32 0.0, %v11736_v45  ;;  %v15270_v45 = vsub.s32 7, %v15257_v58  ;;  %v11738_v20 = vpop.eup %11737  ;;  %v15273_v58 = vld [vmem:[#allocation20_spill] sm:$0xff] }
 0xa3e   :  { %v14154_v10 = vadd.f32 %v5896_v21, %v5895_v39  ;;  %v5796_v60 = vpop.f32.mrb[62].mxu0  ;;  %v5867_v57 = vpop.f32.mrb[62].mxu1  ;;  %v14161_v0 = vrot.slane %v4890_v51, %v15270_v45  ;;  %v14166_v39 = vrot.slane %v4890_v51, %v15271_v26  ;;  %v15278_v26 = vld [vmem:[#allocation52_spill] sm:$0xff] }
 0xa3f   :  { %v11308_v8 = vadd.f32 %v5796_v60, %v14148_v42  ;;  %v5798_v46 = vpop.f32.mrb[63].mxu0  ;;  %v5869_v16 = vpop.f32.mrb[63].mxu1 }
 0xa40   :  { %15269 = vst [vmem:[#allocation62_spill] sm:$0xff] %v14154_v10  ;;  %11739 = vtanh.f32 %v14154_v10  ;;  %v11309_v36 = vadd.f32 %v5798_v46, %v14152_v13  ;;  %v11325_v21 = vadd.f32 %v5869_v16, %v14161_v0  ;;  %v11324_v10 = vadd.f32 %v5867_v57, %v14166_v39  ;;  %v15276_v57 = vld [vmem:[#allocation18_spill] sm:$0xff]  ;;  %v15277_v16 = vld [vmem:[#allocation51_spill] sm:$0xff] }
 0xa41   :  { %v8664_v62 = vmul.f32 -1.442695, %v11308_v8 }
 0xa42   :  { %v8665_v18 = vmul.f32 -1.442695, %v11309_v36  ;;  %v8666_v42 = vmul.f32 -1.442695, %v11325_v21 }
 0xa43   :  { %11741 = vpow2.f32 %v8664_v62 }
 0xa44   :  { %11743 = vpow2.f32 %v8665_v18 }
 0xa45   :  { %11745 = vpow2.f32 %v8666_v42  ;;  %v15274_v42 = vld [vmem:[#allocation36_spill] sm:$0xff] }
 0xa46   :  { %11747 = vtanh.f32 %v11324_v10  ;;  %v15275_v10 = vld [vmem:[#allocation43_spill] sm:$0xff] }
 0xa4a   :  { %v11740_v60 = vpop.eup %11739 }
 0xa4b   :  { %v14169_v46 = vmul.f32 %v11740_v60, %v11738_v20  ;;  %v15279_v20 = vld [vmem:[#allocation53_spill] sm:$0xff] }
 0xa4d   :  { %15272 = vst [vmem:[#allocation63_spill] sm:$0xff] %v14169_v46  ;;  %v11742_v8 = vpop.eup %11741  ;;  %5995 = vmatmul.mubr.f32.vlgmr.msra.gmra.mrb[34].mxu0 %v14169_v46  ;;  %6066 = vmatmul.mubr.f32.vlgmr.msra.gmra.mrb[34].mxu1 %v14169_v46 }
 0xa4e   :  { %v11744_v36 = vpop.eup %11743  ;;  %v5903_v62 = vadd.f32 1.0, %v11742_v8  ;;  %10321 = vmatpush1.bf16.msra.mxu0 %v13989_v56  ;;  %10353 = vmatpush1.bf16.msra.mxu1 %v13991_v44 }
 0xa4f   :  { %v5909_v51 = vadd.f32 1.0, %v11744_v36  ;;  %10323 = vmatprep.subr.bf16.mxu0 %v13995_v54  ;;  %10355 = vmatprep.subr.bf16.mxu1 %v13997_v61  ;;  %v11746_v18 = vpop.eup %11745 }
 0xa50   :  { %11749 = vrcp.f32 %v5903_v62  ;;  %6144 = vmatprep.mubr.f32.mxu0 %v15070_v63  ;;  %6215 = vmatprep.mubr.f32.mxu1 %v15070_v63  ;;  %v11748_v45 = vpop.eup %11747  ;;  %v5916_v36 = vadd.f32 1.0, %v11746_v18  ;;  %v15280_v62 = vld [vmem:[#allocation54_spill] sm:$0xff] }
 0xa51   :  { %11751 = vrcp.f32 %v5909_v51  ;;  %v15281_v51 = vld [vmem:[#allocation55_spill] sm:$0xff] }
 0xa52   :  { %10325 = vmatpush1.bf16.msra.mxu0 %v14003_v41  ;;  %10357 = vmatpush1.bf16.msra.mxu1 %v14005_v29  ;;  %11753 = vrcp.f32 %v5916_v36  ;;  %v15288_v36 = vld [vmem:[#allocation22_spill] sm:$0xff] }
 0xa53   :  { %10327 = vmatprep.subr.bf16.mxu0 %v14009_v2  ;;  %10359 = vmatprep.subr.bf16.mxu1 %v15273_v58 }
 0xa56   :  { %10329 = vmatpush1.bf16.msra.mxu0 %v15274_v42  ;;  %10361 = vmatpush1.bf16.msra.mxu1 %v15275_v10 }
 0xa57   :  { %10331 = vmatprep.subr.bf16.mxu0 %v15276_v57  ;;  %10363 = vmatprep.subr.bf16.mxu1 %v15277_v16  ;;  %v15282_v57 = vld [vmem:[#allocation56_spill] sm:$0xff]  ;;  %v15283_v16 = vld [vmem:[#allocation57_spill] sm:$0xff] }
 0xa5a   :  { %v11750_v21 = vpop.eup %11749  ;;  %10333 = vmatpush1.bf16.msra.mxu0 %v15278_v26  ;;  %10365 = vmatpush1.bf16.msra.mxu1 %v15279_v20 }
 0xa5b   :  { %v11752_v60 = vpop.eup %11751  ;;  %v5920_v8 = vmul.f32 %v11750_v21, %v11748_v45  ;;  %10335 = vmatprep.subr.bf16.mxu0 %v15280_v62  ;;  %10367 = vmatprep.subr.bf16.mxu1 %v15281_v51  ;;  %v15285_v21 = vld [vmem:[#allocation49_spill] sm:$0xff] }
 0xa5c   :  { %v5919_v46 = vmul.f32 0.0, %v11752_v60  ;;  %v15286_v60 = vld [vmem:[#allocation50_spill] sm:$0xff] }
 0xa5e   :  { %v14191_v10 = vadd.f32 %v5920_v8, %v5919_v46  ;;  %10337 = vmatpush1.bf16.msra.mxu0 %v15282_v57  ;;  %10369 = vmatpush1.bf16.msra.mxu1 %v15283_v16  ;;  %v11754_v46 = vpop.eup %11753  ;;  %v15287_v8 = vld [vmem:[#allocation35_spill] sm:$0xff] }
 0xa5f   :  { %10339 = vmatprep.subr.bf16.mxu0 %v14047_v4  ;;  %10371 = vmatprep.subr.bf16.mxu1 %v14049_v47 }
 0xa60   :  { %11755 = vtanh.f32 %v14191_v10 }
 0xa62   :  { %10341 = vmatpush1.bf16.msra.mxu0 %v14053_v25  ;;  %10373 = vmatpush1.bf16.msra.mxu1 %v14055_v19 }
 0xa63   :  { %10343 = vmatprep.subr.bf16.mxu0 %v14059_v32  ;;  %10375 = vmatprep.subr.bf16.mxu1 %v14061_v37 }
 0xa66   :  { %10345 = vmatpush1.bf16.msra.mxu0 %v14065_v34  ;;  %10377 = vmatpush1.bf16.msra.mxu1 %v14067_v15 }
 0xa67   :  { %10347 = vmatprep.subr.bf16.mxu0 %v14071_v48  ;;  %10379 = vmatprep.subr.bf16.mxu1 %v14073_v43 }
 0xa6a   :  { %v11756_v18 = vpop.eup %11755  ;;  %10349 = vmatpush1.bf16.msra.mxu0 %v14077_v55  ;;  %10381 = vmatpush1.bf16.msra.mxu1 %v14079_v38 }
 0xa6b   :  { %v14208_v45 = vmul.f32 %v11756_v18, %v11754_v46  ;;  %10383 = vmatprep.subr.bf16.mxu0 %v13857_v14  ;;  %10415 = vmatprep.subr.bf16.mxu1 %v13859_v9  ;;  %v15289_v46 = vld [vmem:[#allocation19_spill] sm:$0xff] }
 0xa6c   :  { %v15290_v18 = vld [vmem:[#allocation23_spill] sm:$0xff] }
 0xa6d   :  { %15284 = vst [vmem:[#allocation20_spill] sm:$0xff] %v14208_v45  ;;  %6145 = vmatmul.mubr.f32.vlgmr.msra.gmra.mrb[60].mxu0 %v14208_v45  ;;  %6216 = vmatmul.mubr.f32.vlgmr.msra.gmra.mrb[60].mxu1 %v14208_v45  ;;  %v15291_v45 = vld [vmem:[#allocation25_spill] sm:$0xff] }
 0xa6e   :  { %10385 = vmatpush1.bf16.msra.mxu0 %v13863_v49  ;;  %10417 = vmatpush1.bf16.msra.mxu1 %v13865_v27 }
 0xa6f   :  { %10387 = vmatprep.subr.bf16.mxu0 %v13867_v3  ;;  %10419 = vmatprep.subr.bf16.mxu1 %v13869_v40 }
 0xa70   :  { %6344 = vmatprep.mubr.f32.mxu0 %v15070_v63  ;;  %6415 = vmatprep.mubr.f32.mxu1 %v15070_v63 }
 0xa72   :  { %10389 = vmatpush1.bf16.msra.mxu0 %v13877_v17  ;;  %10421 = vmatpush1.bf16.msra.mxu1 %v13879_v5 }
 0xa73   :  { %10391 = vmatprep.subr.bf16.mxu0 %v13883_v31  ;;  %10423 = vmatprep.subr.bf16.mxu1 %v13885_v12 }
 0xa76   :  { %10393 = vmatpush1.bf16.msra.mxu0 %v13893_v22  ;;  %10425 = vmatpush1.bf16.msra.mxu1 %v13895_v52 }
 0xa77   :  { %10395 = vmatprep.subr.bf16.mxu0 %v13899_v30  ;;  %10427 = vmatprep.subr.bf16.mxu1 %v13901_v11 }
 0xa7a   :  { %10397 = vmatpush1.bf16.msra.mxu0 %v13909_v33  ;;  %10429 = vmatpush1.bf16.msra.mxu1 %v13911_v53 }
 0xa7b   :  { %10399 = vmatprep.subr.bf16.mxu0 %v13915_v1  ;;  %10431 = vmatprep.subr.bf16.mxu1 %v13917_v23 }
 0xa7e   :  { %10401 = vmatpush1.bf16.msra.mxu0 %v13925_v7  ;;  %10433 = vmatpush1.bf16.msra.mxu1 %v13927_v24  ;;  %v15295_v7 = vld [vmem:[#allocation58_spill] sm:$0xff] }
 0xa7f   :  { %10403 = vmatprep.subr.bf16.mxu0 %v13931_v28  ;;  %10435 = vmatprep.subr.bf16.mxu1 %v13933_v35  ;;  %v15292_v35 = vld [vmem:[#allocation47_spill] sm:$0xff]  ;;  %v15294_v28 = vld [vmem:[#allocation28_spill] sm:$0xff] }
 0xa82   :  { %10405 = vmatpush1.bf16.msra.mxu0 %v13941_v50  ;;  %10437 = vmatpush1.bf16.msra.mxu1 %v13943_v6  ;;  %v15293_v50 = vld [vmem:[#allocation21_spill] sm:$0xff] }
 0xa83   :  { %10407 = vmatprep.subr.bf16.mxu0 %v13947_v59  ;;  %10439 = vmatprep.subr.bf16.mxu1 %v15285_v21 }
 0xa86   :  { %10409 = vmatpush1.bf16.msra.mxu0 %v15286_v60  ;;  %10441 = vmatpush1.bf16.msra.mxu1 %v15287_v8 }
 0xa87   :  { %10411 = vmatprep.subr.bf16.mxu0 %v15288_v36  ;;  %10443 = vmatprep.subr.bf16.mxu1 %v15289_v46  ;;  %v15296_v46 = vld [vmem:[#allocation59_spill] sm:$0xff] }
 0xa8a   :  { %10413 = vmatpush1.bf16.msra.mxu0 %v15290_v18  ;;  %10445 = vmatpush1.bf16.msra.mxu1 %v15291_v45  ;;  %v15297_v45 = vld [vmem:[#allocation60_spill] sm:$0xff] }
 0xa8b   :  { %10447 = vmatprep.subr.bf16.mxu0 %v15292_v35  ;;  %10479 = vmatprep.subr.bf16.mxu1 %v15293_v50 }
 0xb20   :  { %v5996_v6 = vpop.f32.mrb[34].mxu0  ;;  %v6067_v59 = vpop.f32.mrb[34].mxu1 }
 0xb21   :  { %v11264_v21 = vadd.f32 %v5996_v6, %v15294_v28  ;;  %v5998_v24 = vpop.f32.mrb[35].mxu0  ;;  %v6069_v60 = vpop.f32.mrb[35].mxu1  ;;  %v11280_v53 = vadd.f32 %v6067_v59, %v15297_v45  ;;  %v15299_v45 = vld [vmem:[#allocation61_spill] sm:$0xff] }
 0xb22   :  { %v11265_v8 = vadd.f32 %v5998_v24, %v15295_v7  ;;  %v11281_v18 = vadd.f32 %v6069_v60, %v15296_v46 }
 0xb23   :  { %v8667_v23 = vmul.f32 -1.442695, %v11264_v21 }
 0xb24   :  { %v8668_v36 = vmul.f32 -1.442695, %v11265_v8  ;;  %v8669_v1 = vmul.f32 -1.442695, %v11281_v18 }
 0xb25   :  { %11757 = vpow2.f32 %v8667_v23 }
 0xb26   :  { %11759 = vpow2.f32 %v8668_v36  ;;  %v15298_v36 = vld [vmem:[#allocation62_spill] sm:$0xff] }
 0xb27   :  { %11761 = vpow2.f32 %v8669_v1 }
 0xb28   :  { %11763 = vtanh.f32 %v11280_v53 }
 0xb2f   :  { %v11758_v35 = vpop.eup %11757 }
 0xb30   :  { %v11760_v33 = vpop.eup %11759  ;;  %v6229_v50 = vadd.f32 1.0, %v11758_v35 }
 0xb31   :  { %v6235_v11 = vadd.f32 1.0, %v11760_v33  ;;  %v11762_v6 = vpop.eup %11761 }
 0xb32   :  { %11765 = vrcp.f32 %v6229_v50  ;;  %v11764_v28 = vpop.eup %11763  ;;  %v6242_v23 = vadd.f32 1.0, %v11762_v6 }
 0xb33   :  { %11767 = vrcp.f32 %v6235_v11 }
 0xb34   :  { %11769 = vrcp.f32 %v6242_v23 }
 0xb3c   :  { %v11766_v24 = vpop.eup %11765 }
 0xb3d   :  { %v11768_v21 = vpop.eup %11767  ;;  %v6246_v8 = vmul.f32 %v11766_v24, %v11764_v28 }
 0xb3e   :  { %v6245_v7 = vmul.f32 %v11768_v21, %v15298_v36  ;;  %v11770_v6 = vpop.eup %11769 }
 0xb40   :  { %v14253_v60 = vadd.f32 %v6246_v8, %v6245_v7  ;;  %v6146_v18 = vpop.f32.mrb[60].mxu0  ;;  %v6217_v59 = vpop.f32.mrb[60].mxu1 }
 0xb41   :  { %v11306_v35 = vadd.f32 %v6146_v18, %v15299_v45  ;;  %v6148_v1 = vpop.f32.mrb[61].mxu0  ;;  %v6219_v53 = vpop.f32.mrb[61].mxu1  ;;  %v11322_v21 = vadd.f32 %v6217_v59, %v14166_v39  ;;  %v15300_v59 = vld [vmem:[#allocation43_spill] sm:$0xff] }
 0xb42   :  { %v11307_v33 = vadd.f32 %v6148_v1, %v14152_v13  ;;  %11771 = vtanh.f32 %v14253_v60  ;;  %v11323_v28 = vadd.f32 %v6219_v53, %v14161_v0  ;;  %v15301_v1 = vld [vmem:[#allocation18_spill] sm:$0xff]  ;;  %v15302_v53 = vld [vmem:[#allocation51_spill] sm:$0xff] }
 0xb43   :  { %v8670_v11 = vmul.f32 -1.442695, %v11306_v35 }
 0xb44   :  { %v8671_v50 = vmul.f32 -1.442695, %v11307_v33  ;;  %v8672_v24 = vmul.f32 -1.442695, %v11323_v28 }
 0xb45   :  { %11773 = vpow2.f32 %v8670_v11 }
 0xb46   :  { %11775 = vpow2.f32 %v8671_v50 }
 0xb47   :  { %11777 = vpow2.f32 %v8672_v24 }
 0xb48   :  { %11779 = vtanh.f32 %v11322_v21 }
 0xb4c   :  { %v11772_v7 = vpop.eup %11771 }
 0xb4d   :  { %v14260_v8 = vmul.f32 %v11772_v7, %v11770_v6 }
 0xb4f   :  { %v11774_v23 = vpop.eup %11773  ;;  %6345 = vmatmul.mubr.f32.vlgmr.msra.gmra.mrb[36].mxu0 %v14260_v8  ;;  %6416 = vmatmul.mubr.f32.vlgmr.msra.gmra.mrb[36].mxu1 %v14260_v8 }
 0xb50   :  { %v11776_v36 = vpop.eup %11775  ;;  %v6253_v18 = vadd.f32 1.0, %v11774_v23  ;;  %10449 = vmatpush1.bf16.msra.mxu0 %v13989_v56  ;;  %10481 = vmatpush1.bf16.msra.mxu1 %v13991_v44 }
 0xb51   :  { %v6259_v35 = vadd.f32 1.0, %v11776_v36  ;;  %10451 = vmatprep.subr.bf16.mxu0 %v13995_v54  ;;  %10483 = vmatprep.subr.bf16.mxu1 %v13997_v61  ;;  %v11778_v33 = vpop.eup %11777 }
 0xb52   :  { %11781 = vrcp.f32 %v6253_v18  ;;  %6494 = vmatprep.mubr.f32.mxu0 %v15070_v63  ;;  %6565 = vmatprep.mubr.f32.mxu1 %v15070_v63  ;;  %v11780_v11 = vpop.eup %11779  ;;  %v6266_v7 = vadd.f32 1.0, %v11778_v33  ;;  %v15303_v18 = vld [vmem:[#allocation26_spill] sm:$0xff]  ;;  %v15305_v33 = vld [vmem:[#allocation37_spill] sm:$0xff] }
 0xb53   :  { %11783 = vrcp.f32 %v6259_v35  ;;  %v15304_v35 = vld [vmem:[#allocation27_spill] sm:$0xff] }
 0xb54   :  { %10453 = vmatpush1.bf16.msra.mxu0 %v14003_v41  ;;  %10485 = vmatpush1.bf16.msra.mxu1 %v14005_v29  ;;  %11785 = vrcp.f32 %v6266_v7  ;;  %v15310_v7 = vld [vmem:[#allocation42_spill] sm:$0xff] }
 0xb55   :  { %10455 = vmatprep.subr.bf16.mxu0 %v14009_v2  ;;  %10487 = vmatprep.subr.bf16.mxu1 %v15273_v58 }
 0xb58   :  { %10457 = vmatpush1.bf16.msra.mxu0 %v15274_v42  ;;  %10489 = vmatpush1.bf16.msra.mxu1 %v15300_v59 }
 0xb59   :  { %10459 = vmatprep.subr.bf16.mxu0 %v15301_v1  ;;  %10491 = vmatprep.subr.bf16.mxu1 %v15302_v53 }
 0xb5c   :  { %v11782_v50 = vpop.eup %11781  ;;  %10461 = vmatpush1.bf16.msra.mxu0 %v15278_v26  ;;  %10493 = vmatpush1.bf16.msra.mxu1 %v15279_v20 }
 0xb5d   :  { %v11784_v28 = vpop.eup %11783  ;;  %v6270_v6 = vmul.f32 %v11782_v50, %v11780_v11  ;;  %10463 = vmatprep.subr.bf16.mxu0 %v15280_v62  ;;  %10495 = vmatprep.subr.bf16.mxu1 %v15281_v51  ;;  %v15306_v11 = vld [vmem:[#allocation38_spill] sm:$0xff]  ;;  %v15307_v50 = vld [vmem:[#allocation39_spill] sm:$0xff] }
 0xb5e   :  { %v6269_v24 = vmul.f32 %v11784_v28, %v14191_v10  ;;  %v11786_v10 = vpop.eup %11785  ;;  %v15308_v28 = vld [vmem:[#allocation40_spill] sm:$0xff] }
 0xb60   :  { %v14283_v21 = vadd.f32 %v6270_v6, %v6269_v24  ;;  %10465 = vmatpush1.bf16.msra.mxu0 %v15282_v57  ;;  %10497 = vmatpush1.bf16.msra.mxu1 %v15283_v16  ;;  %v15309_v6 = vld [vmem:[#allocation41_spill] sm:$0xff]  ;;  %v15311_v24 = vld [vmem:[#allocation44_spill] sm:$0xff] }
 0xb61   :  { %10467 = vmatprep.subr.bf16.mxu0 %v14047_v4  ;;  %10499 = vmatprep.subr.bf16.mxu1 %v14049_v47 }
 0xb62   :  { %11787 = vtanh.f32 %v14283_v21 }
 0xb64   :  { %10469 = vmatpush1.bf16.msra.mxu0 %v14053_v25  ;;  %10501 = vmatpush1.bf16.msra.mxu1 %v14055_v19 }
 0xb65   :  { %10471 = vmatprep.subr.bf16.mxu0 %v14059_v32  ;;  %10503 = vmatprep.subr.bf16.mxu1 %v14061_v37 }
 0xb68   :  { %10473 = vmatpush1.bf16.msra.mxu0 %v14065_v34  ;;  %10505 = vmatpush1.bf16.msra.mxu1 %v14067_v15 }
 0xb69   :  { %10475 = vmatprep.subr.bf16.mxu0 %v14071_v48  ;;  %10507 = vmatprep.subr.bf16.mxu1 %v14073_v43 }
 0xb6c   :  { %v11788_v23 = vpop.eup %11787  ;;  %10477 = vmatpush1.bf16.msra.mxu0 %v14077_v55  ;;  %10509 = vmatpush1.bf16.msra.mxu1 %v14079_v38 }
 0xb6d   :  { %v14300_v36 = vmul.f32 %v11788_v23, %v11786_v10  ;;  %10511 = vmatprep.subr.bf16.mxu0 %v13857_v14  ;;  %10543 = vmatprep.subr.bf16.mxu1 %v13859_v9  ;;  %v15312_v10 = vld [vmem:[#allocation45_spill] sm:$0xff]  ;;  %v15313_v23 = vld [vmem:[#allocation46_spill] sm:$0xff] }
 0xb6f   :  { %6495 = vmatmul.mubr.f32.vlgmr.msra.gmra.mrb[58].mxu0 %v14300_v36  ;;  %6566 = vmatmul.mubr.f32.vlgmr.msra.gmra.mrb[58].mxu1 %v14300_v36 }
 0xb70   :  { %10513 = vmatpush1.bf16.msra.mxu0 %v13863_v49  ;;  %10545 = vmatpush1.bf16.msra.mxu1 %v13865_v27 }
 0xb71   :  { %10515 = vmatprep.subr.bf16.mxu0 %v13867_v3  ;;  %10547 = vmatprep.subr.bf16.mxu1 %v13869_v40 }
 0xb72   :  { %6694 = vmatprep.mubr.f32.mxu0 %v15070_v63  ;;  %6765 = vmatprep.mubr.f32.mxu1 %v15070_v63 }
 0xb74   :  { %10517 = vmatpush1.bf16.msra.mxu0 %v13877_v17  ;;  %10549 = vmatpush1.bf16.msra.mxu1 %v13879_v5 }
 0xb75   :  { %10519 = vmatprep.subr.bf16.mxu0 %v13883_v31  ;;  %10551 = vmatprep.subr.bf16.mxu1 %v13885_v12 }
 0xb78   :  { %10521 = vmatpush1.bf16.msra.mxu0 %v13893_v22  ;;  %10553 = vmatpush1.bf16.msra.mxu1 %v13895_v52  ;;  %v15325_v22 = vld [vmem:[#allocation58_spill] sm:$0xff] }
 0xb79   :  { %10523 = vmatprep.subr.bf16.mxu0 %v13899_v30  ;;  %10555 = vmatprep.subr.bf16.mxu1 %v15303_v18  ;;  %v15314_v18 = vld [vmem:[#allocation48_spill] sm:$0xff] }
 0xb7a   :  { %v15324_v30 = vld [vmem:[#allocation28_spill] sm:$0xff] }
 0xb7c   :  { %10525 = vmatpush1.bf16.msra.mxu0 %v15304_v35  ;;  %10557 = vmatpush1.bf16.msra.mxu1 %v15305_v33  ;;  %v15315_v35 = vld [vmem:[#allocation49_spill] sm:$0xff]  ;;  %v15316_v33 = vld [vmem:[#allocation50_spill] sm:$0xff] }
 0xb7d   :  { %10527 = vmatprep.subr.bf16.mxu0 %v15306_v11  ;;  %10559 = vmatprep.subr.bf16.mxu1 %v15307_v50  ;;  %v15317_v11 = vld [vmem:[#allocation35_spill] sm:$0xff]  ;;  %v15318_v50 = vld [vmem:[#allocation22_spill] sm:$0xff] }
 0xb80   :  { %10529 = vmatpush1.bf16.msra.mxu0 %v15308_v28  ;;  %10561 = vmatpush1.bf16.msra.mxu1 %v15309_v6  ;;  %v15319_v28 = vld [vmem:[#allocation19_spill] sm:$0xff] }
 0xb81   :  { %10531 = vmatprep.subr.bf16.mxu0 %v15310_v7  ;;  %10563 = vmatprep.subr.bf16.mxu1 %v15311_v24  ;;  %v15320_v6 = vld [vmem:[#allocation23_spill] sm:$0xff]  ;;  %v15321_v7 = vld [vmem:[#allocation25_spill] sm:$0xff] }
 0xb82   :  { %v15322_v24 = vld [vmem:[#allocation47_spill] sm:$0xff] }
 0xb84   :  { %10533 = vmatpush1.bf16.msra.mxu0 %v15312_v10  ;;  %10565 = vmatpush1.bf16.msra.mxu1 %v15313_v23  ;;  %v15323_v10 = vld [vmem:[#allocation21_spill] sm:$0xff] }
 0xb85   :  { %10535 = vmatprep.subr.bf16.mxu0 %v15314_v18  ;;  %10567 = vmatprep.subr.bf16.mxu1 %v15315_v35 }
 0xb88   :  { %10537 = vmatpush1.bf16.msra.mxu0 %v15316_v33  ;;  %10569 = vmatpush1.bf16.msra.mxu1 %v15317_v11 }
 0xb89   :  { %10539 = vmatprep.subr.bf16.mxu0 %v15318_v50  ;;  %10571 = vmatprep.subr.bf16.mxu1 %v15319_v28 }
 0xb8c   :  { %10541 = vmatpush1.bf16.msra.mxu0 %v15320_v6  ;;  %10573 = vmatpush1.bf16.msra.mxu1 %v15321_v7  ;;  %v15326_v7 = vld [vmem:[#allocation60_spill] sm:$0xff] }
 0xb8d   :  { %10575 = vmatprep.subr.bf16.mxu0 %v15322_v24  ;;  %10607 = vmatprep.subr.bf16.mxu1 %v15323_v10 }
 0xc22   :  { %v6346_v23 = vpop.f32.mrb[36].mxu0  ;;  %v6417_v18 = vpop.f32.mrb[36].mxu1 }
 0xc23   :  { %v11266_v35 = vadd.f32 %v6346_v23, %v15324_v30  ;;  %v6348_v52 = vpop.f32.mrb[37].mxu0  ;;  %v6419_v33 = vpop.f32.mrb[37].mxu1  ;;  %v11282_v31 = vadd.f32 %v6417_v18, %v15326_v7 }
 0xc24   :  { %v11267_v11 = vadd.f32 %v6348_v52, %v15325_v22  ;;  %v11283_v6 = vadd.f32 %v6419_v33, %v15296_v46 }
 0xc25   :  { %v8673_v12 = vmul.f32 -1.442695, %v11266_v35 }
 0xc26   :  { %v8674_v50 = vmul.f32 -1.442695, %v11267_v11  ;;  %v8675_v28 = vmul.f32 -1.442695, %v11283_v6 }
 0xc27   :  { %11789 = vpow2.f32 %v8673_v12 }
 0xc28   :  { %11791 = vpow2.f32 %v8674_v50 }
 0xc29   :  { %11793 = vpow2.f32 %v8675_v28 }
 0xc2a   :  { %11795 = vtanh.f32 %v11282_v31 }
 0xc31   :  { %v11790_v24 = vpop.eup %11789 }
 0xc32   :  { %v11792_v5 = vpop.eup %11791  ;;  %v6579_v10 = vadd.f32 1.0, %v11790_v24 }
 0xc33   :  { %v6585_v17 = vadd.f32 1.0, %v11792_v5  ;;  %v11794_v23 = vpop.eup %11793 }
 0xc34   :  { %11797 = vrcp.f32 %v6579_v10  ;;  %v11796_v30 = vpop.eup %11795  ;;  %v6592_v12 = vadd.f32 1.0, %v11794_v23 }
 0xc35   :  { %11799 = vrcp.f32 %v6585_v17 }
 0xc36   :  { %11801 = vrcp.f32 %v6592_v12 }
 0xc3e   :  { %v11798_v52 = vpop.eup %11797 }
 0xc3f   :  { %v11800_v35 = vpop.eup %11799  ;;  %v6596_v11 = vmul.f32 %v11798_v52, %v11796_v30 }
 0xc40   :  { %v6595_v50 = vmul.f32 %v11800_v35, %v14253_v60  ;;  %v11802_v60 = vpop.eup %11801  ;;  %v15327_v35 = vld [vmem:[#allocation63_spill] sm:$0xff] }
 0xc42   :  { %v14345_v33 = vadd.f32 %v6596_v11, %v6595_v50  ;;  %v6496_v6 = vpop.f32.mrb[58].mxu0  ;;  %v6567_v18 = vpop.f32.mrb[58].mxu1  ;;  %v6274_v11 = vadd.f32 %v14260_v8, %v15327_v35  ;;  %v15328_v35 = vld [vmem:[#allocation20_spill] sm:$0xff] }
 0xc43   :  { %v11304_v24 = vadd.f32 %v6496_v6, %v15299_v45  ;;  %v6498_v28 = vpop.f32.mrb[59].mxu0  ;;  %v6569_v31 = vpop.f32.mrb[59].mxu1  ;;  %v11320_v12 = vadd.f32 %v6567_v18, %v14166_v39 }
 0xc44   :  { %v11305_v5 = vadd.f32 %v6498_v28, %v14152_v13  ;;  %11803 = vtanh.f32 %v14345_v33  ;;  %v11321_v30 = vadd.f32 %v6569_v31, %v14161_v0 }
 0xc45   :  { %v8676_v17 = vmul.f32 -1.442695, %v11304_v24 }
 0xc46   :  { %v8677_v10 = vmul.f32 -1.442695, %v11305_v5  ;;  %v8678_v52 = vmul.f32 -1.442695, %v11321_v30 }
 0xc47   :  { %11805 = vpow2.f32 %v8676_v17 }
 0xc48   :  { %11807 = vpow2.f32 %v8677_v10 }
 0xc49   :  { %11809 = vpow2.f32 %v8678_v52 }
 0xc4a   :  { %11811 = vtanh.f32 %v11320_v12 }
 0xc4e   :  { %v11804_v23 = vpop.eup %11803 }
 0xc4f   :  { %v6599_v50 = vmul.f32 %v11804_v23, %v11802_v60 }
 0xc51   :  { %v11806_v6 = vpop.eup %11805  ;;  %v14354_v45 = vadd.f32 %v6599_v50, %v6274_v11  ;;  %6695 = vmatmul.mubr.f32.vlgmr.msra.gmra.mrb[38].mxu0 %v6599_v50  ;;  %6766 = vmatmul.mubr.f32.vlgmr.msra.gmra.mrb[38].mxu1 %v6599_v50  ;;  %v6275_v11 = vadd.f32 %v14300_v36, %v15328_v35  ;;  %v15329_v36 = vld [vmem:[#allocation29_spill] sm:$0xff]  ;;  %v15343_v35 = vld [vmem:[#allocation42_spill] sm:$0xff] }
 0xc52   :  { %v11808_v24 = vpop.eup %11807  ;;  %v6603_v28 = vadd.f32 1.0, %v11806_v6  ;;  %10577 = vmatpush1.bf16.msra.mxu0 %v13989_v56  ;;  %10609 = vmatpush1.bf16.msra.mxu1 %v13991_v44  ;;  %v15330_v6 = vld [vmem:[#allocation30_spill] sm:$0xff] }
 0xc53   :  { %v6609_v31 = vadd.f32 1.0, %v11808_v24  ;;  %10579 = vmatprep.subr.bf16.mxu0 %v13995_v54  ;;  %10611 = vmatprep.subr.bf16.mxu1 %v13997_v61  ;;  %v11810_v8 = vpop.eup %11809  ;;  %v15331_v24 = vld [vmem:[#allocation31_spill] sm:$0xff] }
 0xc54   :  { %11813 = vrcp.f32 %v6603_v28  ;;  %6844 = vmatprep.mubr.f32.mxu0 %v15070_v63  ;;  %6915 = vmatprep.mubr.f32.mxu1 %v15070_v63  ;;  %v11812_v18 = vpop.eup %11811  ;;  %v6616_v30 = vadd.f32 1.0, %v11810_v8  ;;  %v15332_v28 = vld [vmem:[#allocation24_spill] sm:$0xff]  ;;  %v15334_v8 = vld [vmem:[#allocation33_spill] sm:$0xff] }
 0xc55   :  { %11815 = vrcp.f32 %v6609_v31  ;;  %v15333_v31 = vld [vmem:[#allocation32_spill] sm:$0xff] }
 0xc56   :  { %10581 = vmatpush1.bf16.msra.mxu0 %v14003_v41  ;;  %10613 = vmatpush1.bf16.msra.mxu1 %v14005_v29  ;;  %11817 = vrcp.f32 %v6616_v30  ;;  %v15339_v30 = vld [vmem:[#allocation38_spill] sm:$0xff] }
 0xc57   :  { %10583 = vmatprep.subr.bf16.mxu0 %v14009_v2  ;;  %10615 = vmatprep.subr.bf16.mxu1 %v15273_v58 }
 0xc5a   :  { %10585 = vmatpush1.bf16.msra.mxu0 %v15274_v42  ;;  %10617 = vmatpush1.bf16.msra.mxu1 %v15300_v59 }
 0xc5b   :  { %10587 = vmatprep.subr.bf16.mxu0 %v15301_v1  ;;  %10619 = vmatprep.subr.bf16.mxu1 %v15302_v53 }
 0xc5e   :  { %v11814_v5 = vpop.eup %11813  ;;  %10589 = vmatpush1.bf16.msra.mxu0 %v15278_v26  ;;  %10621 = vmatpush1.bf16.msra.mxu1 %v15279_v20 }
 0xc5f   :  { %v11816_v17 = vpop.eup %11815  ;;  %v6620_v10 = vmul.f32 %v11814_v5, %v11812_v18  ;;  %10591 = vmatprep.subr.bf16.mxu0 %v15280_v62  ;;  %10623 = vmatprep.subr.bf16.mxu1 %v15281_v51  ;;  %v15335_v18 = vld [vmem:[#allocation34_spill] sm:$0xff] }
 0xc60   :  { %v6619_v60 = vmul.f32 %v11816_v17, %v14283_v21  ;;  %v11818_v21 = vpop.eup %11817  ;;  %v15336_v5 = vld [vmem:[#allocation26_spill] sm:$0xff]  ;;  %v15337_v17 = vld [vmem:[#allocation27_spill] sm:$0xff] }
 0xc62   :  { %v14375_v23 = vadd.f32 %v6620_v10, %v6619_v60  ;;  %10593 = vmatpush1.bf16.msra.mxu0 %v15282_v57  ;;  %10625 = vmatpush1.bf16.msra.mxu1 %v15283_v16  ;;  %v15338_v10 = vld [vmem:[#allocation37_spill] sm:$0xff]  ;;  %v15340_v60 = vld [vmem:[#allocation39_spill] sm:$0xff] }
 0xc63   :  { %10595 = vmatprep.subr.bf16.mxu0 %v14047_v4  ;;  %10627 = vmatprep.subr.bf16.mxu1 %v14049_v47 }
 0xc64   :  { %11819 = vtanh.f32 %v14375_v23 }
 0xc66   :  { %10597 = vmatpush1.bf16.msra.mxu0 %v14053_v25  ;;  %10629 = vmatpush1.bf16.msra.mxu1 %v14055_v19 }
 0xc67   :  { %10599 = vmatprep.subr.bf16.mxu0 %v14059_v32  ;;  %10631 = vmatprep.subr.bf16.mxu1 %v14061_v37 }
 0xc6a   :  { %10601 = vmatpush1.bf16.msra.mxu0 %v14065_v34  ;;  %10633 = vmatpush1.bf16.msra.mxu1 %v14067_v15 }
 0xc6b   :  { %10603 = vmatprep.subr.bf16.mxu0 %v14071_v48  ;;  %10635 = vmatprep.subr.bf16.mxu1 %v14073_v43 }
 0xc6e   :  { %v11820_v52 = vpop.eup %11819  ;;  %10605 = vmatpush1.bf16.msra.mxu0 %v14077_v55  ;;  %10637 = vmatpush1.bf16.msra.mxu1 %v14079_v38 }
 0xc6f   :  { %v6623_v12 = vmul.f32 %v11820_v52, %v11818_v21  ;;  %10639 = vmatprep.subr.bf16.mxu0 %v13857_v14  ;;  %10671 = vmatprep.subr.bf16.mxu1 %v13859_v9  ;;  %v15341_v21 = vld [vmem:[#allocation40_spill] sm:$0xff]  ;;  %v15342_v52 = vld [vmem:[#allocation41_spill] sm:$0xff] }
 0xc71   :  { %v14396_v50 = vadd.f32 %v6623_v12, %v6275_v11  ;;  %6845 = vmatmul.mubr.f32.vlgmr.msra.gmra.mrb[56].mxu0 %v6623_v12  ;;  %6916 = vmatmul.mubr.f32.vlgmr.msra.gmra.mrb[56].mxu1 %v6623_v12  ;;  %v15344_v11 = vld [vmem:[#allocation44_spill] sm:$0xff]  ;;  %v15345_v12 = vld [vmem:[#allocation45_spill] sm:$0xff] }
 0xc72   :  { %10641 = vmatpush1.bf16.msra.mxu0 %v13863_v49  ;;  %10673 = vmatpush1.bf16.msra.mxu1 %v13865_v27 }
 0xc73   :  { %10643 = vmatprep.subr.bf16.mxu0 %v13867_v3  ;;  %10675 = vmatprep.subr.bf16.mxu1 %v13869_v40 }
 0xc74   :  { %7044 = vmatprep.mubr.f32.mxu0 %v15070_v63  ;;  %7115 = vmatprep.mubr.f32.mxu1 %v15070_v63 }
 0xc76   :  { %10645 = vmatpush1.bf16.msra.mxu0 %v15329_v36  ;;  %10677 = vmatpush1.bf16.msra.mxu1 %v15330_v6 }
 0xc77   :  { %10647 = vmatprep.subr.bf16.mxu0 %v15331_v24  ;;  %10679 = vmatprep.subr.bf16.mxu1 %v15332_v28 }
 0xc7a   :  { %10649 = vmatpush1.bf16.msra.mxu0 %v15333_v31  ;;  %10681 = vmatpush1.bf16.msra.mxu1 %v15334_v8  ;;  %v15357_v8 = vld [vmem:[#allocation28_spill] sm:$0xff] }
 0xc7b   :  { %10651 = vmatprep.subr.bf16.mxu0 %v15335_v18  ;;  %10683 = vmatprep.subr.bf16.mxu1 %v15336_v5  ;;  %v15346_v18 = vld [vmem:[#allocation46_spill] sm:$0xff]  ;;  %v15347_v5 = vld [vmem:[#allocation48_spill] sm:$0xff] }
 0xc7e   :  { %10653 = vmatpush1.bf16.msra.mxu0 %v15337_v17  ;;  %10685 = vmatpush1.bf16.msra.mxu1 %v15338_v10  ;;  %v15348_v17 = vld [vmem:[#allocation49_spill] sm:$0xff]  ;;  %v15349_v10 = vld [vmem:[#allocation50_spill] sm:$0xff] }
 0xc7f   :  { %10655 = vmatprep.subr.bf16.mxu0 %v15339_v30  ;;  %10687 = vmatprep.subr.bf16.mxu1 %v15340_v60  ;;  %v15350_v30 = vld [vmem:[#allocation35_spill] sm:$0xff]  ;;  %v15351_v60 = vld [vmem:[#allocation22_spill] sm:$0xff] }
 0xc82   :  { %10657 = vmatpush1.bf16.msra.mxu0 %v15341_v21  ;;  %10689 = vmatpush1.bf16.msra.mxu1 %v15342_v52  ;;  %v15352_v21 = vld [vmem:[#allocation19_spill] sm:$0xff] }
 0xc83   :  { %10659 = vmatprep.subr.bf16.mxu0 %v15343_v35  ;;  %10691 = vmatprep.subr.bf16.mxu1 %v15344_v11  ;;  %v15353_v52 = vld [vmem:[#allocation23_spill] sm:$0xff]  ;;  %v15354_v35 = vld [vmem:[#allocation25_spill] sm:$0xff] }
 0xc84   :  { %v15355_v11 = vld [vmem:[#allocation47_spill] sm:$0xff] }
 0xc86   :  { %10661 = vmatpush1.bf16.msra.mxu0 %v15345_v12  ;;  %10693 = vmatpush1.bf16.msra.mxu1 %v15346_v18  ;;  %v15356_v12 = vld [vmem:[#allocation21_spill] sm:$0xff] }
 0xc87   :  { %10663 = vmatprep.subr.bf16.mxu0 %v15347_v5  ;;  %10695 = vmatprep.subr.bf16.mxu1 %v15348_v17 }
 0xc8a   :  { %10665 = vmatpush1.bf16.msra.mxu0 %v15349_v10  ;;  %10697 = vmatpush1.bf16.msra.mxu1 %v15350_v30 }
 0xc8b   :  { %10667 = vmatprep.subr.bf16.mxu0 %v15351_v60  ;;  %10699 = vmatprep.subr.bf16.mxu1 %v15352_v21 }
 0xc8e   :  { %10669 = vmatpush1.bf16.msra.mxu0 %v15353_v52  ;;  %10701 = vmatpush1.bf16.msra.mxu1 %v15354_v35 }
 0xc8f   :  { %10703 = vmatprep.subr.bf16.mxu0 %v15355_v11  ;;  %10735 = vmatprep.subr.bf16.mxu1 %v15356_v12 }
 0xd24   :  { %v6696_v18 = vpop.f32.mrb[38].mxu0  ;;  %v6767_v5 = vpop.f32.mrb[38].mxu1 }
 0xd25   :  { %v11268_v17 = vadd.f32 %v6696_v18, %v15357_v8  ;;  %v6698_v31 = vpop.f32.mrb[39].mxu0  ;;  %v6769_v10 = vpop.f32.mrb[39].mxu1  ;;  %v11284_v35 = vadd.f32 %v6767_v5, %v15326_v7  ;;  %v15358_v7 = vld [vmem:[#allocation61_spill] sm:$0xff] }
 0xd26   :  { %v11269_v30 = vadd.f32 %v6698_v31, %v15325_v22  ;;  %v11285_v52 = vadd.f32 %v6769_v10, %v15296_v46 }
 0xd27   :  { %v8679_v28 = vmul.f32 -1.442695, %v11268_v17 }
 0xd28   :  { %v8680_v60 = vmul.f32 -1.442695, %v11269_v30  ;;  %v8681_v21 = vmul.f32 -1.442695, %v11285_v52 }
 0xd29   :  { %11821 = vpow2.f32 %v8679_v28 }
 0xd2a   :  { %11823 = vpow2.f32 %v8680_v60 }
 0xd2b   :  { %11825 = vpow2.f32 %v8681_v21 }
 0xd2c   :  { %11827 = vtanh.f32 %v11284_v35 }
 0xd33   :  { %v11822_v11 = vpop.eup %11821 }
 0xd34   :  { %v11824_v24 = vpop.eup %11823  ;;  %v6929_v12 = vadd.f32 1.0, %v11822_v11 }
 0xd35   :  { %v6935_v6 = vadd.f32 1.0, %v11824_v24  ;;  %v11826_v18 = vpop.eup %11825 }
 0xd36   :  { %11829 = vrcp.f32 %v6929_v12  ;;  %v11828_v8 = vpop.eup %11827  ;;  %v6942_v28 = vadd.f32 1.0, %v11826_v18 }
 0xd37   :  { %11831 = vrcp.f32 %v6935_v6 }
 0xd38   :  { %11833 = vrcp.f32 %v6942_v28 }
 0xd40   :  { %v11830_v31 = vpop.eup %11829 }
 0xd41   :  { %v11832_v17 = vpop.eup %11831  ;;  %v6946_v30 = vmul.f32 %v11830_v31, %v11828_v8 }
 0xd42   :  { %v6945_v60 = vmul.f32 %v11832_v17, %v14345_v33  ;;  %v11834_v33 = vpop.eup %11833 }
 0xd44   :  { %v14437_v10 = vadd.f32 %v6946_v30, %v6945_v60  ;;  %v6846_v52 = vpop.f32.mrb[56].mxu0  ;;  %v6917_v5 = vpop.f32.mrb[56].mxu1 }
 0xd45   :  { %v11302_v11 = vadd.f32 %v6846_v52, %v15358_v7  ;;  %v6848_v21 = vpop.f32.mrb[57].mxu0  ;;  %v6919_v35 = vpop.f32.mrb[57].mxu1  ;;  %v11318_v17 = vadd.f32 %v6917_v5, %v14166_v39 }
 0xd46   :  { %v11303_v24 = vadd.f32 %v6848_v21, %v14152_v13  ;;  %11835 = vtanh.f32 %v14437_v10  ;;  %v11319_v8 = vadd.f32 %v6919_v35, %v14161_v0 }
 0xd47   :  { %v8682_v6 = vmul.f32 -1.442695, %v11302_v11 }
 0xd48   :  { %v8683_v12 = vmul.f32 -1.442695, %v11303_v24  ;;  %v8684_v31 = vmul.f32 -1.442695, %v11319_v8 }
 0xd49   :  { %11837 = vpow2.f32 %v8682_v6 }
 0xd4a   :  { %11839 = vpow2.f32 %v8683_v12 }
 0xd4b   :  { %11841 = vpow2.f32 %v8684_v31 }
 0xd4c   :  { %11843 = vtanh.f32 %v11318_v17 }
 0xd50   :  { %v11836_v18 = vpop.eup %11835 }
 0xd51   :  { %v6949_v30 = vmul.f32 %v11836_v18, %v11834_v33 }
 0xd53   :  { %v11838_v28 = vpop.eup %11837  ;;  %v14445_v60 = vadd.f32 %v6949_v30, %v14354_v45  ;;  %7045 = vmatmul.mubr.f32.vlgmr.msra.gmra.mrb[40].mxu0 %v6949_v30  ;;  %7116 = vmatmul.mubr.f32.vlgmr.msra.gmra.mrb[40].mxu1 %v6949_v30  ;;  %v15359_v30 = vld [vmem:[#allocation30_spill] sm:$0xff] }
 0xd54   :  { %v11840_v52 = vpop.eup %11839  ;;  %v6953_v21 = vadd.f32 1.0, %v11838_v28  ;;  %10705 = vmatpush1.bf16.msra.mxu0 %v13989_v56  ;;  %10737 = vmatpush1.bf16.msra.mxu1 %v13991_v44  ;;  %v15361_v28 = vld [vmem:[#allocation24_spill] sm:$0xff] }
 0xd55   :  { %v6959_v11 = vadd.f32 1.0, %v11840_v52  ;;  %10707 = vmatprep.subr.bf16.mxu0 %v13995_v54  ;;  %10739 = vmatprep.subr.bf16.mxu1 %v13997_v61  ;;  %v11842_v45 = vpop.eup %11841  ;;  %v15362_v52 = vld [vmem:[#allocation32_spill] sm:$0xff] }
 0xd56   :  { %11845 = vrcp.f32 %v6953_v21  ;;  %7194 = vmatprep.mubr.f32.mxu0 %v15070_v63  ;;  %7265 = vmatprep.mubr.f32.mxu1 %v15070_v63  ;;  %v11844_v5 = vpop.eup %11843  ;;  %v6966_v12 = vadd.f32 1.0, %v11842_v45  ;;  %v15363_v21 = vld [vmem:[#allocation33_spill] sm:$0xff]  ;;  %v15365_v45 = vld [vmem:[#allocation26_spill] sm:$0xff] }
 0xd57   :  { %11847 = vrcp.f32 %v6959_v11  ;;  %v15364_v11 = vld [vmem:[#allocation34_spill] sm:$0xff] }
 0xd58   :  { %10709 = vmatpush1.bf16.msra.mxu0 %v14003_v41  ;;  %10741 = vmatpush1.bf16.msra.mxu1 %v14005_v29  ;;  %11849 = vrcp.f32 %v6966_v12  ;;  %v15370_v12 = vld [vmem:[#allocation40_spill] sm:$0xff] }
 0xd59   :  { %10711 = vmatprep.subr.bf16.mxu0 %v14009_v2  ;;  %10743 = vmatprep.subr.bf16.mxu1 %v15273_v58 }
 0xd5c   :  { %10713 = vmatpush1.bf16.msra.mxu0 %v15274_v42  ;;  %10745 = vmatpush1.bf16.msra.mxu1 %v15300_v59 }
 0xd5d   :  { %10715 = vmatprep.subr.bf16.mxu0 %v15301_v1  ;;  %10747 = vmatprep.subr.bf16.mxu1 %v15302_v53 }
 0xd60   :  { %v11846_v35 = vpop.eup %11845  ;;  %10717 = vmatpush1.bf16.msra.mxu0 %v15278_v26  ;;  %10749 = vmatpush1.bf16.msra.mxu1 %v15279_v20 }
 0xd61   :  { %v11848_v24 = vpop.eup %11847  ;;  %v6970_v6 = vmul.f32 %v11846_v35, %v11844_v5  ;;  %10719 = vmatprep.subr.bf16.mxu0 %v15280_v62  ;;  %10751 = vmatprep.subr.bf16.mxu1 %v15281_v51  ;;  %v15366_v5 = vld [vmem:[#allocation27_spill] sm:$0xff]  ;;  %v15367_v35 = vld [vmem:[#allocation37_spill] sm:$0xff] }
 0xd62   :  { %v6969_v8 = vmul.f32 %v11848_v24, %v14375_v23  ;;  %v11850_v23 = vpop.eup %11849  ;;  %v15368_v24 = vld [vmem:[#allocation38_spill] sm:$0xff] }
 0xd64   :  { %v14466_v33 = vadd.f32 %v6970_v6, %v6969_v8  ;;  %10721 = vmatpush1.bf16.msra.mxu0 %v15282_v57  ;;  %10753 = vmatpush1.bf16.msra.mxu1 %v15283_v16  ;;  %v15369_v6 = vld [vmem:[#allocation39_spill] sm:$0xff]  ;;  %v15371_v8 = vld [vmem:[#allocation41_spill] sm:$0xff] }
 0xd65   :  { %10723 = vmatprep.subr.bf16.mxu0 %v14047_v4  ;;  %10755 = vmatprep.subr.bf16.mxu1 %v14049_v47 }
 0xd66   :  { %11851 = vtanh.f32 %v14466_v33 }
 0xd68   :  { %10725 = vmatpush1.bf16.msra.mxu0 %v14053_v25  ;;  %10757 = vmatpush1.bf16.msra.mxu1 %v14055_v19 }
 0xd69   :  { %10727 = vmatprep.subr.bf16.mxu0 %v14059_v32  ;;  %10759 = vmatprep.subr.bf16.mxu1 %v14061_v37 }
 0xd6c   :  { %10729 = vmatpush1.bf16.msra.mxu0 %v14065_v34  ;;  %10761 = vmatpush1.bf16.msra.mxu1 %v14067_v15 }
 0xd6d   :  { %10731 = vmatprep.subr.bf16.mxu0 %v14071_v48  ;;  %10763 = vmatprep.subr.bf16.mxu1 %v14073_v43 }
 0xd70   :  { %v11852_v18 = vpop.eup %11851  ;;  %10733 = vmatpush1.bf16.msra.mxu0 %v14077_v55  ;;  %10765 = vmatpush1.bf16.msra.mxu1 %v14079_v38 }
 0xd71   :  { %v6973_v31 = vmul.f32 %v11852_v18, %v11850_v23  ;;  %10767 = vmatprep.subr.bf16.mxu0 %v13857_v14  ;;  %10799 = vmatprep.subr.bf16.mxu1 %v13859_v9  ;;  %v15372_v23 = vld [vmem:[#allocation42_spill] sm:$0xff]  ;;  %v15373_v18 = vld [vmem:[#allocation44_spill] sm:$0xff] }
 0xd73   :  { %v14486_v17 = vadd.f32 %v6973_v31, %v14396_v50  ;;  %7195 = vmatmul.mubr.f32.vlgmr.msra.gmra.mrb[54].mxu0 %v6973_v31  ;;  %7266 = vmatmul.mubr.f32.vlgmr.msra.gmra.mrb[54].mxu1 %v6973_v31  ;;  %v15360_v50 = vld [vmem:[#allocation31_spill] sm:$0xff]  ;;  %v15374_v31 = vld [vmem:[#allocation45_spill] sm:$0xff] }
 0xd74   :  { %10769 = vmatpush1.bf16.msra.mxu0 %v13863_v49  ;;  %10801 = vmatpush1.bf16.msra.mxu1 %v13865_v27 }
 0xd75   :  { %10771 = vmatprep.subr.bf16.mxu0 %v13867_v3  ;;  %10803 = vmatprep.subr.bf16.mxu1 %v13869_v40 }
 0xd76   :  { %7394 = vmatprep.mubr.f32.mxu0 %v15070_v63  ;;  %7465 = vmatprep.mubr.f32.mxu1 %v15070_v63 }
 0xd78   :  { %10773 = vmatpush1.bf16.msra.mxu0 %v15329_v36  ;;  %10805 = vmatpush1.bf16.msra.mxu1 %v15359_v30 }
 0xd79   :  { %10775 = vmatprep.subr.bf16.mxu0 %v15360_v50  ;;  %10807 = vmatprep.subr.bf16.mxu1 %v15361_v28 }
 0xd7c   :  { %10777 = vmatpush1.bf16.msra.mxu0 %v15362_v52  ;;  %10809 = vmatpush1.bf16.msra.mxu1 %v15363_v21  ;;  %v15386_v21 = vld [vmem:[#allocation28_spill] sm:$0xff] }
 0xd7d   :  { %10779 = vmatprep.subr.bf16.mxu0 %v15364_v11  ;;  %10811 = vmatprep.subr.bf16.mxu1 %v15365_v45  ;;  %v15375_v11 = vld [vmem:[#allocation46_spill] sm:$0xff]  ;;  %v15376_v45 = vld [vmem:[#allocation48_spill] sm:$0xff] }
 0xd80   :  { %10781 = vmatpush1.bf16.msra.mxu0 %v15366_v5  ;;  %10813 = vmatpush1.bf16.msra.mxu1 %v15367_v35  ;;  %v15377_v5 = vld [vmem:[#allocation49_spill] sm:$0xff]  ;;  %v15378_v35 = vld [vmem:[#allocation50_spill] sm:$0xff] }
 0xd81   :  { %10783 = vmatprep.subr.bf16.mxu0 %v15368_v24  ;;  %10815 = vmatprep.subr.bf16.mxu1 %v15369_v6  ;;  %v15379_v24 = vld [vmem:[#allocation35_spill] sm:$0xff]  ;;  %v15380_v6 = vld [vmem:[#allocation22_spill] sm:$0xff] }
 0xd84   :  { %10785 = vmatpush1.bf16.msra.mxu0 %v15370_v12  ;;  %10817 = vmatpush1.bf16.msra.mxu1 %v15371_v8  ;;  %v15381_v12 = vld [vmem:[#allocation19_spill] sm:$0xff] }
 0xd85   :  { %10787 = vmatprep.subr.bf16.mxu0 %v15372_v23  ;;  %10819 = vmatprep.subr.bf16.mxu1 %v15373_v18  ;;  %v15382_v8 = vld [vmem:[#allocation23_spill] sm:$0xff]  ;;  %v15383_v23 = vld [vmem:[#allocation25_spill] sm:$0xff] }
 0xd86   :  { %v15384_v18 = vld [vmem:[#allocation47_spill] sm:$0xff] }
 0xd88   :  { %10789 = vmatpush1.bf16.msra.mxu0 %v15374_v31  ;;  %10821 = vmatpush1.bf16.msra.mxu1 %v15375_v11  ;;  %v15385_v31 = vld [vmem:[#allocation21_spill] sm:$0xff] }
 0xd89   :  { %10791 = vmatprep.subr.bf16.mxu0 %v15376_v45  ;;  %10823 = vmatprep.subr.bf16.mxu1 %v15377_v5 }
 0xd8c   :  { %10793 = vmatpush1.bf16.msra.mxu0 %v15378_v35  ;;  %10825 = vmatpush1.bf16.msra.mxu1 %v15379_v24 }
 0xd8d   :  { %10795 = vmatprep.subr.bf16.mxu0 %v15380_v6  ;;  %10827 = vmatprep.subr.bf16.mxu1 %v15381_v12 }
 0xd90   :  { %10797 = vmatpush1.bf16.msra.mxu0 %v15382_v8  ;;  %10829 = vmatpush1.bf16.msra.mxu1 %v15383_v23  ;;  %v15387_v23 = vld [vmem:[#allocation60_spill] sm:$0xff] }
 0xd91   :  { %10831 = vmatprep.subr.bf16.mxu0 %v15384_v18  ;;  %10863 = vmatprep.subr.bf16.mxu1 %v15385_v31 }
 0xe26   :  { %v7046_v11 = vpop.f32.mrb[40].mxu0  ;;  %v7117_v45 = vpop.f32.mrb[40].mxu1 }
 0xe27   :  { %v11270_v5 = vadd.f32 %v7046_v11, %v15386_v21  ;;  %v7048_v52 = vpop.f32.mrb[41].mxu0  ;;  %v7119_v35 = vpop.f32.mrb[41].mxu1  ;;  %v11286_v50 = vadd.f32 %v7117_v45, %v15387_v23 }
 0xe28   :  { %v11271_v24 = vadd.f32 %v7048_v52, %v15325_v22  ;;  %v11287_v8 = vadd.f32 %v7119_v35, %v15296_v46 }
 0xe29   :  { %v8685_v28 = vmul.f32 -1.442695, %v11270_v5 }
 0xe2a   :  { %v8686_v6 = vmul.f32 -1.442695, %v11271_v24  ;;  %v8687_v12 = vmul.f32 -1.442695, %v11287_v8 }
 0xe2b   :  { %11853 = vpow2.f32 %v8685_v28 }
 0xe2c   :  { %11855 = vpow2.f32 %v8686_v6 }
 0xe2d   :  { %11857 = vpow2.f32 %v8687_v12 }
 0xe2e   :  { %11859 = vtanh.f32 %v11286_v50 }
 0xe35   :  { %v11854_v18 = vpop.eup %11853 }
 0xe36   :  { %v11856_v30 = vpop.eup %11855  ;;  %v7279_v31 = vadd.f32 1.0, %v11854_v18 }
 0xe37   :  { %v7285_v36 = vadd.f32 1.0, %v11856_v30  ;;  %v11858_v11 = vpop.eup %11857 }
 0xe38   :  { %11861 = vrcp.f32 %v7279_v31  ;;  %v11860_v21 = vpop.eup %11859  ;;  %v7292_v28 = vadd.f32 1.0, %v11858_v11 }
 0xe39   :  { %11863 = vrcp.f32 %v7285_v36 }
 0xe3a   :  { %11865 = vrcp.f32 %v7292_v28 }
 0xe42   :  { %v11862_v52 = vpop.eup %11861 }
 0xe43   :  { %v11864_v5 = vpop.eup %11863  ;;  %v7296_v24 = vmul.f32 %v11862_v52, %v11860_v21 }
 0xe44   :  { %v7295_v6 = vmul.f32 %v11864_v5, %v14437_v10  ;;  %v11866_v10 = vpop.eup %11865 }
 0xe46   :  { %v14527_v35 = vadd.f32 %v7296_v24, %v7295_v6  ;;  %v7196_v8 = vpop.f32.mrb[54].mxu0  ;;  %v7267_v45 = vpop.f32.mrb[54].mxu1 }
 0xe47   :  { %v11300_v18 = vadd.f32 %v7196_v8, %v15358_v7  ;;  %v7198_v12 = vpop.f32.mrb[55].mxu0  ;;  %v7269_v50 = vpop.f32.mrb[55].mxu1  ;;  %v11316_v5 = vadd.f32 %v7267_v45, %v14166_v39 }
 0xe48   :  { %v11301_v30 = vadd.f32 %v7198_v12, %v14152_v13  ;;  %11867 = vtanh.f32 %v14527_v35  ;;  %v11317_v21 = vadd.f32 %v7269_v50, %v14161_v0 }
 0xe49   :  { %v8688_v36 = vmul.f32 -1.442695, %v11300_v18 }
 0xe4a   :  { %v8689_v31 = vmul.f32 -1.442695, %v11301_v30  ;;  %v8690_v52 = vmul.f32 -1.442695, %v11317_v21 }
 0xe4b   :  { %11869 = vpow2.f32 %v8688_v36 }
 0xe4c   :  { %11871 = vpow2.f32 %v8689_v31 }
 0xe4d   :  { %11873 = vpow2.f32 %v8690_v52 }
 0xe4e   :  { %11875 = vtanh.f32 %v11316_v5 }
 0xe52   :  { %v11868_v11 = vpop.eup %11867 }
 0xe53   :  { %v7299_v24 = vmul.f32 %v11868_v11, %v11866_v10 }
 0xe55   :  { %v11870_v28 = vpop.eup %11869  ;;  %v14535_v6 = vadd.f32 %v7299_v24, %v14445_v60  ;;  %7395 = vmatmul.mubr.f32.vlgmr.msra.gmra.mrb[42].mxu0 %v7299_v24  ;;  %7466 = vmatmul.mubr.f32.vlgmr.msra.gmra.mrb[42].mxu1 %v7299_v24  ;;  %v15388_v24 = vld [vmem:[#allocation29_spill] sm:$0xff] }
 0xe56   :  { %v11872_v8 = vpop.eup %11871  ;;  %v7303_v12 = vadd.f32 1.0, %v11870_v28  ;;  %10833 = vmatpush1.bf16.msra.mxu0 %v13989_v56  ;;  %10865 = vmatpush1.bf16.msra.mxu1 %v13991_v44  ;;  %v15389_v28 = vld [vmem:[#allocation30_spill] sm:$0xff] }
 0xe57   :  { %v7309_v18 = vadd.f32 1.0, %v11872_v8  ;;  %10835 = vmatprep.subr.bf16.mxu0 %v13995_v54  ;;  %10867 = vmatprep.subr.bf16.mxu1 %v13997_v61  ;;  %v11874_v60 = vpop.eup %11873  ;;  %v15391_v8 = vld [vmem:[#allocation24_spill] sm:$0xff] }
 0xe58   :  { %11877 = vrcp.f32 %v7303_v12  ;;  %7544 = vmatprep.mubr.f32.mxu0 %v15070_v63  ;;  %7615 = vmatprep.mubr.f32.mxu1 %v15070_v63  ;;  %v11876_v45 = vpop.eup %11875  ;;  %v7316_v31 = vadd.f32 1.0, %v11874_v60  ;;  %v15392_v12 = vld [vmem:[#allocation32_spill] sm:$0xff]  ;;  %v15394_v60 = vld [vmem:[#allocation34_spill] sm:$0xff] }
 0xe59   :  { %11879 = vrcp.f32 %v7309_v18  ;;  %v15393_v18 = vld [vmem:[#allocation33_spill] sm:$0xff] }
 0xe5a   :  { %10837 = vmatpush1.bf16.msra.mxu0 %v14003_v41  ;;  %10869 = vmatpush1.bf16.msra.mxu1 %v14005_v29  ;;  %11881 = vrcp.f32 %v7316_v31  ;;  %v15399_v31 = vld [vmem:[#allocation39_spill] sm:$0xff] }
 0xe5b   :  { %10839 = vmatprep.subr.bf16.mxu0 %v14009_v2  ;;  %10871 = vmatprep.subr.bf16.mxu1 %v15273_v58 }
 0xe5e   :  { %10841 = vmatpush1.bf16.msra.mxu0 %v15274_v42  ;;  %10873 = vmatpush1.bf16.msra.mxu1 %v15300_v59 }
 0xe5f   :  { %10843 = vmatprep.subr.bf16.mxu0 %v15301_v1  ;;  %10875 = vmatprep.subr.bf16.mxu1 %v15302_v53 }
 0xe62   :  { %v11878_v50 = vpop.eup %11877  ;;  %10845 = vmatpush1.bf16.msra.mxu0 %v15278_v26  ;;  %10877 = vmatpush1.bf16.msra.mxu1 %v15279_v20 }
 0xe63   :  { %v11880_v30 = vpop.eup %11879  ;;  %v7320_v36 = vmul.f32 %v11878_v50, %v11876_v45  ;;  %10847 = vmatprep.subr.bf16.mxu0 %v15280_v62  ;;  %10879 = vmatprep.subr.bf16.mxu1 %v15281_v51  ;;  %v15395_v45 = vld [vmem:[#allocation26_spill] sm:$0xff]  ;;  %v15396_v50 = vld [vmem:[#allocation27_spill] sm:$0xff] }
 0xe64   :  { %v7319_v21 = vmul.f32 %v11880_v30, %v14466_v33  ;;  %v11882_v33 = vpop.eup %11881  ;;  %v15397_v30 = vld [vmem:[#allocation37_spill] sm:$0xff] }
 0xe66   :  { %v14556_v10 = vadd.f32 %v7320_v36, %v7319_v21  ;;  %10849 = vmatpush1.bf16.msra.mxu0 %v15282_v57  ;;  %10881 = vmatpush1.bf16.msra.mxu1 %v15283_v16  ;;  %v15398_v36 = vld [vmem:[#allocation38_spill] sm:$0xff]  ;;  %v15400_v21 = vld [vmem:[#allocation40_spill] sm:$0xff] }
 0xe67   :  { %10851 = vmatprep.subr.bf16.mxu0 %v14047_v4  ;;  %10883 = vmatprep.subr.bf16.mxu1 %v14049_v47 }
 0xe68   :  { %11883 = vtanh.f32 %v14556_v10 }
 0xe6a   :  { %10853 = vmatpush1.bf16.msra.mxu0 %v14053_v25  ;;  %10885 = vmatpush1.bf16.msra.mxu1 %v14055_v19 }
 0xe6b   :  { %10855 = vmatprep.subr.bf16.mxu0 %v14059_v32  ;;  %10887 = vmatprep.subr.bf16.mxu1 %v14061_v37 }
 0xe6e   :  { %10857 = vmatpush1.bf16.msra.mxu0 %v14065_v34  ;;  %10889 = vmatpush1.bf16.msra.mxu1 %v14067_v15 }
 0xe6f   :  { %10859 = vmatprep.subr.bf16.mxu0 %v14071_v48  ;;  %10891 = vmatprep.subr.bf16.mxu1 %v14073_v43 }
 0xe72   :  { %v11884_v11 = vpop.eup %11883  ;;  %10861 = vmatpush1.bf16.msra.mxu0 %v14077_v55  ;;  %10893 = vmatpush1.bf16.msra.mxu1 %v14079_v38 }
 0xe73   :  { %v7323_v52 = vmul.f32 %v11884_v11, %v11882_v33  ;;  %10895 = vmatprep.subr.bf16.mxu0 %v13857_v14  ;;  %10927 = vmatprep.subr.bf16.mxu1 %v13859_v9  ;;  %v15401_v33 = vld [vmem:[#allocation41_spill] sm:$0xff]  ;;  %v15402_v11 = vld [vmem:[#allocation42_spill] sm:$0xff] }
 0xe75   :  { %v14576_v5 = vadd.f32 %v7323_v52, %v14486_v17  ;;  %7545 = vmatmul.mubr.f32.vlgmr.msra.gmra.mrb[52].mxu0 %v7323_v52  ;;  %7616 = vmatmul.mubr.f32.vlgmr.msra.gmra.mrb[52].mxu1 %v7323_v52  ;;  %v15390_v17 = vld [vmem:[#allocation31_spill] sm:$0xff]  ;;  %v15403_v52 = vld [vmem:[#allocation44_spill] sm:$0xff] }
 0xe76   :  { %10897 = vmatpush1.bf16.msra.mxu0 %v13863_v49  ;;  %10929 = vmatpush1.bf16.msra.mxu1 %v13865_v27 }
 0xe77   :  { %10899 = vmatprep.subr.bf16.mxu0 %v13867_v3  ;;  %10931 = vmatprep.subr.bf16.mxu1 %v13869_v40 }
 0xe78   :  { %7744 = vmatprep.mubr.f32.mxu0 %v15070_v63  ;;  %7815 = vmatprep.mubr.f32.mxu1 %v15070_v63 }
 0xe7a   :  { %10901 = vmatpush1.bf16.msra.mxu0 %v15388_v24  ;;  %10933 = vmatpush1.bf16.msra.mxu1 %v15389_v28 }
 0xe7b   :  { %10903 = vmatprep.subr.bf16.mxu0 %v15390_v17  ;;  %10935 = vmatprep.subr.bf16.mxu1 %v15391_v8 }
 0xe7e   :  { %10905 = vmatpush1.bf16.msra.mxu0 %v15392_v12  ;;  %10937 = vmatpush1.bf16.msra.mxu1 %v15393_v18  ;;  %v15404_v18 = vld [vmem:[#allocation45_spill] sm:$0xff]  ;;  %v15416_v12 = vld [vmem:[#allocation28_spill] sm:$0xff] }
 0xe7f   :  { %10907 = vmatprep.subr.bf16.mxu0 %v15394_v60  ;;  %10939 = vmatprep.subr.bf16.mxu1 %v15395_v45  ;;  %v15405_v60 = vld [vmem:[#allocation46_spill] sm:$0xff]  ;;  %v15406_v45 = vld [vmem:[#allocation48_spill] sm:$0xff] }
 0xe82   :  { %10909 = vmatpush1.bf16.msra.mxu0 %v15396_v50  ;;  %10941 = vmatpush1.bf16.msra.mxu1 %v15397_v30  ;;  %v15407_v50 = vld [vmem:[#allocation49_spill] sm:$0xff]  ;;  %v15408_v30 = vld [vmem:[#allocation50_spill] sm:$0xff] }
 0xe83   :  { %10911 = vmatprep.subr.bf16.mxu0 %v15398_v36  ;;  %10943 = vmatprep.subr.bf16.mxu1 %v15399_v31  ;;  %v15409_v36 = vld [vmem:[#allocation35_spill] sm:$0xff]  ;;  %v15410_v31 = vld [vmem:[#allocation22_spill] sm:$0xff] }
 0xe86   :  { %10913 = vmatpush1.bf16.msra.mxu0 %v15400_v21  ;;  %10945 = vmatpush1.bf16.msra.mxu1 %v15401_v33  ;;  %v15411_v21 = vld [vmem:[#allocation19_spill] sm:$0xff] }
 0xe87   :  { %10915 = vmatprep.subr.bf16.mxu0 %v15402_v11  ;;  %10947 = vmatprep.subr.bf16.mxu1 %v15403_v52  ;;  %v15412_v33 = vld [vmem:[#allocation23_spill] sm:$0xff]  ;;  %v15413_v11 = vld [vmem:[#allocation25_spill] sm:$0xff] }
 0xe88   :  { %v15414_v52 = vld [vmem:[#allocation47_spill] sm:$0xff] }
 0xe8a   :  { %10917 = vmatpush1.bf16.msra.mxu0 %v15404_v18  ;;  %10949 = vmatpush1.bf16.msra.mxu1 %v15405_v60  ;;  %v15415_v18 = vld [vmem:[#allocation21_spill] sm:$0xff] }
 0xe8b   :  { %10919 = vmatprep.subr.bf16.mxu0 %v15406_v45  ;;  %10951 = vmatprep.subr.bf16.mxu1 %v15407_v50 }
 0xe8e   :  { %10921 = vmatpush1.bf16.msra.mxu0 %v15408_v30  ;;  %10953 = vmatpush1.bf16.msra.mxu1 %v15409_v36 }
 0xe8f   :  { %10923 = vmatprep.subr.bf16.mxu0 %v15410_v31  ;;  %10955 = vmatprep.subr.bf16.mxu1 %v15411_v21 }
 0xe92   :  { %10925 = vmatpush1.bf16.msra.mxu0 %v15412_v33  ;;  %10957 = vmatpush1.bf16.msra.mxu1 %v15413_v11 }
 0xe93   :  { %10959 = vmatprep.subr.bf16.mxu0 %v15414_v52  ;;  %10991 = vmatprep.subr.bf16.mxu1 %v15415_v18 }
 0xf28   :  { %v7396_v60 = vpop.f32.mrb[42].mxu0  ;;  %v7467_v45 = vpop.f32.mrb[42].mxu1 }
 0xf29   :  { %v11272_v50 = vadd.f32 %v7396_v60, %v15416_v12  ;;  %v7398_v8 = vpop.f32.mrb[43].mxu0  ;;  %v7469_v30 = vpop.f32.mrb[43].mxu1  ;;  %v11288_v11 = vadd.f32 %v7467_v45, %v15387_v23 }
 0xf2a   :  { %v11273_v36 = vadd.f32 %v7398_v8, %v15325_v22  ;;  %v11289_v33 = vadd.f32 %v7469_v30, %v15296_v46 }
 0xf2b   :  { %v8691_v17 = vmul.f32 -1.442695, %v11272_v50 }
 0xf2c   :  { %v8692_v31 = vmul.f32 -1.442695, %v11273_v36  ;;  %v8693_v21 = vmul.f32 -1.442695, %v11289_v33 }
 0xf2d   :  { %11885 = vpow2.f32 %v8691_v17 }
 0xf2e   :  { %11887 = vpow2.f32 %v8692_v31 }
 0xf2f   :  { %11889 = vpow2.f32 %v8693_v21 }
 0xf30   :  { %11891 = vtanh.f32 %v11288_v11 }
 0xf37   :  { %v11886_v52 = vpop.eup %11885 }
 0xf38   :  { %v11888_v28 = vpop.eup %11887  ;;  %v7629_v18 = vadd.f32 1.0, %v11886_v52 }
 0xf39   :  { %v7635_v24 = vadd.f32 1.0, %v11888_v28  ;;  %v11890_v60 = vpop.eup %11889 }
 0xf3a   :  { %11893 = vrcp.f32 %v7629_v18  ;;  %v11892_v12 = vpop.eup %11891  ;;  %v7642_v17 = vadd.f32 1.0, %v11890_v60 }
 0xf3b   :  { %11895 = vrcp.f32 %v7635_v24 }
 0xf3c   :  { %11897 = vrcp.f32 %v7642_v17 }
 0xf44   :  { %v11894_v8 = vpop.eup %11893 }
 0xf45   :  { %v11896_v50 = vpop.eup %11895  ;;  %v7646_v36 = vmul.f32 %v11894_v8, %v11892_v12 }
 0xf46   :  { %v7645_v31 = vmul.f32 %v11896_v50, %v14527_v35  ;;  %v11898_v35 = vpop.eup %11897 }
 0xf48   :  { %v14617_v30 = vadd.f32 %v7646_v36, %v7645_v31  ;;  %v7546_v33 = vpop.f32.mrb[52].mxu0  ;;  %v7617_v45 = vpop.f32.mrb[52].mxu1 }
 0xf49   :  { %v11298_v52 = vadd.f32 %v7546_v33, %v15358_v7  ;;  %v7548_v21 = vpop.f32.mrb[53].mxu0  ;;  %v7619_v11 = vpop.f32.mrb[53].mxu1  ;;  %v11314_v50 = vadd.f32 %v7617_v45, %v14166_v39 }
 0xf4a   :  { %v11299_v28 = vadd.f32 %v7548_v21, %v14152_v13  ;;  %11899 = vtanh.f32 %v14617_v30  ;;  %v11315_v12 = vadd.f32 %v7619_v11, %v14161_v0 }
 0xf4b   :  { %v8694_v24 = vmul.f32 -1.442695, %v11298_v52 }
 0xf4c   :  { %v8695_v18 = vmul.f32 -1.442695, %v11299_v28  ;;  %v8696_v8 = vmul.f32 -1.442695, %v11315_v12 }
 0xf4d   :  { %11901 = vpow2.f32 %v8694_v24 }
 0xf4e   :  { %11903 = vpow2.f32 %v8695_v18 }
 0xf4f   :  { %11905 = vpow2.f32 %v8696_v8 }
 0xf50   :  { %11907 = vtanh.f32 %v11314_v50 }
 0xf54   :  { %v11900_v60 = vpop.eup %11899 }
 0xf55   :  { %v7649_v36 = vmul.f32 %v11900_v60, %v11898_v35 }
 0xf57   :  { %v11902_v17 = vpop.eup %11901  ;;  %7745 = vmatmul.mubr.f32.vlgmr.msra.gmra.mrb[44].mxu0 %v7649_v36  ;;  %7816 = vmatmul.mubr.f32.vlgmr.msra.gmra.mrb[44].mxu1 %v7649_v36  ;;  %v14625_v31 = vadd.f32 %v7649_v36, %v14535_v6  ;;  %v15419_v36 = vld [vmem:[#allocation31_spill] sm:$0xff] }
 0xf58   :  { %v11904_v33 = vpop.eup %11903  ;;  %v7653_v21 = vadd.f32 1.0, %v11902_v17  ;;  %10961 = vmatpush1.bf16.msra.mxu0 %v13989_v56  ;;  %10993 = vmatpush1.bf16.msra.mxu1 %v13991_v44  ;;  %v15421_v17 = vld [vmem:[#allocation32_spill] sm:$0xff] }
 0xf59   :  { %v7659_v52 = vadd.f32 1.0, %v11904_v33  ;;  %10963 = vmatprep.subr.bf16.mxu0 %v13995_v54  ;;  %10995 = vmatprep.subr.bf16.mxu1 %v13997_v61  ;;  %v11906_v6 = vpop.eup %11905  ;;  %v15426_v33 = vld [vmem:[#allocation37_spill] sm:$0xff] }
 0xf5a   :  { %11909 = vrcp.f32 %v7653_v21  ;;  %7894 = vmatprep.mubr.f32.mxu0 %v15070_v63  ;;  %7965 = vmatprep.mubr.f32.mxu1 %v15070_v63  ;;  %v11908_v45 = vpop.eup %11907  ;;  %v7666_v18 = vadd.f32 1.0, %v11906_v6  ;;  %v15427_v21 = vld [vmem:[#allocation38_spill] sm:$0xff]  ;;  %v15429_v6 = vld [vmem:[#allocation40_spill] sm:$0xff] }
 0xf5b   :  { %11911 = vrcp.f32 %v7659_v52  ;;  %v15428_v52 = vld [vmem:[#allocation39_spill] sm:$0xff] }
 0xf5c   :  { %10965 = vmatpush1.bf16.msra.mxu0 %v14003_v41  ;;  %10997 = vmatpush1.bf16.msra.mxu1 %v14005_v29  ;;  %11913 = vrcp.f32 %v7666_v18  ;;  %v15434_v18 = vld [vmem:[#allocation46_spill] sm:$0xff] }
 0xf5d   :  { %10967 = vmatprep.subr.bf16.mxu0 %v14009_v2  ;;  %10999 = vmatprep.subr.bf16.mxu1 %v15273_v58 }
 0xf60   :  { %10969 = vmatpush1.bf16.msra.mxu0 %v15274_v42  ;;  %11001 = vmatpush1.bf16.msra.mxu1 %v15300_v59 }
 0xf61   :  { %10971 = vmatprep.subr.bf16.mxu0 %v15301_v1  ;;  %11003 = vmatprep.subr.bf16.mxu1 %v15302_v53 }
 0xf64   :  { %v11910_v11 = vpop.eup %11909  ;;  %10973 = vmatpush1.bf16.msra.mxu0 %v15278_v26  ;;  %11005 = vmatpush1.bf16.msra.mxu1 %v15279_v20 }
 0xf65   :  { %v11912_v28 = vpop.eup %11911  ;;  %v7670_v24 = vmul.f32 %v11910_v11, %v11908_v45  ;;  %10975 = vmatprep.subr.bf16.mxu0 %v15280_v62  ;;  %11007 = vmatprep.subr.bf16.mxu1 %v15281_v51  ;;  %v15430_v45 = vld [vmem:[#allocation41_spill] sm:$0xff]  ;;  %v15431_v11 = vld [vmem:[#allocation42_spill] sm:$0xff] }
 0xf66   :  { %v7669_v12 = vmul.f32 %v11912_v28, %v14556_v10  ;;  %v11914_v10 = vpop.eup %11913  ;;  %v15432_v28 = vld [vmem:[#allocation44_spill] sm:$0xff] }
 0xf68   :  { %v14646_v35 = vadd.f32 %v7670_v24, %v7669_v12  ;;  %10977 = vmatpush1.bf16.msra.mxu0 %v15282_v57  ;;  %11009 = vmatpush1.bf16.msra.mxu1 %v15283_v16  ;;  %v15433_v24 = vld [vmem:[#allocation45_spill] sm:$0xff]  ;;  %v15435_v12 = vld [vmem:[#allocation48_spill] sm:$0xff] }
 0xf69   :  { %10979 = vmatprep.subr.bf16.mxu0 %v14047_v4  ;;  %11011 = vmatprep.subr.bf16.mxu1 %v14049_v47 }
 0xf6a   :  { %11915 = vtanh.f32 %v14646_v35 }
 0xf6c   :  { %10981 = vmatpush1.bf16.msra.mxu0 %v14053_v25  ;;  %11013 = vmatpush1.bf16.msra.mxu1 %v14055_v19 }
 0xf6d   :  { %10983 = vmatprep.subr.bf16.mxu0 %v14059_v32  ;;  %11015 = vmatprep.subr.bf16.mxu1 %v14061_v37 }
 0xf70   :  { %10985 = vmatpush1.bf16.msra.mxu0 %v14065_v34  ;;  %11017 = vmatpush1.bf16.msra.mxu1 %v14067_v15 }
 0xf71   :  { %10987 = vmatprep.subr.bf16.mxu0 %v14071_v48  ;;  %11019 = vmatprep.subr.bf16.mxu1 %v14073_v43 }
 0xf74   :  { %v11916_v60 = vpop.eup %11915  ;;  %10989 = vmatpush1.bf16.msra.mxu0 %v14077_v55  ;;  %11021 = vmatpush1.bf16.msra.mxu1 %v14079_v38 }
 0xf75   :  { %v7673_v8 = vmul.f32 %v11916_v60, %v11914_v10  ;;  %11023 = vmatprep.subr.bf16.mxu0 %v13857_v14  ;;  %11055 = vmatprep.subr.bf16.mxu1 %v13859_v9  ;;  %v15417_v14 = vld [vmem:[#allocation29_spill] sm:$0xff]  ;;  %v15418_v9 = vld [vmem:[#allocation30_spill] sm:$0xff] }
 0xf76   :  { %v15436_v10 = vld [vmem:[#allocation49_spill] sm:$0xff]  ;;  %v15437_v60 = vld [vmem:[#allocation50_spill] sm:$0xff] }
 0xf77   :  { %7895 = vmatmul.mubr.f32.vlgmr.msra.gmra.mrb[50].mxu0 %v7673_v8  ;;  %7966 = vmatmul.mubr.f32.vlgmr.msra.gmra.mrb[50].mxu1 %v7673_v8  ;;  %v14666_v50 = vadd.f32 %v7673_v8, %v14576_v5  ;;  %v15420_v5 = vld [vmem:[#allocation24_spill] sm:$0xff]  ;;  %v15438_v8 = vld [vmem:[#allocation35_spill] sm:$0xff] }
 0xf78   :  { %11025 = vmatpush1.bf16.msra.mxu0 %v13863_v49  ;;  %11057 = vmatpush1.bf16.msra.mxu1 %v13865_v27  ;;  %v15422_v49 = vld [vmem:[#allocation33_spill] sm:$0xff]  ;;  %v15423_v27 = vld [vmem:[#allocation34_spill] sm:$0xff] }
 0xf79   :  { %11027 = vmatprep.subr.bf16.mxu0 %v13867_v3  ;;  %11059 = vmatprep.subr.bf16.mxu1 %v13869_v40  ;;  %v15424_v3 = vld [vmem:[#allocation26_spill] sm:$0xff]  ;;  %v15425_v40 = vld [vmem:[#allocation27_spill] sm:$0xff] }
 0xf7a   :  { %8094 = vmatprep.mubr.f32.mxu0 %v15070_v63  ;;  %8165 = vmatprep.mubr.f32.mxu1 %v15070_v63 }
 0xf7c   :  { %11029 = vmatpush1.bf16.msra.mxu0 %v15417_v14  ;;  %11061 = vmatpush1.bf16.msra.mxu1 %v15418_v9  ;;  %v15439_v14 = vld [vmem:[#allocation22_spill] sm:$0xff]  ;;  %v15440_v9 = vld [vmem:[#allocation19_spill] sm:$0xff] }
 0xf7d   :  { %11031 = vmatprep.subr.bf16.mxu0 %v15419_v36  ;;  %11063 = vmatprep.subr.bf16.mxu1 %v15420_v5  ;;  %v15441_v36 = vld [vmem:[#allocation23_spill] sm:$0xff]  ;;  %v15442_v5 = vld [vmem:[#allocation25_spill] sm:$0xff] }
 0xf80   :  { %11033 = vmatpush1.bf16.msra.mxu0 %v15421_v17  ;;  %11065 = vmatpush1.bf16.msra.mxu1 %v15422_v49  ;;  %v15443_v17 = vld [vmem:[#allocation47_spill] sm:$0xff]  ;;  %v15444_v49 = vld [vmem:[#allocation21_spill] sm:$0xff] }
 0xf81   :  { %11035 = vmatprep.subr.bf16.mxu0 %v15423_v27  ;;  %11067 = vmatprep.subr.bf16.mxu1 %v15424_v3 }
 0xf84   :  { %11037 = vmatpush1.bf16.msra.mxu0 %v15425_v40  ;;  %11069 = vmatpush1.bf16.msra.mxu1 %v15426_v33  ;;  %v15445_v40 = vld [vmem:[#allocation28_spill] sm:$0xff] }
 0xf85   :  { %11039 = vmatprep.subr.bf16.mxu0 %v15427_v21  ;;  %11071 = vmatprep.subr.bf16.mxu1 %v15428_v52 }
 0xf88   :  { %11041 = vmatpush1.bf16.msra.mxu0 %v15429_v6  ;;  %11073 = vmatpush1.bf16.msra.mxu1 %v15430_v45 }
 0xf89   :  { %11043 = vmatprep.subr.bf16.mxu0 %v15431_v11  ;;  %11075 = vmatprep.subr.bf16.mxu1 %v15432_v28 }
 0xf8c   :  { %11045 = vmatpush1.bf16.msra.mxu0 %v15433_v24  ;;  %11077 = vmatpush1.bf16.msra.mxu1 %v15434_v18 }
 0xf8d   :  { %11047 = vmatprep.subr.bf16.mxu0 %v15435_v12  ;;  %11079 = vmatprep.subr.bf16.mxu1 %v15436_v10 }
 0xf90   :  { %11049 = vmatpush1.bf16.msra.mxu0 %v15437_v60  ;;  %11081 = vmatpush1.bf16.msra.mxu1 %v15438_v8 }
 0xf91   :  { %11051 = vmatprep.subr.bf16.mxu0 %v15439_v14  ;;  %11083 = vmatprep.subr.bf16.mxu1 %v15440_v9 }
 0xf94   :  { %11053 = vmatpush1.bf16.msra.mxu0 %v15441_v36  ;;  %11085 = vmatpush1.bf16.msra.mxu1 %v15442_v5 }
 0xf95   :  { %11087 = vmatprep.subr.bf16.mxu0 %v15443_v17  ;;  %11119 = vmatprep.subr.bf16.mxu1 %v15444_v49 }
0x102a   :  { %v7746_v27 = vpop.f32.mrb[44].mxu0  ;;  %v7817_v3 = vpop.f32.mrb[44].mxu1 }
0x102b   :  { %v11274_v33 = vadd.f32 %v7746_v27, %v15445_v40  ;;  %v7748_v21 = vpop.f32.mrb[45].mxu0  ;;  %v7819_v52 = vpop.f32.mrb[45].mxu1  ;;  %v11290_v18 = vadd.f32 %v7817_v3, %v15387_v23 }
0x102c   :  { %v11275_v6 = vadd.f32 %v7748_v21, %v15325_v22  ;;  %v11291_v28 = vadd.f32 %v7819_v52, %v15296_v46 }
0x102d   :  { %v8697_v45 = vmul.f32 -1.442695, %v11274_v33 }
0x102e   :  { %v8698_v11 = vmul.f32 -1.442695, %v11275_v6  ;;  %v8699_v24 = vmul.f32 -1.442695, %v11291_v28 }
0x102f   :  { %11917 = vpow2.f32 %v8697_v45 }
0x1030   :  { %11919 = vpow2.f32 %v8698_v11 }
0x1031   :  { %11921 = vpow2.f32 %v8699_v24 }
0x1032   :  { %11923 = vtanh.f32 %v11290_v18 }
0x1039   :  { %v11918_v12 = vpop.eup %11917 }
0x103a   :  { %v11920_v10 = vpop.eup %11919  ;;  %v7979_v60 = vadd.f32 1.0, %v11918_v12 }
0x103b   :  { %v7985_v8 = vadd.f32 1.0, %v11920_v10  ;;  %v11922_v14 = vpop.eup %11921 }
0x103c   :  { %11925 = vrcp.f32 %v7979_v60  ;;  %v11924_v9 = vpop.eup %11923  ;;  %v7992_v49 = vadd.f32 1.0, %v11922_v14 }
0x103d   :  { %11927 = vrcp.f32 %v7985_v8 }
0x103e   :  { %11929 = vrcp.f32 %v7992_v49 }
0x1046   :  { %v11926_v36 = vpop.eup %11925 }
0x1047   :  { %v11928_v5 = vpop.eup %11927  ;;  %v7996_v17 = vmul.f32 %v11926_v36, %v11924_v9 }
0x1048   :  { %v7995_v27 = vmul.f32 %v11928_v5, %v14617_v30  ;;  %v11930_v30 = vpop.eup %11929 }
0x104a   :  { %v14707_v33 = vadd.f32 %v7996_v17, %v7995_v27  ;;  %v7896_v21 = vpop.f32.mrb[50].mxu0  ;;  %v7967_v3 = vpop.f32.mrb[50].mxu1  ;;  %v8391_v27 = vld [vmem:[%s14849_s9 + $0x70] sm:$0xff] }
0x104b   :  { %v11296_v52 = vadd.f32 %v7896_v21, %v15358_v7  ;;  %v7898_v6 = vpop.f32.mrb[51].mxu0  ;;  %v7969_v45 = vpop.f32.mrb[51].mxu1  ;;  %v11312_v60 = vadd.f32 %v7967_v3, %v14166_v39  ;;  %v8392_v21 = vld [vmem:[%s14849_s9 + $0x78] sm:$0xff] }
0x104c   :  { %v11297_v11 = vadd.f32 %v7898_v6, %v14152_v13  ;;  %11931 = vtanh.f32 %v14707_v33  ;;  %v11313_v18 = vadd.f32 %v7969_v45, %v14161_v0  ;;  %v11196_v3 = vpack.c.bf16 %v8392_v21, %v8391_v27  ;;  %v8395_v6 = vld [vmem:[#allocation12 + $0x8] sm:$0xff] }
0x104d   :  { %v8700_v28 = vmul.f32 -1.442695, %v11296_v52  ;;  %v8394_v52 = vld [vmem:[#allocation12] sm:$0xff] }
0x104e   :  { %v8701_v24 = vmul.f32 -1.442695, %v11297_v11  ;;  %v8702_v10 = vmul.f32 -1.442695, %v11313_v18  ;;  %v11151_v45 = vpack.c.bf16 %v8395_v6, %v8394_v52  ;;  %v8396_v11 = vld [vmem:[#allocation12 + $0x10] sm:$0xff]  ;;  %v8398_v18 = vld [vmem:[#allocation12 + $0x20] sm:$0xff] }
0x104f   :  { %11933 = vpow2.f32 %v8700_v28  ;;  %v8397_v28 = vld [vmem:[#allocation12 + $0x18] sm:$0xff] }
0x1050   :  { %11935 = vpow2.f32 %v8701_v24  ;;  %v11154_v24 = vpack.c.bf16 %v8397_v28, %v8396_v11 }
0x1051   :  { %11937 = vpow2.f32 %v8702_v10  ;;  %v8400_v10 = vld [vmem:[#allocation12 + $0x30] sm:$0xff] }
0x1052   :  { %11939 = vtanh.f32 %v11312_v60  ;;  %v8401_v60 = vld [vmem:[#allocation12 + $0x38] sm:$0xff] }
0x1056   :  { %v11932_v12 = vpop.eup %11931 }
0x1057   :  { %v7999_v8 = vmul.f32 %v11932_v12, %v11930_v30  ;;  %v8399_v30 = vld [vmem:[#allocation12 + $0x28] sm:$0xff] }
0x1058   :  { %v11157_v12 = vpack.c.bf16 %v8399_v30, %v8398_v18 }
0x1059   :  { %v11934_v14 = vpop.eup %11933  ;;  %8095 = vmatmul.mubr.f32.vlgmr.msra.gmra.mrb[46].mxu0 %v7999_v8  ;;  %8166 = vmatmul.mubr.f32.vlgmr.msra.gmra.mrb[46].mxu1 %v7999_v8  ;;  %v14715_v9 = vadd.f32 %v7999_v8, %v14625_v31  ;;  %v11160_v8 = vpack.c.bf16 %v8401_v60, %v8400_v10 }
0x105a   :  { %v11936_v36 = vpop.eup %11935  ;;  %v8003_v5 = vadd.f32 1.0, %v11934_v14  ;;  %11089 = vmatpush1.bf16.msra.mxu0 %v13989_v56  ;;  %11121 = vmatpush1.bf16.msra.mxu1 %v13991_v44  ;;  %v8403_v14 = vld [vmem:[#allocation12 + $0x48] sm:$0xff] }
0x105b   :  { %v8009_v17 = vadd.f32 1.0, %v11936_v36  ;;  %11091 = vmatprep.subr.bf16.mxu0 %v13995_v54  ;;  %11123 = vmatprep.subr.bf16.mxu1 %v13997_v61  ;;  %v11938_v56 = vpop.eup %11937  ;;  %v8404_v36 = vld [vmem:[#allocation12 + $0x50] sm:$0xff] }
0x105c   :  { %11941 = vrcp.f32 %v8003_v5  ;;  %8244 = vmatprep.mubr.f32.mxu0 %v15070_v63  ;;  %8315 = vmatprep.mubr.f32.mxu1 %v15070_v63  ;;  %v11940_v44 = vpop.eup %11939 }
0x105d   :  { %11943 = vrcp.f32 %v8009_v17  ;;  %v8405_v17 = vld [vmem:[#allocation12 + $0x58] sm:$0xff] }
0x105e   :  { %11093 = vmatpush1.bf16.msra.mxu0 %v14003_v41  ;;  %11125 = vmatpush1.bf16.msra.mxu1 %v14005_v29  ;;  %v8016_v29 = vadd.f32 1.0, %v11938_v56  ;;  %v11166_v56 = vpack.c.bf16 %v8405_v17, %v8404_v36 }
0x105f   :  { %11095 = vmatprep.subr.bf16.mxu0 %v14009_v2  ;;  %11127 = vmatprep.subr.bf16.mxu1 %v15273_v58 }
0x1060   :  { %11945 = vrcp.f32 %v8016_v29  ;;  %v8409_v29 = vld [vmem:[#allocation12 + $0x78] sm:$0xff] }
0x1062   :  { %11097 = vmatpush1.bf16.msra.mxu0 %v15274_v42  ;;  %11129 = vmatpush1.bf16.msra.mxu1 %v15300_v59  ;;  %v8382_v42 = vld [vmem:[%s14849_s9 + $0x28] sm:$0xff] }
0x1063   :  { %11099 = vmatprep.subr.bf16.mxu0 %v15301_v1  ;;  %11131 = vmatprep.subr.bf16.mxu1 %v15302_v53  ;;  %v8387_v1 = vld [vmem:[%s14849_s9 + $0x50] sm:$0xff]  ;;  %v8388_v53 = vld [vmem:[%s14849_s9 + $0x58] sm:$0xff] }
0x1064   :  { %v11190_v31 = vpack.c.bf16 %v8388_v53, %v8387_v1 }
0x1066   :  { %v11942_v54 = vpop.eup %11941  ;;  %11101 = vmatpush1.bf16.msra.mxu0 %v15278_v26  ;;  %11133 = vmatpush1.bf16.msra.mxu1 %v15279_v20  ;;  %v8384_v26 = vld [vmem:[%s14849_s9 + $0x38] sm:$0xff] }
0x1067   :  { %v11944_v61 = vpop.eup %11943  ;;  %v8020_v41 = vmul.f32 %v11942_v54, %v11940_v44  ;;  %11103 = vmatprep.subr.bf16.mxu0 %v15280_v62  ;;  %11135 = vmatprep.subr.bf16.mxu1 %v15281_v51  ;;  %v8385_v62 = vld [vmem:[%s14849_s9 + $0x40] sm:$0xff]  ;;  %v8386_v51 = vld [vmem:[%s14849_s9 + $0x48] sm:$0xff] }
0x1068   :  { %v8019_v2 = vmul.f32 %v11944_v61, %v14646_v35  ;;  %v11187_v59 = vpack.c.bf16 %v8386_v51, %v8385_v62  ;;  %v8389_v35 = vld [vmem:[%s14849_s9 + $0x60] sm:$0xff]  ;;  %v8407_v54 = vld [vmem:[#allocation12 + $0x68] sm:$0xff] }
0x1069   :  { %v8406_v44 = vld [vmem:[#allocation12 + $0x60] sm:$0xff] }
0x106a   :  { %v14736_v58 = vadd.f32 %v8020_v41, %v8019_v2  ;;  %11105 = vmatpush1.bf16.msra.mxu0 %v15282_v57  ;;  %11137 = vmatpush1.bf16.msra.mxu1 %v15283_v16  ;;  %v8383_v16 = vld [vmem:[%s14849_s9 + $0x30] sm:$0xff]  ;;  %v11169_v61 = vpack.c.bf16 %v8407_v54, %v8406_v44 }
0x106b   :  { %11107 = vmatprep.subr.bf16.mxu0 %v14047_v4  ;;  %11139 = vmatprep.subr.bf16.mxu1 %v14049_v47  ;;  %v11946_v4 = vpop.eup %11945  ;;  %v11184_v20 = vpack.c.bf16 %v8384_v26, %v8383_v16  ;;  %v8408_v41 = vld [vmem:[#allocation12 + $0x70] sm:$0xff] }
0x106c   :  { %11947 = vtanh.f32 %v14736_v58  ;;  %v11172_v2 = vpack.c.bf16 %v8409_v29, %v8408_v41  ;;  %v8709_v41 = vld [vmem:[%s14851_s11] ss:$0 sm:$0xff] }
0x106e   :  { %11109 = vmatpush1.bf16.msra.mxu0 %v14053_v25  ;;  %11141 = vmatpush1.bf16.msra.mxu1 %v14055_v19 }
0x106f   :  { %11111 = vmatprep.subr.bf16.mxu0 %v14059_v32  ;;  %11143 = vmatprep.subr.bf16.mxu1 %v14061_v37  ;;  %v8377_v32 = vld [vmem:[%s14849_s9] sm:$0xff]  ;;  %v8378_v37 = vld [vmem:[%s14849_s9 + $0x8] sm:$0xff] }
0x1072   :  { %11113 = vmatpush1.bf16.msra.mxu0 %v14065_v34  ;;  %11145 = vmatpush1.bf16.msra.mxu1 %v14067_v15  ;;  %v11175_v34 = vpack.c.bf16 %v8378_v37, %v8377_v32  ;;  %v12134_v15 = vmov 0.0|0.0  }
0x1073   :  { %11115 = vmatprep.subr.bf16.mxu0 %v14071_v48  ;;  %11147 = vmatprep.subr.bf16.mxu1 %v14073_v43  ;;  %v8379_v48 = vld [vmem:[%s14849_s9 + $0x10] sm:$0xff]  ;;  %v8380_v43 = vld [vmem:[%s14849_s9 + $0x18] sm:$0xff] }
0x1076   :  { %v11948_v47 = vpop.eup %11947  ;;  %11117 = vmatpush1.bf16.msra.mxu0 %v14077_v55  ;;  %11149 = vmatpush1.bf16.msra.mxu1 %v14079_v38  ;;  %v11178_v55 = vpack.c.bf16 %v8380_v43, %v8379_v48  ;;  %v8381_v38 = vld [vmem:[%s14849_s9 + $0x20] sm:$0xff] }
0x1077   :  { %v8023_v25 = vmul.f32 %v11948_v47, %v11946_v4  ;;  %11174 = vmatprep.subr.bf16.mxu1 %v12134_v15  ;;  %11150 = vmatprep.subr.bf16.mxu0 %v12134_v15  ;;  %v11181_v57 = vpack.c.bf16 %v8382_v42, %v8381_v38 }
0x1079   :  { %8245 = vmatmul.mubr.f32.vlgmr.msra.gmra.mrb[48].mxu0 %v8023_v25  ;;  %8316 = vmatmul.mubr.f32.vlgmr.msra.gmra.mrb[48].mxu1 %v8023_v25  ;;  %v14754_v19 = vadd.f32 %v8023_v25, %v14666_v50  ;;  %v8390_v50 = vld [vmem:[%s14849_s9 + $0x68] sm:$0xff] }
0x107a   :  { %11176 = vmatpush3.bf16.msra.mxu1 %v11175_v34  ;;  %v11193_v49 = vpack.c.bf16 %v8390_v50, %v8389_v35  ;;  %8811 = vmatprep.mubr.msk.f32.mxu1 %vm12135_vm1, %v15070_v63 }
0x107b   :  { %11177 = vmatprep.subr.bf16.mxu1 %v12134_v15  ;;  %8776 = vmatprep.mubr.msk.f32.mxu0 %vm12135_vm1, %v15070_v63  ;;  %v8402_v63 = vld [vmem:[#allocation12 + $0x40] sm:$0xff] }
0x107c   :  { %11152 = vmatpush3.bf16.msra.mxu0 %v11151_v45  ;;  %v11163_v5 = vpack.c.bf16 %v8403_v14, %v8402_v63 }
0x107d   :  { %11153 = vmatprep.subr.bf16.mxu0 %v12134_v15 }
0x107e   :  { %11179 = vmatpush3.bf16.msra.mxu1 %v11178_v55 }
0x107f   :  { %11180 = vmatprep.subr.bf16.mxu1 %v12134_v15 }
0x1080   :  { %11155 = vmatpush3.bf16.msra.mxu0 %v11154_v24 }
0x1081   :  { %11156 = vmatprep.subr.bf16.mxu0 %v12134_v15 }
0x1082   :  { %11182 = vmatpush3.bf16.msra.mxu1 %v11181_v57 }
0x1083   :  { %11183 = vmatprep.subr.bf16.mxu1 %v12134_v15 }
0x1084   :  { %11158 = vmatpush3.bf16.msra.mxu0 %v11157_v12 }
0x1085   :  { %11159 = vmatprep.subr.bf16.mxu0 %v12134_v15 }
0x1086   :  { %11185 = vmatpush3.bf16.msra.mxu1 %v11184_v20 }
0x1087   :  { %11186 = vmatprep.subr.bf16.mxu1 %v12134_v15 }
0x1088   :  { %11161 = vmatpush3.bf16.msra.mxu0 %v11160_v8 }
0x1089   :  { %11162 = vmatprep.subr.bf16.mxu0 %v12134_v15 }
0x108a   :  { %11188 = vmatpush3.bf16.msra.mxu1 %v11187_v59 }
0x108b   :  { %11189 = vmatprep.subr.bf16.mxu1 %v12134_v15 }
0x108c   :  { %11164 = vmatpush3.bf16.msra.mxu0 %v11163_v5 }
0x108d   :  { %11165 = vmatprep.subr.bf16.mxu0 %v12134_v15 }
0x108e   :  { %11191 = vmatpush3.bf16.msra.mxu1 %v11190_v31 }
0x108f   :  { %11192 = vmatprep.subr.bf16.mxu1 %v12134_v15 }
0x1090   :  { %11167 = vmatpush3.bf16.msra.mxu0 %v11166_v56 }
0x1091   :  { %11168 = vmatprep.subr.bf16.mxu0 %v12134_v15 }
0x1092   :  { %11194 = vmatpush3.bf16.msra.mxu1 %v11193_v49 }
0x1093   :  { %11195 = vmatprep.subr.bf16.mxu1 %v12134_v15 }
0x1094   :  { %11170 = vmatpush3.bf16.msra.mxu0 %v11169_v61 }
0x1095   :  { %11171 = vmatprep.subr.bf16.mxu0 %v12134_v15 }
0x1096   :  { %11197 = vmatpush3.bf16.msra.mxu1 %v11196_v3 }
0x1098   :  { %11173 = vmatpush3.bf16.msra.mxu0 %v11172_v2 }
0x112c   :  { %v8096_v4 = vpop.f32.mrb[46].mxu0  ;;  %v8167_v47 = vpop.f32.mrb[46].mxu1 }
0x112d   :  { %v11276_v25 = vadd.f32 %v8096_v4, %v15445_v40  ;;  %v8098_v32 = vpop.f32.mrb[47].mxu0  ;;  %v8169_v37 = vpop.f32.mrb[47].mxu1  ;;  %v11292_v42 = vadd.f32 %v8167_v47, %v15387_v23 }
0x112e   :  { %v11277_v34 = vadd.f32 %v8098_v32, %v15325_v22  ;;  %v11293_v55 = vadd.f32 %v8169_v37, %v15296_v46 }
0x112f   :  { %v8703_v48 = vmul.f32 -1.442695, %v11276_v25 }
0x1130   :  { %v8704_v43 = vmul.f32 -1.442695, %v11277_v34  ;;  %v8705_v38 = vmul.f32 -1.442695, %v11293_v55 }
0x1131   :  { %11949 = vpow2.f32 %v8703_v48 }
0x1132   :  { %11951 = vpow2.f32 %v8704_v43 }
0x1133   :  { %11953 = vpow2.f32 %v8705_v38 }
0x1134   :  { %11955 = vtanh.f32 %v11292_v42 }
0x113b   :  { %v11950_v57 = vpop.eup %11949 }
0x113c   :  { %v11952_v15 = vpop.eup %11951  ;;  %v8329_v16 = vadd.f32 1.0, %v11950_v57 }
0x113d   :  { %v8335_v26 = vadd.f32 1.0, %v11952_v15  ;;  %v11954_v40 = vpop.eup %11953 }
0x113e   :  { %11957 = vrcp.f32 %v8329_v16  ;;  %v11956_v20 = vpop.eup %11955  ;;  %v8342_v59 = vadd.f32 1.0, %v11954_v40 }
0x113f   :  { %11959 = vrcp.f32 %v8335_v26 }
0x1140   :  { %11961 = vrcp.f32 %v8342_v59 }
0x1148   :  { %v11958_v22 = vpop.eup %11957 }
0x1149   :  { %v11960_v62 = vpop.eup %11959  ;;  %v8346_v51 = vmul.f32 %v11958_v22, %v11956_v20 }
0x114a   :  { %v8345_v1 = vmul.f32 %v11960_v62, %v14707_v33  ;;  %v11962_v52 = vpop.eup %11961 }
0x114c   :  { %v8347_v46 = vadd.f32 %v8346_v51, %v8345_v1  ;;  %v8246_v53 = vpop.f32.mrb[48].mxu0  ;;  %v8317_v31 = vpop.f32.mrb[48].mxu1 }
0x114d   :  { %v11294_v23 = vadd.f32 %v8246_v53, %v15358_v7  ;;  %v8248_v35 = vpop.f32.mrb[49].mxu0  ;;  %v8319_v50 = vpop.f32.mrb[49].mxu1  ;;  %v11310_v45 = vadd.f32 %v8317_v31, %v14166_v39 }
0x114e   :  { %11963 = vtanh.f32 %v8347_v46  ;;  %v11295_v49 = vadd.f32 %v8248_v35, %v14152_v13  ;;  %v11311_v3 = vadd.f32 %v8319_v50, %v14161_v0 }
0x114f   :  { %v8706_v27 = vmul.f32 -1.442695, %v11294_v23 }
0x1150   :  { %v8707_v21 = vmul.f32 -1.442695, %v11295_v49  ;;  %v8708_v33 = vmul.f32 -1.442695, %v11311_v3 }
0x1151   :  { %11965 = vpow2.f32 %v8706_v27 }
0x1152   :  { %11967 = vpow2.f32 %v8707_v21 }
0x1153   :  { %11969 = vpow2.f32 %v8708_v33 }
0x1154   :  { %11971 = vtanh.f32 %v11310_v45 }
0x1158   :  { %v11964_v6 = vpop.eup %11963 }
0x1159   :  { %v8349_v11 = vmul.f32 %v11964_v6, %v11962_v52 }
0x115b   :  { %v11966_v28 = vpop.eup %11965  ;;  %v8374_v7 = vadd.f32 %v8349_v11, %v14715_v9 }
0x115c   :  { %v11968_v24 = vpop.eup %11967  ;;  %v8353_v18 = vadd.f32 1.0, %v11966_v28 }
0x115d   :  { %v8359_v13 = vadd.f32 1.0, %v11968_v24  ;;  %v8376_v30 = vmul.f32 0.125, %v8374_v7  ;;  %v11970_v12 = vpop.eup %11969 }
0x115e   :  { %11973 = vrcp.f32 %v8353_v18  ;;  %v11972_v0 = vpop.eup %11971  ;;  %v8366_v63 = vadd.f32 1.0, %v11970_v12 }
0x115f   :  { %11975 = vrcp.f32 %v8359_v13  ;;  %8812 = vmatmul.mubr.f32.vlgmr.msra.gmra.mrb[64].mxu1 %v8376_v30 }
0x1160   :  { %11977 = vrcp.f32 %v8366_v63 }
0x1168   :  { %v11974_v10 = vpop.eup %11973 }
0x1169   :  { %v11976_v60 = vpop.eup %11975  ;;  %v8370_v8 = vmul.f32 %v11974_v10, %v11972_v0 }
0x116a   :  { %v8369_v39 = vmul.f32 %v11976_v60, %v14736_v58  ;;  %v11978_v9 = vpop.eup %11977 }
0x116c   :  { %v8371_v14 = vadd.f32 %v8370_v8, %v8369_v39 }
0x116e   :  { %11979 = vtanh.f32 %v8371_v14 }
0x1178   :  { %v11980_v36 = vpop.eup %11979 }
0x1179   :  { %v8373_v5 = vmul.f32 %v11980_v36, %v11978_v9 }
0x117b   :  { %v8375_v17 = vadd.f32 %v8373_v5, %v14754_v19 }
0x117d   :  { %v8393_v56 = vmul.f32 0.125, %v8375_v17 }
0x117f   :  { %8777 = vmatmul.mubr.f32.vlgmr.msra.gmra.mrb[64].mxu0 %v8393_v56 }
0x1232   :  { %v8546_v44 = vpop.f32.mrb[64].mxu1 }
0x1233   :  { %v8813_v54 = vpop.f32.mrb[65].mxu1 }
0x1252   :  { %v8476_v61 = vpop.f32.mrb[64].mxu0 }
0x1253   :  { %v8547_v29 = vadd.f32 %v8546_v44, %v8476_v61  ;;  %v8778_v2 = vpop.f32.mrb[65].mxu0 }
0x1255   :  { %v8557_v58 = vadd.f32 %v8709_v41, %v8547_v29 }
0x1257   :  { %8558 = vst [vmem:[%s14852_s12] sm:$0xff] %v8557_v58 }
0x1258   :  { %8563 = vsyncpa [#allocation5], 1 }
0x1259   :  { %8564 = vsyncpa [#allocation7], 1 }
0x125a   :  { %8565 = vsyncpa [#allocation10], 1 }
0x125b   :  { %8566 = vsyncpa [#allocation13], 1 }

</bundles_post_ra>
